<compile_context>
chip_gen: v6e
topology: v6e:2x2x1
jax: 0.10.0
libtpu: 0.0.40
codegen_flags: <defaults>
</compile_context>

<pallas_src>
import numpy as np
import jax
import jax.numpy as jnp
from jax.experimental import pallas as pl
from jax.experimental.pallas import tpu as pltpu


# ----------------------------------------------------------------------------
# Bicubic resize matrices (PyTorch 'bicubic', align_corners=False, a = -0.75)
# ----------------------------------------------------------------------------
def _cubic_weight(t, a=-0.75):
    t = np.abs(t)
    return np.where(
        t <= 1.0,
        ((a + 2.0) * t - (a + 3.0)) * t * t + 1.0,
        np.where(t < 2.0, (((t - 5.0) * t + 8.0) * t - 4.0) * a, 0.0),
    )


def bicubic_resize_matrix(in_size, out_size):
    """A (out_size, in_size) such that y = A @ x reproduces torch bicubic 1-D resize."""
    scale = in_size / out_size
    i = np.arange(out_size, dtype=np.float64)
    src = (i + 0.5) * scale - 0.5
    x0 = np.floor(src).astype(np.int64)
    t = src - x0
    A = np.zeros((out_size, in_size), dtype=np.float64)
    for k in range(-1, 3):
        w = _cubic_weight(t - k)
        idx = np.clip(x0 + k, 0, in_size - 1)  # clamped borders, like PyTorch
        np.add.at(A, (np.arange(out_size), idx), w)
    return A


def padded_resize_matrix(in_size, out_size, pad, extra_rows=0):
    """Resize matrix with `pad` zero rows on both sides (+ extra zero rows at the end)."""
    A = bicubic_resize_matrix(in_size, out_size)
    out = np.zeros((out_size + 2 * pad + extra_rows, in_size), np.float64)
    out[pad:pad + out_size, :] = A
    return out


# ----------------------------------------------------------------------------
# Fused SRCNN kernel (one grid step == one image)
# ----------------------------------------------------------------------------
def _make_srcnn_kernel(C, C1, C2, K1, K3, Wp1, HW1, Lp1, Lc, p3):
    CO = p3 * Wp1 + p3  # flat offset of the conv2 slab inside the conv3 canvas

    def kernel(x_ref, up_ref, w1t_ref, b1_ref, w2t_ref, b2_ref, w3r_ref, b3_ref,
               mask_ref, o_ref, xpad1_s, xim1_s, canvas_s, p3_s):
        # x_ref : (1, C, Hin*Win) f32        up_ref : (Hin*Win, Lp1) f32
        # w1t   : (C1, K1*K1*C) bf16         b1 : (C1, 1) f32
        # w2t   : (C2, C1) bf16              b2 : (C2, 1) f32
        # w3r   : (K3*K3*C, C2) f32          b3 : (C, 1)  f32
        # mask  : (1, HW1) f32 (1 on valid wide-row columns, 0 on garbage columns)
        # o_ref : (1, C, HW1) f32 (lane-dense wide output, sliced to Wout in XLA)

        # ---- 1) bicubic x2 upsample with conv1 zero padding folded in (one matmul) ----
        # Produces the padded conv1 input already flattened row-major (wide-row trick).
        xpad1_s[...] = jnp.dot(x_ref[0], up_ref[...],
                               preferred_element_type=jnp.float32)        # (C, Lp1)

        # ---- 2) conv1 im2col into VMEM scratch (each tap temp dies immediately) ----
        for kh in range(K1):
            for kw in range(K1):
                t = kh * K1 + kw
                off = kh * Wp1 + kw
                xim1_s[t * C:(t + 1) * C, :] = xpad1_s[:, off:off + HW1]

        # ---- 3) conv1 (9x9) + bias + ReLU; fused bf16 cast (no long f32 live range) ----
        a1 = jnp.maximum(
            jnp.dot(w1t_ref[...], xim1_s[...].astype(jnp.bfloat16),
                    preferred_element_type=jnp.float32) + b1_ref[...],
            0.0).astype(jnp.bfloat16)                                     # (C1, HW1)

        # ---- 4) conv2 (1x1) + bias + ReLU; zero the garbage wide-row columns ----
        a2 = jnp.maximum(
            jnp.dot(w2t_ref[...], a1, preferred_element_type=jnp.float32)
            + b2_ref[...], 0.0) * mask_ref[...]                           # (C2, HW1) f32

        # ---- 5) place conv2 output inside a zero canvas == conv3 zero-padded input ----
        canvas_s[...] = jnp.zeros_like(canvas_s)
        canvas_s[:, CO:CO + HW1] = a2

        # ---- 6) conv3 (5x5, f32): contract channels first, then shift-add 25 taps ----
        p3_s[...] = jnp.dot(w3r_ref[...], canvas_s[...],
                            preferred_element_type=jnp.float32)           # (K3*K3*C, Lc)
        y = jnp.zeros((C, HW1), jnp.float32)
        for kh in range(K3):
            for kw in range(K3):
                t = kh * K3 + kw
                off = kh * Wp1 + kw
                y = y + p3_s[t * C:(t + 1) * C, off:off + HW1]
        o_ref[0] = (y + b3_ref[...]).astype(o_ref.dtype)

    return kernel


# ----------------------------------------------------------------------------
# SRCNN forward (single fused pallas_call)
# ----------------------------------------------------------------------------
def srcnn_forward(x_nchw, params, upscale_factor=2.0):
    N, C, Hin, Win = x_nchw.shape
    Hout, Wout = int(Hin * upscale_factor), int(Win * upscale_factor)

    K1, K3 = 9, 5
    p1, p3 = (K1 - 1) // 2, (K3 - 1) // 2
    C1 = params["w1"].shape[-1]
    C2 = params["w2"].shape[-1]

    Wp1 = Wout + 2 * p1               # common wide-row width for all stages
    Hp1e = Hout + 2 * p1 + 1          # conv1 canvas rows (+1 extra zero row for in-bounds taps)
    Lp1 = Hp1e * Wp1
    HW1 = Hout * Wp1                  # wide output length per plane
    Hc3 = Hout + 2 * p3 + 1           # conv3 canvas rows (+1 extra zero row)
    Lc = Hc3 * Wp1

    # Bicubic + conv1 padding folded into one Kronecker matrix -> the kernel gets the
    # padded, row-major-flattened conv1 input from a single matmul (no in-kernel reshape).
    Ah = padded_resize_matrix(Hin, Hout, p1, extra_rows=1)        # (Hp1e, Hin)
    Aw = padded_resize_matrix(Win, Wout, p1, extra_rows=0)        # (Wp1,  Win)
    upmat = jnp.asarray(np.kron(Ah, Aw).T.astype(np.float32))     # (Hin*Win, Lp1)

    # Weights. Tap order (kh, kw, cin) matches the in-kernel im2col / shift-add order.
    w1t = params["w1"].reshape(K1 * K1 * C, C1).T.astype(jnp.bfloat16)    # (C1, 81*C)
    b1c = params["b1"].reshape(C1, 1).astype(jnp.float32)
    w2t = params["w2"].reshape(C1, C2).T.astype(jnp.bfloat16)             # (C2, C1)
    b2c = params["b2"].reshape(C2, 1).astype(jnp.float32)
    w3r = jnp.transpose(params["w3"], (0, 1, 3, 2)).reshape(K3 * K3 * C, C2) \
             .astype(jnp.float32)                                         # (25*C, C2)
    b3c = params["b3"].reshape(C, 1).astype(jnp.float32)

    # Lane mask zeroing the garbage wide-row columns (w >= Wout).
    colmask = jnp.asarray(
        (np.arange(HW1) % Wp1 < Wout).astype(np.float32).reshape(1, HW1))

    xflat = x_nchw.reshape(N, C, Hin * Win)

    kernel = _make_srcnn_kernel(C, C1, C2, K1, K3, Wp1, HW1, Lp1, Lc, p3)

    flops = 2 * N * (C * Hin * Win * Lp1 + K1 * K1 * C * C1 * HW1
                     + C1 * C2 * HW1 + K3 * K3 * C * C2 * Lc)
    bytes_accessed = int(4 * (N * C * Hin * Win + upmat.size + N * C * HW1)
                         + 2 * (w1t.size + w2t.size)
                         + 4 * (w3r.size + C1 + C2 + C + colmask.size))

    y_wide = pl.pallas_call(
        kernel,
        out_shape=jax.ShapeDtypeStruct((N, C, HW1), jnp.float32),
        grid_spec=pltpu.PrefetchScalarGridSpec(
            num_scalar_prefetch=0,
            grid=(N,),
            in_specs=[
                pl.BlockSpec((1, C, Hin * Win), lambda n: (n, 0, 0)),
                pl.BlockSpec((Hin * Win, Lp1), lambda n: (0, 0)),
                pl.BlockSpec((C1, K1 * K1 * C), lambda n: (0, 0)),
                pl.BlockSpec((C1, 1), lambda n: (0, 0)),
                pl.BlockSpec((C2, C1), lambda n: (0, 0)),
                pl.BlockSpec((C2, 1), lambda n: (0, 0)),
                pl.BlockSpec((K3 * K3 * C, C2), lambda n: (0, 0)),
                pl.BlockSpec((C, 1), lambda n: (0, 0)),
                pl.BlockSpec((1, HW1), lambda n: (0, 0)),
            ],
            out_specs=pl.BlockSpec((1, C, HW1), lambda n: (n, 0, 0)),
            scratch_shapes=[
                pltpu.VMEM((C, Lp1), jnp.float32),             # padded upsampled plane
                pltpu.VMEM((K1 * K1 * C, HW1), jnp.float32),   # conv1 im2col
                pltpu.VMEM((C2, Lc), jnp.float32),             # conv3 zero-padded canvas
                pltpu.VMEM((K3 * K3 * C, Lc), jnp.float32),    # conv3 channel-contracted taps
            ],
        ),
        compiler_params=pltpu.CompilerParams(
            dimension_semantics=("parallel",),
            vmem_limit_bytes=32 * 1024 * 1024,
        ),
        cost_estimate=pl.CostEstimate(flops=flops, transcendentals=0,
                                      bytes_accessed=bytes_accessed),
    )(xflat, upmat, w1t, b1c, w2t, b2c, w3r, b3c, colmask)

    # Tiny XLA epilogue: drop the garbage wide-row columns.
    return y_wide.reshape(N, C, Hout, Wp1)[:, :, :, :Wout]


# ----------------------------------------------------------------------------
# Pure-JAX f32 reference for validation
# ----------------------------------------------------------------------------
def _conv_ref(x_nhwc, w, b, relu):
    out = jax.lax.conv_general_dilated(
        x_nhwc, w, window_strides=(1, 1), padding="SAME",
        dimension_numbers=("NHWC", "HWIO", "NHWC"))
    out = out + b
    return jnp.maximum(out, 0.0) if relu else out


def srcnn_reference(x_nchw, params, upscale_factor=2.0):
    N, C, Hin, Win = x_nchw.shape
    Hout, Wout = int(Hin * upscale_factor), int(Win * upscale_factor)
    ah = jnp.asarray(bicubic_resize_matrix(Hin, Hout).astype(np.float32))
    aw = jnp.asarray(bicubic_resize_matrix(Win, Wout).astype(np.float32))
    x = jnp.einsum("oi,nciw->ncow", ah, x_nchw)
    x = jnp.einsum("pw,ncow->ncop", aw, x)
    x = x.transpose(0, 2, 3, 1)
    x = _conv_ref(x, params["w1"], params["b1"], True)
    x = _conv_ref(x, params["w2"], params["b2"], True)
    x = _conv_ref(x, params["w3"], params["b3"], False)
    return x.transpose(0, 3, 1, 2)


# ----------------------------------------------------------------------------
# Deterministic parameter init (mimics PyTorch Conv2d default uniform bounds)
# ----------------------------------------------------------------------------
def _conv_params(key, k, cin, cout):
    wk, bk = jax.random.split(key)
    bound = 1.0 / np.sqrt(cin * k * k)
    w = jax.random.uniform(wk, (k, k, cin, cout), jnp.float32, -bound, bound)
    b = jax.random.uniform(bk, (cout,), jnp.float32, -bound, bound)
    return w, b


if __name__ == "__main__":
    img_channels = 1
    key = jax.random.PRNGKey(0)
    kx, k1, k2, k3 = jax.random.split(key, 4)

    x = jax.random.normal(kx, (2, img_channels, 16, 16), jnp.float32)

    w1, b1 = _conv_params(k1, 9, img_channels, 64)
    w2, b2 = _conv_params(k2, 1, 64, 32)
    w3, b3 = _conv_params(k3, 5, 32, img_channels)
    params = {"w1": w1, "b1": b1, "w2": w2, "b2": b2, "w3": w3, "b3": b3}

    fwd = jax.jit(srcnn_forward)
    out = jax.block_until_ready(fwd(x, params))
    ref = jax.block_until_ready(srcnn_reference(x, params))

    assert out.shape == (2, img_channels, 32, 32), out.shape
    max_err = float(jnp.max(jnp.abs(out - ref)))
    assert max_err < 5e-2, f"max abs error vs reference = {max_err}"

    print("KERNEL_OK")
</pallas_src>

<mosaic_0001>
module attributes {stable_mosaic.version = 11 : i64} {
  func.func @kernel(%arg0: i32, %arg1: memref<1x1x256xf32, #tpu.memory_space<vmem>>, %arg2: memref<256x1640xf32, #tpu.memory_space<vmem>>, %arg3: memref<64x81xbf16, #tpu.memory_space<vmem>>, %arg4: memref<64x1xf32, #tpu.memory_space<vmem>>, %arg5: memref<32x64xbf16, #tpu.memory_space<vmem>>, %arg6: memref<32x1xf32, #tpu.memory_space<vmem>>, %arg7: memref<25x32xf32, #tpu.memory_space<vmem>>, %arg8: memref<1x1xf32, #tpu.memory_space<vmem>>, %arg9: memref<1x1280xf32, #tpu.memory_space<vmem>>, %arg10: memref<1x1x1280xf32, #tpu.memory_space<vmem>>, %arg11: memref<1x1640xf32, #tpu.memory_space<vmem>>, %arg12: memref<81x1280xf32, #tpu.memory_space<vmem>>, %arg13: memref<32x1480xf32, #tpu.memory_space<vmem>>, %arg14: memref<25x1480xf32, #tpu.memory_space<vmem>>) attributes {dimension_semantics = [#tpu.dimension_semantics<parallel>], iteration_bounds = array<i64: 2>, scalar_prefetch = 0 : i64, scratch_operands = 4 : i64, tpu.core_type = #tpu.core_type<tc>, window_params = [{transform_indices = @transform_0, window_bounds = array<i64: 1, 1, 256>}, {pipeline_mode = #tpu.pipeline_mode<synchronous>, transform_indices = @transform_1, window_bounds = array<i64: 256, 1640>}, {pipeline_mode = #tpu.pipeline_mode<synchronous>, transform_indices = @transform_2, window_bounds = array<i64: 64, 81>}, {pipeline_mode = #tpu.pipeline_mode<synchronous>, transform_indices = @transform_3, window_bounds = array<i64: 64, 1>}, {pipeline_mode = #tpu.pipeline_mode<synchronous>, transform_indices = @transform_4, window_bounds = array<i64: 32, 64>}, {pipeline_mode = #tpu.pipeline_mode<synchronous>, transform_indices = @transform_5, window_bounds = array<i64: 32, 1>}, {pipeline_mode = #tpu.pipeline_mode<synchronous>, transform_indices = @transform_6, window_bounds = array<i64: 25, 32>}, {pipeline_mode = #tpu.pipeline_mode<synchronous>, transform_indices = @transform_7, window_bounds = array<i64: 1, 1>}, {pipeline_mode = #tpu.pipeline_mode<synchronous>, transform_indices = @transform_8, window_bounds = array<i64: 1, 1280>}, {transform_indices = @transform_9, window_bounds = array<i64: 1, 1, 1280>}]} {
    %c0 = arith.constant 0 : index
    %c0_0 = arith.constant 0 : index
    %c0_1 = arith.constant 0 : index
    %0 = vector.load %arg1[%c0, %c0_0, %c0_1] : memref<1x1x256xf32, #tpu.memory_space<vmem>>, vector<1x1x256xf32>
    %1 = vector.shape_cast %0 : vector<1x1x256xf32> to vector<1x256xf32>
    %c0_2 = arith.constant 0 : index
    %c0_3 = arith.constant 0 : index
    %2 = vector.load %arg2[%c0_2, %c0_3] : memref<256x1640xf32, #tpu.memory_space<vmem>>, vector<256x1640xf32>
    %cst = arith.constant dense<0.000000e+00> : vector<1x1640xf32>
    %3 = tpu.matmul %1, %2, %cst {dimension_numbers = #tpu.dot_dimension_numbers<[1], [0], [0], [1], [0, 0, 1, 1], [], []>} : vector<1x256xf32>, vector<256x1640xf32>, vector<1x1640xf32> -> vector<1x1640xf32>
    %c0_4 = arith.constant 0 : index
    %c0_5 = arith.constant 0 : index
    %4 = vector.load %arg11[%c0_4, %c0_5] : memref<1x1640xf32, #tpu.memory_space<vmem>>, vector<1x1640xf32>
    tpu.vector_store %arg11[%c0_4, %c0_5], %3 {strides = array<i32>} : memref<1x1640xf32, #tpu.memory_space<vmem>>, vector<1x1640xf32>,
    %c0_6 = arith.constant 0 : index
    %c0_7 = arith.constant 0 : index
    %5 = vector.load %arg11[%c0_6, %c0_7] : memref<1x1640xf32, #tpu.memory_space<vmem>>, vector<1x1280xf32>
    %c0_8 = arith.constant 0 : index
    %c0_9 = arith.constant 0 : index
    %6 = vector.load %arg12[%c0_8, %c0_9] : memref<81x1280xf32, #tpu.memory_space<vmem>>, vector<1x1280xf32>
    tpu.vector_store %arg12[%c0_8, %c0_9], %5 {strides = array<i32>} : memref<81x1280xf32, #tpu.memory_space<vmem>>, vector<1x1280xf32>,
    %c0_10 = arith.constant 0 : index
    %c1 = arith.constant 1 : index
    %7 = vector.load %arg11[%c0_10, %c1] : memref<1x1640xf32, #tpu.memory_space<vmem>>, vector<1x1280xf32>
    %c1_11 = arith.constant 1 : index
    %c0_12 = arith.constant 0 : index
    %8 = vector.load %arg12[%c1_11, %c0_12] : memref<81x1280xf32, #tpu.memory_space<vmem>>, vector<1x1280xf32>
    tpu.vector_store %arg12[%c1_11, %c0_12], %7 {strides = array<i32>} : memref<81x1280xf32, #tpu.memory_space<vmem>>, vector<1x1280xf32>,
    %c0_13 = arith.constant 0 : index
    %c2 = arith.constant 2 : index
    %9 = vector.load %arg11[%c0_13, %c2] : memref<1x1640xf32, #tpu.memory_space<vmem>>, vector<1x1280xf32>
    %c2_14 = arith.constant 2 : index
    %c0_15 = arith.constant 0 : index
    %10 = vector.load %arg12[%c2_14, %c0_15] : memref<81x1280xf32, #tpu.memory_space<vmem>>, vector<1x1280xf32>
    tpu.vector_store %arg12[%c2_14, %c0_15], %9 {strides = array<i32>} : memref<81x1280xf32, #tpu.memory_space<vmem>>, vector<1x1280xf32>,
    %c0_16 = arith.constant 0 : index
    %c3 = arith.constant 3 : index
    %11 = vector.load %arg11[%c0_16, %c3] : memref<1x1640xf32, #tpu.memory_space<vmem>>, vector<1x1280xf32>
    %c3_17 = arith.constant 3 : index
    %c0_18 = arith.constant 0 : index
    %12 = vector.load %arg12[%c3_17, %c0_18] : memref<81x1280xf32, #tpu.memory_space<vmem>>, vector<1x1280xf32>
    tpu.vector_store %arg12[%c3_17, %c0_18], %11 {strides = array<i32>} : memref<81x1280xf32, #tpu.memory_space<vmem>>, vector<1x1280xf32>,
    %c0_19 = arith.constant 0 : index
    %c4 = arith.constant 4 : index
    %13 = vector.load %arg11[%c0_19, %c4] : memref<1x1640xf32, #tpu.memory_space<vmem>>, vector<1x1280xf32>
    %c4_20 = arith.constant 4 : index
    %c0_21 = arith.constant 0 : index
    %14 = vector.load %arg12[%c4_20, %c0_21] : memref<81x1280xf32, #tpu.memory_space<vmem>>, vector<1x1280xf32>
    tpu.vector_store %arg12[%c4_20, %c0_21], %13 {strides = array<i32>} : memref<81x1280xf32, #tpu.memory_space<vmem>>, vector<1x1280xf32>,
    %c0_22 = arith.constant 0 : index
    %c5 = arith.constant 5 : index
    %15 = vector.load %arg11[%c0_22, %c5] : memref<1x1640xf32, #tpu.memory_space<vmem>>, vector<1x1280xf32>
    %c5_23 = arith.constant 5 : index
    %c0_24 = arith.constant 0 : index
    %16 = vector.load %arg12[%c5_23, %c0_24] : memref<81x1280xf32, #tpu.memory_space<vmem>>, vector<1x1280xf32>
    tpu.vector_store %arg12[%c5_23, %c0_24], %15 {strides = array<i32>} : memref<81x1280xf32, #tpu.memory_space<vmem>>, vector<1x1280xf32>,
    %c0_25 = arith.constant 0 : index
    %c6 = arith.constant 6 : index
    %17 = vector.load %arg11[%c0_25, %c6] : memref<1x1640xf32, #tpu.memory_space<vmem>>, vector<1x1280xf32>
    %c6_26 = arith.constant 6 : index
    %c0_27 = arith.constant 0 : index
    %18 = vector.load %arg12[%c6_26, %c0_27] : memref<81x1280xf32, #tpu.memory_space<vmem>>, vector<1x1280xf32>
    tpu.vector_store %arg12[%c6_26, %c0_27], %17 {strides = array<i32>} : memref<81x1280xf32, #tpu.memory_space<vmem>>, vector<1x1280xf32>,
    %c0_28 = arith.constant 0 : index
    %c7 = arith.constant 7 : index
    %19 = vector.load %arg11[%c0_28, %c7] : memref<1x1640xf32, #tpu.memory_space<vmem>>, vector<1x1280xf32>
    %c7_29 = arith.constant 7 : index
    %c0_30 = arith.constant 0 : index
    %20 = vector.load %arg12[%c7_29, %c0_30] : memref<81x1280xf32, #tpu.memory_space<vmem>>, vector<1x1280xf32>
    tpu.vector_store %arg12[%c7_29, %c0_30], %19 {strides = array<i32>} : memref<81x1280xf32, #tpu.memory_space<vmem>>, vector<1x1280xf32>,
    %c0_31 = arith.constant 0 : index
    %c8 = arith.constant 8 : index
    %21 = vector.load %arg11[%c0_31, %c8] : memref<1x1640xf32, #tpu.memory_space<vmem>>, vector<1x1280xf32>
    %c8_32 = arith.constant 8 : index
    %c0_33 = arith.constant 0 : index
    %22 = vector.load %arg12[%c8_32, %c0_33] : memref<81x1280xf32, #tpu.memory_space<vmem>>, vector<1x1280xf32>
    tpu.vector_store %arg12[%c8_32, %c0_33], %21 {strides = array<i32>} : memref<81x1280xf32, #tpu.memory_space<vmem>>, vector<1x1280xf32>,
    %c0_34 = arith.constant 0 : index
    %c40 = arith.constant 40 : index
    %23 = vector.load %arg11[%c0_34, %c40] : memref<1x1640xf32, #tpu.memory_space<vmem>>, vector<1x1280xf32>
    %c9 = arith.constant 9 : index
    %c0_35 = arith.constant 0 : index
    %24 = vector.load %arg12[%c9, %c0_35] : memref<81x1280xf32, #tpu.memory_space<vmem>>, vector<1x1280xf32>
    tpu.vector_store %arg12[%c9, %c0_35], %23 {strides = array<i32>} : memref<81x1280xf32, #tpu.memory_space<vmem>>, vector<1x1280xf32>,
    %c0_36 = arith.constant 0 : index
    %c41 = arith.constant 41 : index
    %25 = vector.load %arg11[%c0_36, %c41] : memref<1x1640xf32, #tpu.memory_space<vmem>>, vector<1x1280xf32>
    %c10 = arith.constant 10 : index
    %c0_37 = arith.constant 0 : index
    %26 = vector.load %arg12[%c10, %c0_37] : memref<81x1280xf32, #tpu.memory_space<vmem>>, vector<1x1280xf32>
    tpu.vector_store %arg12[%c10, %c0_37], %25 {strides = array<i32>} : memref<81x1280xf32, #tpu.memory_space<vmem>>, vector<1x1280xf32>,
    %c0_38 = arith.constant 0 : index
    %c42 = arith.constant 42 : index
    %27 = vector.load %arg11[%c0_38, %c42] : memref<1x1640xf32, #tpu.memory_space<vmem>>, vector<1x1280xf32>
    %c11 = arith.constant 11 : index
    %c0_39 = arith.constant 0 : index
    %28 = vector.load %arg12[%c11, %c0_39] : memref<81x1280xf32, #tpu.memory_space<vmem>>, vector<1x1280xf32>
    tpu.vector_store %arg12[%c11, %c0_39], %27 {strides = array<i32>} : memref<81x1280xf32, #tpu.memory_space<vmem>>, vector<1x1280xf32>,
    %c0_40 = arith.constant 0 : index
    %c43 = arith.constant 43 : index
    %29 = vector.load %arg11[%c0_40, %c43] : memref<1x1640xf32, #tpu.memory_space<vmem>>, vector<1x1280xf32>
    %c12 = arith.constant 12 : index
    %c0_41 = arith.constant 0 : index
    %30 = vector.load %arg12[%c12, %c0_41] : memref<81x1280xf32, #tpu.memory_space<vmem>>, vector<1x1280xf32>
    tpu.vector_store %arg12[%c12, %c0_41], %29 {strides = array<i32>} : memref<81x1280xf32, #tpu.memory_space<vmem>>, vector<1x1280xf32>,
    %c0_42 = arith.constant 0 : index
    %c44 = arith.constant 44 : index
    %31 = vector.load %arg11[%c0_42, %c44] : memref<1x1640xf32, #tpu.memory_space<vmem>>, vector<1x1280xf32>
    %c13 = arith.constant 13 : index
    %c0_43 = arith.constant 0 : index
    %32 = vector.load %arg12[%c13, %c0_43] : memref<81x1280xf32, #tpu.memory_space<vmem>>, vector<1x1280xf32>
    tpu.vector_store %arg12[%c13, %c0_43], %31 {strides = array<i32>} : memref<81x1280xf32, #tpu.memory_space<vmem>>, vector<1x1280xf32>,
    %c0_44 = arith.constant 0 : index
    %c45 = arith.constant 45 : index
    %33 = vector.load %arg11[%c0_44, %c45] : memref<1x1640xf32, #tpu.memory_space<vmem>>, vector<1x1280xf32>
    %c14 = arith.constant 14 : index
    %c0_45 = arith.constant 0 : index
    %34 = vector.load %arg12[%c14, %c0_45] : memref<81x1280xf32, #tpu.memory_space<vmem>>, vector<1x1280xf32>
    tpu.vector_store %arg12[%c14, %c0_45], %33 {strides = array<i32>} : memref<81x1280xf32, #tpu.memory_space<vmem>>, vector<1x1280xf32>,
    %c0_46 = arith.constant 0 : index
    %c46 = arith.constant 46 : index
    %35 = vector.load %arg11[%c0_46, %c46] : memref<1x1640xf32, #tpu.memory_space<vmem>>, vector<1x1280xf32>
    %c15 = arith.constant 15 : index
    %c0_47 = arith.constant 0 : index
    %36 = vector.load %arg12[%c15, %c0_47] : memref<81x1280xf32, #tpu.memory_space<vmem>>, vector<1x1280xf32>
    tpu.vector_store %arg12[%c15, %c0_47], %35 {strides = array<i32>} : memref<81x1280xf32, #tpu.memory_space<vmem>>, vector<1x1280xf32>,
    %c0_48 = arith.constant 0 : index
    %c47 = arith.constant 47 : index
    %37 = vector.load %arg11[%c0_48, %c47] : memref<1x1640xf32, #tpu.memory_space<vmem>>, vector<1x1280xf32>
    %c16 = arith.constant 16 : index
    %c0_49 = arith.constant 0 : index
    %38 = vector.load %arg12[%c16, %c0_49] : memref<81x1280xf32, #tpu.memory_space<vmem>>, vector<1x1280xf32>
    tpu.vector_store %arg12[%c16, %c0_49], %37 {strides = array<i32>} : memref<81x1280xf32, #tpu.memory_space<vmem>>, vector<1x1280xf32>,
    %c0_50 = arith.constant 0 : index
    %c48 = arith.constant 48 : index
    %39 = vector.load %arg11[%c0_50, %c48] : memref<1x1640xf32, #tpu.memory_space<vmem>>, vector<1x1280xf32>
    %c17 = arith.constant 17 : index
    %c0_51 = arith.constant 0 : index
    %40 = vector.load %arg12[%c17, %c0_51] : memref<81x1280xf32, #tpu.memory_space<vmem>>, vector<1x1280xf32>
    tpu.vector_store %arg12[%c17, %c0_51], %39 {strides = array<i32>} : memref<81x1280xf32, #tpu.memory_space<vmem>>, vector<1x1280xf32>,
    %c0_52 = arith.constant 0 : index
    %c80 = arith.constant 80 : index
    %41 = vector.load %arg11[%c0_52, %c80] : memref<1x1640xf32, #tpu.memory_space<vmem>>, vector<1x1280xf32>
    %c18 = arith.constant 18 : index
    %c0_53 = arith.constant 0 : index
    %42 = vector.load %arg12[%c18, %c0_53] : memref<81x1280xf32, #tpu.memory_space<vmem>>, vector<1x1280xf32>
    tpu.vector_store %arg12[%c18, %c0_53], %41 {strides = array<i32>} : memref<81x1280xf32, #tpu.memory_space<vmem>>, vector<1x1280xf32>,
    %c0_54 = arith.constant 0 : index
    %c81 = arith.constant 81 : index
    %43 = vector.load %arg11[%c0_54, %c81] : memref<1x1640xf32, #tpu.memory_space<vmem>>, vector<1x1280xf32>
    %c19 = arith.constant 19 : index
    %c0_55 = arith.constant 0 : index
    %44 = vector.load %arg12[%c19, %c0_55] : memref<81x1280xf32, #tpu.memory_space<vmem>>, vector<1x1280xf32>
    tpu.vector_store %arg12[%c19, %c0_55], %43 {strides = array<i32>} : memref<81x1280xf32, #tpu.memory_space<vmem>>, vector<1x1280xf32>,
    %c0_56 = arith.constant 0 : index
    %c82 = arith.constant 82 : index
    %45 = vector.load %arg11[%c0_56, %c82] : memref<1x1640xf32, #tpu.memory_space<vmem>>, vector<1x1280xf32>
    %c20 = arith.constant 20 : index
    %c0_57 = arith.constant 0 : index
    %46 = vector.load %arg12[%c20, %c0_57] : memref<81x1280xf32, #tpu.memory_space<vmem>>, vector<1x1280xf32>
    tpu.vector_store %arg12[%c20, %c0_57], %45 {strides = array<i32>} : memref<81x1280xf32, #tpu.memory_space<vmem>>, vector<1x1280xf32>,
    %c0_58 = arith.constant 0 : index
    %c83 = arith.constant 83 : index
    %47 = vector.load %arg11[%c0_58, %c83] : memref<1x1640xf32, #tpu.memory_space<vmem>>, vector<1x1280xf32>
    %c21 = arith.constant 21 : index
    %c0_59 = arith.constant 0 : index
    %48 = vector.load %arg12[%c21, %c0_59] : memref<81x1280xf32, #tpu.memory_space<vmem>>, vector<1x1280xf32>
    tpu.vector_store %arg12[%c21, %c0_59], %47 {strides = array<i32>} : memref<81x1280xf32, #tpu.memory_space<vmem>>, vector<1x1280xf32>,
    %c0_60 = arith.constant 0 : index
    %c84 = arith.constant 84 : index
    %49 = vector.load %arg11[%c0_60, %c84] : memref<1x1640xf32, #tpu.memory_space<vmem>>, vector<1x1280xf32>
    %c22 = arith.constant 22 : index
    %c0_61 = arith.constant 0 : index
    %50 = vector.load %arg12[%c22, %c0_61] : memref<81x1280xf32, #tpu.memory_space<vmem>>, vector<1x1280xf32>
    tpu.vector_store %arg12[%c22, %c0_61], %49 {strides = array<i32>} : memref<81x1280xf32, #tpu.memory_space<vmem>>, vector<1x1280xf32>,
    %c0_62 = arith.constant 0 : index
    %c85 = arith.constant 85 : index
    %51 = vector.load %arg11[%c0_62, %c85] : memref<1x1640xf32, #tpu.memory_space<vmem>>, vector<1x1280xf32>
    %c23 = arith.constant 23 : index
    %c0_63 = arith.constant 0 : index
    %52 = vector.load %arg12[%c23, %c0_63] : memref<81x1280xf32, #tpu.memory_space<vmem>>, vector<1x1280xf32>
    tpu.vector_store %arg12[%c23, %c0_63], %51 {strides = array<i32>} : memref<81x1280xf32, #tpu.memory_space<vmem>>, vector<1x1280xf32>,
    %c0_64 = arith.constant 0 : index
    %c86 = arith.constant 86 : index
    %53 = vector.load %arg11[%c0_64, %c86] : memref<1x1640xf32, #tpu.memory_space<vmem>>, vector<1x1280xf32>
    %c24 = arith.constant 24 : index
    %c0_65 = arith.constant 0 : index
    %54 = vector.load %arg12[%c24, %c0_65] : memref<81x1280xf32, #tpu.memory_space<vmem>>, vector<1x1280xf32>
    tpu.vector_store %arg12[%c24, %c0_65], %53 {strides = array<i32>} : memref<81x1280xf32, #tpu.memory_space<vmem>>, vector<1x1280xf32>,
    %c0_66 = arith.constant 0 : index
    %c87 = arith.constant 87 : index
    %55 = vector.load %arg11[%c0_66, %c87] : memref<1x1640xf32, #tpu.memory_space<vmem>>, vector<1x1280xf32>
    %c25 = arith.constant 25 : index
    %c0_67 = arith.constant 0 : index
    %56 = vector.load %arg12[%c25, %c0_67] : memref<81x1280xf32, #tpu.memory_space<vmem>>, vector<1x1280xf32>
    tpu.vector_store %arg12[%c25, %c0_67], %55 {strides = array<i32>} : memref<81x1280xf32, #tpu.memory_space<vmem>>, vector<1x1280xf32>,
    %c0_68 = arith.constant 0 : index
    %c88 = arith.constant 88 : index
    %57 = vector.load %arg11[%c0_68, %c88] : memref<1x1640xf32, #tpu.memory_space<vmem>>, vector<1x1280xf32>
    %c26 = arith.constant 26 : index
    %c0_69 = arith.constant 0 : index
    %58 = vector.load %arg12[%c26, %c0_69] : memref<81x1280xf32, #tpu.memory_space<vmem>>, vector<1x1280xf32>
    tpu.vector_store %arg12[%c26, %c0_69], %57 {strides = array<i32>} : memref<81x1280xf32, #tpu.memory_space<vmem>>, vector<1x1280xf32>,
    %c0_70 = arith.constant 0 : index
    %c120 = arith.constant 120 : index
    %59 = vector.load %arg11[%c0_70, %c120] : memref<1x1640xf32, #tpu.memory_space<vmem>>, vector<1x1280xf32>
    %c27 = arith.constant 27 : index
    %c0_71 = arith.constant 0 : index
    %60 = vector.load %arg12[%c27, %c0_71] : memref<81x1280xf32, #tpu.memory_space<vmem>>, vector<1x1280xf32>
    tpu.vector_store %arg12[%c27, %c0_71], %59 {strides = array<i32>} : memref<81x1280xf32, #tpu.memory_space<vmem>>, vector<1x1280xf32>,
    %c0_72 = arith.constant 0 : index
    %c121 = arith.constant 121 : index
    %61 = vector.load %arg11[%c0_72, %c121] : memref<1x1640xf32, #tpu.memory_space<vmem>>, vector<1x1280xf32>
    %c28 = arith.constant 28 : index
    %c0_73 = arith.constant 0 : index
    %62 = vector.load %arg12[%c28, %c0_73] : memref<81x1280xf32, #tpu.memory_space<vmem>>, vector<1x1280xf32>
    tpu.vector_store %arg12[%c28, %c0_73], %61 {strides = array<i32>} : memref<81x1280xf32, #tpu.memory_space<vmem>>, vector<1x1280xf32>,
    %c0_74 = arith.constant 0 : index
    %c122 = arith.constant 122 : index
    %63 = vector.load %arg11[%c0_74, %c122] : memref<1x1640xf32, #tpu.memory_space<vmem>>, vector<1x1280xf32>
    %c29 = arith.constant 29 : index
    %c0_75 = arith.constant 0 : index
    %64 = vector.load %arg12[%c29, %c0_75] : memref<81x1280xf32, #tpu.memory_space<vmem>>, vector<1x1280xf32>
    tpu.vector_store %arg12[%c29, %c0_75], %63 {strides = array<i32>} : memref<81x1280xf32, #tpu.memory_space<vmem>>, vector<1x1280xf32>,
    %c0_76 = arith.constant 0 : index
    %c123 = arith.constant 123 : index
    %65 = vector.load %arg11[%c0_76, %c123] : memref<1x1640xf32, #tpu.memory_space<vmem>>, vector<1x1280xf32>
    %c30 = arith.constant 30 : index
    %c0_77 = arith.constant 0 : index
    %66 = vector.load %arg12[%c30, %c0_77] : memref<81x1280xf32, #tpu.memory_space<vmem>>, vector<1x1280xf32>
    tpu.vector_store %arg12[%c30, %c0_77], %65 {strides = array<i32>} : memref<81x1280xf32, #tpu.memory_space<vmem>>, vector<1x1280xf32>,
    %c0_78 = arith.constant 0 : index
    %c124 = arith.constant 124 : index
    %67 = vector.load %arg11[%c0_78, %c124] : memref<1x1640xf32, #tpu.memory_space<vmem>>, vector<1x1280xf32>
    %c31 = arith.constant 31 : index
    %c0_79 = arith.constant 0 : index
    %68 = vector.load %arg12[%c31, %c0_79] : memref<81x1280xf32, #tpu.memory_space<vmem>>, vector<1x1280xf32>
    tpu.vector_store %arg12[%c31, %c0_79], %67 {strides = array<i32>} : memref<81x1280xf32, #tpu.memory_space<vmem>>, vector<1x1280xf32>,
    %c0_80 = arith.constant 0 : index
    %c125 = arith.constant 125 : index
    %69 = vector.load %arg11[%c0_80, %c125] : memref<1x1640xf32, #tpu.memory_space<vmem>>, vector<1x1280xf32>
    %c32 = arith.constant 32 : index
    %c0_81 = arith.constant 0 : index
    %70 = vector.load %arg12[%c32, %c0_81] : memref<81x1280xf32, #tpu.memory_space<vmem>>, vector<1x1280xf32>
    tpu.vector_store %arg12[%c32, %c0_81], %69 {strides = array<i32>} : memref<81x1280xf32, #tpu.memory_space<vmem>>, vector<1x1280xf32>,
    %c0_82 = arith.constant 0 : index
    %c126 = arith.constant 126 : index
    %71 = vector.load %arg11[%c0_82, %c126] : memref<1x1640xf32, #tpu.memory_space<vmem>>, vector<1x1280xf32>
    %c33 = arith.constant 33 : index
    %c0_83 = arith.constant 0 : index
    %72 = vector.load %arg12[%c33, %c0_83] : memref<81x1280xf32, #tpu.memory_space<vmem>>, vector<1x1280xf32>
    tpu.vector_store %arg12[%c33, %c0_83], %71 {strides = array<i32>} : memref<81x1280xf32, #tpu.memory_space<vmem>>, vector<1x1280xf32>,
    %c0_84 = arith.constant 0 : index
    %c127 = arith.constant 127 : index
    %73 = vector.load %arg11[%c0_84, %c127] : memref<1x1640xf32, #tpu.memory_space<vmem>>, vector<1x1280xf32>
    %c34 = arith.constant 34 : index
    %c0_85 = arith.constant 0 : index
    %74 = vector.load %arg12[%c34, %c0_85] : memref<81x1280xf32, #tpu.memory_space<vmem>>, vector<1x1280xf32>
    tpu.vector_store %arg12[%c34, %c0_85], %73 {strides = array<i32>} : memref<81x1280xf32, #tpu.memory_space<vmem>>, vector<1x1280xf32>,
    %c0_86 = arith.constant 0 : index
    %c128 = arith.constant 128 : index
    %75 = vector.load %arg11[%c0_86, %c128] : memref<1x1640xf32, #tpu.memory_space<vmem>>, vector<1x1280xf32>
    %c35 = arith.constant 35 : index
    %c0_87 = arith.constant 0 : index
    %76 = vector.load %arg12[%c35, %c0_87] : memref<81x1280xf32, #tpu.memory_space<vmem>>, vector<1x1280xf32>
    tpu.vector_store %arg12[%c35, %c0_87], %75 {strides = array<i32>} : memref<81x1280xf32, #tpu.memory_space<vmem>>, vector<1x1280xf32>,
    %c0_88 = arith.constant 0 : index
    %c160 = arith.constant 160 : index
    %77 = vector.load %arg11[%c0_88, %c160] : memref<1x1640xf32, #tpu.memory_space<vmem>>, vector<1x1280xf32>
    %c36 = arith.constant 36 : index
    %c0_89 = arith.constant 0 : index
    %78 = vector.load %arg12[%c36, %c0_89] : memref<81x1280xf32, #tpu.memory_space<vmem>>, vector<1x1280xf32>
    tpu.vector_store %arg12[%c36, %c0_89], %77 {strides = array<i32>} : memref<81x1280xf32, #tpu.memory_space<vmem>>, vector<1x1280xf32>,
    %c0_90 = arith.constant 0 : index
    %c161 = arith.constant 161 : index
    %79 = vector.load %arg11[%c0_90, %c161] : memref<1x1640xf32, #tpu.memory_space<vmem>>, vector<1x1280xf32>
    %c37 = arith.constant 37 : index
    %c0_91 = arith.constant 0 : index
    %80 = vector.load %arg12[%c37, %c0_91] : memref<81x1280xf32, #tpu.memory_space<vmem>>, vector<1x1280xf32>
    tpu.vector_store %arg12[%c37, %c0_91], %79 {strides = array<i32>} : memref<81x1280xf32, #tpu.memory_space<vmem>>, vector<1x1280xf32>,
    %c0_92 = arith.constant 0 : index
    %c162 = arith.constant 162 : index
    %81 = vector.load %arg11[%c0_92, %c162] : memref<1x1640xf32, #tpu.memory_space<vmem>>, vector<1x1280xf32>
    %c38 = arith.constant 38 : index
    %c0_93 = arith.constant 0 : index
    %82 = vector.load %arg12[%c38, %c0_93] : memref<81x1280xf32, #tpu.memory_space<vmem>>, vector<1x1280xf32>
    tpu.vector_store %arg12[%c38, %c0_93], %81 {strides = array<i32>} : memref<81x1280xf32, #tpu.memory_space<vmem>>, vector<1x1280xf32>,
    %c0_94 = arith.constant 0 : index
    %c163 = arith.constant 163 : index
    %83 = vector.load %arg11[%c0_94, %c163] : memref<1x1640xf32, #tpu.memory_space<vmem>>, vector<1x1280xf32>
    %c39 = arith.constant 39 : index
    %c0_95 = arith.constant 0 : index
    %84 = vector.load %arg12[%c39, %c0_95] : memref<81x1280xf32, #tpu.memory_space<vmem>>, vector<1x1280xf32>
    tpu.vector_store %arg12[%c39, %c0_95], %83 {strides = array<i32>} : memref<81x1280xf32, #tpu.memory_space<vmem>>, vector<1x1280xf32>,
    %c0_96 = arith.constant 0 : index
    %c164 = arith.constant 164 : index
    %85 = vector.load %arg11[%c0_96, %c164] : memref<1x1640xf32, #tpu.memory_space<vmem>>, vector<1x1280xf32>
    %c40_97 = arith.constant 40 : index
    %c0_98 = arith.constant 0 : index
    %86 = vector.load %arg12[%c40_97, %c0_98] : memref<81x1280xf32, #tpu.memory_space<vmem>>, vector<1x1280xf32>
    tpu.vector_store %arg12[%c40_97, %c0_98], %85 {strides = array<i32>} : memref<81x1280xf32, #tpu.memory_space<vmem>>, vector<1x1280xf32>,
    %c0_99 = arith.constant 0 : index
    %c165 = arith.constant 165 : index
    %87 = vector.load %arg11[%c0_99, %c165] : memref<1x1640xf32, #tpu.memory_space<vmem>>, vector<1x1280xf32>
    %c41_100 = arith.constant 41 : index
    %c0_101 = arith.constant 0 : index
    %88 = vector.load %arg12[%c41_100, %c0_101] : memref<81x1280xf32, #tpu.memory_space<vmem>>, vector<1x1280xf32>
    tpu.vector_store %arg12[%c41_100, %c0_101], %87 {strides = array<i32>} : memref<81x1280xf32, #tpu.memory_space<vmem>>, vector<1x1280xf32>,
    %c0_102 = arith.constant 0 : index
    %c166 = arith.constant 166 : index
    %89 = vector.load %arg11[%c0_102, %c166] : memref<1x1640xf32, #tpu.memory_space<vmem>>, vector<1x1280xf32>
    %c42_103 = arith.constant 42 : index
    %c0_104 = arith.constant 0 : index
    %90 = vector.load %arg12[%c42_103, %c0_104] : memref<81x1280xf32, #tpu.memory_space<vmem>>, vector<1x1280xf32>
    tpu.vector_store %arg12[%c42_103, %c0_104], %89 {strides = array<i32>} : memref<81x1280xf32, #tpu.memory_space<vmem>>, vector<1x1280xf32>,
    %c0_105 = arith.constant 0 : index
    %c167 = arith.constant 167 : index
    %91 = vector.load %arg11[%c0_105, %c167] : memref<1x1640xf32, #tpu.memory_space<vmem>>, vector<1x1280xf32>
    %c43_106 = arith.constant 43 : index
    %c0_107 = arith.constant 0 : index
    %92 = vector.load %arg12[%c43_106, %c0_107] : memref<81x1280xf32, #tpu.memory_space<vmem>>, vector<1x1280xf32>
    tpu.vector_store %arg12[%c43_106, %c0_107], %91 {strides = array<i32>} : memref<81x1280xf32, #tpu.memory_space<vmem>>, vector<1x1280xf32>,
    %c0_108 = arith.constant 0 : index
    %c168 = arith.constant 168 : index
    %93 = vector.load %arg11[%c0_108, %c168] : memref<1x1640xf32, #tpu.memory_space<vmem>>, vector<1x1280xf32>
    %c44_109 = arith.constant 44 : index
    %c0_110 = arith.constant 0 : index
    %94 = vector.load %arg12[%c44_109, %c0_110] : memref<81x1280xf32, #tpu.memory_space<vmem>>, vector<1x1280xf32>
    tpu.vector_store %arg12[%c44_109, %c0_110], %93 {strides = array<i32>} : memref<81x1280xf32, #tpu.memory_space<vmem>>, vector<1x1280xf32>,
    %c0_111 = arith.constant 0 : index
    %c200 = arith.constant 200 : index
    %95 = vector.load %arg11[%c0_111, %c200] : memref<1x1640xf32, #tpu.memory_space<vmem>>, vector<1x1280xf32>
    %c45_112 = arith.constant 45 : index
    %c0_113 = arith.constant 0 : index
    %96 = vector.load %arg12[%c45_112, %c0_113] : memref<81x1280xf32, #tpu.memory_space<vmem>>, vector<1x1280xf32>
    tpu.vector_store %arg12[%c45_112, %c0_113], %95 {strides = array<i32>} : memref<81x1280xf32, #tpu.memory_space<vmem>>, vector<1x1280xf32>,
    %c0_114 = arith.constant 0 : index
    %c201 = arith.constant 201 : index
    %97 = vector.load %arg11[%c0_114, %c201] : memref<1x1640xf32, #tpu.memory_space<vmem>>, vector<1x1280xf32>
    %c46_115 = arith.constant 46 : index
    %c0_116 = arith.constant 0 : index
    %98 = vector.load %arg12[%c46_115, %c0_116] : memref<81x1280xf32, #tpu.memory_space<vmem>>, vector<1x1280xf32>
    tpu.vector_store %arg12[%c46_115, %c0_116], %97 {strides = array<i32>} : memref<81x1280xf32, #tpu.memory_space<vmem>>, vector<1x1280xf32>,
    %c0_117 = arith.constant 0 : index
    %c202 = arith.constant 202 : index
    %99 = vector.load %arg11[%c0_117, %c202] : memref<1x1640xf32, #tpu.memory_space<vmem>>, vector<1x1280xf32>
    %c47_118 = arith.constant 47 : index
    %c0_119 = arith.constant 0 : index
    %100 = vector.load %arg12[%c47_118, %c0_119] : memref<81x1280xf32, #tpu.memory_space<vmem>>, vector<1x1280xf32>
    tpu.vector_store %arg12[%c47_118, %c0_119], %99 {strides = array<i32>} : memref<81x1280xf32, #tpu.memory_space<vmem>>, vector<1x1280xf32>,
    %c0_120 = arith.constant 0 : index
    %c203 = arith.constant 203 : index
    %101 = vector.load %arg11[%c0_120, %c203] : memref<1x1640xf32, #tpu.memory_space<vmem>>, vector<1x1280xf32>
    %c48_121 = arith.constant 48 : index
    %c0_122 = arith.constant 0 : index
    %102 = vector.load %arg12[%c48_121, %c0_122] : memref<81x1280xf32, #tpu.memory_space<vmem>>, vector<1x1280xf32>
    tpu.vector_store %arg12[%c48_121, %c0_122], %101 {strides = array<i32>} : memref<81x1280xf32, #tpu.memory_space<vmem>>, vector<1x1280xf32>,
    %c0_123 = arith.constant 0 : index
    %c204 = arith.constant 204 : index
    %103 = vector.load %arg11[%c0_123, %c204] : memref<1x1640xf32, #tpu.memory_space<vmem>>, vector<1x1280xf32>
    %c49 = arith.constant 49 : index
    %c0_124 = arith.constant 0 : index
    %104 = vector.load %arg12[%c49, %c0_124] : memref<81x1280xf32, #tpu.memory_space<vmem>>, vector<1x1280xf32>
    tpu.vector_store %arg12[%c49, %c0_124], %103 {strides = array<i32>} : memref<81x1280xf32, #tpu.memory_space<vmem>>, vector<1x1280xf32>,
    %c0_125 = arith.constant 0 : index
    %c205 = arith.constant 205 : index
    %105 = vector.load %arg11[%c0_125, %c205] : memref<1x1640xf32, #tpu.memory_space<vmem>>, vector<1x1280xf32>
    %c50 = arith.constant 50 : index
    %c0_126 = arith.constant 0 : index
    %106 = vector.load %arg12[%c50, %c0_126] : memref<81x1280xf32, #tpu.memory_space<vmem>>, vector<1x1280xf32>
    tpu.vector_store %arg12[%c50, %c0_126], %105 {strides = array<i32>} : memref<81x1280xf32, #tpu.memory_space<vmem>>, vector<1x1280xf32>,
    %c0_127 = arith.constant 0 : index
    %c206 = arith.constant 206 : index
    %107 = vector.load %arg11[%c0_127, %c206] : memref<1x1640xf32, #tpu.memory_space<vmem>>, vector<1x1280xf32>
    %c51 = arith.constant 51 : index
    %c0_128 = arith.constant 0 : index
    %108 = vector.load %arg12[%c51, %c0_128] : memref<81x1280xf32, #tpu.memory_space<vmem>>, vector<1x1280xf32>
    tpu.vector_store %arg12[%c51, %c0_128], %107 {strides = array<i32>} : memref<81x1280xf32, #tpu.memory_space<vmem>>, vector<1x1280xf32>,
    %c0_129 = arith.constant 0 : index
    %c207 = arith.constant 207 : index
    %109 = vector.load %arg11[%c0_129, %c207] : memref<1x1640xf32, #tpu.memory_space<vmem>>, vector<1x1280xf32>
    %c52 = arith.constant 52 : index
    %c0_130 = arith.constant 0 : index
    %110 = vector.load %arg12[%c52, %c0_130] : memref<81x1280xf32, #tpu.memory_space<vmem>>, vector<1x1280xf32>
    tpu.vector_store %arg12[%c52, %c0_130], %109 {strides = array<i32>} : memref<81x1280xf32, #tpu.memory_space<vmem>>, vector<1x1280xf32>,
    %c0_131 = arith.constant 0 : index
    %c208 = arith.constant 208 : index
    %111 = vector.load %arg11[%c0_131, %c208] : memref<1x1640xf32, #tpu.memory_space<vmem>>, vector<1x1280xf32>
    %c53 = arith.constant 53 : index
    %c0_132 = arith.constant 0 : index
    %112 = vector.load %arg12[%c53, %c0_132] : memref<81x1280xf32, #tpu.memory_space<vmem>>, vector<1x1280xf32>
    tpu.vector_store %arg12[%c53, %c0_132], %111 {strides = array<i32>} : memref<81x1280xf32, #tpu.memory_space<vmem>>, vector<1x1280xf32>,
    %c0_133 = arith.constant 0 : index
    %c240 = arith.constant 240 : index
    %113 = vector.load %arg11[%c0_133, %c240] : memref<1x1640xf32, #tpu.memory_space<vmem>>, vector<1x1280xf32>
    %c54 = arith.constant 54 : index
    %c0_134 = arith.constant 0 : index
    %114 = vector.load %arg12[%c54, %c0_134] : memref<81x1280xf32, #tpu.memory_space<vmem>>, vector<1x1280xf32>
    tpu.vector_store %arg12[%c54, %c0_134], %113 {strides = array<i32>} : memref<81x1280xf32, #tpu.memory_space<vmem>>, vector<1x1280xf32>,
    %c0_135 = arith.constant 0 : index
    %c241 = arith.constant 241 : index
    %115 = vector.load %arg11[%c0_135, %c241] : memref<1x1640xf32, #tpu.memory_space<vmem>>, vector<1x1280xf32>
    %c55 = arith.constant 55 : index
    %c0_136 = arith.constant 0 : index
    %116 = vector.load %arg12[%c55, %c0_136] : memref<81x1280xf32, #tpu.memory_space<vmem>>, vector<1x1280xf32>
    tpu.vector_store %arg12[%c55, %c0_136], %115 {strides = array<i32>} : memref<81x1280xf32, #tpu.memory_space<vmem>>, vector<1x1280xf32>,
    %c0_137 = arith.constant 0 : index
    %c242 = arith.constant 242 : index
    %117 = vector.load %arg11[%c0_137, %c242] : memref<1x1640xf32, #tpu.memory_space<vmem>>, vector<1x1280xf32>
    %c56 = arith.constant 56 : index
    %c0_138 = arith.constant 0 : index
    %118 = vector.load %arg12[%c56, %c0_138] : memref<81x1280xf32, #tpu.memory_space<vmem>>, vector<1x1280xf32>
    tpu.vector_store %arg12[%c56, %c0_138], %117 {strides = array<i32>} : memref<81x1280xf32, #tpu.memory_space<vmem>>, vector<1x1280xf32>,
    %c0_139 = arith.constant 0 : index
    %c243 = arith.constant 243 : index
    %119 = vector.load %arg11[%c0_139, %c243] : memref<1x1640xf32, #tpu.memory_space<vmem>>, vector<1x1280xf32>
    %c57 = arith.constant 57 : index
    %c0_140 = arith.constant 0 : index
    %120 = vector.load %arg12[%c57, %c0_140] : memref<81x1280xf32, #tpu.memory_space<vmem>>, vector<1x1280xf32>
    tpu.vector_store %arg12[%c57, %c0_140], %119 {strides = array<i32>} : memref<81x1280xf32, #tpu.memory_space<vmem>>, vector<1x1280xf32>,
    %c0_141 = arith.constant 0 : index
    %c244 = arith.constant 244 : index
    %121 = vector.load %arg11[%c0_141, %c244] : memref<1x1640xf32, #tpu.memory_space<vmem>>, vector<1x1280xf32>
    %c58 = arith.constant 58 : index
    %c0_142 = arith.constant 0 : index
    %122 = vector.load %arg12[%c58, %c0_142] : memref<81x1280xf32, #tpu.memory_space<vmem>>, vector<1x1280xf32>
    tpu.vector_store %arg12[%c58, %c0_142], %121 {strides = array<i32>} : memref<81x1280xf32, #tpu.memory_space<vmem>>, vector<1x1280xf32>,
    %c0_143 = arith.constant 0 : index
    %c245 = arith.constant 245 : index
    %123 = vector.load %arg11[%c0_143, %c245] : memref<1x1640xf32, #tpu.memory_space<vmem>>, vector<1x1280xf32>
    %c59 = arith.constant 59 : index
    %c0_144 = arith.constant 0 : index
    %124 = vector.load %arg12[%c59, %c0_144] : memref<81x1280xf32, #tpu.memory_space<vmem>>, vector<1x1280xf32>
    tpu.vector_store %arg12[%c59, %c0_144], %123 {strides = array<i32>} : memref<81x1280xf32, #tpu.memory_space<vmem>>, vector<1x1280xf32>,
    %c0_145 = arith.constant 0 : index
    %c246 = arith.constant 246 : index
    %125 = vector.load %arg11[%c0_145, %c246] : memref<1x1640xf32, #tpu.memory_space<vmem>>, vector<1x1280xf32>
    %c60 = arith.constant 60 : index
    %c0_146 = arith.constant 0 : index
    %126 = vector.load %arg12[%c60, %c0_146] : memref<81x1280xf32, #tpu.memory_space<vmem>>, vector<1x1280xf32>
    tpu.vector_store %arg12[%c60, %c0_146], %125 {strides = array<i32>} : memref<81x1280xf32, #tpu.memory_space<vmem>>, vector<1x1280xf32>,
    %c0_147 = arith.constant 0 : index
    %c247 = arith.constant 247 : index
    %127 = vector.load %arg11[%c0_147, %c247] : memref<1x1640xf32, #tpu.memory_space<vmem>>, vector<1x1280xf32>
    %c61 = arith.constant 61 : index
    %c0_148 = arith.constant 0 : index
    %128 = vector.load %arg12[%c61, %c0_148] : memref<81x1280xf32, #tpu.memory_space<vmem>>, vector<1x1280xf32>
    tpu.vector_store %arg12[%c61, %c0_148], %127 {strides = array<i32>} : memref<81x1280xf32, #tpu.memory_space<vmem>>, vector<1x1280xf32>,
    %c0_149 = arith.constant 0 : index
    %c248 = arith.constant 248 : index
    %129 = vector.load %arg11[%c0_149, %c248] : memref<1x1640xf32, #tpu.memory_space<vmem>>, vector<1x1280xf32>
    %c62 = arith.constant 62 : index
    %c0_150 = arith.constant 0 : index
    %130 = vector.load %arg12[%c62, %c0_150] : memref<81x1280xf32, #tpu.memory_space<vmem>>, vector<1x1280xf32>
    tpu.vector_store %arg12[%c62, %c0_150], %129 {strides = array<i32>} : memref<81x1280xf32, #tpu.memory_space<vmem>>, vector<1x1280xf32>,
    %c0_151 = arith.constant 0 : index
    %c280 = arith.constant 280 : index
    %131 = vector.load %arg11[%c0_151, %c280] : memref<1x1640xf32, #tpu.memory_space<vmem>>, vector<1x1280xf32>
    %c63 = arith.constant 63 : index
    %c0_152 = arith.constant 0 : index
    %132 = vector.load %arg12[%c63, %c0_152] : memref<81x1280xf32, #tpu.memory_space<vmem>>, vector<1x1280xf32>
    tpu.vector_store %arg12[%c63, %c0_152], %131 {strides = array<i32>} : memref<81x1280xf32, #tpu.memory_space<vmem>>, vector<1x1280xf32>,
    %c0_153 = arith.constant 0 : index
    %c281 = arith.constant 281 : index
    %133 = vector.load %arg11[%c0_153, %c281] : memref<1x1640xf32, #tpu.memory_space<vmem>>, vector<1x1280xf32>
    %c64 = arith.constant 64 : index
    %c0_154 = arith.constant 0 : index
    %134 = vector.load %arg12[%c64, %c0_154] : memref<81x1280xf32, #tpu.memory_space<vmem>>, vector<1x1280xf32>
    tpu.vector_store %arg12[%c64, %c0_154], %133 {strides = array<i32>} : memref<81x1280xf32, #tpu.memory_space<vmem>>, vector<1x1280xf32>,
    %c0_155 = arith.constant 0 : index
    %c282 = arith.constant 282 : index
    %135 = vector.load %arg11[%c0_155, %c282] : memref<1x1640xf32, #tpu.memory_space<vmem>>, vector<1x1280xf32>
    %c65 = arith.constant 65 : index
    %c0_156 = arith.constant 0 : index
    %136 = vector.load %arg12[%c65, %c0_156] : memref<81x1280xf32, #tpu.memory_space<vmem>>, vector<1x1280xf32>
    tpu.vector_store %arg12[%c65, %c0_156], %135 {strides = array<i32>} : memref<81x1280xf32, #tpu.memory_space<vmem>>, vector<1x1280xf32>,
    %c0_157 = arith.constant 0 : index
    %c283 = arith.constant 283 : index
    %137 = vector.load %arg11[%c0_157, %c283] : memref<1x1640xf32, #tpu.memory_space<vmem>>, vector<1x1280xf32>
    %c66 = arith.constant 66 : index
    %c0_158 = arith.constant 0 : index
    %138 = vector.load %arg12[%c66, %c0_158] : memref<81x1280xf32, #tpu.memory_space<vmem>>, vector<1x1280xf32>
    tpu.vector_store %arg12[%c66, %c0_158], %137 {strides = array<i32>} : memref<81x1280xf32, #tpu.memory_space<vmem>>, vector<1x1280xf32>,
    %c0_159 = arith.constant 0 : index
    %c284 = arith.constant 284 : index
    %139 = vector.load %arg11[%c0_159, %c284] : memref<1x1640xf32, #tpu.memory_space<vmem>>, vector<1x1280xf32>
    %c67 = arith.constant 67 : index
    %c0_160 = arith.constant 0 : index
    %140 = vector.load %arg12[%c67, %c0_160] : memref<81x1280xf32, #tpu.memory_space<vmem>>, vector<1x1280xf32>
    tpu.vector_store %arg12[%c67, %c0_160], %139 {strides = array<i32>} : memref<81x1280xf32, #tpu.memory_space<vmem>>, vector<1x1280xf32>,
    %c0_161 = arith.constant 0 : index
    %c285 = arith.constant 285 : index
    %141 = vector.load %arg11[%c0_161, %c285] : memref<1x1640xf32, #tpu.memory_space<vmem>>, vector<1x1280xf32>
    %c68 = arith.constant 68 : index
    %c0_162 = arith.constant 0 : index
    %142 = vector.load %arg12[%c68, %c0_162] : memref<81x1280xf32, #tpu.memory_space<vmem>>, vector<1x1280xf32>
    tpu.vector_store %arg12[%c68, %c0_162], %141 {strides = array<i32>} : memref<81x1280xf32, #tpu.memory_space<vmem>>, vector<1x1280xf32>,
    %c0_163 = arith.constant 0 : index
    %c286 = arith.constant 286 : index
    %143 = vector.load %arg11[%c0_163, %c286] : memref<1x1640xf32, #tpu.memory_space<vmem>>, vector<1x1280xf32>
    %c69 = arith.constant 69 : index
    %c0_164 = arith.constant 0 : index
    %144 = vector.load %arg12[%c69, %c0_164] : memref<81x1280xf32, #tpu.memory_space<vmem>>, vector<1x1280xf32>
    tpu.vector_store %arg12[%c69, %c0_164], %143 {strides = array<i32>} : memref<81x1280xf32, #tpu.memory_space<vmem>>, vector<1x1280xf32>,
    %c0_165 = arith.constant 0 : index
    %c287 = arith.constant 287 : index
    %145 = vector.load %arg11[%c0_165, %c287] : memref<1x1640xf32, #tpu.memory_space<vmem>>, vector<1x1280xf32>
    %c70 = arith.constant 70 : index
    %c0_166 = arith.constant 0 : index
    %146 = vector.load %arg12[%c70, %c0_166] : memref<81x1280xf32, #tpu.memory_space<vmem>>, vector<1x1280xf32>
    tpu.vector_store %arg12[%c70, %c0_166], %145 {strides = array<i32>} : memref<81x1280xf32, #tpu.memory_space<vmem>>, vector<1x1280xf32>,
    %c0_167 = arith.constant 0 : index
    %c288 = arith.constant 288 : index
    %147 = vector.load %arg11[%c0_167, %c288] : memref<1x1640xf32, #tpu.memory_space<vmem>>, vector<1x1280xf32>
    %c71 = arith.constant 71 : index
    %c0_168 = arith.constant 0 : index
    %148 = vector.load %arg12[%c71, %c0_168] : memref<81x1280xf32, #tpu.memory_space<vmem>>, vector<1x1280xf32>
    tpu.vector_store %arg12[%c71, %c0_168], %147 {strides = array<i32>} : memref<81x1280xf32, #tpu.memory_space<vmem>>, vector<1x1280xf32>,
    %c0_169 = arith.constant 0 : index
    %c320 = arith.constant 320 : index
    %149 = vector.load %arg11[%c0_169, %c320] : memref<1x1640xf32, #tpu.memory_space<vmem>>, vector<1x1280xf32>
    %c72 = arith.constant 72 : index
    %c0_170 = arith.constant 0 : index
    %150 = vector.load %arg12[%c72, %c0_170] : memref<81x1280xf32, #tpu.memory_space<vmem>>, vector<1x1280xf32>
    tpu.vector_store %arg12[%c72, %c0_170], %149 {strides = array<i32>} : memref<81x1280xf32, #tpu.memory_space<vmem>>, vector<1x1280xf32>,
    %c0_171 = arith.constant 0 : index
    %c321 = arith.constant 321 : index
    %151 = vector.load %arg11[%c0_171, %c321] : memref<1x1640xf32, #tpu.memory_space<vmem>>, vector<1x1280xf32>
    %c73 = arith.constant 73 : index
    %c0_172 = arith.constant 0 : index
    %152 = vector.load %arg12[%c73, %c0_172] : memref<81x1280xf32, #tpu.memory_space<vmem>>, vector<1x1280xf32>
    tpu.vector_store %arg12[%c73, %c0_172], %151 {strides = array<i32>} : memref<81x1280xf32, #tpu.memory_space<vmem>>, vector<1x1280xf32>,
    %c0_173 = arith.constant 0 : index
    %c322 = arith.constant 322 : index
    %153 = vector.load %arg11[%c0_173, %c322] : memref<1x1640xf32, #tpu.memory_space<vmem>>, vector<1x1280xf32>
    %c74 = arith.constant 74 : index
    %c0_174 = arith.constant 0 : index
    %154 = vector.load %arg12[%c74, %c0_174] : memref<81x1280xf32, #tpu.memory_space<vmem>>, vector<1x1280xf32>
    tpu.vector_store %arg12[%c74, %c0_174], %153 {strides = array<i32>} : memref<81x1280xf32, #tpu.memory_space<vmem>>, vector<1x1280xf32>,
    %c0_175 = arith.constant 0 : index
    %c323 = arith.constant 323 : index
    %155 = vector.load %arg11[%c0_175, %c323] : memref<1x1640xf32, #tpu.memory_space<vmem>>, vector<1x1280xf32>
    %c75 = arith.constant 75 : index
    %c0_176 = arith.constant 0 : index
    %156 = vector.load %arg12[%c75, %c0_176] : memref<81x1280xf32, #tpu.memory_space<vmem>>, vector<1x1280xf32>
    tpu.vector_store %arg12[%c75, %c0_176], %155 {strides = array<i32>} : memref<81x1280xf32, #tpu.memory_space<vmem>>, vector<1x1280xf32>,
    %c0_177 = arith.constant 0 : index
    %c324 = arith.constant 324 : index
    %157 = vector.load %arg11[%c0_177, %c324] : memref<1x1640xf32, #tpu.memory_space<vmem>>, vector<1x1280xf32>
    %c76 = arith.constant 76 : index
    %c0_178 = arith.constant 0 : index
    %158 = vector.load %arg12[%c76, %c0_178] : memref<81x1280xf32, #tpu.memory_space<vmem>>, vector<1x1280xf32>
    tpu.vector_store %arg12[%c76, %c0_178], %157 {strides = array<i32>} : memref<81x1280xf32, #tpu.memory_space<vmem>>, vector<1x1280xf32>,
    %c0_179 = arith.constant 0 : index
    %c325 = arith.constant 325 : index
    %159 = vector.load %arg11[%c0_179, %c325] : memref<1x1640xf32, #tpu.memory_space<vmem>>, vector<1x1280xf32>
    %c77 = arith.constant 77 : index
    %c0_180 = arith.constant 0 : index
    %160 = vector.load %arg12[%c77, %c0_180] : memref<81x1280xf32, #tpu.memory_space<vmem>>, vector<1x1280xf32>
    tpu.vector_store %arg12[%c77, %c0_180], %159 {strides = array<i32>} : memref<81x1280xf32, #tpu.memory_space<vmem>>, vector<1x1280xf32>,
    %c0_181 = arith.constant 0 : index
    %c326 = arith.constant 326 : index
    %161 = vector.load %arg11[%c0_181, %c326] : memref<1x1640xf32, #tpu.memory_space<vmem>>, vector<1x1280xf32>
    %c78 = arith.constant 78 : index
    %c0_182 = arith.constant 0 : index
    %162 = vector.load %arg12[%c78, %c0_182] : memref<81x1280xf32, #tpu.memory_space<vmem>>, vector<1x1280xf32>
    tpu.vector_store %arg12[%c78, %c0_182], %161 {strides = array<i32>} : memref<81x1280xf32, #tpu.memory_space<vmem>>, vector<1x1280xf32>,
    %c0_183 = arith.constant 0 : index
    %c327 = arith.constant 327 : index
    %163 = vector.load %arg11[%c0_183, %c327] : memref<1x1640xf32, #tpu.memory_space<vmem>>, vector<1x1280xf32>
    %c79 = arith.constant 79 : index
    %c0_184 = arith.constant 0 : index
    %164 = vector.load %arg12[%c79, %c0_184] : memref<81x1280xf32, #tpu.memory_space<vmem>>, vector<1x1280xf32>
    tpu.vector_store %arg12[%c79, %c0_184], %163 {strides = array<i32>} : memref<81x1280xf32, #tpu.memory_space<vmem>>, vector<1x1280xf32>,
    %c0_185 = arith.constant 0 : index
    %c328 = arith.constant 328 : index
    %165 = vector.load %arg11[%c0_185, %c328] : memref<1x1640xf32, #tpu.memory_space<vmem>>, vector<1x1280xf32>
    %c80_186 = arith.constant 80 : index
    %c0_187 = arith.constant 0 : index
    %166 = vector.load %arg12[%c80_186, %c0_187] : memref<81x1280xf32, #tpu.memory_space<vmem>>, vector<1x1280xf32>
    tpu.vector_store %arg12[%c80_186, %c0_187], %165 {strides = array<i32>} : memref<81x1280xf32, #tpu.memory_space<vmem>>, vector<1x1280xf32>,
    %c0_188 = arith.constant 0 : index
    %c0_189 = arith.constant 0 : index
    %167 = vector.load %arg3[%c0_188, %c0_189] : memref<64x81xbf16, #tpu.memory_space<vmem>>, vector<64x81xbf16>
    %c0_190 = arith.constant 0 : index
    %c0_191 = arith.constant 0 : index
    %168 = vector.load %arg12[%c0_190, %c0_191] : memref<81x1280xf32, #tpu.memory_space<vmem>>, vector<81x1280xf32>
    %169 = arith.truncf %168 : vector<81x1280xf32> to vector<81x1280xbf16>
    %cst_192 = arith.constant dense<0.000000e+00> : vector<64x1280xf32>
    %170 = tpu.matmul %167, %169, %cst_192 {dimension_numbers = #tpu.dot_dimension_numbers<[1], [0], [0], [1], [0, 0, 1, 1], [], []>} : vector<64x81xbf16>, vector<81x1280xbf16>, vector<64x1280xf32> -> vector<64x1280xf32>
    %c0_193 = arith.constant 0 : index
    %c0_194 = arith.constant 0 : index
    %171 = vector.load %arg4[%c0_193, %c0_194] : memref<64x1xf32, #tpu.memory_space<vmem>>, vector<64x1xf32>
    %172 = vector.broadcast %171 : vector<64x1xf32> to vector<64x1280xf32>
    %173 = arith.addf %170, %172 : vector<64x1280xf32>
    %cst_195 = arith.constant 0.000000e+00 : f32
    %174 = vector.broadcast %cst_195 : f32 to vector<64x1280xf32>
    %175 = arith.maximumf %173, %174 : vector<64x1280xf32>
    %176 = arith.truncf %175 : vector<64x1280xf32> to vector<64x1280xbf16>
    %c0_196 = arith.constant 0 : index
    %c0_197 = arith.constant 0 : index
    %177 = vector.load %arg5[%c0_196, %c0_197] : memref<32x64xbf16, #tpu.memory_space<vmem>>, vector<32x64xbf16>
    %cst_198 = arith.constant dense<0.000000e+00> : vector<32x1280xf32>
    %178 = tpu.matmul %177, %176, %cst_198 {dimension_numbers = #tpu.dot_dimension_numbers<[1], [0], [0], [1], [0, 0, 1, 1], [], []>} : vector<32x64xbf16>, vector<64x1280xbf16>, vector<32x1280xf32> -> vector<32x1280xf32>
    %c0_199 = arith.constant 0 : index
    %c0_200 = arith.constant 0 : index
    %179 = vector.load %arg6[%c0_199, %c0_200] : memref<32x1xf32, #tpu.memory_space<vmem>>, vector<32x1xf32>
    %180 = vector.broadcast %179 : vector<32x1xf32> to vector<32x1280xf32>
    %181 = arith.addf %178, %180 : vector<32x1280xf32>
    %cst_201 = arith.constant 0.000000e+00 : f32
    %182 = vector.broadcast %cst_201 : f32 to vector<32x1280xf32>
    %183 = arith.maximumf %181, %182 : vector<32x1280xf32>
    %c0_202 = arith.constant 0 : index
    %c0_203 = arith.constant 0 : index
    %184 = vector.load %arg9[%c0_202, %c0_203] : memref<1x1280xf32, #tpu.memory_space<vmem>>, vector<1x1280xf32>
    %185 = vector.broadcast %184 : vector<1x1280xf32> to vector<32x1280xf32>
    %186 = arith.mulf %183, %185 : vector<32x1280xf32>
    %cst_204 = arith.constant 0.000000e+00 : f32
    %187 = vector.broadcast %cst_204 : f32 to vector<32x1480xf32>
    %c0_205 = arith.constant 0 : index
    %c0_206 = arith.constant 0 : index
    %188 = vector.load %arg13[%c0_205, %c0_206] : memref<32x1480xf32, #tpu.memory_space<vmem>>, vector<32x1480xf32>
    tpu.vector_store %arg13[%c0_205, %c0_206], %187 {strides = array<i32>} : memref<32x1480xf32, #tpu.memory_space<vmem>>, vector<32x1480xf32>,
    %c0_207 = arith.constant 0 : index
    %c82_208 = arith.constant 82 : index
    %189 = vector.load %arg13[%c0_207, %c82_208] : memref<32x1480xf32, #tpu.memory_space<vmem>>, vector<32x1280xf32>
    tpu.vector_store %arg13[%c0_207, %c82_208], %186 {strides = array<i32>} : memref<32x1480xf32, #tpu.memory_space<vmem>>, vector<32x1280xf32>,
    %c0_209 = arith.constant 0 : index
    %c0_210 = arith.constant 0 : index
    %190 = vector.load %arg7[%c0_209, %c0_210] : memref<25x32xf32, #tpu.memory_space<vmem>>, vector<25x32xf32>
    %c0_211 = arith.constant 0 : index
    %c0_212 = arith.constant 0 : index
    %191 = vector.load %arg13[%c0_211, %c0_212] : memref<32x1480xf32, #tpu.memory_space<vmem>>, vector<32x1480xf32>
    %cst_213 = arith.constant dense<0.000000e+00> : vector<25x1480xf32>
    %192 = tpu.matmul %190, %191, %cst_213 {dimension_numbers = #tpu.dot_dimension_numbers<[1], [0], [0], [1], [0, 0, 1, 1], [], []>} : vector<25x32xf32>, vector<32x1480xf32>, vector<25x1480xf32> -> vector<25x1480xf32>
    %c0_214 = arith.constant 0 : index
    %c0_215 = arith.constant 0 : index
    %193 = vector.load %arg14[%c0_214, %c0_215] : memref<25x1480xf32, #tpu.memory_space<vmem>>, vector<25x1480xf32>
    tpu.vector_store %arg14[%c0_214, %c0_215], %192 {strides = array<i32>} : memref<25x1480xf32, #tpu.memory_space<vmem>>, vector<25x1480xf32>,
    %cst_216 = arith.constant 0.000000e+00 : f32
    %194 = vector.broadcast %cst_216 : f32 to vector<1x1280xf32>
    %c0_217 = arith.constant 0 : index
    %c0_218 = arith.constant 0 : index
    %195 = vector.load %arg14[%c0_217, %c0_218] : memref<25x1480xf32, #tpu.memory_space<vmem>>, vector<1x1280xf32>
    %196 = arith.addf %194, %195 : vector<1x1280xf32>
    %c1_219 = arith.constant 1 : index
    %c1_220 = arith.constant 1 : index
    %197 = vector.load %arg14[%c1_219, %c1_220] : memref<25x1480xf32, #tpu.memory_space<vmem>>, vector<1x1280xf32>
    %198 = arith.addf %196, %197 : vector<1x1280xf32>
    %c2_221 = arith.constant 2 : index
    %c2_222 = arith.constant 2 : index
    %199 = vector.load %arg14[%c2_221, %c2_222] : memref<25x1480xf32, #tpu.memory_space<vmem>>, vector<1x1280xf32>
    %200 = arith.addf %198, %199 : vector<1x1280xf32>
    %c3_223 = arith.constant 3 : index
    %c3_224 = arith.constant 3 : index
    %201 = vector.load %arg14[%c3_223, %c3_224] : memref<25x1480xf32, #tpu.memory_space<vmem>>, vector<1x1280xf32>
    %202 = arith.addf %200, %201 : vector<1x1280xf32>
    %c4_225 = arith.constant 4 : index
    %c4_226 = arith.constant 4 : index
    %203 = vector.load %arg14[%c4_225, %c4_226] : memref<25x1480xf32, #tpu.memory_space<vmem>>, vector<1x1280xf32>
    %204 = arith.addf %202, %203 : vector<1x1280xf32>
    %c5_227 = arith.constant 5 : index
    %c40_228 = arith.constant 40 : index
    %205 = vector.load %arg14[%c5_227, %c40_228] : memref<25x1480xf32, #tpu.memory_space<vmem>>, vector<1x1280xf32>
    %206 = arith.addf %204, %205 : vector<1x1280xf32>
    %c6_229 = arith.constant 6 : index
    %c41_230 = arith.constant 41 : index
    %207 = vector.load %arg14[%c6_229, %c41_230] : memref<25x1480xf32, #tpu.memory_space<vmem>>, vector<1x1280xf32>
    %208 = arith.addf %206, %207 : vector<1x1280xf32>
    %c7_231 = arith.constant 7 : index
    %c42_232 = arith.constant 42 : index
    %209 = vector.load %arg14[%c7_231, %c42_232] : memref<25x1480xf32, #tpu.memory_space<vmem>>, vector<1x1280xf32>
    %210 = arith.addf %208, %209 : vector<1x1280xf32>
    %c8_233 = arith.constant 8 : index
    %c43_234 = arith.constant 43 : index
    %211 = vector.load %arg14[%c8_233, %c43_234] : memref<25x1480xf32, #tpu.memory_space<vmem>>, vector<1x1280xf32>
    %212 = arith.addf %210, %211 : vector<1x1280xf32>
    %c9_235 = arith.constant 9 : index
    %c44_236 = arith.constant 44 : index
    %213 = vector.load %arg14[%c9_235, %c44_236] : memref<25x1480xf32, #tpu.memory_space<vmem>>, vector<1x1280xf32>
    %214 = arith.addf %212, %213 : vector<1x1280xf32>
    %c10_237 = arith.constant 10 : index
    %c80_238 = arith.constant 80 : index
    %215 = vector.load %arg14[%c10_237, %c80_238] : memref<25x1480xf32, #tpu.memory_space<vmem>>, vector<1x1280xf32>
    %216 = arith.addf %214, %215 : vector<1x1280xf32>
    %c11_239 = arith.constant 11 : index
    %c81_240 = arith.constant 81 : index
    %217 = vector.load %arg14[%c11_239, %c81_240] : memref<25x1480xf32, #tpu.memory_space<vmem>>, vector<1x1280xf32>
    %218 = arith.addf %216, %217 : vector<1x1280xf32>
    %c12_241 = arith.constant 12 : index
    %c82_242 = arith.constant 82 : index
    %219 = vector.load %arg14[%c12_241, %c82_242] : memref<25x1480xf32, #tpu.memory_space<vmem>>, vector<1x1280xf32>
    %220 = arith.addf %218, %219 : vector<1x1280xf32>
    %c13_243 = arith.constant 13 : index
    %c83_244 = arith.constant 83 : index
    %221 = vector.load %arg14[%c13_243, %c83_244] : memref<25x1480xf32, #tpu.memory_space<vmem>>, vector<1x1280xf32>
    %222 = arith.addf %220, %221 : vector<1x1280xf32>
    %c14_245 = arith.constant 14 : index
    %c84_246 = arith.constant 84 : index
    %223 = vector.load %arg14[%c14_245, %c84_246] : memref<25x1480xf32, #tpu.memory_space<vmem>>, vector<1x1280xf32>
    %224 = arith.addf %222, %223 : vector<1x1280xf32>
    %c15_247 = arith.constant 15 : index
    %c120_248 = arith.constant 120 : index
    %225 = vector.load %arg14[%c15_247, %c120_248] : memref<25x1480xf32, #tpu.memory_space<vmem>>, vector<1x1280xf32>
    %226 = arith.addf %224, %225 : vector<1x1280xf32>
    %c16_249 = arith.constant 16 : index
    %c121_250 = arith.constant 121 : index
    %227 = vector.load %arg14[%c16_249, %c121_250] : memref<25x1480xf32, #tpu.memory_space<vmem>>, vector<1x1280xf32>
    %228 = arith.addf %226, %227 : vector<1x1280xf32>
    %c17_251 = arith.constant 17 : index
    %c122_252 = arith.constant 122 : index
    %229 = vector.load %arg14[%c17_251, %c122_252] : memref<25x1480xf32, #tpu.memory_space<vmem>>, vector<1x1280xf32>
    %230 = arith.addf %228, %229 : vector<1x1280xf32>
    %c18_253 = arith.constant 18 : index
    %c123_254 = arith.constant 123 : index
    %231 = vector.load %arg14[%c18_253, %c123_254] : memref<25x1480xf32, #tpu.memory_space<vmem>>, vector<1x1280xf32>
    %232 = arith.addf %230, %231 : vector<1x1280xf32>
    %c19_255 = arith.constant 19 : index
    %c124_256 = arith.constant 124 : index
    %233 = vector.load %arg14[%c19_255, %c124_256] : memref<25x1480xf32, #tpu.memory_space<vmem>>, vector<1x1280xf32>
    %234 = arith.addf %232, %233 : vector<1x1280xf32>
    %c20_257 = arith.constant 20 : index
    %c160_258 = arith.constant 160 : index
    %235 = vector.load %arg14[%c20_257, %c160_258] : memref<25x1480xf32, #tpu.memory_space<vmem>>, vector<1x1280xf32>
    %236 = arith.addf %234, %235 : vector<1x1280xf32>
    %c21_259 = arith.constant 21 : index
    %c161_260 = arith.constant 161 : index
    %237 = vector.load %arg14[%c21_259, %c161_260] : memref<25x1480xf32, #tpu.memory_space<vmem>>, vector<1x1280xf32>
    %238 = arith.addf %236, %237 : vector<1x1280xf32>
    %c22_261 = arith.constant 22 : index
    %c162_262 = arith.constant 162 : index
    %239 = vector.load %arg14[%c22_261, %c162_262] : memref<25x1480xf32, #tpu.memory_space<vmem>>, vector<1x1280xf32>
    %240 = arith.addf %238, %239 : vector<1x1280xf32>
    %c23_263 = arith.constant 23 : index
    %c163_264 = arith.constant 163 : index
    %241 = vector.load %arg14[%c23_263, %c163_264] : memref<25x1480xf32, #tpu.memory_space<vmem>>, vector<1x1280xf32>
    %242 = arith.addf %240, %241 : vector<1x1280xf32>
    %c24_265 = arith.constant 24 : index
    %c164_266 = arith.constant 164 : index
    %243 = vector.load %arg14[%c24_265, %c164_266] : memref<25x1480xf32, #tpu.memory_space<vmem>>, vector<1x1280xf32>
    %244 = arith.addf %242, %243 : vector<1x1280xf32>
    %c0_267 = arith.constant 0 : index
    %c0_268 = arith.constant 0 : index
    %245 = vector.load %arg8[%c0_267, %c0_268] : memref<1x1xf32, #tpu.memory_space<vmem>>, vector<1x1xf32>
    %246 = vector.broadcast %245 : vector<1x1xf32> to vector<1x1280xf32>
    %247 = arith.addf %244, %246 : vector<1x1280xf32>
    %c0_269 = arith.constant 0 : index
    %c0_270 = arith.constant 0 : index
    %c0_271 = arith.constant 0 : index
    %248 = vector.load %arg10[%c0_269, %c0_270, %c0_271] : memref<1x1x1280xf32, #tpu.memory_space<vmem>>, vector<1x1x1280xf32>
    %249 = vector.shape_cast %248 : vector<1x1x1280xf32> to vector<1x1280xf32>
    %250 = vector.shape_cast %247 : vector<1x1280xf32> to vector<1x1x1280xf32>
    tpu.vector_store %arg10[%c0_269, %c0_270, %c0_271], %250 {strides = array<i32>} : memref<1x1x1280xf32, #tpu.memory_space<vmem>>, vector<1x1x1280xf32>,
    return
  }
  func.func @transform_0(%arg0: i32) -> (i32, i32, i32) {
    %c0_i32 = arith.constant 0 : i32
    %c0_i32_0 = arith.constant 0 : i32
    %c0_i32_1 = arith.constant 0 : i32
    return %arg0, %c0_i32, %c0_i32_0 : i32, i32, i32
  }
  func.func @transform_1(%arg0: i32) -> (i32, i32) {
    %c0_i32 = arith.constant 0 : i32
    %c0_i32_0 = arith.constant 0 : i32
    %c0_i32_1 = arith.constant 0 : i32
    return %c0_i32, %c0_i32_0 : i32, i32
  }
  func.func @transform_2(%arg0: i32) -> (i32, i32) {
    %c0_i32 = arith.constant 0 : i32
    %c0_i32_0 = arith.constant 0 : i32
    %c0_i32_1 = arith.constant 0 : i32
    return %c0_i32, %c0_i32_0 : i32, i32
  }
  func.func @transform_3(%arg0: i32) -> (i32, i32) {
    %c0_i32 = arith.constant 0 : i32
    %c0_i32_0 = arith.constant 0 : i32
    %c0_i32_1 = arith.constant 0 : i32
    return %c0_i32, %c0_i32_0 : i32, i32
  }
  func.func @transform_4(%arg0: i32) -> (i32, i32) {
    %c0_i32 = arith.constant 0 : i32
    %c0_i32_0 = arith.constant 0 : i32
    %c0_i32_1 = arith.constant 0 : i32
    return %c0_i32, %c0_i32_0 : i32, i32
  }
  func.func @transform_5(%arg0: i32) -> (i32, i32) {
    %c0_i32 = arith.constant 0 : i32
    %c0_i32_0 = arith.constant 0 : i32
    %c0_i32_1 = arith.constant 0 : i32
    return %c0_i32, %c0_i32_0 : i32, i32
  }
  func.func @transform_6(%arg0: i32) -> (i32, i32) {
    %c0_i32 = arith.constant 0 : i32
    %c0_i32_0 = arith.constant 0 : i32
    %c0_i32_1 = arith.constant 0 : i32
    return %c0_i32, %c0_i32_0 : i32, i32
  }
  func.func @transform_7(%arg0: i32) -> (i32, i32) {
    %c0_i32 = arith.constant 0 : i32
    %c0_i32_0 = arith.constant 0 : i32
    %c0_i32_1 = arith.constant 0 : i32
    return %c0_i32, %c0_i32_0 : i32, i32
  }
  func.func @transform_8(%arg0: i32) -> (i32, i32) {
    %c0_i32 = arith.constant 0 : i32
    %c0_i32_0 = arith.constant 0 : i32
    %c0_i32_1 = arith.constant 0 : i32
    return %c0_i32, %c0_i32_0 : i32, i32
  }
  func.func @transform_9(%arg0: i32) -> (i32, i32, i32) {
    %c0_i32 = arith.constant 0 : i32
    %c0_i32_0 = arith.constant 0 : i32
    %c0_i32_1 = arith.constant 0 : i32
    return %arg0, %c0_i32, %c0_i32_0 : i32, i32, i32
  }
}

</mosaic_0001>

<bundles_post_ra>
// kernel: srcnn_forward.1
= control target key start
LH: loop header
LB: loop body
LE: loop exit
PB: predicated region body
PF: predicated region fallthrough
CT: control target
= control target key end

     0   :  { %s8379_s0 = inlined_call_operand.vmem [shape: f32[2,1,256], index: 0, kind: input, shape index: {}]   ;;  %s8380_s1 = inlined_call_operand.hbm [shape: f32[256,1640], index: 1, kind: input, shape index: {}]   ;;  %s8381_s2 = inlined_call_operand.vmem [shape: bf16[64,81], index: 2, kind: input, shape index: {}]   ;;  %s8382_s3 = inlined_call_operand.vmem [shape: f32[64,1], index: 3, kind: input, shape index: {}]   ;;  %s8383_s4 = inlined_call_operand.vmem [shape: bf16[32,64], index: 4, kind: input, shape index: {}]   ;;  %s8384_s5 = inlined_call_operand.vmem [shape: f32[32,1], index: 5, kind: input, shape index: {}]   ;;  %s8385_s6 = inlined_call_operand.vmem [shape: f32[25,32], index: 6, kind: input, shape index: {}]   ;;  %s8386_s7 = inlined_call_operand.<no memory space> [shape: f32[1,1], index: 7, kind: input, shape index: {}]   ;;  %s8387_s8 = inlined_call_operand.hbm [shape: f32[1,1280], index: 8, kind: input, shape index: {}]   ;;  %s8388_s9 = inlined_call_operand.vmem [shape: f32[2,1,1280], index: 9, kind: output, shape index: {}]  }
   0x1   :  { %v14_v0 = vstv %s8386_s7 }
   0x2   :  { %15 = vst [vmem:[#allocation6] sm:$0x1] %v14_v0 }
   0x3   :  { %16 = vsyncpa [#allocation8], 0 }
   0x4   :  { %17 = vsyncpa [#allocation10], 0  ;;  %s6338_s11 = smov 0  }
   0x5 LB: > { %s6344_s12 = sadd.s32 4294967295, %s6202_s11   ;;  %p5906_p0 = scmp.ge.s32.totalorder %s6202_s11, 1  ;;  %s6202_s11 = sphi %s6338_s11, %s23_s11  }
   0x6   : > { %p248_p1 = scmp.lt.s32.totalorder %s6202_s11, 3  ;;  %s6204_s7 = smov [#allocation7]  }
   0x7   : > { %s260_s13 = sshll.u32 %s6204_s7, 4  ;;  %p6035_p3 = scmp.eq.s32.totalorder %s6344_s12, 0  ;;  %s261_s13 = int_to_ptr.vmem [resolvable:$true] %s260_s13 }
   0x8   : > { %p6348_p2 = pnand %p5906_p0, %p248_p1  ;;  %s6205_s15 = smov [#allocation9]  }
   0x9   : > { %s292_s16 = sshll.u32 %s6205_s15, 4  ;;  %s6147_s18 = scalar_lea.vmem %s261_s13, 53248  ;;  %s293_s16 = int_to_ptr.vmem [resolvable:$true] %s292_s16 }
   0xa   : > { %p6028_p4 = pneg %p6348_p2  ;;  %p6148_p7 = scmp.ne.s32.totalorder %s261_s13, %s6147_s18 }
   0xb   : > { %p6155_p10 = scmp.lt.s32.totalorder %s261_s13, %s261_s13  ;;  %p6156_p11 = scmp.lt.s32.totalorder %s6147_s18, %s6147_s18 }
   0xc   : > { %p6357_p5 = pnand %p6035_p3, %p6028_p4 }
   0xd   : > { %p6157_p12 = por %p6156_p11, %p6155_p10 }
   0xe   : > { %p6138_p6 = pneg %p6357_p5 }
  0x10   : > { %p6150_p8 = pnand %p6148_p7, %p6138_p6 }
  0x12   : > { %p6151_p9 = pneg %p6150_p8 }
  0x14   : > { %p6158_p13 = pnand %p6157_p12, %p6151_p9 }
  0x16   : > { %6161 = shalt.err (!%p6158_p13)
}
  0x17   : > { %s6206_s19 = smov 1664   ;;  %s6207_s20 = smov 104  }
  0x18   : > { %6031 = dma.hbm_to_vmem [thread:$0]  (!%p6357_p5), %s8380_s1, 53248, %s261_s13, [#allocation8], %s6206_s19, %s6206_s19, %s6207_s20  }
  0x19   : > { %s6173_s23 = scalar_lea.vmem %s293_s16, 160  ;;  %p6181_p7 = scmp.lt.s32.totalorder %s293_s16, %s293_s16 }
  0x1a   : > { %p6174_p0 = scmp.ne.s32.totalorder %s293_s16, %s6173_s23  ;;  %p6182_p8 = scmp.lt.s32.totalorder %s6173_s23, %s6173_s23 }
  0x1c   : > { %p6176_p1 = pnand %p6174_p0, %p6138_p6  ;;  %p6183_p10 = por %p6182_p8, %p6181_p7 }
  0x1e   : > { %p6177_p4 = pneg %p6176_p1 }
  0x20   : > { %p6184_p9 = pnand %p6183_p10, %p6177_p4 }
  0x22   : > { %6187 = shalt.err (!%p6184_p9)
}
  0x23   : > { %6034 = dma.hbm_to_vmem [thread:$0]  (!%p6357_p5), %s8387_s8, 160, %s293_s16, [#allocation10]  }
  0x24   : > { %312 = sbr.rel (%p6348_p2) target bundleno = 1996 (0x7cc), region = 56 }
  0x29   : > { %6193 = dma.done.wait (%p6035_p3), [#allocation8], 53248  }
  0x2a   : > { %6195 = vsyncadd (%p6035_p3), [#allocation8], 4294914048 }
  0x2b   : > { %6197 = dma.done.wait (%p6035_p3), [#allocation10], 160  }
  0x2c   : > { %6199 = vsyncadd (%p6035_p3), [#allocation10], 4294967136  ;;  %v556_v1 = vld [vmem:[#allocation7 + $0x620] sm:$0xff]  ;;  %v558_v2 = vld [vmem:[#allocation7 + $0x630] sm:$0xff]  ;;  %p350_p2 = scmp.lt.s32.totalorder %s6344_s12, 1  ;;  %s6209_s30 = smov 3  }
  0x2d   : > { %v555_v3 = vld [vmem:[#allocation7 + $0x618] sm:$0xff]  ;;  %787 = vmatprep.subr.mxu0 %v556_v1  ;;  %858 = vmatprep.subr.mxu1 %v558_v2  ;;  %v557_v4 = vld [vmem:[#allocation7 + $0x628] sm:$0xff]  ;;  %v542_v7 = vld [vmem:[#allocation7 + $0x5b0] sm:$0xff]  ;;  %s6210_s10 = smov 2   ;;  %s6211_s7 = smov 1   ;;  %vm1411_vm2 = vcmask 1046528  }
  0x2e   : > { %v543_v5 = vld [vmem:[#allocation7 + $0x5b8] sm:$0xff]  ;;  %v545_v6 = vld [vmem:[#allocation7 + $0x5c8] sm:$0xff]  ;;  %788 = vmatpush1.msra.mxu0 %v555_v3  ;;  %859 = vmatpush1.msra.mxu1 %v557_v4  ;;  %v544_v8 = vld [vmem:[#allocation7 + $0x5c0] sm:$0xff]  ;;  %s8542_s12 = smov (!%p350_p2, %s6344_s12), 1  ;;  %s6212_s13 = smov 81   ;;  %vm2782_vm3 = vcmask 842752  }
  0x2f   : > { %v530_v9 = vld [vmem:[#allocation7 + $0x550] sm:$0xff]  ;;  %789 = vmatprep.subr.mxu0 %v543_v5  ;;  %860 = vmatprep.subr.mxu1 %v545_v6  ;;  %v532_v10 = vld [vmem:[#allocation7 + $0x560] sm:$0xff]  ;;  %v529_v11 = vld [vmem:[#allocation7 + $0x548] sm:$0xff]  ;;  %s5913_s26 = sshll.u32 %s8542_s12, 1  ;;  %s6213_s14 = smov 80   ;;  %vm2804_vm4 = vcmask 834560  }
  0x30   : > { %v531_v12 = vld [vmem:[#allocation7 + $0x558] sm:$0xff]  ;;  %790 = vmatpush1.msra.mxu0 %v542_v7  ;;  %861 = vmatpush1.msra.mxu1 %v544_v8  ;;  %v517_v13 = vld [vmem:[#allocation7 + $0x4e8] sm:$0xff]  ;;  %v516_v15 = vld [vmem:[#allocation7 + $0x4e0] sm:$0xff]  ;;  %s353_s29 = scalar_lea.vmem %s8379_s0, %s5913_s26  ;;  %s8454_s15 = smov 48   ;;  %vm2826_vm5 = vcmask 826368   ;;  %vm2848_vm6 = vcmask 818176  }
  0x31   : > { %v519_v14 = vld [vmem:[#allocation7 + $0x4f8] sm:$0xff]  ;;  %791 = vmatprep.subr.mxu0 %v530_v9  ;;  %862 = vmatprep.subr.mxu1 %v532_v10  ;;  %v518_v16 = vld [vmem:[#allocation7 + $0x4f0] sm:$0xff]  ;;  %v504_v17 = vld [vmem:[#allocation7 + $0x480] sm:$0xff]  ;;  %s8452_s16 = smov 47   ;;  %s8425_s17 = smov 46   ;;  %vm2870_vm7 = vcmask 809984  }
  0x32   : > { %792 = vmatpush1.msra.mxu0 %v529_v11  ;;  %863 = vmatpush1.msra.mxu1 %v531_v12  ;;  %v506_v18 = vld [vmem:[#allocation7 + $0x490] sm:$0xff]  ;;  %v503_v19 = vld [vmem:[#allocation7 + $0x478] sm:$0xff]  ;;  %v505_v20 = vld [vmem:[#allocation7 + $0x488] sm:$0xff]  ;;  %s8423_s18 = smov 45   ;;  %s8421_s19 = smov 44   ;;  %vm2892_vm8 = vcmask 801792  }
  0x33   : > { %793 = vmatprep.subr.mxu0 %v517_v13  ;;  %864 = vmatprep.subr.mxu1 %v519_v14  ;;  %v491_v21 = vld [vmem:[#allocation7 + $0x418] sm:$0xff]  ;;  %v493_v22 = vld [vmem:[#allocation7 + $0x428] sm:$0xff]  ;;  %v490_v23 = vld [vmem:[#allocation7 + $0x410] sm:$0xff]  ;;  %s8420_s20 = smov 43   ;;  %s8415_s21 = smov 42   ;;  %vm2366_vm9 = vcmask 457728  }
  0x34   : > { %794 = vmatpush1.msra.mxu0 %v516_v15  ;;  %865 = vmatpush1.msra.mxu1 %v518_v16  ;;  %v492_v24 = vld [vmem:[#allocation7 + $0x420] sm:$0xff]  ;;  %v478_v25 = vld [vmem:[#allocation7 + $0x3b0] sm:$0xff]  ;;  %v477_v27 = vld [vmem:[#allocation7 + $0x3a8] sm:$0xff]  ;;  %s8412_s22 = smov 41   ;;  %s8409_s23 = smov 40   ;;  %vm2914_vm10 = vcmask 793600  }
  0x35   : > { %795 = vmatprep.subr.mxu0 %v504_v17  ;;  %866 = vmatprep.subr.mxu1 %v506_v18  ;;  %v480_v26 = vld [vmem:[#allocation7 + $0x3c0] sm:$0xff]  ;;  %v479_v28 = vld [vmem:[#allocation7 + $0x3b8] sm:$0xff]  ;;  %v465_v29 = vld [vmem:[#allocation7 + $0x348] sm:$0xff]  ;;  %s8445_s24 = smov 8   ;;  %s8389_s25 = smov 7   ;;  %vm8451_vm11 = vcmask 785408  }
  0x36   : > { %796 = vmatpush1.msra.mxu0 %v503_v19  ;;  %867 = vmatpush1.msra.mxu1 %v505_v20  ;;  %v467_v30 = vld [vmem:[#allocation7 + $0x358] sm:$0xff]  ;;  %v464_v31 = vld [vmem:[#allocation7 + $0x340] sm:$0xff]  ;;  %v466_v32 = vld [vmem:[#allocation7 + $0x350] sm:$0xff]  ;;  %s8391_s26 = smov 6   ;;  %s8404_s27 = smov 5   ;;  %vm3401_vm12 = vcmask 1040384  }
  0x37   : > { %797 = vmatprep.subr.mxu0 %v491_v21  ;;  %868 = vmatprep.subr.mxu1 %v493_v22  ;;  %v452_v33 = vld [vmem:[#allocation7 + $0x2e0] sm:$0xff]  ;;  %v454_v34 = vld [vmem:[#allocation7 + $0x2f0] sm:$0xff]  ;;  %v451_v35 = vld [vmem:[#allocation7 + $0x2d8] sm:$0xff]  ;;  %s8393_s28 = smov 4   ;;  %vm2957_vm13 = vcmask 523264   ;;  %vm2979_vm14 = vcmask 515072  }
  0x38   : > { %798 = vmatpush1.msra.mxu0 %v490_v23  ;;  %869 = vmatpush1.msra.mxu1 %v492_v24  ;;  %v453_v36 = vld [vmem:[#allocation7 + $0x2e8] sm:$0xff]  ;;  %v439_v37 = vld [vmem:[#allocation7 + $0x278] sm:$0xff]  ;;  %v438_v39 = vld [vmem:[#allocation7 + $0x270] sm:$0xff]  ;;  %vm3001_vm15 = vcmask 506880  }
  0x39   : > { %799 = vmatprep.subr.mxu0 %v478_v25  ;;  %870 = vmatprep.subr.mxu1 %v480_v26  ;;  %v441_v38 = vld [vmem:[#allocation7 + $0x288] sm:$0xff]  ;;  %v440_v40 = vld [vmem:[#allocation7 + $0x280] sm:$0xff]  ;;  %v426_v41 = vld [vmem:[#allocation7 + $0x210] sm:$0xff] }
  0x3a   : > { %800 = vmatpush1.msra.mxu0 %v477_v27  ;;  %871 = vmatpush1.msra.mxu1 %v479_v28  ;;  %v428_v42 = vld [vmem:[#allocation7 + $0x220] sm:$0xff]  ;;  %v425_v43 = vld [vmem:[#allocation7 + $0x208] sm:$0xff]  ;;  %v427_v44 = vld [vmem:[#allocation7 + $0x218] sm:$0xff] }
  0x3b   : > { %801 = vmatprep.subr.mxu0 %v465_v29  ;;  %872 = vmatprep.subr.mxu1 %v467_v30  ;;  %v413_v45 = vld [vmem:[#allocation7 + $0x1a8] sm:$0xff]  ;;  %v415_v46 = vld [vmem:[#allocation7 + $0x1b8] sm:$0xff]  ;;  %v412_v47 = vld [vmem:[#allocation7 + $0x1a0] sm:$0xff] }
  0x3c   : > { %802 = vmatpush1.msra.mxu0 %v464_v31  ;;  %873 = vmatpush1.msra.mxu1 %v466_v32  ;;  %v414_v48 = vld [vmem:[#allocation7 + $0x1b0] sm:$0xff]  ;;  %v400_v49 = vld [vmem:[#allocation7 + $0x140] sm:$0xff]  ;;  %v399_v51 = vld [vmem:[#allocation7 + $0x138] sm:$0xff] }
  0x3d   : > { %803 = vmatprep.subr.mxu0 %v452_v33  ;;  %874 = vmatprep.subr.mxu1 %v454_v34  ;;  %v402_v50 = vld [vmem:[#allocation7 + $0x150] sm:$0xff]  ;;  %v401_v52 = vld [vmem:[#allocation7 + $0x148] sm:$0xff]  ;;  %v387_v53 = vld [vmem:[#allocation7 + $0xd8] sm:$0xff] }
  0x3e   : > { %804 = vmatpush1.msra.mxu0 %v451_v35  ;;  %875 = vmatpush1.msra.mxu1 %v453_v36  ;;  %v389_v54 = vld [vmem:[#allocation7 + $0xe8] sm:$0xff]  ;;  %v386_v55 = vld [vmem:[#allocation7 + $0xd0] sm:$0xff]  ;;  %v388_v56 = vld [vmem:[#allocation7 + $0xe0] sm:$0xff] }
  0x3f   : > { %805 = vmatprep.subr.mxu0 %v439_v37  ;;  %876 = vmatprep.subr.mxu1 %v441_v38  ;;  %v374_v57 = vld [vmem:[#allocation7 + $0x70] sm:$0xff]  ;;  %v376_v58 = vld [vmem:[#allocation7 + $0x80] sm:$0xff]  ;;  %v373_v59 = vld [vmem:[#allocation7 + $0x68] sm:$0xff] }
  0x40   : > { %806 = vmatpush1.msra.mxu0 %v438_v39  ;;  %877 = vmatpush1.msra.mxu1 %v440_v40  ;;  %v375_v60 = vld [vmem:[#allocation7 + $0x78] sm:$0xff]  ;;  %v361_v61 = vld [vmem:[#allocation7 + $0x8] sm:$0xff]  ;;  %v360_v63 = vld [vmem:[#allocation7] sm:$0xff]  ;;  %v777_v39 = vlaneseq }
  0x41   : > { %807 = vmatprep.subr.mxu0 %v426_v41  ;;  %878 = vmatprep.subr.mxu1 %v428_v42  ;;  %v363_v62 = vld [vmem:[#allocation7 + $0x18] sm:$0xff]  ;;  %v362_v0 = vld [vmem:[#allocation7 + $0x10] sm:$0xff]  ;;  %v764_v1 = vld [vmem:[#allocation7 + $0xca0] sm:$0xff] }
  0x42   : > { %808 = vmatpush1.msra.mxu0 %v425_v43  ;;  %879 = vmatpush1.msra.mxu1 %v427_v44  ;;  %v766_v2 = vld [vmem:[#allocation7 + $0xcb0] sm:$0xff]  ;;  %v763_v3 = vld [vmem:[#allocation7 + $0xc98] sm:$0xff]  ;;  %v765_v4 = vld [vmem:[#allocation7 + $0xca8] sm:$0xff]  ;;  %vm1389_vm0 = vcmp.lt.s32.totalorder %v777_v39, 616  ;;  %vm6531_vm1 = vcmp.lt.s32.totalorder %v777_v39, 256 }
  0x43   : > { %809 = vmatprep.subr.mxu0 %v413_v45  ;;  %880 = vmatprep.subr.mxu1 %v415_v46  ;;  %v751_v5 = vld [vmem:[#allocation7 + $0xc38] sm:$0xff]  ;;  %v753_v6 = vld [vmem:[#allocation7 + $0xc48] sm:$0xff]  ;;  %v750_v7 = vld [vmem:[#allocation7 + $0xc30] sm:$0xff] }
  0x44   : > { %810 = vmatpush1.msra.mxu0 %v412_v47  ;;  %881 = vmatpush1.msra.mxu1 %v414_v48  ;;  %v752_v8 = vld [vmem:[#allocation7 + $0xc40] sm:$0xff]  ;;  %v738_v9 = vld [vmem:[#allocation7 + $0xbd0] sm:$0xff]  ;;  %v737_v11 = vld [vmem:[#allocation7 + $0xbc8] sm:$0xff]  ;;  %v6397_v48 = vshrl.u32 %v777_v39, 7 }
  0x45   : > { %811 = vmatprep.subr.mxu0 %v400_v49  ;;  %882 = vmatprep.subr.mxu1 %v402_v50  ;;  %v740_v10 = vld [vmem:[#allocation7 + $0xbe0] sm:$0xff]  ;;  %v739_v12 = vld [vmem:[#allocation7 + $0xbd8] sm:$0xff]  ;;  %v725_v13 = vld [vmem:[#allocation7 + $0xb68] sm:$0xff] }
  0x46   : > { %812 = vmatpush1.msra.mxu0 %v399_v51  ;;  %883 = vmatpush1.msra.mxu1 %v401_v52  ;;  %v727_v14 = vld [vmem:[#allocation7 + $0xb78] sm:$0xff]  ;;  %v724_v15 = vld [vmem:[#allocation7 + $0xb60] sm:$0xff]  ;;  %v726_v16 = vld [vmem:[#allocation7 + $0xb70] sm:$0xff] }
  0x47   : > { %813 = vmatprep.subr.mxu0 %v387_v53  ;;  %884 = vmatprep.subr.mxu1 %v389_v54  ;;  %v712_v17 = vld [vmem:[#allocation7 + $0xb00] sm:$0xff]  ;;  %v714_v18 = vld [vmem:[#allocation7 + $0xb10] sm:$0xff]  ;;  %v711_v19 = vld [vmem:[#allocation7 + $0xaf8] sm:$0xff] }
  0x48   : > { %814 = vmatpush1.msra.mxu0 %v386_v55  ;;  %885 = vmatpush1.msra.mxu1 %v388_v56  ;;  %v713_v20 = vld [vmem:[#allocation7 + $0xb08] sm:$0xff]  ;;  %v699_v21 = vld [vmem:[#allocation7 + $0xa98] sm:$0xff]  ;;  %v698_v23 = vld [vmem:[#allocation7 + $0xa90] sm:$0xff] }
  0x49   : > { %815 = vmatprep.subr.mxu0 %v374_v57  ;;  %886 = vmatprep.subr.mxu1 %v376_v58  ;;  %v701_v22 = vld [vmem:[#allocation7 + $0xaa8] sm:$0xff]  ;;  %v700_v24 = vld [vmem:[#allocation7 + $0xaa0] sm:$0xff]  ;;  %v686_v25 = vld [vmem:[#allocation7 + $0xa30] sm:$0xff]  ;;  %v6403_v57 = vsub.s32 1, %v6397_v48 }
  0x4a   : > { %816 = vmatpush1.msra.mxu0 %v373_v59  ;;  %887 = vmatpush1.msra.mxu1 %v375_v60  ;;  %v688_v26 = vld [vmem:[#allocation7 + $0xa40] sm:$0xff]  ;;  %v685_v27 = vld [vmem:[#allocation7 + $0xa28] sm:$0xff]  ;;  %v687_v28 = vld [vmem:[#allocation7 + $0xa38] sm:$0xff] }
  0x4b   : > { %817 = vmatprep.subr.mxu0 %v361_v61  ;;  %888 = vmatprep.subr.mxu1 %v363_v62  ;;  %v673_v29 = vld [vmem:[#allocation7 + $0x9c8] sm:$0xff]  ;;  %v675_v30 = vld [vmem:[#allocation7 + $0x9d8] sm:$0xff]  ;;  %v672_v31 = vld [vmem:[#allocation7 + $0x9c0] sm:$0xff] }
  0x4c   : > { %818 = vmatpush1.msra.mxu0 %v360_v63  ;;  %889 = vmatpush1.msra.mxu1 %v362_v0  ;;  %v674_v32 = vld [vmem:[#allocation7 + $0x9d0] sm:$0xff]  ;;  %v660_v33 = vld [vmem:[#allocation7 + $0x960] sm:$0xff]  ;;  %v659_v35 = vld [vmem:[#allocation7 + $0x958] sm:$0xff]  ;;  %v6406_v63 = vsub.s32 0, %v6397_v48 }
  0x4d   : > { %819 = vmatprep.subr.mxu0 %v764_v1  ;;  %890 = vmatprep.subr.mxu1 %v766_v2  ;;  %v662_v34 = vld [vmem:[#allocation7 + $0x970] sm:$0xff]  ;;  %v661_v36 = vld [vmem:[#allocation7 + $0x968] sm:$0xff]  ;;  %v647_v37 = vld [vmem:[#allocation7 + $0x8f8] sm:$0xff] }
  0x4e   : > { %820 = vmatpush2.msra.mxu0 %v763_v3  ;;  %891 = vmatpush2.msra.mxu1 %v765_v4  ;;  %v649_v38 = vld [vmem:[#allocation7 + $0x908] sm:$0xff]  ;;  %v646_v40 = vld [vmem:[#allocation7 + $0x8f0] sm:$0xff]  ;;  %v648_v41 = vld [vmem:[#allocation7 + $0x900] sm:$0xff] }
  0x4f   : > { %821 = vmatprep.subr.mxu0 %v751_v5  ;;  %892 = vmatprep.subr.mxu1 %v753_v6  ;;  %v634_v42 = vld [vmem:[#allocation7 + $0x890] sm:$0xff]  ;;  %v636_v43 = vld [vmem:[#allocation7 + $0x8a0] sm:$0xff]  ;;  %v633_v44 = vld [vmem:[#allocation7 + $0x888] sm:$0xff] }
  0x50   : > { %822 = vmatpush2.msra.mxu0 %v750_v7  ;;  %893 = vmatpush2.msra.mxu1 %v752_v8  ;;  %v635_v45 = vld [vmem:[#allocation7 + $0x898] sm:$0xff]  ;;  %v621_v46 = vld [vmem:[#allocation7 + $0x828] sm:$0xff]  ;;  %v620_v49 = vld [vmem:[#allocation7 + $0x820] sm:$0xff] }
  0x51   : > { %823 = vmatprep.subr.mxu0 %v738_v9  ;;  %894 = vmatprep.subr.mxu1 %v740_v10  ;;  %v623_v47 = vld [vmem:[#allocation7 + $0x838] sm:$0xff]  ;;  %v622_v50 = vld [vmem:[#allocation7 + $0x830] sm:$0xff]  ;;  %v608_v51 = vld [vmem:[#allocation7 + $0x7c0] sm:$0xff] }
  0x52   : > { %824 = vmatpush2.msra.mxu0 %v737_v11  ;;  %895 = vmatpush2.msra.mxu1 %v739_v12  ;;  %v610_v52 = vld [vmem:[#allocation7 + $0x7d0] sm:$0xff]  ;;  %v607_v53 = vld [vmem:[#allocation7 + $0x7b8] sm:$0xff]  ;;  %v609_v54 = vld [vmem:[#allocation7 + $0x7c8] sm:$0xff] }
  0x53   : > { %825 = vmatprep.subr.mxu0 %v725_v13  ;;  %896 = vmatprep.subr.mxu1 %v727_v14  ;;  %v595_v55 = vld [vmem:[#allocation7 + $0x758] sm:$0xff]  ;;  %v597_v56 = vld [vmem:[#allocation7 + $0x768] sm:$0xff]  ;;  %v594_v58 = vld [vmem:[#allocation7 + $0x750] sm:$0xff] }
  0x54   : > { %826 = vmatpush2.msra.mxu0 %v724_v15  ;;  %897 = vmatpush2.msra.mxu1 %v726_v16  ;;  %v596_v59 = vld [vmem:[#allocation7 + $0x760] sm:$0xff]  ;;  %v582_v61 = vld [vmem:[#allocation7 + $0x6f0] sm:$0xff]  ;;  %v581_v0 = vld [vmem:[#allocation7 + $0x6e8] sm:$0xff] }
  0x55   : > { %827 = vmatprep.subr.mxu0 %v712_v17  ;;  %898 = vmatprep.subr.mxu1 %v714_v18  ;;  %v359_v60 = vld [vmem:[%s353_s29] sm:$0x3]  ;;  %v583_v1 = vld [vmem:[#allocation7 + $0x6f8] sm:$0xff]  ;;  %v569_v2 = vld [vmem:[#allocation7 + $0x688] sm:$0xff]  ;;  %s8401_s29 = smov 127  }
  0x56   : > { %828 = vmatpush2.msra.mxu0 %v711_v19  ;;  %899 = vmatpush2.msra.mxu1 %v713_v20  ;;  %v584_v62 = vld [vmem:[#allocation7 + $0x700] sm:$0xff]  ;;  %v571_v3 = vld [vmem:[#allocation7 + $0x698] sm:$0xff]  ;;  %v6409_v4 = vrot.slane %v359_v60, %v6403_v57  ;;  %v570_v6 = vld [vmem:[#allocation7 + $0x690] sm:$0xff]  ;;  %v6412_v7 = vrot.slane %v359_v60, %v6406_v63 }
  0x57   : > { %829 = vmatprep.subr.mxu0 %v699_v21  ;;  %900 = vmatprep.subr.mxu1 %v701_v22  ;;  %v568_v5 = vld [vmem:[#allocation7 + $0x680] sm:$0xff]  ;;  %v562_v9 = vld [vmem:[#allocation7 + $0x650] sm:$0xff]  ;;  %v559_v10 = vld [vmem:[#allocation7 + $0x638] sm:$0xff] }
  0x58   : > { %830 = vmatpush2.msra.mxu0 %v698_v23  ;;  %901 = vmatpush2.msra.mxu1 %v700_v24  ;;  %v560_v8 = vld [vmem:[#allocation7 + $0x640] sm:$0xff]  ;;  %v561_v11 = vld [vmem:[#allocation7 + $0x648] sm:$0xff]  ;;  %v547_v12 = vld [vmem:[#allocation7 + $0x5d8] sm:$0xff] }
  0x59   : > { %831 = vmatprep.subr.mxu0 %v686_v25  ;;  %902 = vmatprep.subr.mxu1 %v688_v26  ;;  %v549_v13 = vld [vmem:[#allocation7 + $0x5e8] sm:$0xff]  ;;  %v546_v14 = vld [vmem:[#allocation7 + $0x5d0] sm:$0xff]  ;;  %v548_v15 = vld [vmem:[#allocation7 + $0x5e0] sm:$0xff] }
  0x5a   : > { %832 = vmatpush2.msra.mxu0 %v685_v27  ;;  %903 = vmatpush2.msra.mxu1 %v687_v28  ;;  %v534_v16 = vld [vmem:[#allocation7 + $0x570] sm:$0xff]  ;;  %v536_v17 = vld [vmem:[#allocation7 + $0x580] sm:$0xff]  ;;  %v533_v18 = vld [vmem:[#allocation7 + $0x568] sm:$0xff] }
  0x5b   : > { %833 = vmatprep.subr.mxu0 %v673_v29  ;;  %904 = vmatprep.subr.mxu1 %v675_v30  ;;  %v535_v19 = vld [vmem:[#allocation7 + $0x578] sm:$0xff]  ;;  %v521_v20 = vld [vmem:[#allocation7 + $0x508] sm:$0xff]  ;;  %v520_v22 = vld [vmem:[#allocation7 + $0x500] sm:$0xff] }
  0x5c   : > { %834 = vmatpush2.msra.mxu0 %v672_v31  ;;  %905 = vmatpush2.msra.mxu1 %v674_v32  ;;  %v523_v21 = vld [vmem:[#allocation7 + $0x518] sm:$0xff]  ;;  %v522_v23 = vld [vmem:[#allocation7 + $0x510] sm:$0xff]  ;;  %v508_v24 = vld [vmem:[#allocation7 + $0x4a0] sm:$0xff] }
  0x5d   : > { %835 = vmatprep.subr.mxu0 %v660_v33  ;;  %906 = vmatprep.subr.mxu1 %v662_v34  ;;  %v510_v25 = vld [vmem:[#allocation7 + $0x4b0] sm:$0xff]  ;;  %v507_v26 = vld [vmem:[#allocation7 + $0x498] sm:$0xff]  ;;  %v509_v27 = vld [vmem:[#allocation7 + $0x4a8] sm:$0xff] }
  0x5e   : > { %836 = vmatpush2.msra.mxu0 %v659_v35  ;;  %907 = vmatpush2.msra.mxu1 %v661_v36  ;;  %v495_v28 = vld [vmem:[#allocation7 + $0x438] sm:$0xff]  ;;  %v497_v29 = vld [vmem:[#allocation7 + $0x448] sm:$0xff]  ;;  %v494_v30 = vld [vmem:[#allocation7 + $0x430] sm:$0xff] }
  0x5f   : > { %837 = vmatprep.subr.mxu0 %v647_v37  ;;  %908 = vmatprep.subr.mxu1 %v649_v38  ;;  %v496_v31 = vld [vmem:[#allocation7 + $0x440] sm:$0xff]  ;;  %v482_v32 = vld [vmem:[#allocation7 + $0x3d0] sm:$0xff]  ;;  %v481_v34 = vld [vmem:[#allocation7 + $0x3c8] sm:$0xff] }
  0x60   : > { %838 = vmatpush2.msra.mxu0 %v646_v40  ;;  %909 = vmatpush2.msra.mxu1 %v648_v41  ;;  %v484_v33 = vld [vmem:[#allocation7 + $0x3e0] sm:$0xff]  ;;  %v483_v35 = vld [vmem:[#allocation7 + $0x3d8] sm:$0xff]  ;;  %v469_v36 = vld [vmem:[#allocation7 + $0x368] sm:$0xff] }
  0x61   : > { %839 = vmatprep.subr.mxu0 %v634_v42  ;;  %910 = vmatprep.subr.mxu1 %v636_v43  ;;  %v471_v37 = vld [vmem:[#allocation7 + $0x378] sm:$0xff]  ;;  %v468_v38 = vld [vmem:[#allocation7 + $0x360] sm:$0xff]  ;;  %v470_v40 = vld [vmem:[#allocation7 + $0x370] sm:$0xff] }
  0x62   : > { %840 = vmatpush2.msra.mxu0 %v633_v44  ;;  %911 = vmatpush2.msra.mxu1 %v635_v45  ;;  %v456_v41 = vld [vmem:[#allocation7 + $0x300] sm:$0xff]  ;;  %v458_v42 = vld [vmem:[#allocation7 + $0x310] sm:$0xff]  ;;  %v455_v43 = vld [vmem:[#allocation7 + $0x2f8] sm:$0xff] }
  0x63   : > { %841 = vmatprep.subr.mxu0 %v621_v46  ;;  %912 = vmatprep.subr.mxu1 %v623_v47  ;;  %v457_v44 = vld [vmem:[#allocation7 + $0x308] sm:$0xff]  ;;  %v443_v45 = vld [vmem:[#allocation7 + $0x298] sm:$0xff]  ;;  %v442_v47 = vld [vmem:[#allocation7 + $0x290] sm:$0xff] }
  0x64   : > { %842 = vmatpush2.msra.mxu0 %v620_v49  ;;  %913 = vmatpush2.msra.mxu1 %v622_v50  ;;  %v445_v46 = vld [vmem:[#allocation7 + $0x2a8] sm:$0xff]  ;;  %v444_v49 = vld [vmem:[#allocation7 + $0x2a0] sm:$0xff]  ;;  %v430_v50 = vld [vmem:[#allocation7 + $0x230] sm:$0xff] }
  0x65   : > { %843 = vmatprep.subr.mxu0 %v608_v51  ;;  %914 = vmatprep.subr.mxu1 %v610_v52  ;;  %v432_v51 = vld [vmem:[#allocation7 + $0x240] sm:$0xff]  ;;  %v429_v52 = vld [vmem:[#allocation7 + $0x228] sm:$0xff]  ;;  %v406_v60 = vld [vmem:[#allocation7 + $0x170] sm:$0xff] }
  0x66   : > { %844 = vmatpush2.msra.mxu0 %v607_v53  ;;  %915 = vmatpush2.msra.mxu1 %v609_v54  ;;  %v431_v53 = vld [vmem:[#allocation7 + $0x238] sm:$0xff]  ;;  %v417_v54 = vld [vmem:[#allocation7 + $0x1c8] sm:$0xff] }
  0x67   : > { %845 = vmatprep.subr.mxu0 %v595_v55  ;;  %916 = vmatprep.subr.mxu1 %v597_v56  ;;  %v419_v55 = vld [vmem:[#allocation7 + $0x1d8] sm:$0xff]  ;;  %v416_v56 = vld [vmem:[#allocation7 + $0x1c0] sm:$0xff] }
  0x68   : > { %846 = vmatpush2.msra.mxu0 %v594_v58  ;;  %917 = vmatpush2.msra.mxu1 %v596_v59  ;;  %v418_v58 = vld [vmem:[#allocation7 + $0x1d0] sm:$0xff]  ;;  %v404_v59 = vld [vmem:[#allocation7 + $0x160] sm:$0xff] }
  0x69   : > { %847 = vmatprep.subr.mxu0 %v582_v61  ;;  %918 = vmatprep.subr.mxu1 %v584_v62  ;;  %v403_v61 = vld [vmem:[#allocation7 + $0x158] sm:$0xff]  ;;  %v405_v62 = vld [vmem:[#allocation7 + $0x168] sm:$0xff] }
  0x6a   : > { %848 = vmatpush2.msra.mxu0 %v581_v0  ;;  %919 = vmatpush2.msra.mxu1 %v583_v1  ;;  %v391_v0 = vld [vmem:[#allocation7 + $0xf8] sm:$0xff]  ;;  %v393_v1 = vld [vmem:[#allocation7 + $0x108] sm:$0xff] }
  0x6b   : > { %849 = vmatprep.subr.mxu0 %v569_v2  ;;  %920 = vmatprep.subr.mxu1 %v571_v3  ;;  %v390_v2 = vld [vmem:[#allocation7 + $0xf0] sm:$0xff]  ;;  %v392_v3 = vld [vmem:[#allocation7 + $0x100] sm:$0xff] }
  0x6c   : > { %850 = vmatpush2.msra.mxu0 %v568_v5  ;;  %851 = vmatprep.mubr.f32.mxu0 %v6409_v4  ;;  %v378_v5 = vld [vmem:[#allocation7 + $0x90] sm:$0xff] }
  0x6d   : > { %921 = vmatpush2.msra.mxu1 %v570_v6  ;;  %922 = vmatprep.mubr.f32.mxu1 %v6409_v4  ;;  %v380_v6 = vld [vmem:[#allocation7 + $0xa0] sm:$0xff] }
  0x6e   : > { %852 = vmatmul.mubr.f32.vlgmr.msra.gmra.mxu0 %v6412_v7  ;;  %923 = vmatmul.mubr.f32.vlgmr.msra.gmra.mxu1 %v6412_v7 }
  0x6f   : > { %929 = vmatprep.subr.mxu0 %v560_v8  ;;  %1000 = vmatprep.subr.mxu1 %v562_v9  ;;  %v377_v8 = vld [vmem:[#allocation7 + $0x88] sm:$0xff]  ;;  %v379_v9 = vld [vmem:[#allocation7 + $0x98] sm:$0xff] }
  0x70   : > { %930 = vmatpush1.msra.mxu0 %v559_v10  ;;  %1001 = vmatpush1.msra.mxu1 %v561_v11  ;;  %v365_v10 = vld [vmem:[#allocation7 + $0x28] sm:$0xff]  ;;  %v367_v11 = vld [vmem:[#allocation7 + $0x38] sm:$0xff] }
  0x71   : > { %931 = vmatprep.subr.mxu0 %v547_v12  ;;  %1002 = vmatprep.subr.mxu1 %v549_v13  ;;  %v364_v12 = vld [vmem:[#allocation7 + $0x20] sm:$0xff]  ;;  %v366_v13 = vld [vmem:[#allocation7 + $0x30] sm:$0xff] }
  0x72   : > { %932 = vmatpush1.msra.mxu0 %v546_v14  ;;  %1003 = vmatpush1.msra.mxu1 %v548_v15  ;;  %v768_v14 = vld [vmem:[#allocation7 + $0xcc0] sm:$0xff]  ;;  %v770_v15 = vld [vmem:[#allocation7 + $0xcd0] sm:$0xff] }
  0x73   : > { %933 = vmatprep.subr.mxu0 %v534_v16  ;;  %1004 = vmatprep.subr.mxu1 %v536_v17  ;;  %v767_v16 = vld [vmem:[#allocation7 + $0xcb8] sm:$0xff]  ;;  %v769_v17 = vld [vmem:[#allocation7 + $0xcc8] sm:$0xff] }
  0x74   : > { %934 = vmatpush1.msra.mxu0 %v533_v18  ;;  %1005 = vmatpush1.msra.mxu1 %v535_v19  ;;  %v755_v18 = vld [vmem:[#allocation7 + $0xc58] sm:$0xff]  ;;  %v757_v19 = vld [vmem:[#allocation7 + $0xc68] sm:$0xff] }
  0x75   : > { %935 = vmatprep.subr.mxu0 %v521_v20  ;;  %1006 = vmatprep.subr.mxu1 %v523_v21  ;;  %v754_v20 = vld [vmem:[#allocation7 + $0xc50] sm:$0xff]  ;;  %v756_v21 = vld [vmem:[#allocation7 + $0xc60] sm:$0xff] }
  0x76   : > { %936 = vmatpush1.msra.mxu0 %v520_v22  ;;  %1007 = vmatpush1.msra.mxu1 %v522_v23  ;;  %v742_v22 = vld [vmem:[#allocation7 + $0xbf0] sm:$0xff]  ;;  %v744_v23 = vld [vmem:[#allocation7 + $0xc00] sm:$0xff] }
  0x77   : > { %937 = vmatprep.subr.mxu0 %v508_v24  ;;  %1008 = vmatprep.subr.mxu1 %v510_v25  ;;  %v741_v24 = vld [vmem:[#allocation7 + $0xbe8] sm:$0xff]  ;;  %v743_v25 = vld [vmem:[#allocation7 + $0xbf8] sm:$0xff] }
  0x78   : > { %938 = vmatpush1.msra.mxu0 %v507_v26  ;;  %1009 = vmatpush1.msra.mxu1 %v509_v27  ;;  %v729_v26 = vld [vmem:[#allocation7 + $0xb88] sm:$0xff]  ;;  %v731_v27 = vld [vmem:[#allocation7 + $0xb98] sm:$0xff] }
  0x79   : > { %939 = vmatprep.subr.mxu0 %v495_v28  ;;  %1010 = vmatprep.subr.mxu1 %v497_v29  ;;  %v728_v28 = vld [vmem:[#allocation7 + $0xb80] sm:$0xff]  ;;  %v730_v29 = vld [vmem:[#allocation7 + $0xb90] sm:$0xff] }
  0x7a   : > { %940 = vmatpush1.msra.mxu0 %v494_v30  ;;  %1011 = vmatpush1.msra.mxu1 %v496_v31  ;;  %v716_v30 = vld [vmem:[#allocation7 + $0xb20] sm:$0xff]  ;;  %v718_v31 = vld [vmem:[#allocation7 + $0xb30] sm:$0xff] }
  0x7b   : > { %941 = vmatprep.subr.mxu0 %v482_v32  ;;  %1012 = vmatprep.subr.mxu1 %v484_v33  ;;  %v715_v32 = vld [vmem:[#allocation7 + $0xb18] sm:$0xff]  ;;  %v717_v33 = vld [vmem:[#allocation7 + $0xb28] sm:$0xff] }
  0x7c   : > { %942 = vmatpush1.msra.mxu0 %v481_v34  ;;  %1013 = vmatpush1.msra.mxu1 %v483_v35  ;;  %v703_v34 = vld [vmem:[#allocation7 + $0xab8] sm:$0xff]  ;;  %v705_v35 = vld [vmem:[#allocation7 + $0xac8] sm:$0xff] }
  0x7d   : > { %943 = vmatprep.subr.mxu0 %v469_v36  ;;  %1014 = vmatprep.subr.mxu1 %v471_v37  ;;  %v702_v36 = vld [vmem:[#allocation7 + $0xab0] sm:$0xff]  ;;  %v704_v37 = vld [vmem:[#allocation7 + $0xac0] sm:$0xff] }
  0x7e   : > { %944 = vmatpush1.msra.mxu0 %v468_v38  ;;  %1015 = vmatpush1.msra.mxu1 %v470_v40  ;;  %v690_v38 = vld [vmem:[#allocation7 + $0xa50] sm:$0xff]  ;;  %v692_v40 = vld [vmem:[#allocation7 + $0xa60] sm:$0xff] }
  0x7f   : > { %945 = vmatprep.subr.mxu0 %v456_v41  ;;  %1016 = vmatprep.subr.mxu1 %v458_v42  ;;  %v689_v41 = vld [vmem:[#allocation7 + $0xa48] sm:$0xff]  ;;  %v691_v42 = vld [vmem:[#allocation7 + $0xa58] sm:$0xff] }
  0x80   : > { %946 = vmatpush1.msra.mxu0 %v455_v43  ;;  %1017 = vmatpush1.msra.mxu1 %v457_v44  ;;  %v677_v43 = vld [vmem:[#allocation7 + $0x9e8] sm:$0xff]  ;;  %v679_v44 = vld [vmem:[#allocation7 + $0x9f8] sm:$0xff] }
  0x81   : > { %947 = vmatprep.subr.mxu0 %v443_v45  ;;  %1018 = vmatprep.subr.mxu1 %v445_v46  ;;  %v676_v45 = vld [vmem:[#allocation7 + $0x9e0] sm:$0xff]  ;;  %v678_v46 = vld [vmem:[#allocation7 + $0x9f0] sm:$0xff] }
  0x82   : > { %948 = vmatpush1.msra.mxu0 %v442_v47  ;;  %1019 = vmatpush1.msra.mxu1 %v444_v49  ;;  %v664_v47 = vld [vmem:[#allocation7 + $0x980] sm:$0xff]  ;;  %v666_v49 = vld [vmem:[#allocation7 + $0x990] sm:$0xff] }
  0x83   : > { %949 = vmatprep.subr.mxu0 %v430_v50  ;;  %1020 = vmatprep.subr.mxu1 %v432_v51  ;;  %v663_v50 = vld [vmem:[#allocation7 + $0x978] sm:$0xff]  ;;  %v665_v51 = vld [vmem:[#allocation7 + $0x988] sm:$0xff] }
  0x84   : > { %950 = vmatpush1.msra.mxu0 %v429_v52  ;;  %1021 = vmatpush1.msra.mxu1 %v431_v53  ;;  %v651_v52 = vld [vmem:[#allocation7 + $0x918] sm:$0xff]  ;;  %v653_v53 = vld [vmem:[#allocation7 + $0x928] sm:$0xff] }
  0x85   : > { %951 = vmatprep.subr.mxu0 %v417_v54  ;;  %1022 = vmatprep.subr.mxu1 %v419_v55  ;;  %v650_v54 = vld [vmem:[#allocation7 + $0x910] sm:$0xff]  ;;  %v652_v55 = vld [vmem:[#allocation7 + $0x920] sm:$0xff] }
  0x86   : > { %952 = vmatpush1.msra.mxu0 %v416_v56  ;;  %1023 = vmatpush1.msra.mxu1 %v418_v58  ;;  %v638_v56 = vld [vmem:[#allocation7 + $0x8b0] sm:$0xff]  ;;  %v640_v58 = vld [vmem:[#allocation7 + $0x8c0] sm:$0xff] }
  0x87   : > { %953 = vmatprep.subr.mxu0 %v404_v59  ;;  %1024 = vmatprep.subr.mxu1 %v406_v60  ;;  %v637_v59 = vld [vmem:[#allocation7 + $0x8a8] sm:$0xff]  ;;  %v639_v60 = vld [vmem:[#allocation7 + $0x8b8] sm:$0xff] }
  0x88   : > { %954 = vmatpush1.msra.mxu0 %v403_v61  ;;  %1025 = vmatpush1.msra.mxu1 %v405_v62  ;;  %v625_v61 = vld [vmem:[#allocation7 + $0x848] sm:$0xff]  ;;  %v627_v62 = vld [vmem:[#allocation7 + $0x858] sm:$0xff] }
  0x89   : > { %955 = vmatprep.subr.mxu0 %v391_v0  ;;  %1026 = vmatprep.subr.mxu1 %v393_v1  ;;  %v624_v0 = vld [vmem:[#allocation7 + $0x840] sm:$0xff]  ;;  %v626_v1 = vld [vmem:[#allocation7 + $0x850] sm:$0xff] }
  0x8a   : > { %956 = vmatpush1.msra.mxu0 %v390_v2  ;;  %1027 = vmatpush1.msra.mxu1 %v392_v3  ;;  %v612_v2 = vld [vmem:[#allocation7 + $0x7e0] sm:$0xff]  ;;  %v614_v3 = vld [vmem:[#allocation7 + $0x7f0] sm:$0xff] }
  0x8b   : > { %957 = vmatprep.subr.mxu0 %v378_v5  ;;  %1028 = vmatprep.subr.mxu1 %v380_v6  ;;  %v611_v5 = vld [vmem:[#allocation7 + $0x7d8] sm:$0xff]  ;;  %v613_v6 = vld [vmem:[#allocation7 + $0x7e8] sm:$0xff] }
  0x8c   : > { %958 = vmatpush1.msra.mxu0 %v377_v8  ;;  %1029 = vmatpush1.msra.mxu1 %v379_v9  ;;  %v599_v8 = vld [vmem:[#allocation7 + $0x778] sm:$0xff]  ;;  %v601_v9 = vld [vmem:[#allocation7 + $0x788] sm:$0xff] }
  0x8d   : > { %959 = vmatprep.subr.mxu0 %v365_v10  ;;  %1030 = vmatprep.subr.mxu1 %v367_v11  ;;  %v598_v10 = vld [vmem:[#allocation7 + $0x770] sm:$0xff]  ;;  %v600_v11 = vld [vmem:[#allocation7 + $0x780] sm:$0xff] }
  0x8e   : > { %960 = vmatpush1.msra.mxu0 %v364_v12  ;;  %1031 = vmatpush1.msra.mxu1 %v366_v13  ;;  %v586_v12 = vld [vmem:[#allocation7 + $0x710] sm:$0xff]  ;;  %v588_v13 = vld [vmem:[#allocation7 + $0x720] sm:$0xff] }
  0x8f   : > { %961 = vmatprep.subr.mxu0 %v768_v14  ;;  %1032 = vmatprep.subr.mxu1 %v770_v15  ;;  %v585_v14 = vld [vmem:[#allocation7 + $0x708] sm:$0xff]  ;;  %v587_v15 = vld [vmem:[#allocation7 + $0x718] sm:$0xff] }
  0x90   : > { %962 = vmatpush2.msra.mxu0 %v767_v16  ;;  %1033 = vmatpush2.msra.mxu1 %v769_v17  ;;  %v573_v16 = vld [vmem:[#allocation7 + $0x6a8] sm:$0xff]  ;;  %v575_v17 = vld [vmem:[#allocation7 + $0x6b8] sm:$0xff] }
  0x91   : > { %963 = vmatprep.subr.mxu0 %v755_v18  ;;  %1034 = vmatprep.subr.mxu1 %v757_v19  ;;  %v572_v18 = vld [vmem:[#allocation7 + $0x6a0] sm:$0xff]  ;;  %v574_v19 = vld [vmem:[#allocation7 + $0x6b0] sm:$0xff] }
  0x92   : > { %964 = vmatpush2.msra.mxu0 %v754_v20  ;;  %1035 = vmatpush2.msra.mxu1 %v756_v21  ;;  %v564_v20 = vld [vmem:[#allocation7 + $0x660] sm:$0xff]  ;;  %v566_v21 = vld [vmem:[#allocation7 + $0x670] sm:$0xff] }
  0x93   : > { %965 = vmatprep.subr.mxu0 %v742_v22  ;;  %1036 = vmatprep.subr.mxu1 %v744_v23  ;;  %v563_v22 = vld [vmem:[#allocation7 + $0x658] sm:$0xff]  ;;  %v565_v23 = vld [vmem:[#allocation7 + $0x668] sm:$0xff] }
  0x94   : > { %966 = vmatpush2.msra.mxu0 %v741_v24  ;;  %1037 = vmatpush2.msra.mxu1 %v743_v25  ;;  %v551_v24 = vld [vmem:[#allocation7 + $0x5f8] sm:$0xff]  ;;  %v553_v25 = vld [vmem:[#allocation7 + $0x608] sm:$0xff] }
  0x95   : > { %967 = vmatprep.subr.mxu0 %v729_v26  ;;  %1038 = vmatprep.subr.mxu1 %v731_v27  ;;  %v550_v26 = vld [vmem:[#allocation7 + $0x5f0] sm:$0xff]  ;;  %v552_v27 = vld [vmem:[#allocation7 + $0x600] sm:$0xff] }
  0x96   : > { %968 = vmatpush2.msra.mxu0 %v728_v28  ;;  %1039 = vmatpush2.msra.mxu1 %v730_v29  ;;  %v538_v28 = vld [vmem:[#allocation7 + $0x590] sm:$0xff]  ;;  %v540_v29 = vld [vmem:[#allocation7 + $0x5a0] sm:$0xff] }
  0x97   : > { %969 = vmatprep.subr.mxu0 %v716_v30  ;;  %1040 = vmatprep.subr.mxu1 %v718_v31  ;;  %v537_v30 = vld [vmem:[#allocation7 + $0x588] sm:$0xff]  ;;  %v539_v31 = vld [vmem:[#allocation7 + $0x598] sm:$0xff] }
  0x98   : > { %970 = vmatpush2.msra.mxu0 %v715_v32  ;;  %1041 = vmatpush2.msra.mxu1 %v717_v33  ;;  %v525_v32 = vld [vmem:[#allocation7 + $0x528] sm:$0xff]  ;;  %v527_v33 = vld [vmem:[#allocation7 + $0x538] sm:$0xff] }
  0x99   : > { %971 = vmatprep.subr.mxu0 %v703_v34  ;;  %1042 = vmatprep.subr.mxu1 %v705_v35  ;;  %v524_v34 = vld [vmem:[#allocation7 + $0x520] sm:$0xff]  ;;  %v526_v35 = vld [vmem:[#allocation7 + $0x530] sm:$0xff] }
  0x9a   : > { %972 = vmatpush2.msra.mxu0 %v702_v36  ;;  %1043 = vmatpush2.msra.mxu1 %v704_v37  ;;  %v512_v36 = vld [vmem:[#allocation7 + $0x4c0] sm:$0xff]  ;;  %v514_v37 = vld [vmem:[#allocation7 + $0x4d0] sm:$0xff] }
  0x9b   : > { %973 = vmatprep.subr.mxu0 %v690_v38  ;;  %1044 = vmatprep.subr.mxu1 %v692_v40  ;;  %v511_v38 = vld [vmem:[#allocation7 + $0x4b8] sm:$0xff]  ;;  %v513_v40 = vld [vmem:[#allocation7 + $0x4c8] sm:$0xff] }
  0x9c   : > { %974 = vmatpush2.msra.mxu0 %v689_v41  ;;  %1045 = vmatpush2.msra.mxu1 %v691_v42  ;;  %v499_v41 = vld [vmem:[#allocation7 + $0x458] sm:$0xff]  ;;  %v501_v42 = vld [vmem:[#allocation7 + $0x468] sm:$0xff] }
  0x9d   : > { %975 = vmatprep.subr.mxu0 %v677_v43  ;;  %1046 = vmatprep.subr.mxu1 %v679_v44  ;;  %v498_v43 = vld [vmem:[#allocation7 + $0x450] sm:$0xff]  ;;  %v500_v44 = vld [vmem:[#allocation7 + $0x460] sm:$0xff] }
  0x9e   : > { %976 = vmatpush2.msra.mxu0 %v676_v45  ;;  %1047 = vmatpush2.msra.mxu1 %v678_v46  ;;  %v486_v45 = vld [vmem:[#allocation7 + $0x3f0] sm:$0xff]  ;;  %v488_v46 = vld [vmem:[#allocation7 + $0x400] sm:$0xff] }
  0x9f   : > { %977 = vmatprep.subr.mxu0 %v664_v47  ;;  %1048 = vmatprep.subr.mxu1 %v666_v49  ;;  %v485_v47 = vld [vmem:[#allocation7 + $0x3e8] sm:$0xff]  ;;  %v487_v49 = vld [vmem:[#allocation7 + $0x3f8] sm:$0xff] }
  0xa0   : > { %978 = vmatpush2.msra.mxu0 %v663_v50  ;;  %1049 = vmatpush2.msra.mxu1 %v665_v51  ;;  %v473_v50 = vld [vmem:[#allocation7 + $0x388] sm:$0xff]  ;;  %v475_v51 = vld [vmem:[#allocation7 + $0x398] sm:$0xff] }
  0xa1   : > { %979 = vmatprep.subr.mxu0 %v651_v52  ;;  %1050 = vmatprep.subr.mxu1 %v653_v53  ;;  %v472_v52 = vld [vmem:[#allocation7 + $0x380] sm:$0xff]  ;;  %v474_v53 = vld [vmem:[#allocation7 + $0x390] sm:$0xff] }
  0xa2   : > { %980 = vmatpush2.msra.mxu0 %v650_v54  ;;  %1051 = vmatpush2.msra.mxu1 %v652_v55  ;;  %v460_v54 = vld [vmem:[#allocation7 + $0x320] sm:$0xff]  ;;  %v462_v55 = vld [vmem:[#allocation7 + $0x330] sm:$0xff] }
  0xa3   : > { %981 = vmatprep.subr.mxu0 %v638_v56  ;;  %1052 = vmatprep.subr.mxu1 %v640_v58  ;;  %v459_v56 = vld [vmem:[#allocation7 + $0x318] sm:$0xff]  ;;  %v461_v58 = vld [vmem:[#allocation7 + $0x328] sm:$0xff] }
  0xa4   : > { %982 = vmatpush2.msra.mxu0 %v637_v59  ;;  %1053 = vmatpush2.msra.mxu1 %v639_v60  ;;  %v447_v59 = vld [vmem:[#allocation7 + $0x2b8] sm:$0xff]  ;;  %v449_v60 = vld [vmem:[#allocation7 + $0x2c8] sm:$0xff] }
  0xa5   : > { %983 = vmatprep.subr.mxu0 %v625_v61  ;;  %1054 = vmatprep.subr.mxu1 %v627_v62  ;;  %v446_v61 = vld [vmem:[#allocation7 + $0x2b0] sm:$0xff]  ;;  %v448_v62 = vld [vmem:[#allocation7 + $0x2c0] sm:$0xff] }
  0xa6   : > { %984 = vmatpush2.msra.mxu0 %v624_v0  ;;  %1055 = vmatpush2.msra.mxu1 %v626_v1  ;;  %v434_v0 = vld [vmem:[#allocation7 + $0x250] sm:$0xff]  ;;  %v436_v1 = vld [vmem:[#allocation7 + $0x260] sm:$0xff] }
  0xa7   : > { %985 = vmatprep.subr.mxu0 %v612_v2  ;;  %1056 = vmatprep.subr.mxu1 %v614_v3  ;;  %v433_v2 = vld [vmem:[#allocation7 + $0x248] sm:$0xff]  ;;  %v435_v3 = vld [vmem:[#allocation7 + $0x258] sm:$0xff] }
  0xa8   : > { %986 = vmatpush2.msra.mxu0 %v611_v5  ;;  %1057 = vmatpush2.msra.mxu1 %v613_v6  ;;  %v421_v5 = vld [vmem:[#allocation7 + $0x1e8] sm:$0xff]  ;;  %v423_v6 = vld [vmem:[#allocation7 + $0x1f8] sm:$0xff] }
  0xa9   : > { %987 = vmatprep.subr.mxu0 %v599_v8  ;;  %1058 = vmatprep.subr.mxu1 %v601_v9  ;;  %v420_v8 = vld [vmem:[#allocation7 + $0x1e0] sm:$0xff]  ;;  %v422_v9 = vld [vmem:[#allocation7 + $0x1f0] sm:$0xff] }
  0xaa   : > { %988 = vmatpush2.msra.mxu0 %v598_v10  ;;  %1059 = vmatpush2.msra.mxu1 %v600_v11  ;;  %v408_v10 = vld [vmem:[#allocation7 + $0x180] sm:$0xff]  ;;  %v410_v11 = vld [vmem:[#allocation7 + $0x190] sm:$0xff] }
  0xab   : > { %989 = vmatprep.subr.mxu0 %v586_v12  ;;  %1060 = vmatprep.subr.mxu1 %v588_v13  ;;  %v407_v12 = vld [vmem:[#allocation7 + $0x178] sm:$0xff]  ;;  %v409_v13 = vld [vmem:[#allocation7 + $0x188] sm:$0xff] }
  0xac   : > { %990 = vmatpush2.msra.mxu0 %v585_v14  ;;  %1061 = vmatpush2.msra.mxu1 %v587_v15  ;;  %v395_v14 = vld [vmem:[#allocation7 + $0x118] sm:$0xff]  ;;  %v397_v15 = vld [vmem:[#allocation7 + $0x128] sm:$0xff] }
  0xad   : > { %991 = vmatprep.subr.mxu0 %v573_v16  ;;  %1062 = vmatprep.subr.mxu1 %v575_v17  ;;  %v394_v16 = vld [vmem:[#allocation7 + $0x110] sm:$0xff]  ;;  %v396_v17 = vld [vmem:[#allocation7 + $0x120] sm:$0xff] }
  0xae   : > { %992 = vmatpush2.msra.mxu0 %v572_v18  ;;  %993 = vmatprep.mubr.f32.mxu0 %v6409_v4  ;;  %v382_v18 = vld [vmem:[#allocation7 + $0xb0] sm:$0xff] }
  0xaf   : > { %1063 = vmatpush2.msra.mxu1 %v574_v19  ;;  %1064 = vmatprep.mubr.f32.mxu1 %v6409_v4  ;;  %v384_v19 = vld [vmem:[#allocation7 + $0xc0] sm:$0xff] }
  0xb0   : > { %994 = vmatmul.mubr.f32.vlgmr.msra.gmra.mxu0 %v6412_v7  ;;  %1065 = vmatmul.mubr.f32.vlgmr.msra.gmra.mxu1 %v6412_v7 }
  0xb1   : > { %1071 = vmatprep.subr.mxu0 %v564_v20  ;;  %1142 = vmatprep.subr.mxu1 %v566_v21  ;;  %v381_v20 = vld [vmem:[#allocation7 + $0xa8] sm:$0xff]  ;;  %v383_v21 = vld [vmem:[#allocation7 + $0xb8] sm:$0xff] }
  0xb2   : > { %1072 = vmatpush1.msra.mxu0 %v563_v22  ;;  %1143 = vmatpush1.msra.mxu1 %v565_v23  ;;  %v369_v22 = vld [vmem:[#allocation7 + $0x48] sm:$0xff]  ;;  %v371_v23 = vld [vmem:[#allocation7 + $0x58] sm:$0xff] }
  0xb3   : > { %1073 = vmatprep.subr.mxu0 %v551_v24  ;;  %1144 = vmatprep.subr.mxu1 %v553_v25  ;;  %v368_v24 = vld [vmem:[#allocation7 + $0x40] sm:$0xff]  ;;  %v370_v25 = vld [vmem:[#allocation7 + $0x50] sm:$0xff] }
  0xb4   : > { %1074 = vmatpush1.msra.mxu0 %v550_v26  ;;  %1145 = vmatpush1.msra.mxu1 %v552_v27  ;;  %v772_v26 = vld [vmem:[#allocation7 + $0xce0] sm:$0xff]  ;;  %v774_v27 = vld [vmem:[#allocation7 + $0xcf0] sm:$0xff] }
  0xb5   : > { %1075 = vmatprep.subr.mxu0 %v538_v28  ;;  %1146 = vmatprep.subr.mxu1 %v540_v29  ;;  %v771_v28 = vld [vmem:[#allocation7 + $0xcd8] sm:$0xff]  ;;  %v773_v29 = vld [vmem:[#allocation7 + $0xce8] sm:$0xff] }
  0xb6   : > { %1076 = vmatpush1.msra.mxu0 %v537_v30  ;;  %1147 = vmatpush1.msra.mxu1 %v539_v31  ;;  %v759_v30 = vld [vmem:[#allocation7 + $0xc78] sm:$0xff]  ;;  %v761_v31 = vld [vmem:[#allocation7 + $0xc88] sm:$0xff] }
  0xb7   : > { %1077 = vmatprep.subr.mxu0 %v525_v32  ;;  %1148 = vmatprep.subr.mxu1 %v527_v33  ;;  %v758_v32 = vld [vmem:[#allocation7 + $0xc70] sm:$0xff]  ;;  %v760_v33 = vld [vmem:[#allocation7 + $0xc80] sm:$0xff] }
  0xb8   : > { %1078 = vmatpush1.msra.mxu0 %v524_v34  ;;  %1149 = vmatpush1.msra.mxu1 %v526_v35  ;;  %v746_v34 = vld [vmem:[#allocation7 + $0xc10] sm:$0xff]  ;;  %v748_v35 = vld [vmem:[#allocation7 + $0xc20] sm:$0xff] }
  0xb9   : > { %1079 = vmatprep.subr.mxu0 %v512_v36  ;;  %1150 = vmatprep.subr.mxu1 %v514_v37  ;;  %v745_v36 = vld [vmem:[#allocation7 + $0xc08] sm:$0xff]  ;;  %v747_v37 = vld [vmem:[#allocation7 + $0xc18] sm:$0xff] }
  0xba   : > { %1080 = vmatpush1.msra.mxu0 %v511_v38  ;;  %1151 = vmatpush1.msra.mxu1 %v513_v40  ;;  %v733_v38 = vld [vmem:[#allocation7 + $0xba8] sm:$0xff]  ;;  %v735_v40 = vld [vmem:[#allocation7 + $0xbb8] sm:$0xff] }
  0xbb   : > { %1081 = vmatprep.subr.mxu0 %v499_v41  ;;  %1152 = vmatprep.subr.mxu1 %v501_v42  ;;  %v732_v41 = vld [vmem:[#allocation7 + $0xba0] sm:$0xff]  ;;  %v734_v42 = vld [vmem:[#allocation7 + $0xbb0] sm:$0xff] }
  0xbc   : > { %1082 = vmatpush1.msra.mxu0 %v498_v43  ;;  %1153 = vmatpush1.msra.mxu1 %v500_v44  ;;  %v720_v43 = vld [vmem:[#allocation7 + $0xb40] sm:$0xff]  ;;  %v722_v44 = vld [vmem:[#allocation7 + $0xb50] sm:$0xff] }
  0xbd   : > { %1083 = vmatprep.subr.mxu0 %v486_v45  ;;  %1154 = vmatprep.subr.mxu1 %v488_v46  ;;  %v719_v45 = vld [vmem:[#allocation7 + $0xb38] sm:$0xff]  ;;  %v721_v46 = vld [vmem:[#allocation7 + $0xb48] sm:$0xff] }
  0xbe   : > { %1084 = vmatpush1.msra.mxu0 %v485_v47  ;;  %1155 = vmatpush1.msra.mxu1 %v487_v49  ;;  %v707_v47 = vld [vmem:[#allocation7 + $0xad8] sm:$0xff]  ;;  %v709_v49 = vld [vmem:[#allocation7 + $0xae8] sm:$0xff] }
  0xbf   : > { %1085 = vmatprep.subr.mxu0 %v473_v50  ;;  %1156 = vmatprep.subr.mxu1 %v475_v51  ;;  %v706_v50 = vld [vmem:[#allocation7 + $0xad0] sm:$0xff]  ;;  %v708_v51 = vld [vmem:[#allocation7 + $0xae0] sm:$0xff] }
  0xc0   : > { %1086 = vmatpush1.msra.mxu0 %v472_v52  ;;  %1157 = vmatpush1.msra.mxu1 %v474_v53  ;;  %v694_v52 = vld [vmem:[#allocation7 + $0xa70] sm:$0xff]  ;;  %v696_v53 = vld [vmem:[#allocation7 + $0xa80] sm:$0xff] }
  0xc1   : > { %1087 = vmatprep.subr.mxu0 %v460_v54  ;;  %1158 = vmatprep.subr.mxu1 %v462_v55  ;;  %v693_v54 = vld [vmem:[#allocation7 + $0xa68] sm:$0xff]  ;;  %v695_v55 = vld [vmem:[#allocation7 + $0xa78] sm:$0xff] }
  0xc2   : > { %1088 = vmatpush1.msra.mxu0 %v459_v56  ;;  %1159 = vmatpush1.msra.mxu1 %v461_v58  ;;  %v681_v56 = vld [vmem:[#allocation7 + $0xa08] sm:$0xff]  ;;  %v683_v58 = vld [vmem:[#allocation7 + $0xa18] sm:$0xff] }
  0xc3   : > { %1089 = vmatprep.subr.mxu0 %v447_v59  ;;  %1160 = vmatprep.subr.mxu1 %v449_v60  ;;  %v680_v59 = vld [vmem:[#allocation7 + $0xa00] sm:$0xff]  ;;  %v682_v60 = vld [vmem:[#allocation7 + $0xa10] sm:$0xff] }
  0xc4   : > { %1090 = vmatpush1.msra.mxu0 %v446_v61  ;;  %1161 = vmatpush1.msra.mxu1 %v448_v62  ;;  %v668_v61 = vld [vmem:[#allocation7 + $0x9a0] sm:$0xff]  ;;  %v670_v62 = vld [vmem:[#allocation7 + $0x9b0] sm:$0xff] }
  0xc5   : > { %1091 = vmatprep.subr.mxu0 %v434_v0  ;;  %1162 = vmatprep.subr.mxu1 %v436_v1  ;;  %v667_v0 = vld [vmem:[#allocation7 + $0x998] sm:$0xff]  ;;  %v669_v1 = vld [vmem:[#allocation7 + $0x9a8] sm:$0xff] }
  0xc6   : > { %1092 = vmatpush1.msra.mxu0 %v433_v2  ;;  %1163 = vmatpush1.msra.mxu1 %v435_v3  ;;  %v655_v2 = vld [vmem:[#allocation7 + $0x938] sm:$0xff]  ;;  %v657_v3 = vld [vmem:[#allocation7 + $0x948] sm:$0xff] }
  0xc7   : > { %1093 = vmatprep.subr.mxu0 %v421_v5  ;;  %1164 = vmatprep.subr.mxu1 %v423_v6  ;;  %v654_v5 = vld [vmem:[#allocation7 + $0x930] sm:$0xff]  ;;  %v656_v6 = vld [vmem:[#allocation7 + $0x940] sm:$0xff] }
  0xc8   : > { %1094 = vmatpush1.msra.mxu0 %v420_v8  ;;  %1165 = vmatpush1.msra.mxu1 %v422_v9  ;;  %v642_v8 = vld [vmem:[#allocation7 + $0x8d0] sm:$0xff]  ;;  %v644_v9 = vld [vmem:[#allocation7 + $0x8e0] sm:$0xff] }
  0xc9   : > { %1095 = vmatprep.subr.mxu0 %v408_v10  ;;  %1166 = vmatprep.subr.mxu1 %v410_v11  ;;  %v641_v10 = vld [vmem:[#allocation7 + $0x8c8] sm:$0xff]  ;;  %v643_v11 = vld [vmem:[#allocation7 + $0x8d8] sm:$0xff] }
  0xca   : > { %1096 = vmatpush1.msra.mxu0 %v407_v12  ;;  %1167 = vmatpush1.msra.mxu1 %v409_v13  ;;  %v629_v12 = vld [vmem:[#allocation7 + $0x868] sm:$0xff]  ;;  %v631_v13 = vld [vmem:[#allocation7 + $0x878] sm:$0xff] }
  0xcb   : > { %1097 = vmatprep.subr.mxu0 %v395_v14  ;;  %1168 = vmatprep.subr.mxu1 %v397_v15  ;;  %v628_v14 = vld [vmem:[#allocation7 + $0x860] sm:$0xff]  ;;  %v630_v15 = vld [vmem:[#allocation7 + $0x870] sm:$0xff] }
  0xcc   : > { %1098 = vmatpush1.msra.mxu0 %v394_v16  ;;  %1169 = vmatpush1.msra.mxu1 %v396_v17  ;;  %v616_v16 = vld [vmem:[#allocation7 + $0x800] sm:$0xff]  ;;  %v618_v17 = vld [vmem:[#allocation7 + $0x810] sm:$0xff] }
  0xcd   : > { %1099 = vmatprep.subr.mxu0 %v382_v18  ;;  %1170 = vmatprep.subr.mxu1 %v384_v19  ;;  %v615_v18 = vld [vmem:[#allocation7 + $0x7f8] sm:$0xff]  ;;  %v617_v19 = vld [vmem:[#allocation7 + $0x808] sm:$0xff] }
  0xce   : > { %1100 = vmatpush1.msra.mxu0 %v381_v20  ;;  %1171 = vmatpush1.msra.mxu1 %v383_v21  ;;  %v603_v20 = vld [vmem:[#allocation7 + $0x798] sm:$0xff]  ;;  %v605_v21 = vld [vmem:[#allocation7 + $0x7a8] sm:$0xff] }
  0xcf   : > { %1101 = vmatprep.subr.mxu0 %v369_v22  ;;  %1172 = vmatprep.subr.mxu1 %v371_v23  ;;  %v602_v22 = vld [vmem:[#allocation7 + $0x790] sm:$0xff]  ;;  %v604_v23 = vld [vmem:[#allocation7 + $0x7a0] sm:$0xff] }
  0xd0   : > { %1102 = vmatpush1.msra.mxu0 %v368_v24  ;;  %1173 = vmatpush1.msra.mxu1 %v370_v25  ;;  %v590_v24 = vld [vmem:[#allocation7 + $0x730] sm:$0xff]  ;;  %v592_v25 = vld [vmem:[#allocation7 + $0x740] sm:$0xff] }
  0xd1   : > { %1103 = vmatprep.subr.mxu0 %v772_v26  ;;  %1174 = vmatprep.subr.mxu1 %v774_v27  ;;  %v589_v26 = vld [vmem:[#allocation7 + $0x728] sm:$0xff]  ;;  %v591_v27 = vld [vmem:[#allocation7 + $0x738] sm:$0xff] }
  0xd2   : > { %1104 = vmatpush2.msra.mxu0 %v771_v28  ;;  %1175 = vmatpush2.msra.mxu1 %v773_v29  ;;  %v577_v28 = vld [vmem:[#allocation7 + $0x6c8] sm:$0xff]  ;;  %v579_v29 = vld [vmem:[#allocation7 + $0x6d8] sm:$0xff] }
  0xd3   : > { %1105 = vmatprep.subr.mxu0 %v759_v30  ;;  %1176 = vmatprep.subr.mxu1 %v761_v31  ;;  %v576_v30 = vld [vmem:[#allocation7 + $0x6c0] sm:$0xff]  ;;  %v578_v31 = vld [vmem:[#allocation7 + $0x6d0] sm:$0xff] }
  0xd4   : > { %1106 = vmatpush2.msra.mxu0 %v758_v32  ;;  %1177 = vmatpush2.msra.mxu1 %v760_v33  ;;  %v775_v32 = vld [vmem:[#allocation7 + $0xcf8] sm:$0xff] }
  0xd5   : > { %1107 = vmatprep.subr.mxu0 %v746_v34  ;;  %1178 = vmatprep.subr.mxu1 %v748_v35  ;;  %v567_v33 = vld [vmem:[#allocation7 + $0x678] sm:$0xff]  ;;  %v762_v34 = vld [vmem:[#allocation7 + $0xc90] sm:$0xff] }
  0xd6   : > { %1108 = vmatpush2.msra.mxu0 %v745_v36  ;;  %1179 = vmatpush2.msra.mxu1 %v747_v37  ;;  %v554_v35 = vld [vmem:[#allocation7 + $0x610] sm:$0xff]  ;;  %v749_v36 = vld [vmem:[#allocation7 + $0xc28] sm:$0xff] }
  0xd7   : > { %1109 = vmatprep.subr.mxu0 %v733_v38  ;;  %1180 = vmatprep.subr.mxu1 %v735_v40  ;;  %v541_v37 = vld [vmem:[#allocation7 + $0x5a8] sm:$0xff]  ;;  %v736_v38 = vld [vmem:[#allocation7 + $0xbc0] sm:$0xff] }
  0xd8   : > { %1110 = vmatpush2.msra.mxu0 %v732_v41  ;;  %1181 = vmatpush2.msra.mxu1 %v734_v42  ;;  %v528_v40 = vld [vmem:[#allocation7 + $0x540] sm:$0xff]  ;;  %v723_v41 = vld [vmem:[#allocation7 + $0xb58] sm:$0xff] }
  0xd9   : > { %1111 = vmatprep.subr.mxu0 %v720_v43  ;;  %1182 = vmatprep.subr.mxu1 %v722_v44  ;;  %v515_v42 = vld [vmem:[#allocation7 + $0x4d8] sm:$0xff]  ;;  %v710_v43 = vld [vmem:[#allocation7 + $0xaf0] sm:$0xff] }
  0xda   : > { %1112 = vmatpush2.msra.mxu0 %v719_v45  ;;  %1183 = vmatpush2.msra.mxu1 %v721_v46  ;;  %v502_v44 = vld [vmem:[#allocation7 + $0x470] sm:$0xff]  ;;  %v697_v45 = vld [vmem:[#allocation7 + $0xa88] sm:$0xff]  ;;  %v684_v46 = vld [vmem:[#allocation7 + $0xa20] sm:$0xff] }
  0xdb   : > { %1113 = vmatprep.subr.mxu0 %v707_v47  ;;  %1184 = vmatprep.subr.mxu1 %v709_v49  ;;  %v476_v47 = vld [vmem:[#allocation7 + $0x3a0] sm:$0xff]  ;;  %v671_v49 = vld [vmem:[#allocation7 + $0x9b8] sm:$0xff] }
  0xdc   : > { %1114 = vmatpush2.msra.mxu0 %v706_v50  ;;  %1185 = vmatpush2.msra.mxu1 %v708_v51  ;;  %v463_v50 = vld [vmem:[#allocation7 + $0x338] sm:$0xff]  ;;  %v658_v51 = vld [vmem:[#allocation7 + $0x950] sm:$0xff] }
  0xdd   : > { %1115 = vmatprep.subr.mxu0 %v694_v52  ;;  %1186 = vmatprep.subr.mxu1 %v696_v53  ;;  %v450_v52 = vld [vmem:[#allocation7 + $0x2d0] sm:$0xff]  ;;  %v645_v53 = vld [vmem:[#allocation7 + $0x8e8] sm:$0xff] }
  0xde   : > { %1116 = vmatpush2.msra.mxu0 %v693_v54  ;;  %1187 = vmatpush2.msra.mxu1 %v695_v55  ;;  %v437_v54 = vld [vmem:[#allocation7 + $0x268] sm:$0xff]  ;;  %v632_v55 = vld [vmem:[#allocation7 + $0x880] sm:$0xff] }
  0xdf   : > { %1117 = vmatprep.subr.mxu0 %v681_v56  ;;  %1188 = vmatprep.subr.mxu1 %v683_v58  ;;  %v424_v56 = vld [vmem:[#allocation7 + $0x200] sm:$0xff]  ;;  %v619_v58 = vld [vmem:[#allocation7 + $0x818] sm:$0xff] }
  0xe0   : > { %1118 = vmatpush2.msra.mxu0 %v680_v59  ;;  %1189 = vmatpush2.msra.mxu1 %v682_v60  ;;  %v411_v59 = vld [vmem:[#allocation7 + $0x198] sm:$0xff]  ;;  %v606_v60 = vld [vmem:[#allocation7 + $0x7b0] sm:$0xff] }
  0xe1   : > { %1119 = vmatprep.subr.mxu0 %v668_v61  ;;  %1190 = vmatprep.subr.mxu1 %v670_v62  ;;  %v398_v61 = vld [vmem:[#allocation7 + $0x130] sm:$0xff]  ;;  %v593_v62 = vld [vmem:[#allocation7 + $0x748] sm:$0xff] }
  0xe2   : > { %1120 = vmatpush2.msra.mxu0 %v667_v0  ;;  %1191 = vmatpush2.msra.mxu1 %v669_v1  ;;  %v385_v0 = vld [vmem:[#allocation7 + $0xc8] sm:$0xff]  ;;  %v580_v1 = vld [vmem:[#allocation7 + $0x6e0] sm:$0xff] }
  0xe3   : > { %1121 = vmatprep.subr.mxu0 %v655_v2  ;;  %1192 = vmatprep.subr.mxu1 %v657_v3  ;;  %v372_v2 = vld [vmem:[#allocation7 + $0x60] sm:$0xff]  ;;  %v6208_v3 = vmov 1966171168  }
  0xe4   : > { %1122 = vmatpush2.msra.mxu0 %v654_v5  ;;  %1193 = vmatpush2.msra.mxu1 %v656_v6  ;;  %v1301_v5 = vunpack.c.l.s4 %v6208_v3 }
  0xe5   : > { %1123 = vmatprep.subr.mxu0 %v642_v8  ;;  %1194 = vmatprep.subr.mxu1 %v644_v9 }
  0xe6   : > { %1124 = vmatpush2.msra.mxu0 %v641_v10  ;;  %1195 = vmatpush2.msra.mxu1 %v643_v11  ;;  %v1302_v9 = vunpack.c.0.s8 %v1301_v5 }
  0xe7   : > { %1125 = vmatprep.subr.mxu0 %v629_v12  ;;  %1196 = vmatprep.subr.mxu1 %v631_v13 }
  0xe8   : > { %1126 = vmatpush2.msra.mxu0 %v628_v14  ;;  %1197 = vmatpush2.msra.mxu1 %v630_v15  ;;  %v6429_v13 = vsub.s32 %v1302_v9, %v6397_v48 }
  0xe9   : > { %1127 = vmatprep.subr.mxu0 %v616_v16  ;;  %1198 = vmatprep.subr.mxu1 %v618_v17 }
  0xea   : > { %1128 = vmatpush2.msra.mxu0 %v615_v18  ;;  %1199 = vmatpush2.msra.mxu1 %v617_v19 }
  0xeb   : > { %1129 = vmatprep.subr.mxu0 %v603_v20  ;;  %1200 = vmatprep.subr.mxu1 %v605_v21 }
  0xec   : > { %1130 = vmatpush2.msra.mxu0 %v602_v22  ;;  %1201 = vmatpush2.msra.mxu1 %v604_v23 }
  0xed   : > { %1131 = vmatprep.subr.mxu0 %v590_v24  ;;  %1202 = vmatprep.subr.mxu1 %v592_v25 }
  0xee   : > { %1132 = vmatpush2.msra.mxu0 %v589_v26  ;;  %1203 = vmatpush2.msra.mxu1 %v591_v27 }
  0xef   : > { %1133 = vmatprep.subr.mxu0 %v577_v28  ;;  %1204 = vmatprep.subr.mxu1 %v579_v29 }
  0xf0   : > { %1134 = vmatpush2.msra.mxu0 %v576_v30  ;;  %1135 = vmatprep.mubr.f32.mxu0 %v6409_v4 }
  0xf1   : > { %1205 = vmatpush2.msra.mxu1 %v578_v31  ;;  %1206 = vmatprep.mubr.f32.mxu1 %v6409_v4 }
  0xf2   : > { %1136 = vmatmul.mubr.f32.vlgmr.msra.gmra.mxu0 %v6412_v7  ;;  %1207 = vmatmul.mubr.f32.vlgmr.msra.gmra.mxu1 %v6412_v7 }
  0xf3   : > { %5976 = vmatprep.subr.mxu0 %v775_v32  ;;  %1277 = vmatprep.mubr.f32.mxu0 %v6409_v4  ;;  %v489_v4 = vld [vmem:[#allocation7 + $0x408] sm:$0xff] }
  0xf4   : > { %5977 = vmatpush3.msra.mxu0 %v567_v33 }
  0xf5   : > { %5978 = vmatprep.subr.mxu0 %v762_v34 }
  0xf6   : > { %5979 = vmatpush3.msra.mxu0 %v554_v35 }
  0xf7   : > { %5980 = vmatprep.subr.mxu0 %v749_v36 }
  0xf8   : > { %5981 = vmatpush3.msra.mxu0 %v541_v37 }
  0xf9   : > { %5982 = vmatprep.subr.mxu0 %v736_v38 }
  0xfa   : > { %5983 = vmatpush3.msra.mxu0 %v528_v40 }
  0xfb   : > { %5984 = vmatprep.subr.mxu0 %v723_v41 }
  0xfc   : > { %5985 = vmatpush3.msra.mxu0 %v515_v42 }
  0xfd   : > { %5986 = vmatprep.subr.mxu0 %v710_v43 }
  0xfe   : > { %5987 = vmatpush3.msra.mxu0 %v502_v44 }
  0xff   : > { %5988 = vmatprep.subr.mxu0 %v697_v45 }
 0x100   : > { %5989 = vmatpush3.msra.mxu0 %v489_v4 }
 0x101   : > { %5990 = vmatprep.subr.mxu0 %v684_v46 }
 0x102   : > { %5991 = vmatpush3.msra.mxu0 %v476_v47 }
 0x103   : > { %5992 = vmatprep.subr.mxu0 %v671_v49 }
 0x104   : > { %5993 = vmatpush3.msra.mxu0 %v463_v50 }
 0x105   : > { %5994 = vmatprep.subr.mxu0 %v658_v51 }
 0x106   : > { %5995 = vmatpush3.msra.mxu0 %v450_v52 }
 0x107   : > { %5996 = vmatprep.subr.mxu0 %v645_v53 }
 0x108   : > { %5997 = vmatpush3.msra.mxu0 %v437_v54 }
 0x109   : > { %5998 = vmatprep.subr.mxu0 %v632_v55 }
 0x10a   : > { %5999 = vmatpush3.msra.mxu0 %v424_v56 }
 0x10b   : > { %6000 = vmatprep.subr.mxu0 %v619_v58 }
 0x10c   : > { %6001 = vmatpush3.msra.mxu0 %v411_v59 }
 0x10d   : > { %6002 = vmatprep.subr.mxu0 %v606_v60 }
 0x10e   : > { %6003 = vmatpush3.msra.mxu0 %v398_v61  ;;  %v8470_v61 = vmov 0 }
 0x10f   : > { %6004 = vmatprep.subr.mxu0 %v593_v62  ;;  %v8471_v61 = vsel %vm6531_vm1, 4294967295, %v8470_v61 }
 0x110   : > { %6005 = vmatpush3.msra.mxu0 %v385_v0  ;;  %8472 = vst [vmem:[#allocation13_spill] sm:$0xff] %v8471_v61 }
 0x111   : > { %6006 = vmatprep.subr.mxu0 %v580_v1 }
 0x112   : > { %6007 = vmatpush3.msra.mxu0 %v372_v2 }
 0x113   : > { %1278 = vmatmul.mubr.f32.vlgmr.msra.gmra.mxu0 %v6412_v7 }
 0x12e   : > { %v853_v6 = vpop.f32.mrf.mxu0  ;;  %v924_v8 = vpop.f32.mrf.mxu1 }
 0x130   : > { %v855_v10 = vpop.f32.mrf.mxu0  ;;  %v926_v11 = vpop.f32.mrf.mxu1 }
 0x131   : > { %v1296_v12 = vcombine.low %v853_v6, %v855_v10  ;;  %v1297_v14 = vcombine.low %v924_v8, %v926_v11 }
 0x133   : > { %v1306_v17 = vrot.slane %v1296_v12, %v6429_v13  ;;  %v1313_v18 = vrot.slane %v1297_v14, %v6429_v13  ;;  %v8427_v12 = vmov 0  }
 0x134   : > { %3466 = vmatprep.mubr.bf16.mxu1 %v8427_v12  ;;  %3539 = vmatprep.mubr.bf16.mxu0 %v8427_v12 }
 0x135   : > { %v1328_v22 = vcombine.low %v1306_v17, %v1313_v18  ;;  %6129 = vset.pattern.permute.xlu1 %v8427_v12  ;;  %6128 = vset.pattern.permute.xlu0 %v8427_v12 }
 0x137   : > { %v1336_v26 = vrot.slane %v1328_v22, %v6429_v13 }
 0x170   : > { %v995_v15 = vpop.f32.mrf.mxu0  ;;  %v1066_v16 = vpop.f32.mrf.mxu1 }
 0x172   : > { %v997_v19 = vpop.f32.mrf.mxu0  ;;  %v1068_v7 = vpop.f32.mrf.mxu1 }
 0x173   : > { %v1298_v20 = vcombine.low %v995_v15, %v997_v19  ;;  %v1299_v21 = vcombine.low %v1066_v16, %v1068_v7 }
 0x175   : > { %v1320_v23 = vrot.slane %v1298_v20, %v6429_v13  ;;  %v1327_v24 = vrot.slane %v1299_v21, %v6429_v13 }
 0x177   : > { %v1329_v25 = vcombine.low %v1320_v23, %v1327_v24 }
 0x179   : > { %v1343_v27 = vrot.slane %v1329_v25, %v6429_v13 }
 0x17b   : > { %v6437_v28 = vcombine.low %v1336_v26, %v1343_v27 }
 0x17d   : > { %1386 = vst [vmem:[#allocation2] sm:$0xff] %v6437_v28  ;;  %2088 = vrot.lane.b32.xlu0 %v6437_v28, %s6209_s30 }
 0x181   : > { %2110 = vrot.lane.b32.xlu0 %v6437_v28, %s6210_s10 }
 0x184   : > { %v1392_v29 = vld [vmem:[#allocation2] sm:$0xff] }
 0x185   : > { %2132 = vrot.lane.b32.xlu0 %v6437_v28, %s6211_s7  ;;  %1394 = vst [vmem:[#allocation3] ss:$8 sm:$0xf] %v1392_v29  ;;  %1395 = vst [vmem:[#allocation3] ss:$8 sm:$0xf0] %v1392_v29 }
 0x189   : > { %1736 = vrot.lane.b32.xlu0 %v6437_v28, %s6212_s13 }
 0x18d   : > { %1758 = vrot.lane.b32.xlu0 %v6437_v28, %s6213_s14 }
 0x191   : > { %1780 = vrot.lane.b32.xlu0 %v6437_v28, %s8454_s15 }
 0x195   : > { %1802 = vrot.lane.b32.xlu0 %v6437_v28, %s8452_s16 }
 0x199   : > { %1824 = vrot.lane.b32.xlu0 %v6437_v28, %s8425_s17  ;;  %s6259_s17 = smov 53  }
 0x19d   : > { %1846 = vrot.lane.b32.xlu0 %v6437_v28, %s8423_s18  ;;  %s6251_s18 = smov 63  }
 0x1a1   : > { %1868 = vrot.lane.b32.xlu0 %v6437_v28, %s8421_s19  ;;  %s6250_s19 = smov 64  }
 0x1a5   : > { %1890 = vrot.lane.b32.xlu0 %v6437_v28, %s8420_s20  ;;  %s8443_s20 = smov 96  }
 0x1a9   : > { %1912 = vrot.lane.b32.xlu0 %v6437_v28, %s8415_s21  ;;  %s6246_s21 = smov 56  }
 0x1ad   : > { %1934 = vrot.lane.b32.xlu0 %v6437_v28, %s8412_s22  ;;  %s8418_s22 = smov 84  }
 0x1b1   : > { %1956 = vrot.lane.b32.xlu0 %v6437_v28, %s8409_s23  ;;  %s6241_s23 = smov 101  }
 0x1b2   : > { %v1137_v30 = vpop.f32.mrf.mxu0  ;;  %v1208_v31 = vpop.f32.mrf.mxu1 }
 0x1b4   : > { %v1139_v32 = vpop.f32.mrf.mxu0  ;;  %v1210_v33 = vpop.f32.mrf.mxu1 }
 0x1b5   : > { %1978 = vrot.lane.b32.xlu0 %v6437_v28, %s8445_s24  ;;  %v1345_v34 = vcombine.low %v1137_v30, %v1139_v32  ;;  %v1346_v35 = vcombine.low %v1208_v31, %v1210_v33 }
 0x1b7   : > { %v1353_v36 = vrot.slane %v1345_v34, %v6429_v13  ;;  %v1360_v37 = vrot.slane %v1346_v35, %v6429_v13 }
 0x1b9   : > { %2000 = vrot.lane.b32.xlu0 %v6437_v28, %s8389_s25  ;;  %s8395_s25 = smov 126   ;;  %v1368_v41 = vcombine.low %v1353_v36, %v1360_v37 }
 0x1bb   : > { %v1375_v44 = vrot.slane %v1368_v41, %v6429_v13 }
 0x1bd   : > { %2022 = vrot.lane.b32.xlu0 %v6437_v28, %s8391_s26  ;;  %s8397_s26 = smov 125  }
 0x1c1   : > { %2044 = vrot.lane.b32.xlu0 %v6437_v28, %s8404_s27  ;;  %s8456_s27 = smov 88  }
 0x1c5   : > { %2066 = vrot.lane.b32.xlu0 %v6437_v28, %s8393_s28  ;;  %s8399_s28 = smov 124  }
 0x1c9   : > { %1405 = vrot.lane.b32.xlu0 %v6437_v28, %s8401_s29  ;;  %s8408_s29 = smov 120  }
 0x1cd   : > { %1428 = vrot.lane.b32.xlu0 %v6437_v28, %s8395_s25  ;;  %s8403_s25 = smov 123  }
 0x1d1   : > { %1450 = vrot.lane.b32.xlu0 %v6437_v28, %s8397_s26  ;;  %s8406_s26 = smov 122  }
 0x1d3   : > { %v6008_v38 = vpop.f32.mrf.mxu0 }
 0x1d5   : > { %v6009_v40 = vpop.f32.mrf.mxu0  ;;  %1472 = vrot.lane.b32.xlu0 %v6437_v28, %s8399_s28  ;;  %s8407_s28 = smov 121  }
 0x1d6   : > { %v6010_v42 = vadd.f32 %v6009_v40, %v6008_v38 }
 0x1d8   : > { %v1367_v43 = vrot.slane %v6010_v42, %v6429_v13 }
 0x1d9   : > { %1494 = vrot.lane.b32.xlu0 %v6437_v28, %s8403_s25  ;;  %s6236_s25 = smov 103  }
 0x1da   : > { %v1382_v45 = vrot.slane %v1367_v43, %v6429_v13 }
 0x1dc   : > { %v1383_v4 = vcombine.low %v1375_v44, %v1382_v45 }
 0x1dd   : > { %1516 = vrot.lane.b32.xlu0 %v6437_v28, %s8406_s26  ;;  %s8410_s26 = smov 87  }
 0x1de   : > { %1391 = vst.msk [vmem:[#allocation2 + $0x8] sm:$0x1f] %vm1389_vm0, %v1383_v4  ;;  %vm3023_vm0 = vcmask 498688  }
 0x1e1   : > { %1538 = vrot.lane.b32.xlu0 %v6437_v28, %s8407_s28  ;;  %s6239_s28 = smov 102  }
 0x1e5   : > { %v6498_v46 = vld [vmem:[#allocation2 + $0x2] sm:$0xff]  ;;  %1560 = vrot.lane.b32.xlu0 %v6437_v28, %s8408_s29  ;;  %v2772_v47 = vld [vmem:[#allocation2 + $0xa] sm:$0x7]  ;;  %s8413_s29 = smov 86  }
 0x1e6   : > { %2775 = vrot.lane.b32.xlu1 %v6498_v46, %s6236_s25  ;;  %v2794_v49 = vld [vmem:[#allocation2 + $0xa] sm:$0x7]  ;;  %v2150_v58 = vld [vmem:[#allocation2 + $0x1] sm:$0xff] }
 0x1e7   : > { %v2816_v51 = vld [vmem:[#allocation2 + $0xa] sm:$0x7]  ;;  %2153 = vst [vmem:[#allocation3 + $0x143] ss:$8 sm:$0xf] %v2150_v58  ;;  %v6607_v35 = vld [vmem:[#allocation2 + $0x1] sm:$0xff] }
 0x1e8   : > { %v2838_v53 = vld [vmem:[#allocation2 + $0xa] sm:$0x7]  ;;  %2154 = vst [vmem:[#allocation3 + $0x143] ss:$8 sm:$0xf0] %v2150_v58 }
 0x1e9   : > { %1582 = vrot.lane.b32.xlu0 %v6437_v28, %s8456_s27  ;;  %v2860_v55 = vld [vmem:[#allocation2 + $0xa] sm:$0x7]  ;;  %v1393_v3 = vld [vmem:[#allocation2 + $0x8] sm:$0x3] }
 0x1ea   : > { %2777 = vrot.lane.b32.xlu1 %v2772_v47, %s6236_s25  ;;  %s8416_s25 = smov 85   ;;  %v2882_v59 = vld [vmem:[#allocation2 + $0xa] sm:$0x7]  ;;  %1399 = vst.msk [vmem:[#allocation3 + $0x40] ss:$8 sm:$0x3] %vm6531_vm1, %v1393_v3 }
 0x1eb   : > { %v3123_v62 = vld [vmem:[#allocation2 + $0xa] sm:$0x7] }
 0x1ec   : > { %v2904_v0 = vld [vmem:[#allocation2 + $0xa] sm:$0x7] }
 0x1ed   : > { %1604 = vrot.lane.b32.xlu0 %v6437_v28, %s8410_s26  ;;  %s6243_s26 = smov 100   ;;  %v2151_v1 = vld [vmem:[#allocation2 + $0x9] sm:$0x3] }
 0x1ee   : > { %2799 = vrot.lane.b32.xlu1 %v2794_v49, %s6239_s28  ;;  %2156 = vst.msk [vmem:[#allocation3 + $0x183] ss:$8 sm:$0x3] %vm6531_vm1, %v2151_v1  ;;  %v2926_v39 = vld [vmem:[#allocation2 + $0xa] sm:$0x7] }
 0x1ef   : > { %v6508_v50 = vpop.permute.xlu0 %2088  ;;  %v2947_v6 = vld [vmem:[#allocation2 + $0xa] sm:$0x7] }
 0x1f0   : > { %v2969_v9 = vld [vmem:[#allocation2 + $0xa] sm:$0x7] }
 0x1f1   : > { %1626 = vrot.lane.b32.xlu0 %v6437_v28, %s8413_s29  ;;  %s6245_s29 = smov 99   ;;  %v2991_v11 = vld [vmem:[#allocation2 + $0xa] sm:$0x7] }
 0x1f2   : > { %2821 = vrot.lane.b32.xlu1 %v2816_v51, %s6241_s23  ;;  %v3013_v14 = vld [vmem:[#allocation2 + $0xa] sm:$0x7] }
 0x1f3   : > { %v6513_v52 = vpop.permute.xlu0 %2110  ;;  %v3035_v16 = vld [vmem:[#allocation2 + $0xa] sm:$0x7] }
 0x1f4   : > { %v3057_v18 = vld [vmem:[#allocation2 + $0xa] sm:$0x7] }
 0x1f5   : > { %1648 = vrot.lane.b32.xlu0 %v6437_v28, %s8416_s25  ;;  %s6247_s25 = smov 98   ;;  %v3079_v7 = vld [vmem:[#allocation2 + $0xa] sm:$0x7] }
 0x1f6   : > { %2843 = vrot.lane.b32.xlu1 %v2838_v53, %s6243_s26  ;;  %v3101_v21 = vld [vmem:[#allocation2 + $0xa] sm:$0x7] }
 0x1f7   : > { %v6518_v54 = vpop.permute.xlu0 %2132  ;;  %v2422_v23 = vld [vmem:[#allocation2 + $0x9] sm:$0x7] }
 0x1f8   : > { %v2444_v25 = vld [vmem:[#allocation2 + $0x9] sm:$0x7] }
 0x1f9   : > { %1670 = vrot.lane.b32.xlu0 %v6437_v28, %s8418_s22  ;;  %s6248_s22 = smov 97   ;;  %v2466_v27 = vld [vmem:[#allocation2 + $0x9] sm:$0x7] }
 0x1fa   : > { %2865 = vrot.lane.b32.xlu1 %v2860_v55, %s6245_s29  ;;  %v2488_v29 = vld [vmem:[#allocation2 + $0x9] sm:$0x7] }
 0x1fb   : > { %v6523_v56 = vpop.permute.xlu0 %1736  ;;  %v2510_v31 = vld [vmem:[#allocation2 + $0x9] sm:$0x7] }
 0x1fc   : > { %v2532_v33 = vld [vmem:[#allocation2 + $0x9] sm:$0x7] }
 0x1fd   : > { %3126 = vrot.lane.b32.xlu0 %v6498_v46, %s6246_s21  ;;  %v2553_v36 = vld [vmem:[#allocation2 + $0x9] sm:$0x7] }
 0x1fe   : > { %2887 = vrot.lane.b32.xlu1 %v2882_v59, %s6247_s25  ;;  %v2575_v38 = vld [vmem:[#allocation2 + $0x9] sm:$0x7] }
 0x1ff   : > { %v6528_v60 = vpop.permute.xlu0 %1758  ;;  %v2597_v41 = vld [vmem:[#allocation2 + $0x9] sm:$0x7] }
 0x200   : > { %v2619_v43 = vld [vmem:[#allocation2 + $0x9] sm:$0x7] }
 0x201   : > { %3128 = vrot.lane.b32.xlu0 %v3123_v62, %s6246_s21  ;;  %v2641_v45 = vld [vmem:[#allocation2 + $0x9] sm:$0x7] }
 0x202   : > { %2909 = vrot.lane.b32.xlu1 %v2904_v0, %s6248_s22  ;;  %v2663_v47 = vld [vmem:[#allocation2 + $0x9] sm:$0x7] }
 0x203   : > { %v6537_v2 = vpop.permute.xlu0 %1780  ;;  %v2685_v53 = vld [vmem:[#allocation2 + $0x9] sm:$0x7] }
 0x204   : > { %v2707_v0 = vld [vmem:[#allocation2 + $0x9] sm:$0x7] }
 0x205   : > { %2797 = vrot.lane.b32.xlu0 %v6498_v46, %s6239_s28  ;;  %s6255_s28 = smov 60  }
 0x206   : > { %2931 = vrot.lane.b32.xlu1 %v2926_v39, %s8443_s20 }
 0x207   : > { %v6546_v5 = vpop.permute.xlu0 %1802 }
 0x209   : > { %2819 = vrot.lane.b32.xlu0 %v6498_v46, %s6241_s23  ;;  %s6253_s23 = smov 62  }
 0x20a   : > { %2952 = vrot.lane.b32.xlu1 %v2947_v6, %s6250_s19 }
 0x20b   : > { %v6551_v8 = vpop.permute.xlu0 %1824 }
 0x20d   : > { %2841 = vrot.lane.b32.xlu0 %v6498_v46, %s6243_s26  ;;  %s6254_s26 = smov 61  }
 0x20e   : > { %2974 = vrot.lane.b32.xlu1 %v2969_v9, %s6251_s18 }
 0x20f   : > { %v6556_v10 = vpop.permute.xlu0 %1846 }
 0x211   : > { %2863 = vrot.lane.b32.xlu0 %v6498_v46, %s6245_s29  ;;  %s6256_s29 = smov 59  }
 0x212   : > { %2996 = vrot.lane.b32.xlu1 %v2991_v11, %s6253_s23 }
 0x213   : > { %v6563_v13 = vpop.permute.xlu0 %1868 }
 0x215   : > { %2885 = vrot.lane.b32.xlu0 %v6498_v46, %s6247_s25  ;;  %s6257_s25 = smov 58  }
 0x216   : > { %3018 = vrot.lane.b32.xlu1 %v3013_v14, %s6254_s26  ;;  %v2729_v14 = vld [vmem:[#allocation2 + $0x9] sm:$0x7] }
 0x217   : > { %v6569_v15 = vpop.permute.xlu0 %1890 }
 0x219   : > { %2907 = vrot.lane.b32.xlu0 %v6498_v46, %s6248_s22  ;;  %s6258_s22 = smov 57  }
 0x21a   : > { %3040 = vrot.lane.b32.xlu1 %v3035_v16, %s6255_s28 }
 0x21b   : > { %v6573_v17 = vpop.permute.xlu0 %1912 }
 0x21d   : > { %2929 = vrot.lane.b32.xlu0 %v6498_v46, %s8443_s20 }
 0x21e   : > { %3062 = vrot.lane.b32.xlu1 %v3057_v18, %s6256_s29 }
 0x21f   : > { %v6577_v19 = vpop.permute.xlu0 %1934 }
 0x221   : > { %2950 = vrot.lane.b32.xlu0 %v6498_v46, %s6250_s19  ;;  %s6260_s19 = smov 52  }
 0x222   : > { %3084 = vrot.lane.b32.xlu1 %v3079_v7, %s6257_s25 }
 0x223   : > { %v6581_v20 = vpop.permute.xlu0 %1956 }
 0x225   : > { %2972 = vrot.lane.b32.xlu0 %v6498_v46, %s6251_s18  ;;  %s6261_s18 = smov 51  }
 0x226   : > { %3106 = vrot.lane.b32.xlu1 %v3101_v21, %s6258_s22 }
 0x227   : > { %v6585_v22 = vpop.permute.xlu0 %1978 }
 0x229   : > { %2994 = vrot.lane.b32.xlu0 %v6498_v46, %s6253_s23  ;;  %s6262_s23 = smov 50  }
 0x22a   : > { %2427 = vrot.lane.b32.xlu1 %v2422_v23, %s6259_s17  ;;  %v2750_v23 = vld [vmem:[#allocation2 + $0xa] sm:$0x7] }
 0x22b   : > { %v6589_v24 = vpop.permute.xlu0 %2000 }
 0x22d   : > { %3016 = vrot.lane.b32.xlu0 %v6498_v46, %s6254_s26  ;;  %s6263_s26 = smov 49  }
 0x22e   : > { %2449 = vrot.lane.b32.xlu1 %v2444_v25, %s6260_s19 }
 0x22f   : > { %v6592_v26 = vpop.permute.xlu0 %2022 }
 0x231   : > { %3038 = vrot.lane.b32.xlu0 %v6498_v46, %s6255_s28  ;;  %s6264_s28 = smov 16  }
 0x232   : > { %2471 = vrot.lane.b32.xlu1 %v2466_v27, %s6261_s18 }
 0x233   : > { %v6595_v28 = vpop.permute.xlu0 %2044 }
 0x235   : > { %3060 = vrot.lane.b32.xlu0 %v6498_v46, %s6256_s29  ;;  %s6265_s29 = smov 15  }
 0x236   : > { %2493 = vrot.lane.b32.xlu1 %v2488_v29, %s6262_s23 }
 0x237   : > { %v6598_v30 = vpop.permute.xlu0 %2066 }
 0x239   : > { %3082 = vrot.lane.b32.xlu0 %v6498_v46, %s6257_s25  ;;  %s6266_s25 = smov 14  }
 0x23a   : > { %2515 = vrot.lane.b32.xlu1 %v2510_v31, %s6263_s26 }
 0x23b   : > { %v6601_v32 = vpop.permute.xlu0 %1405 }
 0x23d   : > { %3104 = vrot.lane.b32.xlu0 %v6498_v46, %s6258_s22  ;;  %s6268_s22 = smov 12  }
 0x23e   : > { %2537 = vrot.lane.b32.xlu1 %v2532_v33, %s8454_s15  ;;  %v2085_v33 = vld [vmem:[#allocation2 + $0x8] sm:$0x7] }
 0x23f   : > { %v6605_v34 = vpop.permute.xlu0 %1428 }
 0x241   : > { %2425 = vrot.lane.b32.xlu0 %v6607_v35, %s6259_s17  ;;  %s6267_s17 = smov 13  }
 0x242   : > { %2558 = vrot.lane.b32.xlu1 %v2553_v36, %s6264_s28 }
 0x243   : > { %v6610_v37 = vpop.permute.xlu0 %1450 }
 0x245   : > { %2447 = vrot.lane.b32.xlu0 %v6607_v35, %s6260_s19  ;;  %s6269_s19 = smov 11  }
 0x246   : > { %2580 = vrot.lane.b32.xlu1 %v2575_v38, %s6265_s29 }
 0x247   : > { %v6614_v40 = vpop.permute.xlu0 %1472 }
 0x249   : > { %2469 = vrot.lane.b32.xlu0 %v6607_v35, %s6261_s18  ;;  %s6270_s18 = smov 10  }
 0x24a   : > { %2602 = vrot.lane.b32.xlu1 %v2597_v41, %s6266_s25 }
 0x24b   : > { %v6618_v42 = vpop.permute.xlu0 %1494 }
 0x24d   : > { %2491 = vrot.lane.b32.xlu0 %v6607_v35, %s6262_s23  ;;  %s6271_s23 = smov 9  }
 0x24e   : > { %2624 = vrot.lane.b32.xlu1 %v2619_v43, %s6267_s17 }
 0x24f   : > { %v6622_v44 = vpop.permute.xlu0 %1516 }
 0x251   : > { %2513 = vrot.lane.b32.xlu0 %v6607_v35, %s6263_s26  ;;  %s6272_s26 = smov 104  }
 0x252   : > { %2646 = vrot.lane.b32.xlu1 %v2641_v45, %s6268_s22  ;;  %v2107_v45 = vld [vmem:[#allocation2 + $0x8] sm:$0x7] }
 0x253   : > { %v6626_v4 = vpop.permute.xlu0 %1538 }
 0x255   : > { %2535 = vrot.lane.b32.xlu0 %v6607_v35, %s8454_s15 }
 0x256   : > { %2668 = vrot.lane.b32.xlu1 %v2663_v47, %s6269_s19 }
 0x257   : > { %v6631_v49 = vpop.permute.xlu0 %1560 }
 0x258   : > { %v2776_v51 = vpop.permute.xlu1 %2775 }
 0x259   : > { %2556 = vrot.lane.b32.xlu0 %v6607_v35, %s6264_s28  ;;  %v2779_v59 = vrot.slane %v2776_v51, 1  ;;  %s8435_s28 = smov 92  }
 0x25a   : > { %2690 = vrot.lane.b32.xlu1 %v2685_v53, %s6270_s18 }
 0x25b   : > { %v6635_v55 = vpop.permute.xlu0 %1582 }
 0x25c   : > { %v2778_v58 = vpop.permute.xlu1 %2777 }
 0x25d   : > { %v2780_v62 = vrot.slane %v2778_v58, 1  ;;  %2578 = vrot.lane.b32.xlu0 %v6607_v35, %s6265_s29  ;;  %s6277_s29 = smov 91  }
 0x25e   : > { %2712 = vrot.lane.b32.xlu1 %v2707_v0, %s6271_s23 }
 0x25f   : > { %v2781_v1 = vsel %vm1411_vm2, %v2779_v59, %v2780_v62  ;;  %v2784_v3 = vsel %vm2782_vm3, %v2778_v58, %v2780_v62  ;;  %v6641_v39 = vpop.permute.xlu0 %1604  ;;  %v2129_v59 = vld [vmem:[#allocation2 + $0x8] sm:$0x7] }
 0x260   : > { %v2783_v6 = vsel %vm2782_vm3, %v2776_v51, %v2781_v1  ;;  %2791 = vst.msk [vmem:[#allocation3 + $0x2c0] ss:$8 sm:$0x3] %vm6531_vm1, %v2784_v3  ;;  %v6645_v9 = vpop.permute.xlu1 %2799  ;;  %vm3045_vm3 = vcmask 490496  }
 0x261   : > { %2788 = vst [vmem:[#allocation3 + $0x280] ss:$8 sm:$0xf] %v2783_v6  ;;  %2789 = vst [vmem:[#allocation3 + $0x280] ss:$8 sm:$0xf0] %v2783_v6  ;;  %2600 = vrot.lane.b32.xlu0 %v6607_v35, %s6266_s25 }
 0x262   : > { %v2802_v11 = vrot.slane %v6645_v9, 1  ;;  %2734 = vrot.lane.b32.xlu1 %v2729_v14, %s8445_s24  ;;  %s6278_s25 = smov 90  }
 0x263   : > { %v6655_v18 = vpop.permute.xlu0 %1626 }
 0x264   : > { %v2806_v16 = vsel %vm2804_vm4, %v6645_v9, %v2802_v11  ;;  %v6659_v7 = vpop.permute.xlu1 %2821 }
 0x265   : > { %2813 = vst.msk [vmem:[#allocation3 + $0x2c1] ss:$8 sm:$0x3] %vm6531_vm1, %v2806_v16  ;;  %v2824_v21 = vrot.slane %v6659_v7, 1  ;;  %2622 = vrot.lane.b32.xlu0 %v6607_v35, %s6267_s17  ;;  %v2159_v16 = vld [vmem:[#allocation2 + $0x9] sm:$0x7] }
 0x266   : > { %2755 = vrot.lane.b32.xlu1 %v2750_v23, %s6272_s26  ;;  %s6279_s17 = smov 89  }
 0x267   : > { %v2828_v25 = vsel %vm2826_vm5, %v6659_v7, %v2824_v21  ;;  %v6669_v27 = vpop.permute.xlu0 %1648 }
 0x268   : > { %2835 = vst.msk [vmem:[#allocation3 + $0x2c2] ss:$8 sm:$0x3] %vm6531_vm1, %v2828_v25  ;;  %v6673_v29 = vpop.permute.xlu1 %2843 }
 0x269   : > { %v2846_v31 = vrot.slane %v6673_v29, 1  ;;  %2644 = vrot.lane.b32.xlu0 %v6607_v35, %s6268_s22  ;;  %s6280_s22 = smov 55  }
 0x26a   : > { %2090 = vrot.lane.b32.xlu1 %v2085_v33, %s6209_s30  ;;  %s8441_s30 = smov 95  }
 0x26b   : > { %v2850_v36 = vsel %vm2848_vm6, %v6673_v29, %v2846_v31  ;;  %v6683_v38 = vpop.permute.xlu0 %1670 }
 0x26c   : > { %2857 = vst.msk [vmem:[#allocation3 + $0x2c3] ss:$8 sm:$0x3] %vm6531_vm1, %v2850_v36  ;;  %v6687_v41 = vpop.permute.xlu1 %2865 }
 0x26d   : > { %v2868_v43 = vrot.slane %v6687_v41, 1  ;;  %2666 = vrot.lane.b32.xlu0 %v6607_v35, %s6269_s19  ;;  %s6281_s19 = smov 54  }
 0x26e   : > { %2112 = vrot.lane.b32.xlu1 %v2107_v45, %s6210_s10  ;;  %s8439_s10 = smov 94  }
 0x26f   : > { %v2872_v47 = vsel %vm2870_vm7, %v6687_v41, %v2868_v43  ;;  %v3127_v51 = vpop.permute.xlu0 %3126 }
 0x270   : > { %2879 = vst.msk [vmem:[#allocation3 + $0x2c4] ss:$8 sm:$0x3] %vm6531_vm1, %v2872_v47  ;;  %v6699_v53 = vpop.permute.xlu1 %2887  ;;  %v3130_v3 = vrot.slane %v3127_v51, 1 }
 0x271   : > { %v2890_v58 = vrot.slane %v6699_v53, 1  ;;  %2688 = vrot.lane.b32.xlu0 %v6607_v35, %s6270_s18  ;;  %s8476_s18 = smov 45  }
 0x272   : > { %2134 = vrot.lane.b32.xlu1 %v2129_v59, %s6211_s7  ;;  %s8437_s7 = smov 93  }
 0x273   : > { %v2894_v62 = vsel %vm2892_vm8, %v6699_v53, %v2890_v58  ;;  %v3129_v0 = vpop.permute.xlu0 %3128 }
 0x274   : > { %2901 = vst.msk [vmem:[#allocation3 + $0x2c5] ss:$8 sm:$0x3] %vm6531_vm1, %v2894_v62  ;;  %v6711_v1 = vpop.permute.xlu1 %2909  ;;  %v3131_v6 = vrot.slane %v3129_v0, 1 }
 0x275   : > { %v2912_v14 = vrot.slane %v6711_v1, 1  ;;  %2710 = vrot.lane.b32.xlu0 %v6607_v35, %s6271_s23  ;;  %s8477_s23 = smov 44  }
 0x276   : > { %2164 = vrot.lane.b32.xlu1 %v2159_v16, %s8443_s20  ;;  %v3132_v23 = vsel %vm1411_vm2, %v3130_v3, %v3131_v6  ;;  %v3134_v25 = vsel %vm2366_vm9, %v3129_v0, %v3131_v6  ;;  %v2181_v0 = vld [vmem:[#allocation2 + $0x9] sm:$0x7] }
 0x277   : > { %v2916_v33 = vsel %vm2914_vm10, %v6711_v1, %v2912_v14  ;;  %v3133_v36 = vsel %vm2366_vm9, %v3127_v51, %v3132_v23  ;;  %3141 = vst.msk [vmem:[#allocation3 + $0x360] ss:$8 sm:$0x3] %vm6531_vm1, %v3134_v25  ;;  %v2798_v45 = vpop.permute.xlu0 %2797  ;;  %v2203_v25 = vld [vmem:[#allocation2 + $0x9] sm:$0x7] }
 0x278   : > { %2923 = vst.msk [vmem:[#allocation3 + $0x2c6] ss:$8 sm:$0x3] %vm6531_vm1, %v2916_v33  ;;  %v6728_v47 = vpop.permute.xlu1 %2931  ;;  %3138 = vst [vmem:[#allocation3 + $0x320] ss:$8 sm:$0xf] %v3133_v36 }
 0x279   : > { %3139 = vst [vmem:[#allocation3 + $0x320] ss:$8 sm:$0xf0] %v3133_v36  ;;  %v2801_v59 = vrot.slane %v2798_v45, 1  ;;  %v8430_v62 = vrot.slane %v6728_v47, 1  ;;  %2732 = vrot.lane.b32.xlu0 %v6607_v35, %s8445_s24  ;;  %v6754_v36 = vsel %vm3401_vm12, 65535, %v8427_v12 }
 0x27a   : > { %2186 = vrot.lane.b32.xlu1 %v2181_v0, %s8441_s30  ;;  %vm2498_vm12 = vcmask 408576  }
 0x27b   : > { %v2803_v51 = vsel %vm1411_vm2, %v2801_v59, %v2802_v11  ;;  %v2937_v3 = vsel %vm8451_vm11, %v6728_v47, %v8430_v62  ;;  %v2820_v16 = vpop.permute.xlu0 %2819  ;;  %v2225_v62 = vld [vmem:[#allocation2 + $0x9] sm:$0x7] }
 0x27c   : > { %v2805_v6 = vsel %vm2804_vm4, %v2798_v45, %v2803_v51  ;;  %2944 = vst.msk [vmem:[#allocation3 + $0x2c7] ss:$8 sm:$0x3] %vm6531_vm1, %v2937_v3  ;;  %v6744_v23 = vpop.permute.xlu1 %2952  ;;  %v2823_v9 = vrot.slane %v2820_v16, 1  ;;  %vm3067_vm4 = vcmask 482304  }
 0x27d   : > { %2810 = vst [vmem:[#allocation3 + $0x281] ss:$8 sm:$0xf] %v2805_v6  ;;  %2811 = vst [vmem:[#allocation3 + $0x281] ss:$8 sm:$0xf0] %v2805_v6  ;;  %2753 = vrot.lane.b32.xlu0 %v6498_v46, %s6272_s26 }
 0x27e   : > { %v8429_v11 = vrot.slane %v6744_v23, 1  ;;  %2208 = vrot.lane.b32.xlu1 %v2203_v25, %s8439_s10  ;;  %v2825_v33 = vsel %vm1411_vm2, %v2823_v9, %v2824_v21  ;;  %s8478_s26 = smov 43  }
 0x27f   : > { %v2827_v59 = vsel %vm2826_vm5, %v2820_v16, %v2825_v33  ;;  %v2842_v0 = vpop.permute.xlu0 %2841  ;;  %v3252_v46 = vld [vmem:[#allocation3 + $0x328] sm:$0x1]  ;;  %v3254_v51 = vld [vmem:[#allocation3 + $0x338] sm:$0x1]  ;;  %v3251_v3 = vld [vmem:[#allocation3 + $0x320] sm:$0x1] }
 0x280   : > { %v2959_v45 = vsel %vm2957_vm13, %v6744_v23, %v8429_v11  ;;  %v6763_v7 = vpop.permute.xlu1 %2974  ;;  %2832 = vst [vmem:[#allocation3 + $0x282] ss:$8 sm:$0xf] %v2827_v59  ;;  %2833 = vst [vmem:[#allocation3 + $0x282] ss:$8 sm:$0xf0] %v2827_v59  ;;  %v3312_v6 = vpack.c.bf16 %v3252_v46, %v3252_v46  ;;  %v3314_v9 = vpack.c.bf16 %v3254_v51, %v3254_v51 }
 0x281   : > { %2966 = vst.msk [vmem:[#allocation3 + $0x310] ss:$8 sm:$0x3] %vm6531_vm1, %v2959_v45  ;;  %v2845_v21 = vrot.slane %v2842_v0, 1  ;;  %v3311_v25 = vpack.c.bf16 %v3251_v3, %v3251_v3  ;;  %v3253_v12 = vld [vmem:[#allocation3 + $0x330] sm:$0x1]  ;;  %2162 = vrot.lane.b32.xlu0 %v6607_v35, %s8443_s20 }
 0x282   : > { %v2977_v11 = vrot.slane %v6763_v7, 1  ;;  %v3313_v16 = vpack.c.bf16 %v3253_v12, %v3253_v12  ;;  %2230 = vrot.lane.b32.xlu1 %v2225_v62, %s8437_s7  ;;  %v3408_v45 = vand.u32 %v6754_v36, %v3312_v6  ;;  %v3414_v59 = vand.u32 %v6754_v36, %v3314_v9  ;;  %v2247_v6 = vld [vmem:[#allocation2 + $0x9] sm:$0x7]  ;;  %s8500_s20 = smov 85  }
 0x283   : > { %v2847_v33 = vsel %vm1411_vm2, %v2845_v21, %v2846_v31  ;;  %v3405_v46 = vand.u32 %v6754_v36, %v3311_v25  ;;  %v2864_v3 = vpop.permute.xlu0 %2863  ;;  %vm3089_vm5 = vcmask 474112  }
 0x284   : > { %v2981_v51 = vsel %vm2979_vm14, %v6763_v7, %v2977_v11  ;;  %v2849_v12 = vsel %vm2848_vm6, %v2842_v0, %v2847_v33  ;;  %v3411_v62 = vand.u32 %v6754_v36, %v3313_v16  ;;  %v6783_v29 = vpop.permute.xlu1 %2996  ;;  %v2867_v31 = vrot.slane %v2864_v3, 1  ;;  %3438 = vmatprep.subr.bf16.mxu1 %v3408_v45  ;;  %3511 = vmatprep.subr.bf16.mxu0 %v3414_v59  ;;  %v2269_v45 = vld [vmem:[#allocation2 + $0x9] sm:$0x7] }
 0x285   : > { %2988 = vst.msk [vmem:[#allocation3 + $0x311] ss:$8 sm:$0x3] %vm6531_vm1, %v2981_v51  ;;  %2854 = vst [vmem:[#allocation3 + $0x283] ss:$8 sm:$0xf] %v2849_v12  ;;  %3439 = vmatpush1.bf16.msra.mxu1 %v3405_v46  ;;  %2184 = vrot.lane.b32.xlu0 %v6607_v35, %s8441_s30 }
 0x286   : > { %2855 = vst [vmem:[#allocation3 + $0x283] ss:$8 sm:$0xf0] %v2849_v12  ;;  %v2999_v21 = vrot.slane %v6783_v29, 1  ;;  %3512 = vmatpush1.bf16.msra.mxu0 %v3411_v62  ;;  %2252 = vrot.lane.b32.xlu1 %v2247_v6, %s8435_s28  ;;  %v2869_v0 = vsel %vm1411_vm2, %v2867_v31, %v2868_v43  ;;  %v2291_v62 = vld [vmem:[#allocation2 + $0x9] sm:$0x7] }
 0x287   : > { %v2871_v25 = vsel %vm2870_vm7, %v2864_v3, %v2869_v0  ;;  %v2886_v16 = vpop.permute.xlu0 %2885  ;;  %vm3111_vm6 = vcmask 465920   ;;  %vm2432_vm7 = vcmask 433152   ;;  %s8499_s30 = smov 86  }
 0x288   : > { %v3003_v9 = vsel %vm3001_vm15, %v6783_v29, %v2999_v21  ;;  %v6799_v33 = vpop.permute.xlu1 %3018  ;;  %2876 = vst [vmem:[#allocation3 + $0x284] ss:$8 sm:$0xf] %v2871_v25  ;;  %2877 = vst [vmem:[#allocation3 + $0x284] ss:$8 sm:$0xf0] %v2871_v25 }
 0x289   : > { %3010 = vst.msk [vmem:[#allocation3 + $0x312] ss:$8 sm:$0x3] %vm6531_vm1, %v3003_v9  ;;  %v2889_v41 = vrot.slane %v2886_v16, 1  ;;  %v3021_v43 = vrot.slane %v6799_v33, 1  ;;  %2206 = vrot.lane.b32.xlu0 %v6607_v35, %s8439_s10  ;;  %s8494_s10 = smov 123  }
 0x28a   : > { %2274 = vrot.lane.b32.xlu1 %v2269_v45, %s6277_s29 }
 0x28b   : > { %v2891_v59 = vsel %vm1411_vm2, %v2889_v41, %v2890_v58  ;;  %v3025_v46 = vsel %vm3023_vm0, %v6799_v33, %v3021_v43  ;;  %v2908_v12 = vpop.permute.xlu0 %2907  ;;  %v8473_v41 = vrot.slane %v6728_v47, 1 }
 0x28c   : > { %v2893_v51 = vsel %vm2892_vm8, %v2886_v16, %v2891_v59  ;;  %3032 = vst.msk [vmem:[#allocation3 + $0x313] ss:$8 sm:$0x3] %vm6531_vm1, %v3025_v46  ;;  %v6815_v3 = vpop.permute.xlu1 %3040  ;;  %v2911_v53 = vrot.slane %v2908_v12, 1  ;;  %v2313_v16 = vld [vmem:[#allocation2 + $0x9] sm:$0x7] }
 0x28d   : > { %2898 = vst [vmem:[#allocation3 + $0x285] ss:$8 sm:$0xf] %v2893_v51  ;;  %2899 = vst [vmem:[#allocation3 + $0x285] ss:$8 sm:$0xf0] %v2893_v51  ;;  %2228 = vrot.lane.b32.xlu0 %v6607_v35, %s8437_s7 }
 0x28e   : > { %v3043_v58 = vrot.slane %v6815_v3, 1  ;;  %2296 = vrot.lane.b32.xlu1 %v2291_v62, %s6278_s25  ;;  %v2913_v31 = vsel %vm1411_vm2, %v2911_v53, %v2912_v14  ;;  %v2335_v62 = vld [vmem:[#allocation2 + $0x9] sm:$0x7]  ;;  %vm2454_vm8 = vcmask 424960   ;;  %s8493_s7 = smov 124  }
 0x28f   : > { %v2915_v0 = vsel %vm2914_vm10, %v2908_v12, %v2913_v31  ;;  %v2930_v9 = vpop.permute.xlu0 %2929  ;;  %v8474_v31 = vrot.slane %v6744_v23, 1  ;;  %vm2476_vm10 = vcmask 416768  }
 0x290   : > { %v3047_v6 = vsel %vm3045_vm3, %v6815_v3, %v3043_v58  ;;  %v6831_v25 = vpop.permute.xlu1 %3062  ;;  %2920 = vst [vmem:[#allocation3 + $0x286] ss:$8 sm:$0xf] %v2915_v0  ;;  %2921 = vst [vmem:[#allocation3 + $0x286] ss:$8 sm:$0xf0] %v2915_v0 }
 0x291   : > { %3054 = vst.msk [vmem:[#allocation3 + $0x314] ss:$8 sm:$0x3] %vm6531_vm1, %v3047_v6  ;;  %v2933_v1 = vrot.slane %v2930_v9, 1  ;;  %v3065_v14 = vrot.slane %v6831_v25, 1  ;;  %2250 = vrot.lane.b32.xlu0 %v6607_v35, %s8435_s28  ;;  %s8492_s28 = smov 125  }
 0x292   : > { %2318 = vrot.lane.b32.xlu1 %v2313_v16, %s6279_s17 }
 0x293   : > { %v2935_v45 = vsel %vm1411_vm2, %v2933_v1, %v8473_v41  ;;  %v3069_v59 = vsel %vm3067_vm4, %v6831_v25, %v3065_v14  ;;  %v2951_v51 = vpop.permute.xlu0 %2950 }
 0x294   : > { %v2936_v46 = vsel %vm8451_vm11, %v2930_v9, %v2935_v45  ;;  %3076 = vst.msk [vmem:[#allocation3 + $0x315] ss:$8 sm:$0x3] %vm6531_vm1, %v3069_v59  ;;  %v6847_v12 = vpop.permute.xlu1 %3084  ;;  %v2954_v47 = vrot.slane %v2951_v51, 1  ;;  %v2356_v45 = vld [vmem:[#allocation2 + $0x9] sm:$0x7] }
 0x295   : > { %2941 = vst [vmem:[#allocation3 + $0x287] ss:$8 sm:$0xf] %v2936_v46  ;;  %2942 = vst [vmem:[#allocation3 + $0x287] ss:$8 sm:$0xf0] %v2936_v46  ;;  %2272 = vrot.lane.b32.xlu0 %v6607_v35, %s6277_s29 }
 0x296   : > { %v3087_v53 = vrot.slane %v6847_v12, 1  ;;  %2340 = vrot.lane.b32.xlu1 %v2335_v62, %s8456_s27  ;;  %v2956_v6 = vsel %vm1411_vm2, %v2954_v47, %v8474_v31  ;;  %v2378_v31 = vld [vmem:[#allocation2 + $0x9] sm:$0x7]  ;;  %s8479_s29 = smov 42  }
 0x297   : > { %v2958_v9 = vsel %vm2957_vm13, %v2951_v51, %v2956_v6  ;;  %v2973_v1 = vpop.permute.xlu0 %2972 }
 0x298   : > { %v3091_v0 = vsel %vm3089_vm5, %v6847_v12, %v3087_v53  ;;  %v6863_v16 = vpop.permute.xlu1 %3106  ;;  %2963 = vst [vmem:[#allocation3 + $0x2d0] ss:$8 sm:$0xf] %v2958_v9  ;;  %2964 = vst [vmem:[#allocation3 + $0x2d0] ss:$8 sm:$0xf0] %v2958_v9 }
 0x299   : > { %3098 = vst.msk [vmem:[#allocation3 + $0x316] ss:$8 sm:$0x3] %vm6531_vm1, %v3091_v0  ;;  %v2976_v23 = vrot.slane %v2973_v1, 1  ;;  %v3109_v41 = vrot.slane %v6863_v16, 1  ;;  %2294 = vrot.lane.b32.xlu0 %v6607_v35, %s6278_s25  ;;  %s8481_s25 = smov 41  }
 0x29a   : > { %2361 = vrot.lane.b32.xlu1 %v2356_v45, %s6246_s21  ;;  %v2400_v45 = vld [vmem:[#allocation2 + $0x9] sm:$0x7] }
 0x29b   : > { %v2978_v59 = vsel %vm1411_vm2, %v2976_v23, %v2977_v11  ;;  %v3113_v46 = vsel %vm3111_vm6, %v6863_v16, %v3109_v41  ;;  %v2995_v47 = vpop.permute.xlu0 %2994 }
 0x29c   : > { %v2980_v51 = vsel %vm2979_vm14, %v2973_v1, %v2978_v59  ;;  %3120 = vst.msk [vmem:[#allocation3 + $0x317] ss:$8 sm:$0x3] %vm6531_vm1, %v3113_v46  ;;  %v6879_v62 = vpop.permute.xlu1 %2427  ;;  %v2998_v11 = vrot.slane %v2995_v47, 1  ;;  %vm2520_vm14 = vcmask 400384  }
 0x29d   : > { %2985 = vst [vmem:[#allocation3 + $0x2d1] ss:$8 sm:$0xf] %v2980_v51  ;;  %2986 = vst [vmem:[#allocation3 + $0x2d1] ss:$8 sm:$0xf0] %v2980_v51  ;;  %2316 = vrot.lane.b32.xlu0 %v6607_v35, %s6279_s17 }
 0x29e   : > { %v2430_v7 = vrot.slane %v6879_v62, 1  ;;  %2383 = vrot.lane.b32.xlu1 %v2378_v31, %s6280_s22  ;;  %v3000_v6 = vsel %vm1411_vm2, %v2998_v11, %v2999_v21  ;;  %v1733_v31 = vld [vmem:[#allocation2 + $0x8] sm:$0x7]  ;;  %s8483_s17 = smov 40  }
 0x29f   : > { %v3002_v9 = vsel %vm3001_vm15, %v2995_v47, %v3000_v6  ;;  %v3017_v1 = vpop.permute.xlu0 %3016  ;;  %vm1787_vm15 = vcmask 392192  }
 0x2a0   : > { %v2434_v0 = vsel %vm2432_vm7, %v6879_v62, %v2430_v7  ;;  %v6895_v23 = vpop.permute.xlu1 %2449  ;;  %3007 = vst [vmem:[#allocation3 + $0x2d2] ss:$8 sm:$0xf] %v3002_v9  ;;  %3008 = vst [vmem:[#allocation3 + $0x2d2] ss:$8 sm:$0xf0] %v3002_v9 }
 0x2a1   : > { %2441 = vst.msk [vmem:[#allocation3 + $0x220] ss:$8 sm:$0x3] %vm6531_vm1, %v2434_v0  ;;  %v3020_v29 = vrot.slane %v3017_v1, 1  ;;  %v2452_v21 = vrot.slane %v6895_v23, 1  ;;  %2338 = vrot.lane.b32.xlu0 %v6607_v35, %s8456_s27 }
 0x2a2   : > { %2405 = vrot.lane.b32.xlu1 %v2400_v45, %s6281_s19  ;;  %v1755_v45 = vld [vmem:[#allocation2 + $0x8] sm:$0x7] }
 0x2a3   : > { %v3022_v59 = vsel %vm1411_vm2, %v3020_v29, %v3021_v43  ;;  %v2456_v46 = vsel %vm2454_vm8, %v6895_v23, %v2452_v21  ;;  %v3039_v47 = vpop.permute.xlu0 %3038 }
 0x2a4   : > { %v3024_v51 = vsel %vm3023_vm0, %v3017_v1, %v3022_v59  ;;  %2463 = vst.msk [vmem:[#allocation3 + $0x221] ss:$8 sm:$0x3] %vm6531_vm1, %v2456_v46  ;;  %v6911_v11 = vpop.permute.xlu1 %2471  ;;  %v3042_v33 = vrot.slane %v3039_v47, 1  ;;  %vm2563_vm0 = vcmask 130048  }
 0x2a5   : > { %3029 = vst [vmem:[#allocation3 + $0x2d3] ss:$8 sm:$0xf] %v3024_v51  ;;  %3030 = vst [vmem:[#allocation3 + $0x2d3] ss:$8 sm:$0xf0] %v3024_v51  ;;  %2359 = vrot.lane.b32.xlu0 %v6607_v35, %s6246_s21 }
 0x2a6   : > { %v2474_v43 = vrot.slane %v6911_v11, 1  ;;  %1738 = vrot.lane.b32.xlu1 %v1733_v31, %s6212_s13  ;;  %v3044_v6 = vsel %vm1411_vm2, %v3042_v33, %v3043_v58  ;;  %v1777_v31 = vld [vmem:[#allocation2 + $0x8] sm:$0x7]  ;;  %s6282_s13 = smov 83   ;;  %s6283_s21 = smov 82  }
 0x2a7   : > { %v3046_v9 = vsel %vm3045_vm3, %v3039_v47, %v3044_v6  ;;  %v3061_v1 = vpop.permute.xlu0 %3060  ;;  %vm2585_vm3 = vcmask 121856  }
 0x2a8   : > { %v2478_v0 = vsel %vm2476_vm10, %v6911_v11, %v2474_v43  ;;  %v6927_v29 = vpop.permute.xlu1 %2493  ;;  %3051 = vst [vmem:[#allocation3 + $0x2d4] ss:$8 sm:$0xf] %v3046_v9  ;;  %3052 = vst [vmem:[#allocation3 + $0x2d4] ss:$8 sm:$0xf0] %v3046_v9 }
 0x2a9   : > { %2485 = vst.msk [vmem:[#allocation3 + $0x222] ss:$8 sm:$0x3] %vm6531_vm1, %v2478_v0  ;;  %v3064_v3 = vrot.slane %v3061_v1, 1  ;;  %v2496_v58 = vrot.slane %v6927_v29, 1  ;;  %2381 = vrot.lane.b32.xlu0 %v6607_v35, %s6280_s22  ;;  %s8486_s22 = smov 7  }
 0x2aa   : > { %1760 = vrot.lane.b32.xlu1 %v1755_v45, %s6213_s14  ;;  %v1688_v45 = vld [vmem:[#allocation2] sm:$0xff]  ;;  %s8475_s14 = smov 46  }
 0x2ab   : > { %v3066_v59 = vsel %vm1411_vm2, %v3064_v3, %v3065_v14  ;;  %v2500_v46 = vsel %vm2498_vm12, %v6927_v29, %v2496_v58  ;;  %v3083_v47 = vpop.permute.xlu0 %3082 }
 0x2ac   : > { %v3068_v51 = vsel %vm3067_vm4, %v3061_v1, %v3066_v59  ;;  %2507 = vst.msk [vmem:[#allocation3 + $0x223] ss:$8 sm:$0x3] %vm6531_vm1, %v2500_v46  ;;  %v6943_v33 = vpop.permute.xlu1 %2515  ;;  %v3086_v25 = vrot.slane %v3083_v47, 1  ;;  %vm2607_vm4 = vcmask 113664  }
 0x2ad   : > { %3073 = vst [vmem:[#allocation3 + $0x2d5] ss:$8 sm:$0xf] %v3068_v51  ;;  %3074 = vst [vmem:[#allocation3 + $0x2d5] ss:$8 sm:$0xf0] %v3068_v51  ;;  %2403 = vrot.lane.b32.xlu0 %v6607_v35, %s6281_s19 }
 0x2ae   : > { %v8434_v14 = vrot.slane %v6943_v33, 1  ;;  %1782 = vrot.lane.b32.xlu1 %v1777_v31, %s8454_s15  ;;  %v3088_v6 = vsel %vm1411_vm2, %v3086_v25, %v3087_v53  ;;  %v1799_v35 = vld [vmem:[#allocation2 + $0x8] sm:$0x7]  ;;  %s8487_s19 = smov 6   ;;  %s8503_s15 = smov 88  }
 0x2af   : > { %v3090_v9 = vsel %vm3089_vm5, %v3083_v47, %v3088_v6  ;;  %v3105_v1 = vpop.permute.xlu0 %3104  ;;  %v1821_v31 = vld [vmem:[#allocation2 + $0x8] sm:$0x7]  ;;  %vm2629_vm5 = vcmask 105472  }
 0x2b0   : > { %v2522_v0 = vsel %vm2520_vm14, %v6943_v33, %v8434_v14  ;;  %v6959_v3 = vpop.permute.xlu1 %2537  ;;  %3095 = vst [vmem:[#allocation3 + $0x2d6] ss:$8 sm:$0xf] %v3090_v9  ;;  %3096 = vst [vmem:[#allocation3 + $0x2d6] ss:$8 sm:$0xf0] %v3090_v9 }
 0x2b1   : > { %2529 = vst.msk [vmem:[#allocation3 + $0x224] ss:$8 sm:$0x3] %vm6531_vm1, %v2522_v0  ;;  %v3108_v12 = vrot.slane %v3105_v1, 1  ;;  %v8432_v53 = vrot.slane %v6959_v3, 1  ;;  %1692 = vrot.lane.b32.xlu0 %v1688_v45, %s6282_s13 }
 0x2b2   : > { %1804 = vrot.lane.b32.xlu1 %v1799_v35, %s8452_s16  ;;  %v1843_v35 = vld [vmem:[#allocation2 + $0x8] sm:$0x7] }
 0x2b3   : > { %v3110_v59 = vsel %vm1411_vm2, %v3108_v12, %v3109_v41  ;;  %v2543_v46 = vsel %vm1787_vm15, %v6959_v3, %v8432_v53  ;;  %v2426_v47 = vpop.permute.xlu0 %2425  ;;  %v3233_v53 = vld [vmem:[#allocation3 + $0x290] sm:$0xff] }
 0x2b4   : > { %v3112_v51 = vsel %vm3111_vm6, %v3105_v1, %v3110_v59  ;;  %2550 = vst.msk [vmem:[#allocation3 + $0x225] ss:$8 sm:$0x3] %vm6531_vm1, %v2543_v46  ;;  %v6974_v25 = vpop.permute.xlu1 %2558  ;;  %v2429_v16 = vrot.slane %v2426_v47, 1  ;;  %v3232_v59 = vld [vmem:[#allocation3 + $0x288] sm:$0xff]  ;;  %v3234_v46 = vld [vmem:[#allocation3 + $0x298] sm:$0xff] }
 0x2b5   : > { %3117 = vst [vmem:[#allocation3 + $0x2d7] ss:$8 sm:$0xf] %v3112_v51  ;;  %3118 = vst [vmem:[#allocation3 + $0x2d7] ss:$8 sm:$0xf0] %v3112_v51  ;;  %1714 = vrot.lane.b32.xlu0 %v1688_v45, %s6283_s21 }
 0x2b6   : > { %v8431_v41 = vrot.slane %v6974_v25, 1  ;;  %1826 = vrot.lane.b32.xlu1 %v1821_v31, %s8475_s14  ;;  %v2431_v6 = vsel %vm1411_vm2, %v2429_v16, %v2430_v7  ;;  %v3231_v51 = vld [vmem:[#allocation3 + $0x280] sm:$0xff]  ;;  %vm2651_vm6 = vcmask 97280  }
 0x2b7   : > { %v2433_v9 = vsel %vm2432_vm7, %v2426_v47, %v2431_v6  ;;  %v2448_v1 = vpop.permute.xlu0 %2447  ;;  %vm2673_vm7 = vcmask 89088  }
 0x2b8   : > { %v2565_v0 = vsel %vm2563_vm0, %v6974_v25, %v8431_v41  ;;  %v6989_v12 = vpop.permute.xlu1 %2580  ;;  %2438 = vst [vmem:[#allocation3 + $0x1e0] ss:$8 sm:$0xf] %v2433_v9  ;;  %2439 = vst [vmem:[#allocation3 + $0x1e0] ss:$8 sm:$0xf0] %v2433_v9 }
 0x2b9   : > { %2572 = vst.msk [vmem:[#allocation3 + $0x226] ss:$8 sm:$0x3] %vm6531_vm1, %v2565_v0  ;;  %v2451_v62 = vrot.slane %v2448_v1, 1  ;;  %v8433_v7 = vrot.slane %v6989_v12, 1 }
 0x2ba   : > { %1848 = vrot.lane.b32.xlu1 %v1843_v35, %s8476_s18 }
 0x2bb   : > { %v2453_v45 = vsel %vm1411_vm2, %v2451_v62, %v2452_v21  ;;  %v2587_v47 = vsel %vm2585_vm3, %v6989_v12, %v8433_v7  ;;  %v2470_v31 = vpop.permute.xlu0 %2469 }
 0x2bc   : > { %v2455_v16 = vsel %vm2454_vm8, %v2448_v1, %v2453_v45  ;;  %v3242_v6 = vld [vmem:[#allocation3 + $0x2d8] sm:$0xff]  ;;  %v3244_v0 = vld [vmem:[#allocation3 + $0x2e8] sm:$0xff]  ;;  %v3241_v9 = vld [vmem:[#allocation3 + $0x2d0] sm:$0xff]  ;;  %2594 = vst.msk [vmem:[#allocation3 + $0x227] ss:$8 sm:$0x3] %vm6531_vm1, %v2587_v47  ;;  %v7003_v23 = vpop.permute.xlu1 %2602 }
 0x2bd   : > { %2460 = vst [vmem:[#allocation3 + $0x1e1] ss:$8 sm:$0xf] %v2455_v16  ;;  %2461 = vst [vmem:[#allocation3 + $0x1e1] ss:$8 sm:$0xf0] %v2455_v16  ;;  %v3302_v62 = vpack.c.bf16 %v3242_v6, %v3232_v59  ;;  %v3304_v35 = vpack.c.bf16 %v3244_v0, %v3234_v46  ;;  %v3301_v41 = vpack.c.bf16 %v3241_v9, %v3231_v51 }
 0x2be   : > { %v2473_v21 = vrot.slane %v2470_v31, 1  ;;  %v3243_v7 = vld [vmem:[#allocation3 + $0x2e0] sm:$0xff]  ;;  %v2605_v14 = vrot.slane %v7003_v23, 1  ;;  %v1865_v1 = vld [vmem:[#allocation2 + $0x8] sm:$0x7]  ;;  %vm2695_vm8 = vcmask 80896  }
 0x2bf   : > { %v3303_v45 = vpack.c.bf16 %v3243_v7, %v3233_v53  ;;  %1870 = vrot.lane.b32.xlu1 %v1865_v1, %s8477_s23  ;;  %3440 = vmatprep.subr.bf16.mxu1 %v3302_v62  ;;  %v2492_v51 = vpop.permute.xlu0 %2491  ;;  %v1887_v7 = vld [vmem:[#allocation2 + $0x8] sm:$0x7] }
 0x2c0   : > { %v2475_v47 = vsel %vm1411_vm2, %v2473_v21, %v2474_v43  ;;  %v2609_v59 = vsel %vm2607_vm4, %v7003_v23, %v2605_v14  ;;  %3513 = vmatprep.subr.bf16.mxu0 %v3304_v35  ;;  %3441 = vmatpush1.bf16.msra.mxu1 %v3301_v41  ;;  %v7017_v53 = vpop.permute.xlu1 %2624  ;;  %v2495_v11 = vrot.slane %v2492_v51, 1  ;;  %v8480_v21 = vrot.slane %v6943_v33, 1 }
 0x2c1   : > { %v2477_v46 = vsel %vm2476_vm10, %v2470_v31, %v2475_v47  ;;  %2616 = vst.msk [vmem:[#allocation3 + $0x270] ss:$8 sm:$0x3] %vm6531_vm1, %v2609_v59  ;;  %3514 = vmatpush1.bf16.msra.mxu0 %v3303_v45  ;;  %v2627_v43 = vrot.slane %v7017_v53, 1  ;;  %vm2717_vm10 = vcmask 72704  }
 0x2c2   : > { %2482 = vst [vmem:[#allocation3 + $0x1e2] ss:$8 sm:$0xf] %v2477_v46  ;;  %2483 = vst [vmem:[#allocation3 + $0x1e2] ss:$8 sm:$0xf0] %v2477_v46  ;;  %v2497_v41 = vsel %vm1411_vm2, %v2495_v11, %v2496_v58 }
 0x2c3   : > { %1892 = vrot.lane.b32.xlu1 %v1887_v7, %s8478_s26  ;;  %v2631_v16 = vsel %vm2629_vm5, %v7017_v53, %v2627_v43  ;;  %v2499_v31 = vsel %vm2498_vm12, %v2492_v51, %v2497_v41  ;;  %v2514_v6 = vpop.permute.xlu0 %2513  ;;  %v1909_v58 = vld [vmem:[#allocation2 + $0x8] sm:$0x7]  ;;  %v8482_v51 = vrot.slane %v6959_v3, 1  ;;  %vm8462_vm12 = vcmask 64512   ;;  %s8488_s26 = smov 5  }
 0x2c4   : > { %2638 = vst.msk [vmem:[#allocation3 + $0x271] ss:$8 sm:$0x3] %vm6531_vm1, %v2631_v16  ;;  %v7031_v0 = vpop.permute.xlu1 %2646  ;;  %2504 = vst [vmem:[#allocation3 + $0x1e3] ss:$8 sm:$0xf] %v2499_v31 }
 0x2c5   : > { %2505 = vst [vmem:[#allocation3 + $0x1e3] ss:$8 sm:$0xf0] %v2499_v31  ;;  %v2517_v9 = vrot.slane %v2514_v6, 1  ;;  %v2649_v29 = vrot.slane %v7031_v0, 1  ;;  %v2092_v53 = vrot.slane %v6508_v50, 1 }
 0x2c6   : > { %v1931_v46 = vld [vmem:[#allocation2 + $0x8] sm:$0x7] }
 0x2c7   : > { %1914 = vrot.lane.b32.xlu1 %v1909_v58, %s8479_s29  ;;  %v2519_v62 = vsel %vm1411_vm2, %v2517_v9, %v8480_v21  ;;  %v2653_v35 = vsel %vm2651_vm6, %v7031_v0, %v2649_v29  ;;  %v2536_v45 = vpop.permute.xlu0 %2535  ;;  %v1953_v9 = vld [vmem:[#allocation2 + $0x8] sm:$0x7]  ;;  %v8484_v58 = vrot.slane %v6974_v25, 1  ;;  %v2114_v0 = vrot.slane %v6513_v52, 1  ;;  %s8489_s29 = smov 4  }
 0x2c8   : > { %v2521_v1 = vsel %vm2520_vm14, %v2514_v6, %v2519_v62  ;;  %2660 = vst.msk [vmem:[#allocation3 + $0x272] ss:$8 sm:$0x3] %vm6531_vm1, %v2653_v35  ;;  %v7045_v47 = vpop.permute.xlu1 %2668  ;;  %v2539_v59 = vrot.slane %v2536_v45, 1  ;;  %vm2760_vm14 = vcmask 850944  }
 0x2c9   : > { %2526 = vst [vmem:[#allocation3 + $0x1e4] ss:$8 sm:$0xf] %v2521_v1  ;;  %2527 = vst [vmem:[#allocation3 + $0x1e4] ss:$8 sm:$0xf0] %v2521_v1 }
 0x2ca   : > { %v2671_v33 = vrot.slane %v7045_v47, 1  ;;  %v2541_v11 = vsel %vm1411_vm2, %v2539_v59, %v8482_v51  ;;  %v8485_v51 = vrot.slane %v6989_v12, 1 }
 0x2cb   : > { %1936 = vrot.lane.b32.xlu1 %v1931_v46, %s8481_s25  ;;  %v2542_v41 = vsel %vm1787_vm15, %v2536_v45, %v2541_v11  ;;  %v2557_v16 = vpop.permute.xlu0 %2556  ;;  %v1975_v46 = vld [vmem:[#allocation2 + $0x8] sm:$0x7]  ;;  %s8490_s25 = smov 127  }
 0x2cc   : > { %v2675_v7 = vsel %vm2673_vm7, %v7045_v47, %v2671_v33  ;;  %v7059_v31 = vpop.permute.xlu1 %2690  ;;  %2547 = vst [vmem:[#allocation3 + $0x1e5] ss:$8 sm:$0xf] %v2542_v41  ;;  %2548 = vst [vmem:[#allocation3 + $0x1e5] ss:$8 sm:$0xf0] %v2542_v41 }
 0x2cd   : > { %2682 = vst.msk [vmem:[#allocation3 + $0x273] ss:$8 sm:$0x3] %vm6531_vm1, %v2675_v7  ;;  %v2560_v6 = vrot.slane %v2557_v16, 1  ;;  %v2693_v3 = vrot.slane %v7059_v31, 1 }
 0x2cf   : > { %1958 = vrot.lane.b32.xlu1 %v1953_v9, %s8483_s17  ;;  %v2562_v21 = vsel %vm1411_vm2, %v2560_v6, %v8484_v58  ;;  %v2697_v62 = vsel %vm2695_vm8, %v7059_v31, %v2693_v3  ;;  %v2579_v1 = vpop.permute.xlu0 %2578  ;;  %v1997_v58 = vld [vmem:[#allocation2 + $0x8] sm:$0x7]  ;;  %s8491_s17 = smov 126  }
 0x2d0   : > { %v2564_v35 = vsel %vm2563_vm0, %v2557_v16, %v2562_v21  ;;  %2704 = vst.msk [vmem:[#allocation3 + $0x274] ss:$8 sm:$0x3] %vm6531_vm1, %v2697_v62  ;;  %v7073_v45 = vpop.permute.xlu1 %2712  ;;  %v2582_v59 = vrot.slane %v2579_v1, 1  ;;  %vm2095_vm0 = vcmask 23552  }
 0x2d1   : > { %2569 = vst [vmem:[#allocation3 + $0x1e6] ss:$8 sm:$0xf] %v2564_v35  ;;  %2570 = vst [vmem:[#allocation3 + $0x1e6] ss:$8 sm:$0xf0] %v2564_v35 }
 0x2d2   : > { %v2715_v25 = vrot.slane %v7073_v45, 1  ;;  %v2584_v11 = vsel %vm1411_vm2, %v2582_v59, %v8485_v51 }
 0x2d3   : > { %1980 = vrot.lane.b32.xlu1 %v1975_v46, %s8445_s24  ;;  %v2586_v41 = vsel %vm2585_vm3, %v2579_v1, %v2584_v11  ;;  %v2601_v16 = vpop.permute.xlu0 %2600  ;;  %vm2117_vm3 = vcmask 15360   ;;  %s8501_s24 = smov 84  }
 0x2d4   : > { %v2719_v7 = vsel %vm2717_vm10, %v7073_v45, %v2715_v25  ;;  %v7087_v6 = vpop.permute.xlu1 %2734  ;;  %2591 = vst [vmem:[#allocation3 + $0x1e7] ss:$8 sm:$0xf] %v2586_v41  ;;  %2592 = vst [vmem:[#allocation3 + $0x1e7] ss:$8 sm:$0xf0] %v2586_v41 }
 0x2d5   : > { %2726 = vst.msk [vmem:[#allocation3 + $0x275] ss:$8 sm:$0x3] %vm6531_vm1, %v2719_v7  ;;  %v2604_v9 = vrot.slane %v2601_v16, 1  ;;  %v2737_v12 = vrot.slane %v7087_v6, 1 }
 0x2d7   : > { %2002 = vrot.lane.b32.xlu1 %v1997_v58, %s8486_s22  ;;  %v2606_v21 = vsel %vm1411_vm2, %v2604_v9, %v2605_v14  ;;  %v2740_v62 = vsel %vm8462_vm12, %v7087_v6, %v2737_v12  ;;  %v2623_v1 = vpop.permute.xlu0 %2622  ;;  %v2019_v14 = vld [vmem:[#allocation2 + $0x8] sm:$0x7] }
 0x2d8   : > { %v2608_v35 = vsel %vm2607_vm4, %v2601_v16, %v2606_v21  ;;  %2747 = vst.msk [vmem:[#allocation3 + $0x276] ss:$8 sm:$0x3] %vm6531_vm1, %v2740_v62  ;;  %v7101_v59 = vpop.permute.xlu1 %2755  ;;  %v2626_v46 = vrot.slane %v2623_v1, 1  ;;  %vm2139_vm4 = vcmask 7168  }
 0x2d9   : > { %2613 = vst [vmem:[#allocation3 + $0x230] ss:$8 sm:$0xf] %v2608_v35  ;;  %2614 = vst [vmem:[#allocation3 + $0x230] ss:$8 sm:$0xf0] %v2608_v35 }
 0x2da   : > { %v2758_v23 = vrot.slane %v7101_v59, 1  ;;  %v2628_v51 = vsel %vm1411_vm2, %v2626_v46, %v2627_v43  ;;  %v2041_v43 = vld [vmem:[#allocation2 + $0x8] sm:$0x7] }
 0x2db   : > { %2024 = vrot.lane.b32.xlu1 %v2019_v14, %s8487_s19  ;;  %v2630_v7 = vsel %vm2629_vm5, %v2623_v1, %v2628_v51  ;;  %v2645_v41 = vpop.permute.xlu0 %2644  ;;  %vm8450_vm5 = vcmask 777216  }
 0x2dc   : > { %v2762_v11 = vsel %vm2760_vm14, %v7101_v59, %v2758_v23  ;;  %v2091_v16 = vpop.permute.xlu1 %2090  ;;  %2635 = vst [vmem:[#allocation3 + $0x231] ss:$8 sm:$0xf] %v2630_v7  ;;  %2636 = vst [vmem:[#allocation3 + $0x231] ss:$8 sm:$0xf0] %v2630_v7 }
 0x2dd   : > { %2769 = vst.msk [vmem:[#allocation3 + $0x277] ss:$8 sm:$0x3] %vm6531_vm1, %v2762_v11  ;;  %v2648_v9 = vrot.slane %v2645_v41, 1  ;;  %v2093_v58 = vrot.slane %v2091_v16, 1 }
 0x2de   : > { %v2063_v7 = vld [vmem:[#allocation2 + $0x8] sm:$0x7] }
 0x2df   : > { %2046 = vrot.lane.b32.xlu1 %v2041_v43, %s8488_s26  ;;  %v2650_v21 = vsel %vm1411_vm2, %v2648_v9, %v2649_v29  ;;  %v2094_v62 = vsel %vm1411_vm2, %v2092_v53, %v2093_v58  ;;  %v2097_v35 = vsel %vm2095_vm0, %v2091_v16, %v2093_v58  ;;  %v2667_v46 = vpop.permute.xlu0 %2666 }
 0x2e0   : > { %v2652_v1 = vsel %vm2651_vm6, %v2645_v41, %v2650_v21  ;;  %v2096_v14 = vsel %vm2095_vm0, %v6508_v50, %v2094_v62  ;;  %2104 = vst.msk [vmem:[#allocation3 + $0x180] ss:$8 sm:$0x3] %vm6531_vm1, %v2097_v35  ;;  %v2113_v51 = vpop.permute.xlu1 %2112  ;;  %v2670_v11 = vrot.slane %v2667_v46, 1  ;;  %v1402_v62 = vld [vmem:[#allocation2 + $0x8] sm:$0x7] }
 0x2e1   : > { %2657 = vst [vmem:[#allocation3 + $0x232] ss:$8 sm:$0xf] %v2652_v1  ;;  %2658 = vst [vmem:[#allocation3 + $0x232] ss:$8 sm:$0xf0] %v2652_v1 }
 0x2e2   : > { %2101 = vst [vmem:[#allocation3 + $0x140] ss:$8 sm:$0xf] %v2096_v14  ;;  %2102 = vst [vmem:[#allocation3 + $0x140] ss:$8 sm:$0xf0] %v2096_v14  ;;  %v2672_v50 = vsel %vm1411_vm2, %v2670_v11, %v2671_v33 }
 0x2e3   : > { %v2115_v29 = vrot.slane %v2113_v51, 1  ;;  %2068 = vrot.lane.b32.xlu1 %v2063_v7, %s8489_s29  ;;  %v2674_v9 = vsel %vm2673_vm7, %v2667_v46, %v2672_v50  ;;  %v2689_v53 = vpop.permute.xlu0 %2688  ;;  %v2136_v33 = vrot.slane %v6518_v54, 1  ;;  %vm8449_vm6 = vcmask 769024  }
 0x2e4   : > { %v2135_v43 = vpop.permute.xlu1 %2134  ;;  %2679 = vst [vmem:[#allocation3 + $0x233] ss:$8 sm:$0xf] %v2674_v9  ;;  %2680 = vst [vmem:[#allocation3 + $0x233] ss:$8 sm:$0xf0] %v2674_v9 }
 0x2e5   : > { %v2116_v41 = vsel %vm1411_vm2, %v2114_v0, %v2115_v29  ;;  %v2119_v16 = vsel %vm2117_vm3, %v2113_v51, %v2115_v29  ;;  %v2692_v47 = vrot.slane %v2689_v53, 1  ;;  %v2137_v21 = vrot.slane %v2135_v43, 1 }
 0x2e6   : > { %v2118_v58 = vsel %vm2117_vm3, %v6513_v52, %v2116_v41  ;;  %2126 = vst.msk [vmem:[#allocation3 + $0x181] ss:$8 sm:$0x3] %vm6531_vm1, %v2119_v16  ;;  %vm8448_vm7 = vcmask 760832   ;;  %vm2323_vm0 = vcmask 728064   ;;  %vm1589_vm3 = vcmask 719872  }
 0x2e7   : > { %2123 = vst [vmem:[#allocation3 + $0x141] ss:$8 sm:$0xf] %v2118_v58  ;;  %2124 = vst [vmem:[#allocation3 + $0x141] ss:$8 sm:$0xf0] %v2118_v58  ;;  %1407 = vrot.lane.b32.xlu1 %v1402_v62, %s8490_s25  ;;  %v2694_v52 = vsel %vm1411_vm2, %v2692_v47, %v2693_v3  ;;  %v2138_v35 = vsel %vm1411_vm2, %v2136_v33, %v2137_v21  ;;  %v2141_v1 = vsel %vm2139_vm4, %v2135_v43, %v2137_v21  ;;  %v2711_v14 = vpop.permute.xlu0 %2710 }
 0x2e8   : > { %v2696_v46 = vsel %vm2695_vm8, %v2689_v53, %v2694_v52  ;;  %v2140_v51 = vsel %vm2139_vm4, %v6518_v54, %v2138_v35  ;;  %2148 = vst.msk [vmem:[#allocation3 + $0x182] ss:$8 sm:$0x3] %vm6531_vm1, %v2141_v1  ;;  %v2165_v11 = vpop.permute.xlu1 %2164  ;;  %v2714_v0 = vrot.slane %v2711_v14, 1  ;;  %v1425_v3 = vld [vmem:[#allocation2 + $0x8] sm:$0x7] }
 0x2e9   : > { %2701 = vst [vmem:[#allocation3 + $0x234] ss:$8 sm:$0xf] %v2696_v46  ;;  %2702 = vst [vmem:[#allocation3 + $0x234] ss:$8 sm:$0xf0] %v2696_v46 }
 0x2ea   : > { %2145 = vst [vmem:[#allocation3 + $0x142] ss:$8 sm:$0xf] %v2140_v51  ;;  %2146 = vst [vmem:[#allocation3 + $0x142] ss:$8 sm:$0xf0] %v2140_v51  ;;  %v2716_v29 = vsel %vm1411_vm2, %v2714_v0, %v2715_v25 }
 0x2eb   : > { %v2167_v31 = vrot.slane %v2165_v11, 1  ;;  %1430 = vrot.lane.b32.xlu1 %v1425_v3, %s8491_s17  ;;  %v2718_v54 = vsel %vm2717_vm10, %v2711_v14, %v2716_v29  ;;  %v2733_v50 = vpop.permute.xlu0 %2732  ;;  %v1447_v53 = vld [vmem:[#allocation2 + $0x8] sm:$0x7]  ;;  %vm8447_vm8 = vcmask 752640   ;;  %vm2279_vm10 = vcmask 744448  }
 0x2ec   : > { %v2187_v41 = vpop.permute.xlu1 %2186  ;;  %2723 = vst [vmem:[#allocation3 + $0x235] ss:$8 sm:$0xf] %v2718_v54  ;;  %2724 = vst [vmem:[#allocation3 + $0x235] ss:$8 sm:$0xf0] %v2718_v54 }
 0x2ed   : > { %v2171_v7 = vsel %vm8451_vm11, %v2165_v11, %v2167_v31  ;;  %v2736_v16 = vrot.slane %v2733_v50, 1  ;;  %v2189_v9 = vrot.slane %v2187_v41, 1  ;;  %v1469_v62 = vld [vmem:[#allocation2 + $0x8] sm:$0x7]  ;;  %vm2388_vm4 = vcmask 449536  }
 0x2ee   : > { %2178 = vst.msk [vmem:[#allocation3 + $0x184] ss:$8 sm:$0x3] %vm6531_vm1, %v2171_v7  ;;  %v1491_v51 = vld [vmem:[#allocation2 + $0x8] sm:$0x7] }
 0x2ef   : > { %1452 = vrot.lane.b32.xlu1 %v1447_v53, %s8492_s28  ;;  %v2738_v45 = vsel %vm1411_vm2, %v2736_v16, %v2737_v12  ;;  %v2193_v25 = vsel %vm8450_vm5, %v2187_v41, %v2189_v9  ;;  %v2754_v43 = vpop.permute.xlu0 %2753  ;;  %v1513_v7 = vld [vmem:[#allocation2 + $0x8] sm:$0x7]  ;;  %v3211_v41 = vld [vmem:[#allocation3 + $0x1e0] sm:$0xff] }
 0x2f0   : > { %v2739_v58 = vsel %vm8462_vm12, %v2733_v50, %v2738_v45  ;;  %2200 = vst.msk [vmem:[#allocation3 + $0x185] ss:$8 sm:$0x3] %vm6531_vm1, %v2193_v25  ;;  %v2209_v47 = vpop.permute.xlu1 %2208  ;;  %v2757_v33 = vrot.slane %v2754_v43, 1  ;;  %v3214_v50 = vld [vmem:[#allocation3 + $0x1f8] sm:$0xff] }
 0x2f1   : > { %2744 = vst [vmem:[#allocation3 + $0x236] ss:$8 sm:$0xf] %v2739_v58  ;;  %2745 = vst [vmem:[#allocation3 + $0x236] ss:$8 sm:$0xf0] %v2739_v58 }
 0x2f2   : > { %v2211_v21 = vrot.slane %v2209_v47, 1  ;;  %v2759_v6 = vsel %vm1411_vm2, %v2757_v33, %v2758_v23 }
 0x2f3   : > { %1474 = vrot.lane.b32.xlu1 %v1469_v62, %s8493_s7  ;;  %v2761_v52 = vsel %vm2760_vm14, %v2754_v43, %v2759_v6  ;;  %v2163_v35 = vpop.permute.xlu0 %2162  ;;  %vm2301_vm14 = vcmask 736256  }
 0x2f4   : > { %v2215_v12 = vsel %vm8449_vm6, %v2209_v47, %v2211_v21  ;;  %v7173_v1 = vpop.permute.xlu1 %2230  ;;  %2766 = vst [vmem:[#allocation3 + $0x237] ss:$8 sm:$0xf] %v2761_v52  ;;  %2767 = vst [vmem:[#allocation3 + $0x237] ss:$8 sm:$0xf0] %v2761_v52 }
 0x2f5   : > { %2222 = vst.msk [vmem:[#allocation3 + $0x186] ss:$8 sm:$0x3] %vm6531_vm1, %v2215_v12  ;;  %v2166_v46 = vrot.slane %v2163_v35, 1  ;;  %v2233_v14 = vrot.slane %v7173_v1, 1  ;;  %v3213_v52 = vld [vmem:[#allocation3 + $0x1f0] sm:$0xff] }
 0x2f7   : > { %1496 = vrot.lane.b32.xlu1 %v1491_v51, %s8494_s10  ;;  %v2168_v59 = vsel %vm1411_vm2, %v2166_v46, %v2167_v31  ;;  %v2237_v23 = vsel %vm8448_vm7, %v7173_v1, %v2233_v14  ;;  %v2185_v3 = vpop.permute.xlu0 %2184  ;;  %s8495_s10 = smov 122   ;;  %v3212_v31 = vld [vmem:[#allocation3 + $0x1e8] sm:$0xff]  ;;  %v1535_v46 = vld [vmem:[#allocation2 + $0x8] sm:$0x7] }
 0x2f8   : > { %v2170_v11 = vsel %vm8451_vm11, %v2163_v35, %v2168_v59  ;;  %2244 = vst.msk [vmem:[#allocation3 + $0x187] ss:$8 sm:$0x3] %vm6531_vm1, %v2237_v23  ;;  %v7183_v0 = vpop.permute.xlu1 %2252  ;;  %v2188_v54 = vrot.slane %v2185_v3, 1  ;;  %vm1413_vm11 = vcmask 1039360  }
 0x2f9   : > { %2175 = vst [vmem:[#allocation3 + $0x144] ss:$8 sm:$0xf] %v2170_v11  ;;  %2176 = vst [vmem:[#allocation3 + $0x144] ss:$8 sm:$0xf0] %v2170_v11 }
 0x2fa   : > { %v2255_v29 = vrot.slane %v7183_v0, 1  ;;  %v2190_v53 = vsel %vm1411_vm2, %v2188_v54, %v2189_v9  ;;  %v1557_v54 = vld [vmem:[#allocation2 + $0x8] sm:$0x7] }
 0x2fb   : > { %1518 = vrot.lane.b32.xlu1 %v1513_v7, %s8495_s10  ;;  %v3222_v45 = vld [vmem:[#allocation3 + $0x238] sm:$0xff]  ;;  %v3224_v25 = vld [vmem:[#allocation3 + $0x248] sm:$0xff]  ;;  %v3221_v58 = vld [vmem:[#allocation3 + $0x230] sm:$0xff]  ;;  %v2192_v47 = vsel %vm8450_vm5, %v2185_v3, %v2190_v53  ;;  %v2207_v33 = vpop.permute.xlu0 %2206  ;;  %s8496_s10 = smov 121   ;;  %vm8458_vm5 = vcmask 31744  }
 0x2fc   : > { %v2259_v16 = vsel %vm8447_vm8, %v7183_v0, %v2255_v29  ;;  %v2275_v43 = vpop.permute.xlu1 %2274  ;;  %v3292_v62 = vpack.c.bf16 %v3222_v45, %v3212_v31  ;;  %v3294_v6 = vpack.c.bf16 %v3224_v25, %v3214_v50  ;;  %v3291_v12 = vpack.c.bf16 %v3221_v58, %v3211_v41  ;;  %v3223_v35 = vld [vmem:[#allocation3 + $0x240] sm:$0xff]  ;;  %2197 = vst [vmem:[#allocation3 + $0x145] ss:$8 sm:$0xf] %v2192_v47  ;;  %v1579_v25 = vld [vmem:[#allocation2 + $0x8] sm:$0x7] }
 0x2fd   : > { %2266 = vst.msk [vmem:[#allocation3 + $0x1d0] ss:$8 sm:$0x3] %vm6531_vm1, %v2259_v16  ;;  %v2277_v1 = vrot.slane %v2275_v43, 1  ;;  %v2210_v9 = vrot.slane %v2207_v33, 1  ;;  %v3293_v51 = vpack.c.bf16 %v3223_v35, %v3213_v52 }
 0x2fe   : > { %2198 = vst [vmem:[#allocation3 + $0x145] ss:$8 sm:$0xf0] %v2192_v47  ;;  %3442 = vmatprep.subr.bf16.mxu1 %v3292_v62  ;;  %3515 = vmatprep.subr.bf16.mxu0 %v3294_v6 }
 0x2ff   : > { %1540 = vrot.lane.b32.xlu1 %v1535_v46, %s8496_s10  ;;  %v2281_v59 = vsel %vm2279_vm10, %v2275_v43, %v2277_v1  ;;  %v2212_v23 = vsel %vm1411_vm2, %v2210_v9, %v2211_v21  ;;  %3443 = vmatpush1.bf16.msra.mxu1 %v3291_v12  ;;  %v2229_v3 = vpop.permute.xlu0 %2228  ;;  %s8497_s10 = smov 120   ;;  %v1601_v12 = vld [vmem:[#allocation2 + $0x8] sm:$0x7] }
 0x300   : > { %2288 = vst.msk [vmem:[#allocation3 + $0x1d1] ss:$8 sm:$0x3] %vm6531_vm1, %v2281_v59  ;;  %v2297_v11 = vpop.permute.xlu1 %2296  ;;  %v2214_v0 = vsel %vm8449_vm6, %v2207_v33, %v2212_v23  ;;  %3516 = vmatpush1.bf16.msra.mxu0 %v3293_v51  ;;  %v2232_v31 = vrot.slane %v2229_v3, 1  ;;  %v1623_v23 = vld [vmem:[#allocation2 + $0x8] sm:$0x7] }
 0x301   : > { %v2299_v7 = vrot.slane %v2297_v11, 1  ;;  %2219 = vst [vmem:[#allocation3 + $0x146] ss:$8 sm:$0xf] %v2214_v0  ;;  %vm1941_vm6 = vcmask 334848  }
 0x302   : > { %2220 = vst [vmem:[#allocation3 + $0x146] ss:$8 sm:$0xf0] %v2214_v0  ;;  %v2234_v50 = vsel %vm1411_vm2, %v2232_v31, %v2233_v14 }
 0x303   : > { %1562 = vrot.lane.b32.xlu1 %v1557_v54, %s8497_s10  ;;  %v2303_v21 = vsel %vm2301_vm14, %v2297_v11, %v2299_v7  ;;  %v2236_v16 = vsel %vm8448_vm7, %v2229_v3, %v2234_v50  ;;  %v2251_v53 = vpop.permute.xlu0 %2250  ;;  %s8498_s10 = smov 87   ;;  %v1645_v50 = vld [vmem:[#allocation2 + $0x8] sm:$0x7]  ;;  %vm1919_vm7 = vcmask 343040  }
 0x304   : > { %2310 = vst.msk [vmem:[#allocation3 + $0x1d2] ss:$8 sm:$0x3] %vm6531_vm1, %v2303_v21  ;;  %v2319_v41 = vpop.permute.xlu1 %2318  ;;  %2241 = vst [vmem:[#allocation3 + $0x147] ss:$8 sm:$0xf] %v2236_v16 }
 0x305   : > { %v2321_v45 = vrot.slane %v2319_v41, 1  ;;  %2242 = vst [vmem:[#allocation3 + $0x147] ss:$8 sm:$0xf0] %v2236_v16  ;;  %v2254_v58 = vrot.slane %v2251_v53, 1 }
 0x307   : > { %1584 = vrot.lane.b32.xlu1 %v1579_v25, %s8456_s27  ;;  %v2325_v43 = vsel %vm2323_vm0, %v2319_v41, %v2321_v45  ;;  %v2256_v47 = vsel %vm1411_vm2, %v2254_v58, %v2255_v29  ;;  %v2273_v62 = vpop.permute.xlu0 %2272 }
 0x308   : > { %2332 = vst.msk [vmem:[#allocation3 + $0x1d3] ss:$8 sm:$0x3] %vm6531_vm1, %v2325_v43  ;;  %v2341_v14 = vpop.permute.xlu1 %2340  ;;  %v2258_v33 = vsel %vm8447_vm8, %v2251_v53, %v2256_v47  ;;  %v2276_v52 = vrot.slane %v2273_v62, 1  ;;  %v1667_v47 = vld [vmem:[#allocation2 + $0x8] sm:$0x7] }
 0x309   : > { %v2343_v6 = vrot.slane %v2341_v14, 1  ;;  %2263 = vst [vmem:[#allocation3 + $0x190] ss:$8 sm:$0xf] %v2258_v33  ;;  %vm1897_vm8 = vcmask 351232  }
 0x30a   : > { %2264 = vst [vmem:[#allocation3 + $0x190] ss:$8 sm:$0xf0] %v2258_v33  ;;  %v2278_v46 = vsel %vm1411_vm2, %v2276_v52, %v2277_v1 }
 0x30b   : > { %1606 = vrot.lane.b32.xlu1 %v1601_v12, %s8498_s10  ;;  %v2346_v35 = vsel %vm1589_vm3, %v2341_v14, %v2343_v6  ;;  %v2280_v9 = vsel %vm2279_vm10, %v2273_v62, %v2278_v46  ;;  %v2295_v51 = vpop.permute.xlu0 %2294  ;;  %vm2410_vm10 = vcmask 441344  }
 0x30c   : > { %2353 = vst.msk [vmem:[#allocation3 + $0x1d4] ss:$8 sm:$0x3] %vm6531_vm1, %v2346_v35  ;;  %v2362_v29 = vpop.permute.xlu1 %2361  ;;  %2285 = vst [vmem:[#allocation3 + $0x191] ss:$8 sm:$0xf] %v2280_v9 }
 0x30d   : > { %v2364_v59 = vrot.slane %v2362_v29, 1  ;;  %2286 = vst [vmem:[#allocation3 + $0x191] ss:$8 sm:$0xf0] %v2280_v9  ;;  %v2298_v11 = vrot.slane %v2295_v51, 1  ;;  %v1740_v35 = vrot.slane %v6523_v56, 1 }
 0x30f   : > { %1628 = vrot.lane.b32.xlu1 %v1623_v23, %s8499_s30  ;;  %v2368_v0 = vsel %vm2366_vm9, %v2362_v29, %v2364_v59  ;;  %v2300_v3 = vsel %vm1411_vm2, %v2298_v11, %v2299_v7  ;;  %v2317_v31 = vpop.permute.xlu0 %2316  ;;  %v1689_v29 = vld [vmem:[#allocation2 + $0x8] sm:$0x7] }
 0x310   : > { %2375 = vst.msk [vmem:[#allocation3 + $0x1d5] ss:$8 sm:$0x3] %vm6531_vm1, %v2368_v0  ;;  %v2384_v1 = vpop.permute.xlu1 %2383  ;;  %v2302_v54 = vsel %vm2301_vm14, %v2295_v51, %v2300_v3  ;;  %v2320_v41 = vrot.slane %v2317_v31, 1  ;;  %vm1743_vm14 = vcmask 662528  }
 0x311   : > { %v2386_v21 = vrot.slane %v2384_v1, 1  ;;  %2307 = vst [vmem:[#allocation3 + $0x192] ss:$8 sm:$0xf] %v2302_v54 }
 0x312   : > { %2308 = vst [vmem:[#allocation3 + $0x192] ss:$8 sm:$0xf0] %v2302_v54  ;;  %v2322_v53 = vsel %vm1411_vm2, %v2320_v41, %v2321_v45  ;;  %v1762_v54 = vrot.slane %v6528_v60, 1 }
 0x313   : > { %1650 = vrot.lane.b32.xlu1 %v1645_v50, %s8500_s20  ;;  %v2390_v16 = vsel %vm2388_vm4, %v2384_v1, %v2386_v21  ;;  %v2324_v25 = vsel %vm2323_vm0, %v2317_v31, %v2322_v53  ;;  %v2339_v58 = vpop.permute.xlu0 %2338  ;;  %vm1765_vm0 = vcmask 654336   ;;  %v1711_v50 = vld [vmem:[#allocation2 + $0x8] sm:$0x7] }
 0x314   : > { %2397 = vst.msk [vmem:[#allocation3 + $0x1d6] ss:$8 sm:$0x3] %vm6531_vm1, %v2390_v16  ;;  %v2406_v7 = vpop.permute.xlu1 %2405  ;;  %2329 = vst [vmem:[#allocation3 + $0x193] ss:$8 sm:$0xf] %v2324_v25 }
 0x315   : > { %v2408_v43 = vrot.slane %v2406_v7, 1  ;;  %2330 = vst [vmem:[#allocation3 + $0x193] ss:$8 sm:$0xf0] %v2324_v25  ;;  %v2342_v14 = vrot.slane %v2339_v58, 1 }
 0x317   : > { %1672 = vrot.lane.b32.xlu1 %v1667_v47, %s8501_s24  ;;  %v2412_v33 = vsel %vm2410_vm10, %v2406_v7, %v2408_v43  ;;  %v2344_v62 = vsel %vm1411_vm2, %v2342_v14, %v2343_v6  ;;  %v2360_v52 = vpop.permute.xlu0 %2359  ;;  %v1784_v47 = vrot.slane %v6537_v2, 1 }
 0x318   : > { %2419 = vst.msk [vmem:[#allocation3 + $0x1d7] ss:$8 sm:$0x3] %vm6531_vm1, %v2412_v33  ;;  %v1739_v45 = vpop.permute.xlu1 %1738  ;;  %v2345_v12 = vsel %vm1589_vm3, %v2339_v58, %v2344_v62  ;;  %v2363_v9 = vrot.slane %v2360_v52, 1 }
 0x319   : > { %v1741_v46 = vrot.slane %v1739_v45, 1  ;;  %2350 = vst [vmem:[#allocation3 + $0x194] ss:$8 sm:$0xf] %v2345_v12 }
 0x31a   : > { %2351 = vst [vmem:[#allocation3 + $0x194] ss:$8 sm:$0xf0] %v2345_v12  ;;  %v2365_v23 = vsel %vm1411_vm2, %v2363_v9, %v2364_v59 }
 0x31b   : > { %1694 = vrot.lane.b32.xlu1 %v1689_v29, %s6282_s13  ;;  %v1742_v51 = vsel %vm1411_vm2, %v1740_v35, %v1741_v46  ;;  %v1745_v6 = vsel %vm1743_vm14, %v1739_v45, %v1741_v46  ;;  %v2367_v3 = vsel %vm2366_vm9, %v2360_v52, %v2365_v23  ;;  %v2382_v1 = vpop.permute.xlu0 %2381  ;;  %vm8466_vm9 = vcmask 384000  }
 0x31c   : > { %v1744_v11 = vsel %vm1743_vm14, %v6523_v56, %v1742_v51  ;;  %1752 = vst.msk [vmem:[#allocation3 + $0xe0] ss:$8 sm:$0x3] %vm6531_vm1, %v1745_v6  ;;  %v1761_v0 = vpop.permute.xlu1 %1760  ;;  %2372 = vst [vmem:[#allocation3 + $0x195] ss:$8 sm:$0xf] %v2367_v3 }
 0x31d   : > { %1749 = vst [vmem:[#allocation3 + $0xa0] ss:$8 sm:$0xf] %v1744_v11  ;;  %1750 = vst [vmem:[#allocation3 + $0xa0] ss:$8 sm:$0xf0] %v1744_v11 }
 0x31e   : > { %v1763_v31 = vrot.slane %v1761_v0, 1  ;;  %2373 = vst [vmem:[#allocation3 + $0x195] ss:$8 sm:$0xf0] %v2367_v3  ;;  %v2385_v59 = vrot.slane %v2382_v1, 1  ;;  %v1806_v35 = vrot.slane %v6546_v5, 1 }
 0x31f   : > { %1716 = vrot.lane.b32.xlu1 %v1711_v50, %s6283_s21  ;;  %v2404_v58 = vpop.permute.xlu0 %2403  ;;  %v1828_v51 = vrot.slane %v6551_v8, 1  ;;  %v3194_v3 = vld [vmem:[#allocation3 + $0x158] sm:$0xff] }
 0x320   : > { %v1764_v56 = vsel %vm1411_vm2, %v1762_v54, %v1763_v31  ;;  %v1767_v41 = vsel %vm1765_vm0, %v1761_v0, %v1763_v31  ;;  %v2387_v16 = vsel %vm1411_vm2, %v2385_v59, %v2386_v21  ;;  %v1783_v7 = vpop.permute.xlu1 %1782  ;;  %v2407_v33 = vrot.slane %v2404_v58, 1  ;;  %v3192_v0 = vld [vmem:[#allocation3 + $0x148] sm:$0xff] }
 0x321   : > { %v1766_v53 = vsel %vm1765_vm0, %v6528_v60, %v1764_v56  ;;  %1774 = vst.msk [vmem:[#allocation3 + $0xe1] ss:$8 sm:$0x3] %vm6531_vm1, %v1767_v41  ;;  %v2389_v25 = vsel %vm2388_vm4, %v2382_v1, %v2387_v16  ;;  %v1785_v14 = vrot.slane %v1783_v7, 1  ;;  %vm8465_vm4 = vcmask 375808   ;;  %v3191_v1 = vld [vmem:[#allocation3 + $0x140] sm:$0xff] }
 0x322   : > { %1771 = vst [vmem:[#allocation3 + $0xa1] ss:$8 sm:$0xf] %v1766_v53  ;;  %1772 = vst [vmem:[#allocation3 + $0xa1] ss:$8 sm:$0xf0] %v1766_v53  ;;  %v2409_v60 = vsel %vm1411_vm2, %v2407_v33, %v2408_v43 }
 0x323   : > { %2394 = vst [vmem:[#allocation3 + $0x196] ss:$8 sm:$0xf] %v2389_v25  ;;  %2395 = vst [vmem:[#allocation3 + $0x196] ss:$8 sm:$0xf0] %v2389_v25  ;;  %v1786_v21 = vsel %vm1411_vm2, %v1784_v47, %v1785_v14  ;;  %v1789_v62 = vsel %vm1787_vm15, %v1783_v7, %v1785_v14  ;;  %v2411_v52 = vsel %vm2410_vm10, %v2404_v58, %v2409_v60 }
 0x324   : > { %v1788_v45 = vsel %vm1787_vm15, %v6537_v2, %v1786_v21  ;;  %1796 = vst.msk [vmem:[#allocation3 + $0xe2] ss:$8 sm:$0x3] %vm6531_vm1, %v1789_v62  ;;  %v1805_v12 = vpop.permute.xlu1 %1804  ;;  %2416 = vst [vmem:[#allocation3 + $0x197] ss:$8 sm:$0xf] %v2411_v52 }
 0x325   : > { %1793 = vst [vmem:[#allocation3 + $0xa2] ss:$8 sm:$0xf] %v1788_v45  ;;  %1794 = vst [vmem:[#allocation3 + $0xa2] ss:$8 sm:$0xf0] %v1788_v45 }
 0x326   : > { %v1807_v46 = vrot.slane %v1805_v12, 1  ;;  %2417 = vst [vmem:[#allocation3 + $0x197] ss:$8 sm:$0xf0] %v2411_v52  ;;  %v1850_v54 = vrot.slane %v6556_v10, 1  ;;  %vm8464_vm10 = vcmask 367616  }
 0x327   : > { %v3193_v25 = vld [vmem:[#allocation3 + $0x150] sm:$0xff]  ;;  %vm8463_vm0 = vcmask 359424   ;;  %v1872_v62 = vrot.slane %v6563_v13, 1 }
 0x328   : > { %v1808_v29 = vsel %vm1411_vm2, %v1806_v35, %v1807_v46  ;;  %v1811_v43 = vsel %vm8466_vm9, %v1805_v12, %v1807_v46  ;;  %v1827_v9 = vpop.permute.xlu1 %1826  ;;  %v1894_v35 = vrot.slane %v6569_v15, 1 }
 0x329   : > { %v1810_v2 = vsel %vm8466_vm9, %v6546_v5, %v1808_v29  ;;  %1818 = vst.msk [vmem:[#allocation3 + $0xe3] ss:$8 sm:$0x3] %vm6531_vm1, %v1811_v43  ;;  %v1829_v6 = vrot.slane %v1827_v9, 1  ;;  %vm1721_vm9 = vcmask 670720  }
 0x32a   : > { %1815 = vst [vmem:[#allocation3 + $0xa3] ss:$8 sm:$0xf] %v1810_v2  ;;  %1816 = vst [vmem:[#allocation3 + $0xa3] ss:$8 sm:$0xf0] %v1810_v2 }
 0x32b   : > { %v1830_v23 = vsel %vm1411_vm2, %v1828_v51, %v1829_v6  ;;  %v1833_v11 = vsel %vm8465_vm4, %v1827_v9, %v1829_v6  ;;  %v3202_v50 = vld [vmem:[#allocation3 + $0x198] sm:$0xff]  ;;  %v3204_v59 = vld [vmem:[#allocation3 + $0x1a8] sm:$0xff]  ;;  %v3201_v56 = vld [vmem:[#allocation3 + $0x190] sm:$0xff]  ;;  %v1916_v9 = vrot.slane %v6573_v17, 1 }
 0x32c   : > { %v1832_v5 = vsel %vm8465_vm4, %v6551_v8, %v1830_v23  ;;  %1840 = vst.msk [vmem:[#allocation3 + $0xe4] ss:$8 sm:$0x3] %vm6531_vm1, %v1833_v11  ;;  %v1849_v31 = vpop.permute.xlu1 %1848  ;;  %v3282_v16 = vpack.c.bf16 %v3202_v50, %v3192_v0  ;;  %v3284_v53 = vpack.c.bf16 %v3204_v59, %v3194_v3  ;;  %v3281_v7 = vpack.c.bf16 %v3201_v56, %v3191_v1  ;;  %v3203_v58 = vld [vmem:[#allocation3 + $0x1a0] sm:$0xff] }
 0x32d   : > { %1837 = vst [vmem:[#allocation3 + $0xa4] ss:$8 sm:$0xf] %v1832_v5  ;;  %1838 = vst [vmem:[#allocation3 + $0xa4] ss:$8 sm:$0xf0] %v1832_v5  ;;  %v3283_v47 = vpack.c.bf16 %v3203_v58, %v3193_v25 }
 0x32e   : > { %v1851_v41 = vrot.slane %v1849_v31, 1  ;;  %3444 = vmatprep.subr.bf16.mxu1 %v3282_v16  ;;  %3517 = vmatprep.subr.bf16.mxu0 %v3284_v53  ;;  %v1938_v0 = vrot.slane %v6577_v19, 1  ;;  %vm1699_vm4 = vcmask 678912  }
 0x32f   : > { %3445 = vmatpush1.bf16.msra.mxu1 %v3281_v7  ;;  %3518 = vmatpush1.bf16.msra.mxu0 %v3283_v47  ;;  %v2004_v47 = vrot.slane %v6589_v24, 1 }
 0x330   : > { %v1852_v14 = vsel %vm1411_vm2, %v1850_v54, %v1851_v41  ;;  %v1855_v8 = vsel %vm8464_vm10, %v1849_v31, %v1851_v41  ;;  %v1960_v31 = vrot.slane %v6581_v20, 1 }
 0x331   : > { %v1854_v33 = vsel %vm8464_vm10, %v6556_v10, %v1852_v14  ;;  %1862 = vst.msk [vmem:[#allocation3 + $0xe5] ss:$8 sm:$0x3] %vm6531_vm1, %v1855_v8  ;;  %v1871_v21 = vpop.permute.xlu1 %1870  ;;  %vm1677_vm10 = vcmask 687104  }
 0x332   : > { %1859 = vst [vmem:[#allocation3 + $0xa5] ss:$8 sm:$0xf] %v1854_v33  ;;  %1860 = vst [vmem:[#allocation3 + $0xa5] ss:$8 sm:$0xf0] %v1854_v33 }
 0x333   : > { %v1873_v60 = vrot.slane %v1871_v21, 1 }
 0x335   : > { %v1874_v45 = vsel %vm1411_vm2, %v1872_v62, %v1873_v60  ;;  %v1877_v12 = vsel %vm8463_vm0, %v1871_v21, %v1873_v60  ;;  %v1893_v10 = vpop.permute.xlu1 %1892  ;;  %v2026_v62 = vrot.slane %v6592_v26, 1 }
 0x336   : > { %v1876_v52 = vsel %vm8463_vm0, %v6563_v13, %v1874_v45  ;;  %1884 = vst.msk [vmem:[#allocation3 + $0xe6] ss:$8 sm:$0x3] %vm6531_vm1, %v1877_v12  ;;  %v1895_v46 = vrot.slane %v1893_v10, 1  ;;  %vm1567_vm0 = vcmask 982016  }
 0x337   : > { %1881 = vst [vmem:[#allocation3 + $0xa6] ss:$8 sm:$0xf] %v1876_v52  ;;  %1882 = vst [vmem:[#allocation3 + $0xa6] ss:$8 sm:$0xf0] %v1876_v52 }
 0x338   : > { %v1896_v29 = vsel %vm1411_vm2, %v1894_v35, %v1895_v46  ;;  %v1899_v43 = vsel %vm1897_vm8, %v1893_v10, %v1895_v46  ;;  %v2048_v10 = vrot.slane %v6595_v28, 1 }
 0x339   : > { %v1898_v2 = vsel %vm1897_vm8, %v6569_v15, %v1896_v29  ;;  %1906 = vst.msk [vmem:[#allocation3 + $0xe7] ss:$8 sm:$0x3] %vm6531_vm1, %v1899_v43  ;;  %v1915_v13 = vpop.permute.xlu1 %1914  ;;  %vm1963_vm8 = vcmask 326656  }
 0x33a   : > { %1903 = vst [vmem:[#allocation3 + $0xa7] ss:$8 sm:$0xf] %v1898_v2  ;;  %1904 = vst [vmem:[#allocation3 + $0xa7] ss:$8 sm:$0xf0] %v1898_v2 }
 0x33b   : > { %v1917_v51 = vrot.slane %v1915_v13, 1  ;;  %v2070_v2 = vrot.slane %v6598_v30, 1 }
 0x33d   : > { %v1918_v6 = vsel %vm1411_vm2, %v1916_v9, %v1917_v51  ;;  %v1921_v23 = vsel %vm1919_vm7, %v1915_v13, %v1917_v51  ;;  %v1937_v15 = vpop.permute.xlu1 %1936 }
 0x33e   : > { %v1920_v11 = vsel %vm1919_vm7, %v6573_v17, %v1918_v6  ;;  %1928 = vst.msk [vmem:[#allocation3 + $0x130] ss:$8 sm:$0x3] %vm6531_vm1, %v1921_v23  ;;  %v1939_v3 = vrot.slane %v1937_v15, 1  ;;  %vm8460_vm7 = vcmask 48128   ;;  %v1409_v23 = vrot.slane %v6601_v32, 1 }
 0x33f   : > { %1925 = vst [vmem:[#allocation3 + $0xf0] ss:$8 sm:$0xf] %v1920_v11  ;;  %1926 = vst [vmem:[#allocation3 + $0xf0] ss:$8 sm:$0xf0] %v1920_v11 }
 0x340   : > { %v1940_v1 = vsel %vm1411_vm2, %v1938_v0, %v1939_v3  ;;  %v1943_v54 = vsel %vm1941_vm6, %v1937_v15, %v1939_v3  ;;  %v3328_v3 = vld [vmem:[%s8382_s3 + $0x38] sm:$0xff] }
 0x341   : > { %v1942_v5 = vsel %vm1941_vm6, %v6577_v19, %v1940_v1  ;;  %1950 = vst.msk [vmem:[#allocation3 + $0x131] ss:$8 sm:$0x3] %vm6531_vm1, %v1943_v54  ;;  %v1959_v17 = vpop.permute.xlu1 %1958  ;;  %v1982_v19 = vrot.slane %v6585_v22, 1  ;;  %vm8461_vm6 = vcmask 56320   ;;  %3366 = vperm.xlu1 %6129, %v3328_v3  }
 0x342   : > { %1947 = vst [vmem:[#allocation3 + $0xf1] ss:$8 sm:$0xf] %v1942_v5  ;;  %1948 = vst [vmem:[#allocation3 + $0xf1] ss:$8 sm:$0xf0] %v1942_v5 }
 0x343   : > { %v1961_v50 = vrot.slane %v1959_v17, 1  ;;  %v1432_v5 = vrot.slane %v6605_v34, 1 }
 0x345   : > { %v1962_v59 = vsel %vm1411_vm2, %v1960_v31, %v1961_v50  ;;  %v1965_v56 = vsel %vm1963_vm8, %v1959_v17, %v1961_v50  ;;  %v1981_v16 = vpop.permute.xlu1 %1980  ;;  %v3325_v31 = vld [vmem:[%s8382_s3 + $0x20] sm:$0xff] }
 0x346   : > { %v1964_v41 = vsel %vm1963_vm8, %v6581_v20, %v1962_v59  ;;  %1972 = vst.msk [vmem:[#allocation3 + $0x132] ss:$8 sm:$0x3] %vm6531_vm1, %v1965_v56  ;;  %v1983_v53 = vrot.slane %v1981_v16, 1  ;;  %vm8459_vm8 = vcmask 39936   ;;  %v3172_v59 = vld [vmem:[#allocation3 + $0xa8] sm:$0xff]  ;;  %3351 = vperm.xlu1 %6129, %v3325_v31  }
 0x347   : > { %1969 = vst [vmem:[#allocation3 + $0xf2] ss:$8 sm:$0xf] %v1964_v41  ;;  %1970 = vst [vmem:[#allocation3 + $0xf2] ss:$8 sm:$0xf0] %v1964_v41 }
 0x348   : > { %v1984_v7 = vsel %vm1411_vm2, %v1982_v19, %v1983_v53  ;;  %v1987_v25 = vsel %vm8462_vm12, %v1981_v16, %v1983_v53  ;;  %v3174_v56 = vld [vmem:[#allocation3 + $0xb8] sm:$0xff]  ;;  %v3171_v41 = vld [vmem:[#allocation3 + $0xa0] sm:$0xff]  ;;  %v1454_v16 = vrot.slane %v6610_v37, 1  ;;  %v1564_v31 = vrot.slane %v6631_v49, 1 }
 0x349   : > { %v1986_v58 = vsel %vm8462_vm12, %v6585_v22, %v1984_v7  ;;  %1994 = vst.msk [vmem:[#allocation3 + $0x133] ss:$8 sm:$0x3] %vm6531_vm1, %v1987_v25  ;;  %v2003_v20 = vpop.permute.xlu1 %2002  ;;  %vm1523_vm12 = vcmask 998400  }
 0x34a   : > { %1991 = vst [vmem:[#allocation3 + $0xf3] ss:$8 sm:$0xf] %v1986_v58  ;;  %1992 = vst [vmem:[#allocation3 + $0xf3] ss:$8 sm:$0xf0] %v1986_v58 }
 0x34b   : > { %v2005_v14 = vrot.slane %v2003_v20, 1 }
 0x34d   : > { %v2006_v8 = vsel %vm1411_vm2, %v2004_v47, %v2005_v14  ;;  %v2009_v33 = vsel %vm8461_vm6, %v2003_v20, %v2005_v14  ;;  %v2025_v22 = vpop.permute.xlu1 %2024 }
 0x34e   : > { %v2008_v21 = vsel %vm8461_vm6, %v6589_v24, %v2006_v8  ;;  %2016 = vst.msk [vmem:[#allocation3 + $0x134] ss:$8 sm:$0x3] %vm6531_vm1, %v2009_v33  ;;  %v2027_v60 = vrot.slane %v2025_v22, 1  ;;  %v3173_v33 = vld [vmem:[#allocation3 + $0xb0] sm:$0xff]  ;;  %vm1501_vm6 = vcmask 1006592  }
 0x34f   : > { %2013 = vst [vmem:[#allocation3 + $0xf4] ss:$8 sm:$0xf] %v2008_v21  ;;  %2014 = vst [vmem:[#allocation3 + $0xf4] ss:$8 sm:$0xf0] %v2008_v21 }
 0x350   : > { %v2028_v45 = vsel %vm1411_vm2, %v2026_v62, %v2027_v60  ;;  %v2031_v12 = vsel %vm8460_vm7, %v2025_v22, %v2027_v60  ;;  %v3326_v60 = vld [vmem:[%s8382_s3 + $0x28] sm:$0xff] }
 0x351   : > { %v2030_v52 = vsel %vm8460_vm7, %v6592_v26, %v2028_v45  ;;  %2038 = vst.msk [vmem:[#allocation3 + $0x135] ss:$8 sm:$0x3] %vm6531_vm1, %v2031_v12  ;;  %v2047_v24 = vpop.permute.xlu1 %2046  ;;  %v3323_v45 = vld [vmem:[%s8382_s3 + $0x10] sm:$0xff]  ;;  %vm1479_vm7 = vcmask 1014784  }
 0x352   : > { %2035 = vst [vmem:[#allocation3 + $0xf5] ss:$8 sm:$0xf] %v2030_v52  ;;  %2036 = vst [vmem:[#allocation3 + $0xf5] ss:$8 sm:$0xf0] %v2030_v52  ;;  %3341 = vperm.xlu1 %6129, %v3323_v45  }
 0x353   : > { %v2049_v35 = vrot.slane %v2047_v24, 1 }
 0x355   : > { %v2050_v46 = vsel %vm1411_vm2, %v2048_v10, %v2049_v35  ;;  %v2053_v29 = vsel %vm8459_vm8, %v2047_v24, %v2049_v35  ;;  %v2069_v26 = vpop.permute.xlu1 %2068  ;;  %v1476_v24 = vrot.slane %v6614_v40, 1  ;;  %v3324_v35 = vld [vmem:[%s8382_s3 + $0x18] sm:$0xff] }
 0x356   : > { %v2052_v43 = vsel %vm8459_vm8, %v6595_v28, %v2050_v46  ;;  %2060 = vst.msk [vmem:[#allocation3 + $0x136] ss:$8 sm:$0x3] %vm6531_vm1, %v2053_v29  ;;  %v2071_v13 = vrot.slane %v2069_v26, 1  ;;  %vm1457_vm8 = vcmask 1022976  }
 0x357   : > { %2057 = vst [vmem:[#allocation3 + $0xf6] ss:$8 sm:$0xf] %v2052_v43  ;;  %2058 = vst [vmem:[#allocation3 + $0xf6] ss:$8 sm:$0xf0] %v2052_v43 }
 0x358   : > { %v2072_v9 = vsel %vm1411_vm2, %v2070_v2, %v2071_v13  ;;  %v2075_v51 = vsel %vm8458_vm5, %v2069_v26, %v2071_v13  ;;  %v1498_v2 = vrot.slane %v6618_v42, 1 }
 0x359   : > { %v2074_v6 = vsel %vm8458_vm5, %v6598_v30, %v2072_v9  ;;  %2082 = vst.msk [vmem:[#allocation3 + $0x137] ss:$8 sm:$0x3] %vm6531_vm1, %v2075_v51  ;;  %v1408_v28 = vpop.permute.xlu1 %1407  ;;  %v3327_v30 = vld [vmem:[%s8382_s3 + $0x30] sm:$0xff]  ;;  %vm1435_vm5 = vcmask 1031168  }
 0x35a   : > { %2079 = vst [vmem:[#allocation3 + $0xf7] ss:$8 sm:$0xf] %v2074_v6  ;;  %2080 = vst [vmem:[#allocation3 + $0xf7] ss:$8 sm:$0xf0] %v2074_v6  ;;  %3361 = vperm.xlu0 %6128, %v3327_v30  }
 0x35b   : > { %v1410_v11 = vrot.slane %v1408_v28, 1  ;;  %v3322_v6 = vld [vmem:[%s8382_s3 + $0x8] sm:$0xff]  ;;  %v1542_v30 = vrot.slane %v6626_v4, 1 }
 0x35d   : > { %v1412_v15 = vsel %vm1411_vm2, %v1409_v23, %v1410_v11  ;;  %v1415_v0 = vsel %vm1413_vm11, %v1408_v28, %v1410_v11  ;;  %v1431_v54 = vpop.permute.xlu1 %1430  ;;  %v1520_v23 = vrot.slane %v6622_v44, 1 }
 0x35e   : > { %v1414_v1 = vsel %vm1413_vm11, %v6601_v32, %v1412_v15  ;;  %1422 = vst.msk [vmem:[#allocation3 + $0x41] ss:$8 sm:$0x3] %vm6531_vm1, %v1415_v0  ;;  %v1433_v17 = vrot.slane %v1431_v54, 1  ;;  %3356 = vperm.xlu0 %6128, %v3326_v60  }
 0x35f   : > { %1419 = vst [vmem:[#allocation3 + $0x1] ss:$8 sm:$0xf] %v1414_v1  ;;  %1420 = vst [vmem:[#allocation3 + $0x1] ss:$8 sm:$0xf0] %v1414_v1 }
 0x360   : > { %v1434_v50 = vsel %vm1411_vm2, %v1432_v5, %v1433_v17  ;;  %v1437_v32 = vsel %vm1435_vm5, %v1431_v54, %v1433_v17 }
 0x361   : > { %v1436_v19 = vsel %vm1435_vm5, %v6605_v34, %v1434_v50  ;;  %1444 = vst.msk [vmem:[#allocation3 + $0x42] ss:$8 sm:$0x3] %vm6531_vm1, %v1437_v32  ;;  %v1453_v53 = vpop.permute.xlu1 %1452  ;;  %v3182_v7 = vld [vmem:[#allocation3 + $0xf8] sm:$0xff]  ;;  %v3184_v25 = vld [vmem:[#allocation3 + $0x108] sm:$0xff]  ;;  %v3181_v58 = vld [vmem:[#allocation3 + $0xf0] sm:$0xff] }
 0x362   : > { %1441 = vst [vmem:[#allocation3 + $0x2] ss:$8 sm:$0xf] %v1436_v19  ;;  %1442 = vst [vmem:[#allocation3 + $0x2] ss:$8 sm:$0xf0] %v1436_v19  ;;  %v3272_v47 = vpack.c.bf16 %v3182_v7, %v3172_v59  ;;  %v3274_v14 = vpack.c.bf16 %v3184_v25, %v3174_v56  ;;  %v3271_v8 = vpack.c.bf16 %v3181_v58, %v3171_v41  ;;  %3346 = vperm.xlu0 %6128, %v3324_v35  }
 0x363   : > { %v1455_v20 = vrot.slane %v1453_v53, 1  ;;  %v3183_v21 = vld [vmem:[#allocation3 + $0x100] sm:$0xff]  ;;  %v1608_v58 = vrot.slane %v6641_v39, 1 }
 0x364   : > { %v3273_v22 = vpack.c.bf16 %v3183_v21, %v3173_v33  ;;  %3446 = vmatprep.subr.bf16.mxu1 %v3272_v47  ;;  %3519 = vmatprep.subr.bf16.mxu0 %v3274_v14  ;;  %v3925_v7 = vld [vmem:[%s8384_s5 + $0x10] sm:$0xff]  ;;  %v3926_v47 = vld [vmem:[%s8384_s5 + $0x18] sm:$0xff] }
 0x365   : > { %v1456_v34 = vsel %vm1411_vm2, %v1454_v16, %v1455_v20  ;;  %v1459_v62 = vsel %vm1457_vm8, %v1453_v53, %v1455_v20  ;;  %3447 = vmatpush1.bf16.msra.mxu1 %v3271_v8  ;;  %v1475_v52 = vpop.permute.xlu1 %1474 }
 0x366   : > { %v1458_v12 = vsel %vm1457_vm8, %v6610_v37, %v1456_v34  ;;  %1466 = vst.msk [vmem:[#allocation3 + $0x43] ss:$8 sm:$0x3] %vm6531_vm1, %v1459_v62  ;;  %3520 = vmatpush1.bf16.msra.mxu0 %v3273_v22  ;;  %v1477_v10 = vrot.slane %v1475_v52, 1  ;;  %v3321_v37 = vld [vmem:[%s8382_s3] sm:$0xff]  ;;  %3336 = vperm.xlu0 %6128, %v3322_v6   ;;  %v3924_v22 = vld [vmem:[%s8384_s5 + $0x8] sm:$0xff] }
 0x367   : > { %1463 = vst [vmem:[#allocation3 + $0x3] ss:$8 sm:$0xf] %v1458_v12  ;;  %1464 = vst [vmem:[#allocation3 + $0x3] ss:$8 sm:$0xf0] %v1458_v12  ;;  %3331 = vperm.xlu1 %6129, %v3321_v37   ;;  %v1693_v37 = vpop.permute.xlu0 %1692 }
 0x368   : > { %v1478_v46 = vsel %vm1411_vm2, %v1476_v24, %v1477_v10  ;;  %v1481_v29 = vsel %vm1479_vm7, %v1475_v52, %v1477_v10  ;;  %v1630_v34 = vrot.slane %v6655_v18, 1  ;;  %v1652_v52 = vrot.slane %v6669_v27, 1 }
 0x369   : > { %v1480_v43 = vsel %vm1479_vm7, %v6614_v40, %v1478_v46  ;;  %1488 = vst.msk [vmem:[#allocation3 + $0x44] ss:$8 sm:$0x3] %vm6531_vm1, %v1481_v29  ;;  %v1497_v26 = vpop.permute.xlu1 %1496  ;;  %v1674_v29 = vrot.slane %v6683_v38, 1 }
 0x36a   : > { %1485 = vst [vmem:[#allocation3 + $0x4] ss:$8 sm:$0xf] %v1480_v43  ;;  %1486 = vst [vmem:[#allocation3 + $0x4] ss:$8 sm:$0xf0] %v1480_v43  ;;  %3939 = vperm.xlu0 %6128, %v3925_v7  }
 0x36b   : > { %v1499_v13 = vrot.slane %v1497_v26, 1  ;;  %3944 = vperm.xlu1 %6129, %v3926_v47   ;;  %v1715_v6 = vpop.permute.xlu0 %1714 }
 0x36d   : > { %v1500_v9 = vsel %vm1411_vm2, %v1498_v2, %v1499_v13  ;;  %v1503_v51 = vsel %vm1501_vm6, %v1497_v26, %v1499_v13  ;;  %v1519_v28 = vpop.permute.xlu1 %1518 }
 0x36e   : > { %v1502_v40 = vsel %vm1501_vm6, %v6618_v42, %v1500_v9  ;;  %1510 = vst.msk [vmem:[#allocation3 + $0x45] ss:$8 sm:$0x3] %vm6531_vm1, %v1503_v51  ;;  %v1521_v11 = vrot.slane %v1519_v28, 1  ;;  %vm1545_vm6 = vcmask 990208   ;;  %v1696_v9 = vrot.slane %v1693_v37, 1 }
 0x36f   : > { %1507 = vst [vmem:[#allocation3 + $0x5] ss:$8 sm:$0xf] %v1502_v40  ;;  %1508 = vst [vmem:[#allocation3 + $0x5] ss:$8 sm:$0xf0] %v1502_v40  ;;  %3934 = vperm.xlu1 %6129, %v3924_v22  }
 0x370   : > { %v1522_v15 = vsel %vm1411_vm2, %v1520_v23, %v1521_v11  ;;  %v1525_v0 = vsel %vm1523_vm12, %v1519_v28, %v1521_v11  ;;  %v3236_v22 = vld [vmem:[#allocation3 + $0x2a8] sm:$0xff] }
 0x371   : > { %v1524_v3 = vsel %vm1523_vm12, %v6622_v44, %v1522_v15  ;;  %1532 = vst.msk [vmem:[#allocation3 + $0x46] ss:$8 sm:$0x3] %vm6531_vm1, %v1525_v0  ;;  %v1541_v42 = vpop.permute.xlu1 %1540  ;;  %vm1611_vm12 = vcmask 711680  }
 0x372   : > { %1529 = vst [vmem:[#allocation3 + $0x6] ss:$8 sm:$0xf] %v1524_v3  ;;  %1530 = vst [vmem:[#allocation3 + $0x6] ss:$8 sm:$0xf0] %v1524_v3 }
 0x373   : > { %v1543_v1 = vrot.slane %v1541_v42, 1 }
 0x375   : > { %v1544_v54 = vsel %vm1411_vm2, %v1542_v30, %v1543_v1  ;;  %v1547_v5 = vsel %vm1545_vm6, %v1541_v42, %v1543_v1  ;;  %v1563_v44 = vpop.permute.xlu1 %1562  ;;  %v3256_v30 = vld [vmem:[#allocation3 + $0x348] sm:$0x1]  ;;  %v3258_v1 = vld [vmem:[#allocation3 + $0x358] sm:$0x1] }
 0x376   : > { %v1546_v17 = vsel %vm1545_vm6, %v6626_v4, %v1544_v54  ;;  %1554 = vst.msk [vmem:[#allocation3 + $0x47] ss:$8 sm:$0x3] %vm6531_vm1, %v1547_v5  ;;  %v1565_v50 = vrot.slane %v1563_v44, 1  ;;  %v1586_v4 = vrot.slane %v6635_v55, 1  ;;  %vm1655_vm6 = vcmask 695296  }
 0x377   : > { %1551 = vst [vmem:[#allocation3 + $0x7] ss:$8 sm:$0xf] %v1546_v17  ;;  %1552 = vst [vmem:[#allocation3 + $0x7] ss:$8 sm:$0xf0] %v1546_v17 }
 0x378   : > { %v1566_v32 = vsel %vm1411_vm2, %v1564_v31, %v1565_v50  ;;  %v1569_v59 = vsel %vm1567_vm0, %v1563_v44, %v1565_v50  ;;  %v3255_v54 = vld [vmem:[#allocation3 + $0x340] sm:$0x1]  ;;  %v3257_v5 = vld [vmem:[#allocation3 + $0x350] sm:$0x1]  ;;  %v3316_v50 = vpack.c.bf16 %v3256_v30, %v3256_v30  ;;  %v3186_v30 = vld [vmem:[#allocation3 + $0x118] sm:$0xff] }
 0x379   : > { %v1568_v56 = vsel %vm1567_vm0, %v6631_v49, %v1566_v32  ;;  %1576 = vst.msk [vmem:[#allocation3 + $0x90] ss:$8 sm:$0x3] %vm6531_vm1, %v1569_v59  ;;  %v1585_v41 = vpop.permute.xlu1 %1584  ;;  %vm1633_vm0 = vcmask 703488   ;;  %v3318_v32 = vpack.c.bf16 %v3258_v1, %v3258_v1  ;;  %v3188_v1 = vld [vmem:[#allocation3 + $0x128] sm:$0xff] }
 0x37a   : > { %1573 = vst [vmem:[#allocation3 + $0x50] ss:$8 sm:$0xf] %v1568_v56  ;;  %1574 = vst [vmem:[#allocation3 + $0x50] ss:$8 sm:$0xf0] %v1568_v56 }
 0x37b   : > { %v1587_v16 = vrot.slane %v1585_v41, 1  ;;  %v3426_v47 = vand.u32 %v6754_v36, %v3318_v32 }
 0x37d   : > { %v1588_v19 = vsel %vm1411_vm2, %v1586_v4, %v1587_v16  ;;  %v1591_v53 = vsel %vm1589_vm3, %v1585_v41, %v1587_v16  ;;  %v1607_v25 = vpop.permute.xlu1 %1606 }
 0x37e   : > { %v1590_v49 = vsel %vm1589_vm3, %v6635_v55, %v1588_v19  ;;  %1598 = vst.msk [vmem:[#allocation3 + $0x91] ss:$8 sm:$0x3] %vm6531_vm1, %v1591_v53  ;;  %v1609_v20 = vrot.slane %v1607_v25, 1  ;;  %v3923_v55 = vld [vmem:[%s8384_s5] sm:$0xff]  ;;  %v3152_v17 = vld [vmem:[#allocation3 + $0x8] sm:$0xff] }
 0x37f   : > { %1595 = vst [vmem:[#allocation3 + $0x51] ss:$8 sm:$0xf] %v1590_v49  ;;  %1596 = vst [vmem:[#allocation3 + $0x51] ss:$8 sm:$0xf0] %v1590_v49  ;;  %3929 = vperm.xlu0 %6128, %v3923_v55  }
 0x380   : > { %v1610_v14 = vsel %vm1411_vm2, %v1608_v58, %v1609_v20  ;;  %v1613_v8 = vsel %vm1611_vm12, %v1607_v25, %v1609_v20  ;;  %v3154_v44 = vld [vmem:[#allocation3 + $0x18] sm:$0xff]  ;;  %v3151_v31 = vld [vmem:[#allocation3] sm:$0xff]  ;;  %v3153_v53 = vld [vmem:[#allocation3 + $0x10] sm:$0xff]  ;;  %v3315_v25 = vpack.c.bf16 %v3255_v54, %v3255_v54  ;;  %v3317_v58 = vpack.c.bf16 %v3257_v5, %v3257_v5 }
 0x381   : > { %v1612_v33 = vsel %vm1611_vm12, %v6641_v39, %v1610_v14  ;;  %1620 = vst.msk [vmem:[#allocation3 + $0x92] ss:$8 sm:$0x3] %vm6531_vm1, %v1613_v8  ;;  %v1629_v21 = vpop.permute.xlu1 %1628  ;;  %v3420_v20 = vand.u32 %v6754_v36, %v3316_v50  ;;  %v7479_v14 = vld [vmem:[%s8381_s2] sm:$0xff]   ;;  %v3248_v55 = vld [vmem:[#allocation3 + $0x308] sm:$0xff]  ;;  %v3195_v54 = vld [vmem:[#allocation3 + $0x160] sm:$0xff] }
 0x382   : > { %1617 = vst [vmem:[#allocation3 + $0x52] ss:$8 sm:$0xf] %v1612_v33  ;;  %1618 = vst [vmem:[#allocation3 + $0x52] ss:$8 sm:$0xf0] %v1612_v33  ;;  %v3417_v33 = vand.u32 %v6754_v36, %v3315_v25 }
 0x383   : > { %v1631_v62 = vrot.slane %v1629_v21, 1  ;;  %v3246_v8 = vld [vmem:[#allocation3 + $0x2f8] sm:$0xff]  ;;  %v3197_v5 = vld [vmem:[#allocation3 + $0x170] sm:$0xff] }
 0x384   : > { %v3178_v50 = vld [vmem:[#allocation3 + $0xd8] sm:$0xff] }
 0x385   : > { %v1632_v60 = vsel %vm1411_vm2, %v1630_v34, %v1631_v62  ;;  %v1635_v45 = vsel %vm1633_vm0, %v1629_v21, %v1631_v62  ;;  %v1651_v12 = vpop.permute.xlu1 %1650  ;;  %v3423_v21 = vand.u32 %v6754_v36, %v3317_v58  ;;  %v3238_v34 = vld [vmem:[#allocation3 + $0x2b8] sm:$0xff]  ;;  %v3306_v62 = vpack.c.bf16 %v3246_v8, %v3236_v22 }
 0x386   : > { %v1634_v39 = vsel %vm1633_vm0, %v6655_v18, %v1632_v60  ;;  %1642 = vst.msk [vmem:[#allocation3 + $0x93] ss:$8 sm:$0x3] %vm6531_vm1, %v1635_v45  ;;  %v1653_v24 = vrot.slane %v1651_v12, 1  ;;  %v3308_v60 = vpack.c.bf16 %v3248_v55, %v3238_v34  ;;  %v3245_v45 = vld [vmem:[#allocation3 + $0x2f0] sm:$0xff]  ;;  %v3155_v34 = vld [vmem:[#allocation3 + $0x20] sm:$0xff] }
 0x387   : > { %1639 = vst [vmem:[#allocation3 + $0x53] ss:$8 sm:$0xf] %v1634_v39  ;;  %1640 = vst [vmem:[#allocation3 + $0x53] ss:$8 sm:$0xf0] %v1634_v39 }
 0x388   : > { %v1654_v10 = vsel %vm1411_vm2, %v1652_v52, %v1653_v24  ;;  %v1657_v35 = vsel %vm1655_vm6, %v1651_v12, %v1653_v24  ;;  %v3247_v39 = vld [vmem:[#allocation3 + $0x300] sm:$0xff]  ;;  %v3226_v12 = vld [vmem:[#allocation3 + $0x258] sm:$0xff]  ;;  %v3228_v52 = vld [vmem:[#allocation3 + $0x268] sm:$0xff] }
 0x389   : > { %v1656_v46 = vsel %vm1655_vm6, %v6669_v27, %v1654_v10  ;;  %1664 = vst.msk [vmem:[#allocation3 + $0x94] ss:$8 sm:$0x3] %vm6531_vm1, %v1657_v35  ;;  %v1673_v18 = vpop.permute.xlu1 %1672  ;;  %v3235_v24 = vld [vmem:[#allocation3 + $0x2a0] sm:$0xff]  ;;  %v3237_v10 = vld [vmem:[#allocation3 + $0x2b0] sm:$0xff] }
 0x38a   : > { %1661 = vst [vmem:[#allocation3 + $0x54] ss:$8 sm:$0xf] %v1656_v46  ;;  %1662 = vst [vmem:[#allocation3 + $0x54] ss:$8 sm:$0xf0] %v1656_v46  ;;  %v3305_v35 = vpack.c.bf16 %v3245_v45, %v3235_v24 }
 0x38b   : > { %v1675_v43 = vrot.slane %v1673_v18, 1  ;;  %v3216_v46 = vld [vmem:[#allocation3 + $0x208] sm:$0xff] }
 0x38d   : > { %v1676_v26 = vsel %vm1411_vm2, %v1674_v29, %v1675_v43  ;;  %v1679_v2 = vsel %vm1677_vm10, %v1673_v18, %v1675_v43  ;;  %v1695_v27 = vpop.permute.xlu1 %1694  ;;  %v3218_v18 = vld [vmem:[#allocation3 + $0x218] sm:$0xff]  ;;  %v8502_v29 = vmov 0   ;;  %v3296_v43 = vpack.c.bf16 %v3226_v12, %v3216_v46  ;;  %v7515_v12 = vld [vmem:[%s8381_s2 + $0x18] sm:$0xff]  }
 0x38e   : > { %v1678_v13 = vsel %vm1677_vm10, %v6683_v38, %v1676_v26  ;;  %1686 = vst.msk [vmem:[#allocation3 + $0x95] ss:$8 sm:$0x3] %vm6531_vm1, %v1679_v2  ;;  %v1697_v51 = vrot.slane %v1695_v27, 1  ;;  %v1718_v38 = vrot.slane %v1715_v6, 1  ;;  %v3298_v26 = vpack.c.bf16 %v3228_v52, %v3218_v18  ;;  %v7492_v2 = vld [vmem:[%s8381_s2 + $0x8] sm:$0xff]  }
 0x38f   : > { %1683 = vst [vmem:[#allocation3 + $0x55] ss:$8 sm:$0xf] %v1678_v13  ;;  %1684 = vst [vmem:[#allocation3 + $0x55] ss:$8 sm:$0xf0] %v1678_v13 }
 0x390   : > { %v1698_v40 = vsel %vm1411_vm2, %v1696_v9, %v1697_v51  ;;  %v1701_v28 = vsel %vm1699_vm4, %v1695_v27, %v1697_v51  ;;  %v3225_v13 = vld [vmem:[#allocation3 + $0x250] sm:$0xff]  ;;  %v3227_v27 = vld [vmem:[#allocation3 + $0x260] sm:$0xff]  ;;  %v3206_v9 = vld [vmem:[#allocation3 + $0x1b8] sm:$0xff] }
 0x391   : > { %v1700_v23 = vsel %vm1699_vm4, %v1693_v37, %v1698_v40  ;;  %1708 = vst.msk [vmem:[#allocation3 + $0x96] ss:$8 sm:$0x3] %vm6531_vm1, %v1701_v28  ;;  %v1717_v11 = vpop.permute.xlu1 %1716  ;;  %v3307_v37 = vpack.c.bf16 %v3247_v39, %v3237_v10  ;;  %v3208_v51 = vld [vmem:[#allocation3 + $0x1c8] sm:$0xff]  ;;  %v3217_v40 = vld [vmem:[#allocation3 + $0x210] sm:$0xff]  ;;  %v3250_v10 = vld [vmem:[#allocation3 + $0x318] sm:$0xff] }
 0x392   : > { %1705 = vst [vmem:[#allocation3 + $0x56] ss:$8 sm:$0xf] %v1700_v23  ;;  %1706 = vst [vmem:[#allocation3 + $0x56] ss:$8 sm:$0xf0] %v1700_v23  ;;  %v3297_v23 = vpack.c.bf16 %v3227_v27, %v3217_v40 }
 0x393   : > { %v1719_v15 = vrot.slane %v1717_v11, 1  ;;  %v3259_v52 = vld [vmem:[#allocation3 + $0x360] sm:$0x1]  ;;  %v3249_v18 = vld [vmem:[#allocation3 + $0x310] sm:$0xff]  ;;  %v3220_v27 = vld [vmem:[#allocation3 + $0x228] sm:$0xff]  ;;  %vm4708_vm4 = vcmask 261120  }
 0x394   : > { %v3319_v24 = vpack.c.bf16 %v3259_v52, %v3259_v52 }
 0x395   : > { %v1720_v0 = vsel %vm1411_vm2, %v1718_v38, %v1719_v15  ;;  %v1723_v3 = vsel %vm1721_vm9, %v1717_v11, %v1719_v15  ;;  %v3196_v11 = vld [vmem:[#allocation3 + $0x168] sm:$0xff]  ;;  %v3198_v38 = vld [vmem:[#allocation3 + $0x178] sm:$0xff] }
 0x396   : > { %v1722_v42 = vsel %vm1721_vm9, %v1715_v6, %v1720_v0  ;;  %1730 = vst.msk [vmem:[#allocation3 + $0x97] ss:$8 sm:$0x3] %vm6531_vm1, %v1723_v3  ;;  %v3215_v6 = vld [vmem:[#allocation3 + $0x200] sm:$0xff]  ;;  %v3286_v15 = vpack.c.bf16 %v3206_v9, %v3196_v11  ;;  %v3288_v0 = vpack.c.bf16 %v3208_v51, %v3198_v38  ;;  %v3205_v3 = vld [vmem:[#allocation3 + $0x1b0] sm:$0xff]  ;;  %v3210_v51 = vld [vmem:[#allocation3 + $0x1d8] sm:$0xff] }
 0x397   : > { %1727 = vst [vmem:[#allocation3 + $0x57] ss:$8 sm:$0xf] %v1722_v42  ;;  %1728 = vst [vmem:[#allocation3 + $0x57] ss:$8 sm:$0xf0] %v1722_v42  ;;  %v3295_v28 = vpack.c.bf16 %v3225_v13, %v3215_v6 }
 0x398   : > { %v3207_v42 = vld [vmem:[#allocation3 + $0x1c0] sm:$0xff]  ;;  %v3229_v9 = vld [vmem:[#allocation3 + $0x270] sm:$0xff]  ;;  %v3190_v38 = vld [vmem:[#allocation3 + $0x138] sm:$0xff] }
 0x399   : > { %v3219_v6 = vld [vmem:[#allocation3 + $0x220] sm:$0xff]  ;;  %v3209_v11 = vld [vmem:[#allocation3 + $0x1d0] sm:$0xff] }
 0x39a   : > { %v3299_v40 = vpack.c.bf16 %v3229_v9, %v3219_v6 }
 0x39e   : > { %v3162_v59 = vld [vmem:[#allocation3 + $0x58] sm:$0xff]  ;;  %v3164_v56 = vld [vmem:[#allocation3 + $0x68] sm:$0xff]  ;;  %v3161_v41 = vld [vmem:[#allocation3 + $0x50] sm:$0xff] }
 0x39f   : > { %v3262_v4 = vpack.c.bf16 %v3162_v59, %v3152_v17  ;;  %v3264_v16 = vpack.c.bf16 %v3164_v56, %v3154_v44  ;;  %v3261_v19 = vpack.c.bf16 %v3161_v41, %v3151_v31  ;;  %v3163_v7 = vld [vmem:[#allocation3 + $0x60] sm:$0xff]  ;;  %v3285_v17 = vpack.c.bf16 %v3205_v3, %v3195_v54  ;;  %v3176_v31 = vld [vmem:[#allocation3 + $0xc8] sm:$0xff]  ;;  %v3185_v41 = vld [vmem:[#allocation3 + $0x110] sm:$0xff] }
 0x3a0   : > { %v3263_v49 = vpack.c.bf16 %v3163_v7, %v3153_v53  ;;  %v3287_v44 = vpack.c.bf16 %v3207_v42, %v3197_v5  ;;  %v3276_v32 = vpack.c.bf16 %v3186_v30, %v3176_v31  ;;  %v3278_v59 = vpack.c.bf16 %v3188_v1, %v3178_v50  ;;  %v7503_v56 = vld [vmem:[%s8381_s2 + $0x10] sm:$0xff]   ;;  %v3189_v30 = vld [vmem:[#allocation3 + $0x130] sm:$0xff]  ;;  %v3170_v1 = vld [vmem:[#allocation3 + $0x98] sm:$0xff] }
 0x3a1   : > { %3448 = vmatprep.subr.bf16.mxu1 %v3262_v4  ;;  %3521 = vmatprep.subr.bf16.mxu0 %v3264_v16  ;;  %v3187_v4 = vld [vmem:[#allocation3 + $0x120] sm:$0xff]  ;;  %v3166_v16 = vld [vmem:[#allocation3 + $0x78] sm:$0xff]  ;;  %v3260_v53 = vld [vmem:[#allocation3 + $0x368] sm:$0x1] }
 0x3a2   : > { %3449 = vmatpush1.bf16.msra.mxu1 %v3261_v19  ;;  %3522 = vmatpush1.bf16.msra.mxu0 %v3263_v49  ;;  %v3168_v19 = vld [vmem:[#allocation3 + $0x88] sm:$0xff]  ;;  %v3175_v7 = vld [vmem:[#allocation3 + $0xc0] sm:$0xff]  ;;  %v3177_v49 = vld [vmem:[#allocation3 + $0xd0] sm:$0xff]  ;;  %v3320_v22 = vpack.c.bf16 %v3260_v53, %v3260_v53 }
 0x3a3   : > { %3584 = vmatprep.subr.bf16.mxu1 %v3420_v20  ;;  %3657 = vmatprep.subr.bf16.mxu0 %v3426_v47  ;;  %v3275_v25 = vpack.c.bf16 %v3185_v41, %v3175_v7  ;;  %v3277_v58 = vpack.c.bf16 %v3187_v4, %v3177_v49  ;;  %v3156_v20 = vld [vmem:[#allocation3 + $0x28] sm:$0xff]  ;;  %v3158_v47 = vld [vmem:[#allocation3 + $0x38] sm:$0xff]  ;;  %v3179_v54 = vld [vmem:[#allocation3 + $0xe0] sm:$0xff] }
 0x3a4   : > { %v3266_v8 = vpack.c.bf16 %v3166_v16, %v3156_v20  ;;  %v3268_v55 = vpack.c.bf16 %v3168_v19, %v3158_v47  ;;  %v3432_v39 = vand.u32 %v6754_v36, %v3320_v22  ;;  %v3180_v3 = vld [vmem:[#allocation3 + $0xe8] sm:$0xff]  ;;  %v3279_v5 = vpack.c.bf16 %v3189_v30, %v3179_v54  ;;  %v3169_v31 = vld [vmem:[#allocation3 + $0x90] sm:$0xff]  ;;  %v3159_v50 = vld [vmem:[#allocation3 + $0x40] sm:$0xff] }
 0x3a5   : > { %5918 = vmatmul.mubr.msk.bf16.vlgmr.msra.gmra.mxu1 %vm1743_vm14, %v7479_v14  ;;  %5922 = vmatmul.mubr.msk.bf16.vlgmr.msra.gmra.mxu0 %vm1743_vm14, %v7479_v14  ;;  %v3280_v42 = vpack.c.bf16 %v3190_v38, %v3180_v3 }
 0x3a6   : > { %3585 = vmatpush1.bf16.msra.mxu1 %v3417_v33  ;;  %3658 = vmatpush1.bf16.msra.mxu0 %v3423_v21  ;;  %v3165_v33 = vld [vmem:[#allocation3 + $0x70] sm:$0xff]  ;;  %v3167_v21 = vld [vmem:[#allocation3 + $0x80] sm:$0xff] }
 0x3a7   : > { %3586 = vmatprep.subr.bf16.mxu1 %v3306_v62  ;;  %3659 = vmatprep.subr.bf16.mxu0 %v3308_v60  ;;  %v3157_v62 = vld [vmem:[#allocation3 + $0x30] sm:$0xff]  ;;  %v3265_v60 = vpack.c.bf16 %v3165_v33, %v3155_v34 }
 0x3a8   : > { %3476 = vmatprep.mubr.bf16.mxu1 %v8502_v29  ;;  %3549 = vmatprep.mubr.bf16.mxu0 %v8502_v29  ;;  %v3267_v45 = vpack.c.bf16 %v3167_v21, %v3157_v62 }
 0x3aa   : > { %3587 = vmatpush1.bf16.msra.mxu1 %v3305_v35  ;;  %3660 = vmatpush1.bf16.msra.mxu0 %v3307_v37  ;;  %v3429_v35 = vand.u32 %v6754_v36, %v3319_v24  ;;  %v3240_v37 = vld [vmem:[#allocation3 + $0x2c8] sm:$0xff] }
 0x3ab   : > { %3588 = vmatprep.subr.bf16.mxu1 %v3296_v43  ;;  %3661 = vmatprep.subr.bf16.mxu0 %v3298_v26  ;;  %v3310_v46 = vpack.c.bf16 %v3250_v10, %v3240_v37  ;;  %v3230_v43 = vld [vmem:[#allocation3 + $0x278] sm:$0xff]  ;;  %v3239_v26 = vld [vmem:[#allocation3 + $0x2c0] sm:$0xff] }
 0x3ac   : > { %v3309_v13 = vpack.c.bf16 %v3249_v18, %v3239_v26  ;;  %v3300_v36 = vpack.c.bf16 %v3230_v43, %v3220_v27 }
 0x3ad   : > { %5919 = vmatmul.mubr.msk.bf16.gmra.mxu1 %vm1743_vm14, %v7492_v2  ;;  %5923 = vmatmul.mubr.msk.bf16.gmra.mxu0 %vm1743_vm14, %v7492_v2 }
 0x3ae   : > { %3589 = vmatpush1.bf16.msra.mxu1 %v3295_v28  ;;  %3662 = vmatpush1.bf16.msra.mxu0 %v3297_v23  ;;  %v3200_v28 = vld [vmem:[#allocation3 + $0x188] sm:$0xff] }
 0x3af   : > { %3590 = vmatprep.subr.bf16.mxu1 %v3286_v15  ;;  %3663 = vmatprep.subr.bf16.mxu0 %v3288_v0  ;;  %v3290_v23 = vpack.c.bf16 %v3210_v51, %v3200_v28  ;;  %v3199_v15 = vld [vmem:[#allocation3 + $0x180] sm:$0xff] }
 0x3b0   : > { %3486 = vmatprep.mubr.bf16.mxu1 %v8502_v29  ;;  %3559 = vmatprep.mubr.bf16.mxu0 %v8502_v29  ;;  %v3289_v0 = vpack.c.bf16 %v3209_v11, %v3199_v15 }
 0x3b2   : > { %3591 = vmatpush1.bf16.msra.mxu1 %v3285_v17  ;;  %3664 = vmatpush1.bf16.msra.mxu0 %v3287_v44  ;;  %v3160_v17 = vld [vmem:[#allocation3 + $0x48] sm:$0xff] }
 0x3b3   : > { %3592 = vmatprep.subr.bf16.mxu1 %v3276_v32  ;;  %3665 = vmatprep.subr.bf16.mxu0 %v3278_v59  ;;  %v3270_v44 = vpack.c.bf16 %v3170_v1, %v3160_v17  ;;  %v3269_v32 = vpack.c.bf16 %v3169_v31, %v3159_v50 }
 0x3b5   : > { %5920 = vmatmul.mubr.msk.bf16.gmra.mxu1 %vm1743_vm14, %v7503_v56  ;;  %5924 = vmatmul.mubr.msk.bf16.gmra.mxu0 %vm1743_vm14, %v7503_v56 }
 0x3b6   : > { %3593 = vmatpush1.bf16.msra.mxu1 %v3275_v25  ;;  %3666 = vmatpush1.bf16.msra.mxu0 %v3277_v58 }
 0x3b7   : > { %3594 = vmatprep.subr.bf16.mxu1 %v3266_v8  ;;  %3667 = vmatprep.subr.bf16.mxu0 %v3268_v55 }
 0x3b8   : > { %3496 = vmatprep.mubr.bf16.mxu1 %v8502_v29  ;;  %3569 = vmatprep.mubr.bf16.mxu0 %v8502_v29 }
 0x3ba   : > { %3595 = vmatpush1.bf16.msra.mxu1 %v3265_v60  ;;  %3668 = vmatpush1.bf16.msra.mxu0 %v3267_v45 }
 0x3bb   : > { %3730 = vmatprep.subr.bf16.mxu1 %v3432_v39 }
 0x3bc   : > { %v7566_v19 = vpop.permute.xlu1 %3366 }
 0x3bd   : > { %5921 = vmatmul.mubr.msk.bf16.gmra.mxu1 %vm1743_vm14, %v7515_v12  ;;  %5925 = vmatmul.mubr.msk.bf16.gmra.mxu0 %vm1743_vm14, %v7515_v12 }
 0x3be   : > { %3612 = vmatprep.mubr.bf16.mxu1 %v8502_v29  ;;  %3685 = vmatprep.mubr.bf16.mxu0 %v8502_v29 }
 0x3c1   : > { %v7574_v47 = vpop.permute.xlu1 %3351 }
 0x3c5   : > { %5926 = vmatmul.mubr.msk.bf16.vlgmr.msra.gmra.mxu1 %vm1743_vm14, %v7479_v14  ;;  %5930 = vmatmul.mubr.msk.bf16.vlgmr.msra.gmra.mxu0 %vm1743_vm14, %v7479_v14 }
 0x3c6   : > { %3731 = vmatpush1.bf16.msra.mxu1 %v3429_v35  ;;  %3622 = vmatprep.mubr.bf16.mxu1 %v8502_v29 }
 0x3c7   : > { %3732 = vmatprep.subr.bf16.mxu1 %v3310_v46  ;;  %3695 = vmatprep.mubr.bf16.mxu0 %v8502_v29 }
 0x3ca   : > { %3733 = vmatpush1.bf16.msra.mxu1 %v3309_v13 }
 0x3cb   : > { %3734 = vmatprep.subr.bf16.mxu1 %v3300_v36 }
 0x3cd   : > { %5927 = vmatmul.mubr.msk.bf16.gmra.mxu1 %vm1743_vm14, %v7492_v2  ;;  %5931 = vmatmul.mubr.msk.bf16.gmra.mxu0 %vm1743_vm14, %v7492_v2  ;;  %v7578_v60 = vpop.permute.xlu1 %3341 }
 0x3ce   : > { %3735 = vmatpush1.bf16.msra.mxu1 %v3299_v40  ;;  %3632 = vmatprep.mubr.bf16.mxu1 %v8502_v29 }
 0x3cf   : > { %3736 = vmatprep.subr.bf16.mxu1 %v3290_v23  ;;  %3705 = vmatprep.mubr.bf16.mxu0 %v8502_v29 }
 0x3d2   : > { %3737 = vmatpush1.bf16.msra.mxu1 %v3289_v0 }
 0x3d3   : > { %3738 = vmatprep.subr.bf16.mxu1 %v3280_v42 }
 0x3d5   : > { %5928 = vmatmul.mubr.msk.bf16.gmra.mxu1 %vm1743_vm14, %v7503_v56  ;;  %5932 = vmatmul.mubr.msk.bf16.gmra.mxu0 %vm1743_vm14, %v7503_v56  ;;  %v7570_v7 = vpop.permute.xlu0 %3361 }
 0x3d6   : > { %3739 = vmatpush1.bf16.msra.mxu1 %v3279_v5  ;;  %3642 = vmatprep.mubr.bf16.mxu1 %v8502_v29 }
 0x3d7   : > { %3740 = vmatprep.subr.bf16.mxu1 %v3270_v44  ;;  %3715 = vmatprep.mubr.bf16.mxu0 %v8502_v29 }
 0x3d9   : > { %v7576_v33 = vpop.permute.xlu0 %3356 }
 0x3da   : > { %3741 = vmatpush1.bf16.msra.mxu1 %v3269_v32 }
 0x3dd   : > { %5929 = vmatmul.mubr.msk.bf16.gmra.mxu1 %vm1743_vm14, %v7515_v12  ;;  %5933 = vmatmul.mubr.msk.bf16.gmra.mxu0 %vm1743_vm14, %v7515_v12 }
 0x3de   : > { %3758 = vmatprep.mubr.bf16.mxu1 %v8502_v29  ;;  %3995 = vmatprep.mubr.bf16.mxu0 %v8502_v29 }
 0x3e2   : > { %v7582_v37 = vpop.permute.xlu1 %3331 }
 0x3e5   : > { %5934 = vmatmul.mubr.msk.bf16.vlgmr.msra.gmra.mxu1 %vm1743_vm14, %v7479_v14 }
 0x3e6   : > { %3768 = vmatprep.mubr.bf16.mxu1 %v8502_v29 }
 0x3ed   : > { %5935 = vmatmul.mubr.msk.bf16.gmra.mxu1 %vm1743_vm14, %v7492_v2 }
 0x3ee   : > { %3778 = vmatprep.mubr.bf16.mxu1 %v8502_v29 }
 0x3f5   : > { %5936 = vmatmul.mubr.msk.bf16.gmra.mxu1 %vm1743_vm14, %v7503_v56 }
 0x3f6   : > { %3788 = vmatprep.mubr.bf16.mxu1 %v8502_v29 }
 0x3fd   : > { %5937 = vmatmul.mubr.msk.bf16.gmra.mxu1 %vm1743_vm14, %v7515_v12  ;;  %v7580_v12 = vpop.permute.xlu0 %3346  ;;  %vm4611_vm14 = vcmask 1048208  }
 0x3fe   : > { %4048 = vmatprep.mubr.bf16.mxu1 %v8502_v29 }
 0x401   : > { %v7587_v26 = vpop.permute.xlu0 %3336 }
 0x465   : > { %v7560_v59 = vpop.f32.mrf.mxu1  ;;  %v3541_v14 = vpop.f32.mrf.mxu0 }
 0x466   : > { %v7590_v13 = vadd.f32 %v3541_v14, %v7582_v37 }
 0x467   : > { %v3470_v41 = vpop.f32.mrf.mxu1  ;;  %v3543_v4 = vpop.f32.mrf.mxu0 }
 0x468   : > { %v7585_v43 = vadd.f32 %v3470_v41, %v7582_v37  ;;  %v7593_v27 = vadd.f32 %v3543_v4, %v7582_v37 }
 0x469   : > { %v7562_v16 = vpop.f32.mrf.mxu1  ;;  %v7564_v2 = vpop.f32.mrf.mxu0 }
 0x46b   : > { %v3474_v53 = vpop.f32.mrf.mxu1  ;;  %v7568_v56 = vpop.f32.mrf.mxu0 }
 0x46c   : > { %v7596_v36 = vadd.f32 %v3474_v53, %v7587_v26 }
 0x46d   : > { %v7572_v49 = vpop.f32.mrf.mxu1  ;;  %v3551_v25 = vpop.f32.mrf.mxu0 }
 0x46e   : > { %v7599_v9 = vadd.f32 %v3551_v25, %v7578_v60 }
 0x46f   : > { %v3480_v58 = vpop.f32.mrf.mxu1  ;;  %v3553_v20 = vpop.f32.mrf.mxu0 }
 0x470   : > { %v7602_v51 = vadd.f32 %v3480_v58, %v7578_v60  ;;  %v7605_v28 = vadd.f32 %v3553_v20, %v7578_v60 }
 0x471   : > { %v3482_v8 = vpop.f32.mrf.mxu1  ;;  %v3555_v55 = vpop.f32.mrf.mxu0 }
 0x472   : > { %v7608_v23 = vadd.f32 %v3482_v8, %v7580_v12  ;;  %v7611_v11 = vadd.f32 %v3555_v55, %v7580_v12 }
 0x473   : > { %v3484_v21 = vpop.f32.mrf.mxu1  ;;  %v3557_v22 = vpop.f32.mrf.mxu0 }
 0x474   : > { %v7615_v15 = vadd.f32 %v3484_v21, %v7580_v12 }
 0x475   : > { %v3488_v34 = vpop.f32.mrf.mxu1  ;;  %v3561_v62 = vpop.f32.mrf.mxu0 }
 0x476   : > { %v7618_v0 = vadd.f32 %v3561_v62, %v7574_v47 }
 0x477   : > { %v3490_v45 = vpop.f32.mrf.mxu1  ;;  %v3563_v39 = vpop.f32.mrf.mxu0 }
 0x478   : > { %v3491_v31 = vadd.f32 %v3490_v45, %v7574_v47  ;;  %v3564_v50 = vadd.f32 %v3563_v39, %v7574_v47 }
 0x479   : > { %v3492_v52 = vpop.f32.mrf.mxu1  ;;  %v3565_v24 = vpop.f32.mrf.mxu0 }
 0x47a   : > { %v3493_v32 = vadd.f32 %v3492_v52, %v7576_v33  ;;  %v3566_v53 = vadd.f32 %v3565_v24, %v7576_v33  ;;  %v3489_v24 = vadd.f32 %v3488_v34, %v7574_v47  ;;  %v3548_v34 = vadd.f32 %v7568_v56, %v7587_v26 }
 0x47b   : > { %v3494_v10 = vpop.f32.mrf.mxu1  ;;  %v3567_v35 = vpop.f32.mrf.mxu0  ;;  %v3546_v56 = vadd.f32 %v7564_v2, %v7587_v26  ;;  %v3810_v2 = vmax.f32 %v7596_v36, 0.0 }
 0x47c   : > { %v3495_v38 = vadd.f32 %v3494_v10, %v7576_v33  ;;  %v3568_v3 = vadd.f32 %v3567_v35, %v7576_v33 }
 0x47d   : > { %v3498_v46 = vpop.f32.mrf.mxu1  ;;  %v3571_v18 = vpop.f32.mrf.mxu0  ;;  %v3811_v36 = vmax.f32 %v3546_v56, 0.0 }
 0x47e   : > { %v3572_v42 = vadd.f32 %v3571_v18, %v7570_v7  ;;  %v3499_v14 = vadd.f32 %v3498_v46, %v7570_v7  ;;  %v3850_v25 = vmax.f32 %v3495_v38, 0.0  ;;  %v3852_v8 = vmax.f32 %v3568_v3, 0.0 }
 0x47f   : > { %v3500_v6 = vpop.f32.mrf.mxu1  ;;  %v3573_v40 = vpop.f32.mrf.mxu0  ;;  %v3558_v18 = vadd.f32 %v3557_v22, %v7580_v12 }
 0x480   : > { %v3501_v54 = vadd.f32 %v3500_v6, %v7570_v7  ;;  %v3574_v5 = vadd.f32 %v3573_v40, %v7570_v7  ;;  %v3861_v55 = vmax.f32 %v3572_v42, 0.0  ;;  %v3841_v6 = vmax.f32 %v7618_v0, 0.0 }
 0x481   : > { %v3502_v30 = vpop.f32.mrf.mxu1  ;;  %v3575_v1 = vpop.f32.mrf.mxu0  ;;  %v3859_v40 = vmax.f32 %v3499_v14, 0.0  ;;  %v3840_v42 = vmax.f32 %v3491_v31, 0.0  ;;  %v3830_v0 = vmax.f32 %v7615_v15, 0.0  ;;  %v3473_v31 = vadd.f32 %v7562_v16, %v7587_v26 }
 0x482   : > { %v3503_v17 = vadd.f32 %v3502_v30, %v7566_v19  ;;  %v3576_v44 = vadd.f32 %v3575_v1, %v7566_v19  ;;  %v3860_v52 = vmax.f32 %v3501_v54, 0.0  ;;  %v3862_v10 = vmax.f32 %v3574_v5, 0.0 }
 0x483   : > { %v3504_v41 = vpop.f32.mrf.mxu1  ;;  %v3577_v4 = vpop.f32.mrf.mxu0  ;;  %v3842_v30 = vmax.f32 %v3564_v50, 0.0  ;;  %v3851_v54 = vmax.f32 %v3566_v53, 0.0  ;;  %v3900_v14 = vpack.c.bf16 %v3850_v25, %v3840_v42  ;;  %v3479_v50 = vadd.f32 %v7572_v49, %v7578_v60 }
 0x484   : > { %v3505_v58 = vadd.f32 %v3504_v41, %v7566_v19  ;;  %v3578_v20 = vadd.f32 %v3577_v4, %v7566_v19  ;;  %v3869_v21 = vmax.f32 %v3503_v17, 0.0  ;;  %v3871_v62 = vmax.f32 %v3576_v44, 0.0 }
 0x485   : > { %v7633_v45 = vpop.f32.mrf.mxu1  ;;  %v7635_v39 = vpop.f32.mrf.mxu0  ;;  %v3849_v44 = vmax.f32 %v3493_v32, 0.0  ;;  %v3832_v32 = vmax.f32 %v3558_v18, 0.0  ;;  %v3839_v53 = vmax.f32 %v3489_v24, 0.0  ;;  %v3821_v15 = vmax.f32 %v7599_v9, 0.0 }
 0x486   : > { %v3870_v35 = vmax.f32 %v3505_v58, 0.0  ;;  %v3872_v46 = vmax.f32 %v3578_v20, 0.0  ;;  %v3909_v5 = vpack.c.bf16 %v3869_v21, %v3859_v40  ;;  %v3911_v41 = vpack.c.bf16 %v3871_v62, %v3861_v55 }
 0x487   : > { %v7640_v38 = vpop.f32.mrf.mxu1  ;;  %v7642_v3 = vpop.f32.mrf.mxu0  ;;  %v3902_v58 = vpack.c.bf16 %v3852_v8, %v3842_v30  ;;  %v3820_v25 = vmax.f32 %v7602_v51, 0.0  ;;  %v3822_v16 = vmax.f32 %v7605_v28, 0.0  ;;  %v3829_v49 = vmax.f32 %v7608_v23, 0.0 }
 0x488   : > { %v3910_v1 = vpack.c.bf16 %v3870_v35, %v3860_v52  ;;  %v3912_v17 = vpack.c.bf16 %v3872_v46, %v3862_v10  ;;  %v3831_v8 = vmax.f32 %v7611_v11, 0.0  ;;  %v3899_v21 = vpack.c.bf16 %v3849_v44, %v3839_v53 }
 0x489   : > { %v7644_v4 = vpop.f32.mrf.mxu1  ;;  %v7646_v22 = vpop.f32.mrf.mxu0  ;;  %v3901_v62 = vpack.c.bf16 %v3851_v54, %v3841_v6  ;;  %v3812_v35 = vmax.f32 %v3548_v34, 0.0  ;;  %v3890_v9 = vpack.c.bf16 %v3830_v0, %v3820_v25  ;;  %v3469_v51 = vadd.f32 %v7560_v59, %v7582_v37  ;;  %v7679_v0 = vld [vmem:[%s8383_s4] sm:$0xff]  }
 0x48a   : > { %3971 = vmatprep.subr.bf16.mxu0 %v3910_v1  ;;  %4024 = vmatprep.subr.bf16.mxu1 %v3912_v17  ;;  %v3819_v28 = vmax.f32 %v3479_v50, 0.0  ;;  %v3892_v46 = vpack.c.bf16 %v3832_v32, %v3822_v16  ;;  %v3800_v23 = vmax.f32 %v7585_v43, 0.0  ;;  %v3802_v11 = vmax.f32 %v7593_v27, 0.0 }
 0x48b   : > { %v7655_v20 = vpop.f32.mrf.mxu1  ;;  %v7657_v55 = vpop.f32.mrf.mxu0  ;;  %3972 = vmatpush1.bf16.msra.mxu0 %v3909_v5  ;;  %4025 = vmatpush1.bf16.msra.mxu1 %v3911_v41  ;;  %v3801_v6 = vmax.f32 %v7590_v13, 0.0  ;;  %v3809_v40 = vmax.f32 %v3473_v31, 0.0  ;;  %v3891_v30 = vpack.c.bf16 %v3831_v8, %v3821_v15  ;;  %v3799_v54 = vmax.f32 %v3469_v51, 0.0 }
 0x48c   : > { %3973 = vmatprep.subr.bf16.mxu0 %v3900_v14  ;;  %4026 = vmatprep.subr.bf16.mxu1 %v3902_v58  ;;  %v3889_v42 = vpack.c.bf16 %v3829_v49, %v3819_v28  ;;  %v3880_v17 = vpack.c.bf16 %v3810_v2, %v3800_v23  ;;  %v3882_v44 = vpack.c.bf16 %v3812_v35, %v3802_v11  ;;  %v7698_v49 = vld [vmem:[%s8383_s4 + $0x8] sm:$0xff]  }
 0x48d   : > { %v7666_v52 = vpop.f32.mrf.mxu1  ;;  %v7668_v10 = vpop.f32.mrf.mxu0  ;;  %v3879_v43 = vpack.c.bf16 %v3809_v40, %v3799_v54  ;;  %v3881_v27 = vpack.c.bf16 %v3811_v36, %v3801_v6  ;;  %v7689_v25 = vadd.f32 %v7640_v38, %v7582_v37  ;;  %v7693_v16 = vadd.f32 %v7642_v3, %v7582_v37 }
 0x48e   : > { %v7702_v8 = vadd.f32 %v7655_v20, %v7587_v26 }
 0x48f   : > { %v3626_v18 = vpop.f32.mrf.mxu1  ;;  %v3699_v24 = vpop.f32.mrf.mxu0  ;;  %3974 = vmatpush1.bf16.msra.mxu0 %v3899_v21  ;;  %4027 = vmatpush1.bf16.msra.mxu1 %v3901_v62  ;;  %v7706_v21 = vadd.f32 %v7657_v55, %v7587_v26 }
 0x490   : > { %3975 = vmatprep.subr.bf16.mxu0 %v3890_v9  ;;  %4028 = vmatprep.subr.bf16.mxu1 %v3892_v46  ;;  %v7709_v38 = vadd.f32 %v3626_v18, %v7578_v60  ;;  %v7712_v62 = vadd.f32 %v3699_v24, %v7578_v60 }
 0x491   : > { %v3628_v1 = vpop.f32.mrf.mxu1  ;;  %v3701_v59 = vpop.f32.mrf.mxu0 }
 0x492   : > { %v7715_v35 = vadd.f32 %v3628_v1, %v7580_v12  ;;  %v7718_v9 = vadd.f32 %v3701_v59, %v7580_v12 }
 0x493   : > { %v3630_v5 = vpop.f32.mrf.mxu1  ;;  %v3703_v41 = vpop.f32.mrf.mxu0  ;;  %3976 = vmatpush1.bf16.msra.mxu0 %v3889_v42  ;;  %4029 = vmatpush1.bf16.msra.mxu1 %v3891_v30 }
 0x494   : > { %3977 = vmatprep.subr.bf16.mxu0 %v3880_v17  ;;  %4030 = vmatprep.subr.bf16.mxu1 %v3882_v44  ;;  %v7721_v20 = vadd.f32 %v3630_v5, %v7580_v12  ;;  %v7724_v55 = vadd.f32 %v3703_v41, %v7580_v12 }
 0x495   : > { %v3634_v13 = vpop.f32.mrf.mxu1  ;;  %v3707_v34 = vpop.f32.mrf.mxu0 }
 0x497   : > { %v3636_v14 = vpop.f32.mrf.mxu1  ;;  %v3709_v58 = vpop.f32.mrf.mxu0  ;;  %3978 = vmatpush1.bf16.msra.mxu0 %v3879_v43  ;;  %4031 = vmatpush1.bf16.msra.mxu1 %v3881_v27 }
 0x498   : > { %v3637_v51 = vadd.f32 %v3636_v14, %v7574_v47  ;;  %v3710_v36 = vadd.f32 %v3709_v58, %v7574_v47 }
 0x499   : > { %v3638_v31 = vpop.f32.mrf.mxu1  ;;  %v3711_v50 = vpop.f32.mrf.mxu0 }
 0x49a   : > { %5940 = vmatmul.mubr.msk.bf16.vlgmr.msra.gmra.mxu0 %vm2957_vm13, %v7679_v0  ;;  %5942 = vmatmul.mubr.msk.bf16.vlgmr.msra.gmra.mxu1 %vm2957_vm13, %v7679_v0  ;;  %v3639_v17 = vadd.f32 %v3638_v31, %v7576_v33  ;;  %v3712_v44 = vadd.f32 %v3711_v50, %v7576_v33  ;;  %v3708_v31 = vadd.f32 %v3707_v34, %v7574_v47 }
 0x49b   : > { %v3640_v32 = vpop.f32.mrf.mxu1  ;;  %v3713_v53 = vpop.f32.mrf.mxu0  ;;  %4005 = vmatprep.mubr.bf16.mxu0 %v8502_v29  ;;  %4058 = vmatprep.mubr.bf16.mxu1 %v8502_v29 }
 0x49c   : > { %v3641_v28 = vadd.f32 %v3640_v32, %v7576_v33  ;;  %v3714_v46 = vadd.f32 %v3713_v53, %v7576_v33 }
 0x49d   : > { %v3644_v56 = vpop.f32.mrf.mxu1  ;;  %v3717_v15 = vpop.f32.mrf.mxu0 }
 0x49e   : > { %v3645_v42 = vadd.f32 %v3644_v56, %v7570_v7  ;;  %v3718_v30 = vadd.f32 %v3717_v15, %v7570_v7  ;;  %v3854_v41 = vmax.f32 %v3641_v28, 0.0  ;;  %v3856_v43 = vmax.f32 %v3714_v46, 0.0 }
 0x49f   : > { %v3646_v3 = vpop.f32.mrf.mxu1  ;;  %v3719_v2 = vpop.f32.mrf.mxu0 }
 0x4a0   : > { %v3647_v18 = vadd.f32 %v3646_v3, %v7570_v7  ;;  %v3720_v11 = vadd.f32 %v3719_v2, %v7570_v7  ;;  %v3635_v3 = vadd.f32 %v3634_v13, %v7574_v47  ;;  %v3863_v2 = vmax.f32 %v3645_v42, 0.0 }
 0x4a1   : > { %v3648_v24 = vpop.f32.mrf.mxu1  ;;  %v3721_v23 = vpop.f32.mrf.mxu0  ;;  %v3865_v50 = vmax.f32 %v3718_v30, 0.0  ;;  %v3836_v13 = vmax.f32 %v7724_v55, 0.0  ;;  %v3845_v30 = vmax.f32 %v3708_v31, 0.0  ;;  %v3692_v55 = vadd.f32 %v7646_v22, %v7587_v26 }
 0x4a2   : > { %v3649_v6 = vadd.f32 %v3648_v24, %v7566_v19  ;;  %v3722_v40 = vadd.f32 %v3721_v23, %v7566_v19  ;;  %5941 = vmatmul.mubr.msk.bf16.gmra.mxu0 %vm2957_vm13, %v7698_v49  ;;  %5943 = vmatmul.mubr.msk.bf16.gmra.mxu1 %vm2957_vm13, %v7698_v49  ;;  %v3864_v32 = vmax.f32 %v3647_v18, 0.0  ;;  %v3866_v53 = vmax.f32 %v3720_v11, 0.0 }
 0x4a3   : > { %v3650_v1 = vpop.f32.mrf.mxu1  ;;  %v3723_v59 = vpop.f32.mrf.mxu0  ;;  %4101 = vmatprep.mubr.bf16.mxu0 %v8502_v29  ;;  %4154 = vmatprep.mubr.bf16.mxu1 %v8502_v29  ;;  %v3844_v23 = vmax.f32 %v3637_v51, 0.0  ;;  %v3834_v11 = vmax.f32 %v7721_v20, 0.0  ;;  %v3625_v51 = vadd.f32 %v7666_v52, %v7578_v60  ;;  %v3843_v42 = vmax.f32 %v3635_v3, 0.0 }
 0x4a4   : > { %v3651_v54 = vadd.f32 %v3650_v1, %v7566_v19  ;;  %v3724_v5 = vadd.f32 %v3723_v59, %v7566_v19  ;;  %v3873_v27 = vmax.f32 %v3649_v6, 0.0  ;;  %v3875_v14 = vmax.f32 %v3722_v40, 0.0 }
 0x4a5   : > { %v7746_v58 = vpop.f32.mrf.mxu1  ;;  %v3846_v1 = vmax.f32 %v3710_v36, 0.0  ;;  %v3853_v6 = vmax.f32 %v3639_v17, 0.0  ;;  %v3855_v40 = vmax.f32 %v3712_v44, 0.0  ;;  %v3698_v36 = vadd.f32 %v7668_v10, %v7578_v60 }
 0x4a6   : > { %v3874_v56 = vmax.f32 %v3651_v54, 0.0  ;;  %v3876_v15 = vmax.f32 %v3724_v5, 0.0  ;;  %v3913_v59 = vpack.c.bf16 %v3873_v27, %v3863_v2  ;;  %v3915_v61 = vpack.c.bf16 %v3875_v14, %v3865_v50 }
 0x4a7   : > { %v7750_v24 = vpop.f32.mrf.mxu1  ;;  %v3904_v54 = vpack.c.bf16 %v3854_v41, %v3844_v23  ;;  %v3906_v34 = vpack.c.bf16 %v3856_v43, %v3846_v1  ;;  %v3619_v20 = vadd.f32 %v7644_v4, %v7587_v26  ;;  %v3824_v44 = vmax.f32 %v7709_v38, 0.0 }
 0x4a8   : > { %v3914_v28 = vpack.c.bf16 %v3874_v56, %v3864_v32  ;;  %v3916_v46 = vpack.c.bf16 %v3876_v15, %v3866_v53  ;;  %v3826_v5 = vmax.f32 %v7712_v62, 0.0  ;;  %v3833_v52 = vmax.f32 %v7715_v35, 0.0 }
 0x4a9   : > { %v7752_v18 = vpop.f32.mrf.mxu1  ;;  %v3835_v10 = vmax.f32 %v7718_v9, 0.0  ;;  %v3903_v41 = vpack.c.bf16 %v3853_v6, %v3843_v42  ;;  %v3905_v43 = vpack.c.bf16 %v3855_v40, %v3845_v30  ;;  %v3816_v4 = vmax.f32 %v7706_v21, 0.0 }
 0x4aa   : > { %4077 = vmatprep.subr.bf16.mxu0 %v3914_v28  ;;  %4130 = vmatprep.subr.bf16.mxu1 %v3916_v46  ;;  %v3894_v14 = vpack.c.bf16 %v3834_v11, %v3824_v44  ;;  %v3896_v22 = vpack.c.bf16 %v3836_v13, %v3826_v5  ;;  %v3615_v38 = vadd.f32 %v7633_v45, %v7582_v37  ;;  %v3823_v32 = vmax.f32 %v3625_v51, 0.0 }
 0x4ab   : > { %v7760_v17 = vpop.f32.mrf.mxu1  ;;  %4078 = vmatpush1.bf16.msra.mxu0 %v3913_v59  ;;  %4131 = vmatpush1.bf16.msra.mxu1 %v3915_v61  ;;  %v3814_v61 = vmax.f32 %v7702_v8, 0.0  ;;  %v3688_v62 = vadd.f32 %v7635_v39, %v7582_v37  ;;  %v3825_v35 = vmax.f32 %v3698_v36, 0.0  ;;  %v3804_v9 = vmax.f32 %v7689_v25, 0.0 }
 0x4ac   : > { %4079 = vmatprep.subr.bf16.mxu0 %v3904_v54  ;;  %4132 = vmatprep.subr.bf16.mxu1 %v3906_v34  ;;  %v3806_v56 = vmax.f32 %v7693_v16, 0.0  ;;  %v3813_v8 = vmax.f32 %v3619_v20, 0.0  ;;  %v3815_v21 = vmax.f32 %v3692_v55, 0.0  ;;  %v3893_v15 = vpack.c.bf16 %v3833_v52, %v3823_v32 }
 0x4ad   : > { %v7770_v27 = vpop.f32.mrf.mxu1  ;;  %v3895_v3 = vpack.c.bf16 %v3835_v10, %v3825_v35  ;;  %v3884_v45 = vpack.c.bf16 %v3814_v61, %v3804_v9  ;;  %v3803_v50 = vmax.f32 %v3615_v38, 0.0  ;;  %v3805_v39 = vmax.f32 %v3688_v62, 0.0 }
 0x4ae   : > { %v3886_v2 = vpack.c.bf16 %v3816_v4, %v3806_v56  ;;  %v3771_v62 = vadd.f32 %v7770_v27, %v7578_v60  ;;  %v3763_v32 = vadd.f32 %v7750_v24, %v7582_v37 }
 0x4af   : > { %v3772_v53 = vpop.f32.mrf.mxu1  ;;  %4080 = vmatpush1.bf16.msra.mxu0 %v3903_v41  ;;  %4133 = vmatpush1.bf16.msra.mxu1 %v3905_v43  ;;  %v3883_v1 = vpack.c.bf16 %v3813_v8, %v3803_v50  ;;  %v3885_v25 = vpack.c.bf16 %v3815_v21, %v3805_v39  ;;  %v3761_v8 = vadd.f32 %v7746_v58, %v7582_v37  ;;  %v6284_v37 = vmov 0.0   ;;  %v7831_v58 = vpop.permute.xlu1 %3944 }
 0x4b0   : > { %4081 = vmatprep.subr.bf16.mxu0 %v3894_v14  ;;  %4134 = vmatprep.subr.bf16.mxu1 %v3896_v22  ;;  %v3773_v43 = vadd.f32 %v3772_v53, %v7578_v60  ;;  %v3827_v60 = vmax.f32 %v3771_v62, 0.0  ;;  %v3808_v27 = vmax.f32 %v3763_v32, 0.0  ;;  %4362 = vst [vmem:[#allocation4] sm:$0xff] %v6284_v37  ;;  %4372 = vst [vmem:[#allocation4 + $0x50] sm:$0xff] %v6284_v37 }
 0x4b1   : > { %v3774_v31 = vpop.f32.mrf.mxu1  ;;  %4375 = vst [vmem:[#allocation4 + $0x60] sm:$0xff] %v6284_v37  ;;  %4385 = vst [vmem:[#allocation4 + $0xb0] sm:$0xff] %v6284_v37 }
 0x4b2   : > { %v3828_v35 = vmax.f32 %v3773_v43, 0.0  ;;  %4387 = vst [vmem:[#allocation4 + $0xc0] sm:$0xff] %v6284_v37  ;;  %4397 = vst [vmem:[#allocation4 + $0x110] sm:$0xff] %v6284_v37 }
 0x4b3   : > { %v3776_v23 = vpop.f32.mrf.mxu1  ;;  %4082 = vmatpush1.bf16.msra.mxu0 %v3893_v15  ;;  %4135 = vmatpush1.bf16.msra.mxu1 %v3895_v3  ;;  %v3807_v3 = vmax.f32 %v3761_v8, 0.0  ;;  %4399 = vst [vmem:[#allocation4 + $0x120] sm:$0xff] %v6284_v37  ;;  %4409 = vst [vmem:[#allocation4 + $0x170] sm:$0xff] %v6284_v37 }
 0x4b4   : > { %4083 = vmatprep.subr.bf16.mxu0 %v3884_v45  ;;  %4136 = vmatprep.subr.bf16.mxu1 %v3886_v2  ;;  %v3777_v44 = vadd.f32 %v3776_v23, %v7580_v12  ;;  %v4282_v23 = vsub.s32 2, %v6397_v48 }
 0x4b5   : > { %v3780_v28 = vpop.f32.mrf.mxu1 }
 0x4b6   : > { %v3781_v41 = vadd.f32 %v3780_v28, %v7574_v47 }
 0x4b7   : > { %v3782_v16 = vpop.f32.mrf.mxu1  ;;  %4084 = vmatpush1.bf16.msra.mxu0 %v3883_v1  ;;  %4137 = vmatpush1.bf16.msra.mxu1 %v3885_v25 }
 0x4b8   : > { %v3783_v42 = vadd.f32 %v3782_v16, %v7574_v47  ;;  %v3847_v47 = vmax.f32 %v3781_v41, 0.0 }
 0x4b9   : > { %v3784_v46 = vpop.f32.mrf.mxu1 }
 0x4ba   : > { %5944 = vmatmul.mubr.msk.bf16.vlgmr.msra.gmra.mxu0 %vm2957_vm13, %v7679_v0  ;;  %5946 = vmatmul.mubr.msk.bf16.vlgmr.msra.gmra.mxu1 %vm2957_vm13, %v7679_v0  ;;  %v3785_v20 = vadd.f32 %v3784_v46, %v7576_v33  ;;  %v3848_v61 = vmax.f32 %v3783_v42, 0.0 }
 0x4bb   : > { %v3786_v6 = vpop.f32.mrf.mxu1  ;;  %4111 = vmatprep.mubr.bf16.mxu0 %v8502_v29  ;;  %4164 = vmatprep.mubr.bf16.mxu1 %v8502_v29 }
 0x4bc   : > { %v3787_v13 = vadd.f32 %v3786_v6, %v7576_v33  ;;  %v3857_v14 = vmax.f32 %v3785_v20, 0.0  ;;  %v3838_v33 = vmax.f32 %v3777_v44, 0.0 }
 0x4bd   : > { %v3790_v40 = vpop.f32.mrf.mxu1 }
 0x4be   : > { %v3791_v51 = vadd.f32 %v3790_v40, %v7570_v7  ;;  %v3858_v5 = vmax.f32 %v3787_v13, 0.0  ;;  %v3907_v53 = vpack.c.bf16 %v3857_v14, %v3847_v47  ;;  %v3898_v56 = vpack.c.bf16 %v3838_v33, %v3828_v35  ;;  %v7849_v13 = vpop.permute.xlu1 %3934 }
 0x4bf   : > { %v3792_v59 = vpop.f32.mrf.mxu1  ;;  %v4286_v40 = vsub.s32 3, %v6397_v48 }
 0x4c0   : > { %v3793_v54 = vadd.f32 %v3792_v59, %v7570_v7  ;;  %v3867_v7 = vmax.f32 %v3791_v51, 0.0  ;;  %v3908_v38 = vpack.c.bf16 %v3858_v5, %v3848_v61 }
 0x4c1   : > { %v3794_v11 = vpop.f32.mrf.mxu1 }
 0x4c2   : > { %v3795_v34 = vadd.f32 %v3794_v11, %v7566_v19  ;;  %5945 = vmatmul.mubr.msk.bf16.gmra.mxu0 %vm2957_vm13, %v7698_v49  ;;  %5947 = vmatmul.mubr.msk.bf16.gmra.mxu1 %vm2957_vm13, %v7698_v49  ;;  %v3868_v52 = vmax.f32 %v3793_v54, 0.0 }
 0x4c3   : > { %v3796_v36 = vpop.f32.mrf.mxu1  ;;  %4207 = vmatprep.mubr.bf16.mxu0 %v8502_v29  ;;  %4217 = vmatprep.mubr.bf16.mxu1 %v8502_v29  ;;  %v3775_v29 = vadd.f32 %v3774_v31, %v7580_v12  ;;  %v3765_v12 = vadd.f32 %v7752_v18, %v7587_v26 }
 0x4c4   : > { %v3797_v30 = vadd.f32 %v3796_v36, %v7566_v19  ;;  %v3877_v55 = vmax.f32 %v3795_v34, 0.0  ;;  %v3767_v19 = vadd.f32 %v7760_v17, %v7587_v26 }
 0x4c5   : > { %v3837_v17 = vmax.f32 %v3775_v29, 0.0  ;;  %v3817_v24 = vmax.f32 %v3765_v12, 0.0 }
 0x4c6   : > { %v3878_v10 = vmax.f32 %v3797_v30, 0.0  ;;  %v3917_v22 = vpack.c.bf16 %v3877_v55, %v3867_v7  ;;  %v3818_v9 = vmax.f32 %v3767_v19, 0.0 }
 0x4c7   : > { %v3897_v21 = vpack.c.bf16 %v3837_v17, %v3827_v60  ;;  %v3887_v26 = vpack.c.bf16 %v3817_v24, %v3807_v3 }
 0x4c8   : > { %v3918_v4 = vpack.c.bf16 %v3878_v10, %v3868_v52  ;;  %v3888_v15 = vpack.c.bf16 %v3818_v9, %v3808_v27 }
 0x4ca   : > { %4183 = vmatprep.subr.bf16.mxu0 %v3918_v4  ;;  %6011 = vmatprep.subr.bf16.mxu1 %v3918_v4 }
 0x4cb   : > { %4184 = vmatpush1.bf16.msra.mxu0 %v3917_v22  ;;  %6015 = vmatpush1.bf16.msra.mxu1 %v3917_v22 }
 0x4cc   : > { %4185 = vmatprep.subr.bf16.mxu0 %v3908_v38  ;;  %6012 = vmatprep.subr.bf16.mxu1 %v3908_v38 }
 0x4cf   : > { %4186 = vmatpush1.bf16.msra.mxu0 %v3907_v53  ;;  %6016 = vmatpush1.bf16.msra.mxu1 %v3907_v53 }
 0x4d0   : > { %4187 = vmatprep.subr.bf16.mxu0 %v3898_v56  ;;  %6013 = vmatprep.subr.bf16.mxu1 %v3898_v56 }
 0x4d3   : > { %4188 = vmatpush1.bf16.msra.mxu0 %v3897_v21  ;;  %6017 = vmatpush1.bf16.msra.mxu1 %v3897_v21 }
 0x4d4   : > { %4189 = vmatprep.subr.bf16.mxu0 %v3888_v15  ;;  %6014 = vmatprep.subr.bf16.mxu1 %v3888_v15 }
 0x4d7   : > { %4190 = vmatpush1.bf16.msra.mxu0 %v3887_v26  ;;  %6018 = vmatpush1.bf16.msra.mxu1 %v3887_v26 }
 0x4da   : > { %5948 = vmatmul.mubr.msk.bf16.vlgmr.msra.gmra.mxu0 %vm2957_vm13, %v7679_v0  ;;  %5949 = vmatmul.mubr.msk.bf16.vlgmr.msra.gmra.mxu1 %vm2957_vm13, %v7698_v49  ;;  %v7827_v0 = vpop.permute.xlu0 %3939  ;;  %v7829_v49 = vld [vmem:[#allocation9] sm:$0xff]  ;;  %vm4373_vm13 = vcmask 588800  }
 0x4db   : > { %4785 = vmatprep.mubr.f32.mxu1 %v6284_v37  ;;  %4874 = vmatprep.mubr.f32.mxu0 %v6284_v37  ;;  %v7838_v50 = vrot.slane %v7829_v49, %v6406_v63  ;;  %v7844_v25 = vrot.slane %v7829_v49, %v6403_v57  ;;  %v7853_v51 = vrot.slane %v7829_v49, %v4282_v23 }
 0x4dc   : > { %v7858_v44 = vrot.slane %v7829_v49, %v4286_v40  ;;  %4410 = vst.msk [vmem:[#allocation4 + $0x178] sm:$0xff] %vm4373_vm13, %v6284_v37  ;;  %4374 = vst.msk [vmem:[#allocation4 + $0x58] sm:$0xff] %vm4373_vm13, %v6284_v37 }
 0x4dd   : > { %4386 = vst.msk [vmem:[#allocation4 + $0xb8] sm:$0xff] %vm4373_vm13, %v6284_v37  ;;  %4398 = vst.msk [vmem:[#allocation4 + $0x118] sm:$0xff] %vm4373_vm13, %v6284_v37 }
 0x4de   : > { %v7833_v18 = vpop.permute.xlu0 %3929 }
 0x55a   : > { %v3997_v31 = vpop.f32.mrf.mxu0  ;;  %v4050_v45 = vpop.f32.mrf.mxu1 }
 0x55b   : > { %v3998_v2 = vadd.f32 %v3997_v31, %v7833_v18  ;;  %v4051_v39 = vadd.f32 %v4050_v45, %v7833_v18 }
 0x55c   : > { %v3999_v1 = vpop.f32.mrf.mxu0  ;;  %v4052_v28 = vpop.f32.mrf.mxu1 }
 0x55d   : > { %v4228_v16 = vmax.f32 %v3998_v2, 0.0  ;;  %v4000_v46 = vadd.f32 %v3999_v1, %v7833_v18  ;;  %v4053_v6 = vadd.f32 %v4052_v28, %v7833_v18  ;;  %v4230_v34 = vmax.f32 %v4051_v39, 0.0 }
 0x55e   : > { %v4001_v59 = vpop.f32.mrf.mxu0  ;;  %v4054_v11 = vpop.f32.mrf.mxu1 }
 0x55f   : > { %v4322_v54 = vmul.f32 %v7838_v50, %v4228_v16  ;;  %v4229_v36 = vmax.f32 %v4000_v46, 0.0  ;;  %v4002_v42 = vadd.f32 %v4001_v59, %v7849_v13  ;;  %v4231_v55 = vmax.f32 %v4053_v6, 0.0 }
 0x560   : > { %v4003_v30 = vpop.f32.mrf.mxu0  ;;  %v4056_v52 = vpop.f32.mrf.mxu1  ;;  %v4324_v41 = vmul.f32 %v7853_v51, %v4230_v34  ;;  %v4055_v43 = vadd.f32 %v4054_v11, %v7849_v13  ;;  %v4290_v59 = vsub.s32 4, %v6397_v48  ;;  %v4294_v34 = vsub.s32 5, %v6397_v48 }
 0x561   : > { %v4323_v20 = vmul.f32 %v7844_v25, %v4229_v36  ;;  %v4004_v5 = vadd.f32 %v4003_v30, %v7849_v13  ;;  %4451 = vrot.lane.b32.xlu1 %v4322_v54, %s6283_s21  ;;  %v4238_v7 = vmax.f32 %v4002_v42, 0.0  ;;  %v4325_v61 = vmul.f32 %v7858_v44, %v4231_v55 }
 0x562   : > { %v4007_v10 = vpop.f32.mrf.mxu0  ;;  %v4057_v29 = vadd.f32 %v4056_v52, %v7849_v13  ;;  %v4060_v14 = vpop.f32.mrf.mxu1  ;;  %v4240_v33 = vmax.f32 %v4055_v43, 0.0 }
 0x563   : > { %4453 = vrot.lane.b32.xlu0 %v4323_v20, %s6283_s21  ;;  %v4239_v4 = vmax.f32 %v4004_v5, 0.0  ;;  %v4332_v19 = vmul.f32 %v7838_v50, %v4238_v7  ;;  %v4008_v38 = vadd.f32 %v4007_v10, %v7827_v0  ;;  %v4061_v9 = vadd.f32 %v4060_v14, %v7827_v0 }
 0x564   : > { %v4009_v22 = vpop.f32.mrf.mxu0  ;;  %v4241_v47 = vmax.f32 %v4057_v29, 0.0  ;;  %v4062_v35 = vpop.f32.mrf.mxu1  ;;  %v4334_v17 = vmul.f32 %v7853_v51, %v4240_v33 }
 0x565   : > { %4455 = vrot.lane.b32.xlu1 %v4324_v41, %s6283_s21  ;;  %v4333_v62 = vmul.f32 %v7844_v25, %v4239_v4  ;;  %v4010_v32 = vadd.f32 %v4009_v22, %v7827_v0  ;;  %v4248_v53 = vmax.f32 %v4008_v38, 0.0  ;;  %v4063_v60 = vadd.f32 %v4062_v35, %v7827_v0 }
 0x566   : > { %v4011_v12 = vpop.f32.mrf.mxu0  ;;  %v4335_v56 = vmul.f32 %v7858_v44, %v4241_v47  ;;  %v4064_v27 = vpop.f32.mrf.mxu1  ;;  %v4250_v15 = vmax.f32 %v4061_v9, 0.0  ;;  %v7911_v41 = vrot.slane %v7829_v49, %v4294_v34  ;;  %v4298_v38 = vsub.s32 6, %v6397_v48 }
 0x567   : > { %4457 = vrot.lane.b32.xlu0 %v4325_v61, %s6283_s21  ;;  %v4249_v8 = vmax.f32 %v4010_v32, 0.0  ;;  %v4342_v21 = vmul.f32 %v7838_v50, %v4248_v53  ;;  %v4012_v3 = vadd.f32 %v4011_v12, %v7831_v58  ;;  %v4251_v31 = vmax.f32 %v4063_v60, 0.0 }
 0x568   : > { %v4013_v24 = vpop.f32.mrf.mxu0  ;;  %v4066_v2 = vpop.f32.mrf.mxu1  ;;  %v4344_v39 = vmul.f32 %v7853_v51, %v4250_v15  ;;  %v4065_v1 = vadd.f32 %v4064_v27, %v7831_v58  ;;  %v4302_v35 = vsub.s32 7, %v6397_v48  ;;  %v4299_v27 = vrot.slane %v7829_v49, %v4298_v38 }
 0x569   : > { %4471 = vrot.lane.b32.xlu1 %v4332_v19, %s6283_s21  ;;  %v4343_v26 = vmul.f32 %v7844_v25, %v4249_v8  ;;  %v4014_v45 = vadd.f32 %v4013_v24, %v7831_v58  ;;  %v4258_v23 = vmax.f32 %v4012_v3, 0.0  ;;  %v4345_v28 = vmul.f32 %v7858_v44, %v4251_v31 }
 0x56a   : > { %v4067_v46 = vadd.f32 %v4066_v2, %v7831_v58  ;;  %v4260_v40 = vmax.f32 %v4065_v1, 0.0  ;;  %v4303_v15 = vrot.slane %v7829_v49, %v4302_v35 }
 0x56b   : > { %4473 = vrot.lane.b32.xlu0 %v4333_v62, %s6283_s21  ;;  %v4259_v16 = vmax.f32 %v4014_v45, 0.0  ;;  %v4352_v6 = vmul.f32 %v7838_v50, %v4258_v23  ;;  %v7903_v50 = vrot.slane %v7829_v49, %v4290_v59 }
 0x56c   : > { %v4261_v54 = vmax.f32 %v4067_v46, 0.0  ;;  %v4354_v30 = vmul.f32 %v7853_v51, %v4260_v40 }
 0x56d   : > { %4475 = vrot.lane.b32.xlu1 %v4334_v17, %s6283_s21  ;;  %v4353_v11 = vmul.f32 %v7844_v25, %v4259_v16 }
 0x56e   : > { %v4355_v25 = vmul.f32 %v7858_v44, %v4261_v54 }
 0x56f   : > { %4477 = vrot.lane.b32.xlu0 %v4335_v56, %s6283_s21 }
 0x571   : > { %4491 = vrot.lane.b32.xlu1 %v4342_v21, %s6283_s21 }
 0x573   : > { %4493 = vrot.lane.b32.xlu0 %v4343_v26, %s6283_s21 }
 0x575   : > { %4495 = vrot.lane.b32.xlu1 %v4344_v39, %s6283_s21 }
 0x577   : > { %4497 = vrot.lane.b32.xlu0 %v4345_v28, %s6283_s21 }
 0x579   : > { %4511 = vrot.lane.b32.xlu1 %v4352_v6, %s6283_s21 }
 0x57a   : > { %v4103_v36 = vpop.f32.mrf.mxu0  ;;  %v7898_v42 = vpop.f32.mrf.mxu1 }
 0x57b   : > { %v4104_v20 = vadd.f32 %v4103_v36, %v7833_v18  ;;  %4513 = vrot.lane.b32.xlu0 %v4353_v11, %s6283_s21 }
 0x57c   : > { %v4105_v55 = vpop.f32.mrf.mxu0  ;;  %v7906_v5 = vpop.f32.mrf.mxu1 }
 0x57d   : > { %v4232_v52 = vmax.f32 %v4104_v20, 0.0  ;;  %v4106_v10 = vadd.f32 %v4105_v55, %v7833_v18  ;;  %4515 = vrot.lane.b32.xlu1 %v4354_v30, %s6283_s21  ;;  %v4157_v55 = vadd.f32 %v7898_v42, %v7833_v18 }
 0x57e   : > { %v4107_v51 = vpop.f32.mrf.mxu0  ;;  %v4160_v7 = vpop.f32.mrf.mxu1 }
 0x57f   : > { %v4326_v43 = vmul.f32 %v7903_v50, %v4232_v52  ;;  %v4233_v61 = vmax.f32 %v4106_v10, 0.0  ;;  %4517 = vrot.lane.b32.xlu0 %v4355_v25, %s6283_s21  ;;  %v4108_v4 = vadd.f32 %v4107_v51, %v7849_v13  ;;  %v4161_v29 = vadd.f32 %v4160_v7, %v7849_v13 }
 0x580   : > { %v4109_v44 = vpop.f32.mrf.mxu0  ;;  %v4162_v14 = vpop.f32.mrf.mxu1  ;;  %v4159_v10 = vadd.f32 %v7906_v5, %v7833_v18 }
 0x581   : > { %v4327_v22 = vmul.f32 %v7911_v41, %v4233_v61  ;;  %v4110_v19 = vadd.f32 %v4109_v44, %v7849_v13  ;;  %v4163_v33 = vadd.f32 %v4162_v14, %v7849_v13  ;;  %4459 = vrot.lane.b32.xlu1 %v4326_v43, %s6283_s21  ;;  %v4242_v62 = vmax.f32 %v4108_v4, 0.0  ;;  %v4269_v4 = vld [vmem:[#allocation9 + $0x8] sm:$0x3] }
 0x582   : > { %v4113_v47 = vpop.f32.mrf.mxu0  ;;  %v4166_v32 = vpop.f32.mrf.mxu1  ;;  %v4244_v53 = vmax.f32 %v4161_v29, 0.0  ;;  %v4234_v43 = vmax.f32 %v4157_v55, 0.0  ;;  %v4235_v29 = vmax.f32 %v4159_v10, 0.0  ;;  %v4307_v14 = vrot.slane %v4269_v4, %v6406_v63 }
 0x583   : > { %v4243_v12 = vmax.f32 %v4110_v19, 0.0  ;;  %4461 = vrot.lane.b32.xlu0 %v4327_v22, %s6283_s21  ;;  %v4336_v17 = vmul.f32 %v7903_v50, %v4242_v62  ;;  %v4114_v9 = vadd.f32 %v4113_v47, %v7827_v0  ;;  %v4245_v60 = vmax.f32 %v4163_v33, 0.0 }
 0x584   : > { %v4115_v56 = vpop.f32.mrf.mxu0  ;;  %v4168_v21 = vpop.f32.mrf.mxu1  ;;  %v4338_v3 = vmul.f32 %v4299_v27, %v4244_v53  ;;  %v4167_v31 = vadd.f32 %v4166_v32, %v7827_v0  ;;  %v4329_v33 = vmul.f32 %v4303_v15, %v4235_v29  ;;  %v4311_v62 = vrot.slane %v4269_v4, %v6403_v57 }
 0x585   : > { %v4337_v8 = vmul.f32 %v7911_v41, %v4243_v12  ;;  %v4116_v24 = vadd.f32 %v4115_v56, %v7827_v0  ;;  %4479 = vrot.lane.b32.xlu1 %v4336_v17, %s6283_s21  ;;  %v4252_v26 = vmax.f32 %v4114_v9, 0.0  ;;  %v4339_v45 = vmul.f32 %v4303_v15, %v4245_v60 }
 0x586   : > { %v4117_v48 = vpop.f32.mrf.mxu0  ;;  %v4169_v39 = vadd.f32 %v4168_v21, %v7827_v0  ;;  %v4170_v23 = vpop.f32.mrf.mxu1  ;;  %v4254_v16 = vmax.f32 %v4167_v31, 0.0 }
 0x587   : > { %4481 = vrot.lane.b32.xlu0 %v4337_v8, %s6283_s21  ;;  %v4253_v2 = vmax.f32 %v4116_v24, 0.0  ;;  %v4346_v28 = vmul.f32 %v7903_v50, %v4252_v26  ;;  %v4118_v49 = vadd.f32 %v4117_v48, %v7831_v58  ;;  %v4171_v34 = vadd.f32 %v4170_v23, %v7831_v58 }
 0x588   : > { %v4119_v1 = vpop.f32.mrf.mxu0  ;;  %v4255_v6 = vmax.f32 %v4169_v39, 0.0  ;;  %v4172_v59 = vpop.f32.mrf.mxu1  ;;  %v4348_v11 = vmul.f32 %v4299_v27, %v4254_v16 }
 0x589   : > { %4483 = vrot.lane.b32.xlu1 %v4338_v3, %s6283_s21  ;;  %v4347_v46 = vmul.f32 %v7911_v41, %v4253_v2  ;;  %v4120_v40 = vadd.f32 %v4119_v1, %v7831_v58  ;;  %v4262_v54 = vmax.f32 %v4118_v49, 0.0  ;;  %v4173_v20 = vadd.f32 %v4172_v59, %v7831_v58 }
 0x58a   : > { %v4349_v36 = vmul.f32 %v4303_v15, %v4255_v6  ;;  %v4264_v52 = vmax.f32 %v4171_v34, 0.0 }
 0x58b   : > { %4485 = vrot.lane.b32.xlu0 %v4339_v45, %s6283_s21  ;;  %v4263_v30 = vmax.f32 %v4120_v40, 0.0  ;;  %v4356_v25 = vmul.f32 %v7903_v50, %v4262_v54  ;;  %v4265_v7 = vmax.f32 %v4173_v20, 0.0 }
 0x58c   : > { %v4358_v61 = vmul.f32 %v4299_v27, %v4264_v52 }
 0x58d   : > { %4499 = vrot.lane.b32.xlu1 %v4346_v28, %s6283_s21  ;;  %v4357_v51 = vmul.f32 %v7911_v41, %v4263_v30  ;;  %v4359_v44 = vmul.f32 %v4303_v15, %v4265_v7  ;;  %v4328_v41 = vmul.f32 %v4299_v27, %v4234_v43 }
 0x58f   : > { %4501 = vrot.lane.b32.xlu0 %v4347_v46, %s6283_s21 }
 0x591   : > { %4503 = vrot.lane.b32.xlu1 %v4348_v11, %s6283_s21 }
 0x593   : > { %4505 = vrot.lane.b32.xlu0 %v4349_v36, %s6283_s21 }
 0x595   : > { %4519 = vrot.lane.b32.xlu1 %v4356_v25, %s6283_s21 }
 0x597   : > { %4521 = vrot.lane.b32.xlu0 %v4357_v51, %s6283_s21 }
 0x599   : > { %4523 = vrot.lane.b32.xlu1 %v4358_v61, %s6283_s21 }
 0x59a   : > { %v4209_v42 = vpop.f32.mrf.mxu0  ;;  %v4219_v50 = vpop.f32.mrf.mxu1 }
 0x59b   : > { %v4220_v5 = vadd.f32 %v4219_v50, %v7827_v0  ;;  %4525 = vrot.lane.b32.xlu0 %v4359_v44, %s6283_s21 }
 0x59c   : > { %v4211_v22 = vpop.f32.mrf.mxu0  ;;  %v4221_v19 = vpop.f32.mrf.mxu1 }
 0x59d   : > { %v4256_v38 = vmax.f32 %v4220_v5, 0.0  ;;  %v4222_v47 = vadd.f32 %v4221_v19, %v7827_v0  ;;  %4463 = vrot.lane.b32.xlu1 %v4328_v41, %s6283_s21  ;;  %v4212_v48 = vadd.f32 %v4211_v22, %v7833_v18 }
 0x59e   : > { %v4213_v32 = vpop.f32.mrf.mxu0  ;;  %v4223_v35 = vpop.f32.mrf.mxu1 }
 0x59f   : > { %v4350_v12 = vmul.f32 %v4307_v14, %v4256_v38  ;;  %v4257_v17 = vmax.f32 %v4222_v47, 0.0  ;;  %4465 = vrot.lane.b32.xlu0 %v4329_v33, %s6283_s21  ;;  %v4214_v53 = vadd.f32 %v4213_v32, %v7849_v13  ;;  %v4224_v9 = vadd.f32 %v4223_v35, %v7831_v58  ;;  %v8016_v32 = vld [vmem:[%s8385_s6] sm:$0xff] }
 0x5a0   : > { %v4215_v56 = vpop.f32.mrf.mxu0  ;;  %v4225_v8 = vpop.f32.mrf.mxu1  ;;  %v4237_v45 = vmax.f32 %v4212_v48, 0.0  ;;  %v8057_v48 = vld [vmem:[%s8385_s6 + $0x18] sm:$0x1] }
 0x5a1   : > { %v4351_v60 = vmul.f32 %v4311_v62, %v4257_v17  ;;  %v4216_v27 = vadd.f32 %v4215_v56, %v7849_v13  ;;  %v4226_v57 = vadd.f32 %v4225_v8, %v7831_v58  ;;  %v4266_v0 = vmax.f32 %v4224_v9, 0.0  ;;  %4507 = vrot.lane.b32.xlu1 %v4350_v12, %s6283_s21  ;;  %v8028_v56 = vld [vmem:[%s8385_s6 + $0x8] sm:$0xff] }
 0x5a2   : > { %v4210_v58 = vadd.f32 %v4209_v42, %v7833_v18  ;;  %v4246_v13 = vmax.f32 %v4214_v53, 0.0  ;;  %v4331_v23 = vmul.f32 %v4311_v62, %v4237_v45  ;;  %v5815_v18 = vld [vmem:[#allocation6] sm:$0x1] }
 0x5a3   : > { %v4267_v24 = vmax.f32 %v4226_v57, 0.0  ;;  %4509 = vrot.lane.b32.xlu0 %v4351_v60, %s6283_s21  ;;  %v4360_v21 = vmul.f32 %v4307_v14, %v4266_v0  ;;  %v4247_v15 = vmax.f32 %v4216_v27, 0.0  ;;  %v8044_v0 = vld [vmem:[%s8385_s6 + $0x10] sm:$0xff] }
 0x5a4   : > { %v4236_v26 = vmax.f32 %v4210_v58, 0.0  ;;  %v4340_v31 = vmul.f32 %v4307_v14, %v4246_v13 }
 0x5a5   : > { %v4361_v3 = vmul.f32 %v4311_v62, %v4267_v24  ;;  %4527 = vrot.lane.b32.xlu1 %v4360_v21, %s6283_s21  ;;  %v4341_v2 = vmul.f32 %v4311_v62, %v4247_v15 }
 0x5a6   : > { %v4330_v39 = vmul.f32 %v4307_v14, %v4236_v26 }
 0x5a7   : > { %4529 = vrot.lane.b32.xlu0 %v4361_v3, %s6283_s21 }
 0x5a9   : > { %4487 = vrot.lane.b32.xlu1 %v4340_v31, %s6283_s21 }
 0x5ab   : > { %4489 = vrot.lane.b32.xlu0 %v4341_v2, %s6283_s21 }
 0x5ad   : > { %4467 = vrot.lane.b32.xlu1 %v4330_v39, %s6283_s21 }
 0x5af   : > { %4469 = vrot.lane.b32.xlu0 %v4331_v23, %s6283_s21 }
 0x5b1   : > { %5818 = vperm.xlu1 %6129, %v5815_v18  }
 0x5d3   : > { %v4452_v1 = vpop.permute.xlu1 %4451 }
 0x5d4   : > { %4612 = vst.msk [vmem:[#allocation4] sm:$0xff] %vm4611_vm14, %v4452_v1 }
 0x5d5   : > { %v4454_v28 = vpop.permute.xlu0 %4453 }
 0x5d6   : > { %v4531_v16 = vsel %vm1721_vm9, %v4452_v1, %v4454_v28 }
 0x5d7   : > { %v4456_v49 = vpop.permute.xlu1 %4455 }
 0x5d8   : > { %v4532_v46 = vsel %vm1721_vm9, %v4454_v28, %v4456_v49 }
 0x5d9   : > { %v4458_v6 = vpop.permute.xlu0 %4457 }
 0x5da   : > { %v4533_v40 = vsel %vm1721_vm9, %v4456_v49, %v4458_v6 }
 0x5db   : > { %v4472_v59 = vpop.permute.xlu1 %4471  ;;  %v4660_v17 = vld [vmem:[#allocation4] sm:$0xff] }
 0x5dc   : > { %4623 = vst.msk [vmem:[#allocation4 + $0x60] sm:$0xff] %vm4611_vm14, %v4472_v59 }
 0x5dd   : > { %v4474_v11 = vpop.permute.xlu0 %4473 }
 0x5de   : > { %v4540_v54 = vsel %vm1721_vm9, %v4472_v59, %v4474_v11 }
 0x5df   : > { %v4476_v34 = vpop.permute.xlu1 %4475 }
 0x5e0   : > { %v4541_v36 = vsel %vm1721_vm9, %v4474_v11, %v4476_v34 }
 0x5e1   : > { %v4478_v30 = vpop.permute.xlu0 %4477 }
 0x5e2   : > { %v4542_v20 = vsel %vm1721_vm9, %v4476_v34, %v4478_v30 }
 0x5e3   : > { %v4492_v55 = vpop.permute.xlu1 %4491  ;;  %v4672_v62 = vld [vmem:[#allocation4 + $0x60] sm:$0xff] }
 0x5e4   : > { %4634 = vst.msk [vmem:[#allocation4 + $0xc0] sm:$0xff] %vm4611_vm14, %v4492_v55 }
 0x5e5   : > { %v4494_v25 = vpop.permute.xlu0 %4493 }
 0x5e6   : > { %v4549_v52 = vsel %vm1721_vm9, %v4492_v55, %v4494_v25 }
 0x5e7   : > { %v4496_v10 = vpop.permute.xlu1 %4495 }
 0x5e8   : > { %v4550_v51 = vsel %vm1721_vm9, %v4494_v25, %v4496_v10 }
 0x5e9   : > { %v4498_v7 = vpop.permute.xlu0 %4497 }
 0x5ea   : > { %v4551_v43 = vsel %vm1721_vm9, %v4496_v10, %v4498_v7 }
 0x5eb   : > { %v4512_v61 = vpop.permute.xlu1 %4511  ;;  %v4684_v33 = vld [vmem:[#allocation4 + $0xc0] sm:$0xff] }
 0x5ec   : > { %4645 = vst.msk [vmem:[#allocation4 + $0x120] sm:$0xff] %vm4611_vm14, %v4512_v61  ;;  %vm8523_vm14 = vcmask 48128  }
 0x5ed   : > { %v4514_v4 = vpop.permute.xlu0 %4513 }
 0x5ee   : > { %v4558_v29 = vsel %vm1721_vm9, %v4512_v61, %v4514_v4 }
 0x5ef   : > { %v4516_v44 = vpop.permute.xlu1 %4515  ;;  %4745 = vmatprep.subr.mxu1 %v4558_v29 }
 0x5f0   : > { %v4559_v42 = vsel %vm1721_vm9, %v4514_v4, %v4516_v44 }
 0x5f1   : > { %v8000_v50 = vpop.permute.xlu0 %4517 }
 0x5f2   : > { %v4560_v14 = vsel %vm1721_vm9, %v4516_v44, %v8000_v50 }
 0x5f3   : > { %v4460_v5 = vpop.permute.xlu1 %4459  ;;  %v4696_v41 = vld [vmem:[#allocation4 + $0x120] sm:$0xff]  ;;  %4834 = vmatprep.subr.mxu0 %v4560_v14  ;;  %v4671_v14 = vld [vmem:[#allocation4 + $0x58] sm:$0xff] }
 0x5f4   : > { %v8005_v22 = vsel %vm1721_vm9, %v4458_v6, %v4460_v5  ;;  %4746 = vmatpush1.msra.mxu1 %v4696_v41  ;;  %4835 = vmatpush1.msra.mxu0 %v4559_v42  ;;  %v4683_v42 = vld [vmem:[#allocation4 + $0xb8] sm:$0xff] }
 0x5f5   : > { %v8007_v19 = vpop.permute.xlu0 %4461  ;;  %4747 = vmatprep.subr.mxu1 %v4549_v52  ;;  %4836 = vmatprep.subr.mxu0 %v4551_v43  ;;  %v4695_v43 = vld [vmem:[#allocation4 + $0x118] sm:$0xff] }
 0x5f6   : > { %v8011_v38 = vsel %vm1721_vm9, %v4460_v5, %v8007_v19  ;;  %4748 = vmatpush1.msra.mxu1 %v4684_v33  ;;  %4837 = vmatpush1.msra.mxu0 %v4550_v51 }
 0x5f7   : > { %4749 = vmatprep.subr.mxu1 %v4540_v54  ;;  %4838 = vmatprep.subr.mxu0 %v4542_v20  ;;  %v4480_v47 = vpop.permute.xlu1 %4479  ;;  %v4707_v54 = vld [vmem:[#allocation4 + $0x178] sm:$0xff] }
 0x5f8   : > { %4750 = vmatpush1.msra.mxu1 %v4672_v62  ;;  %4839 = vmatpush1.msra.mxu0 %v4541_v36  ;;  %v4543_v35 = vsel %vm1721_vm9, %v4478_v30, %v4480_v47 }
 0x5f9   : > { %v4482_v12 = vpop.permute.xlu0 %4481  ;;  %4751 = vmatprep.subr.mxu1 %v4531_v16  ;;  %4840 = vmatprep.subr.mxu0 %v4533_v40 }
 0x5fa   : > { %v4544_v53 = vsel %vm1721_vm9, %v4480_v47, %v4482_v12  ;;  %4752 = vmatpush1.msra.mxu1 %v4660_v17  ;;  %4841 = vmatpush1.msra.mxu0 %v4532_v46 }
 0x5fb   : > { %5950 = vmatmul.mubr.msk.f32.vlgmr.msra.gmra.mxu1 %vm4708_vm4, %v8016_v32  ;;  %5954 = vmatmul.mubr.msk.f32.vlgmr.msra.gmra.mxu0 %vm4708_vm4, %v8016_v32  ;;  %v4484_v9 = vpop.permute.xlu1 %4483 }
 0x5fc   : > { %4791 = vmatprep.mubr.f32.mxu1 %v6284_v37  ;;  %4880 = vmatprep.mubr.f32.mxu0 %v6284_v37  ;;  %v4545_v8 = vsel %vm1721_vm9, %v4482_v12, %v4484_v9 }
 0x5fd   : > { %v8032_v60 = vpop.permute.xlu0 %4485 }
 0x5fe   : > { %v4546_v27 = vsel %vm1721_vm9, %v4484_v9, %v8032_v60 }
 0x5ff   : > { %5951 = vmatmul.mubr.msk.f32.gmra.mxu1 %vm4708_vm4, %v8028_v56  ;;  %5955 = vmatmul.mubr.msk.f32.gmra.mxu0 %vm4708_vm4, %v8028_v56  ;;  %v4500_v57 = vpop.permute.xlu1 %4499 }
 0x600   : > { %4797 = vmatprep.mubr.f32.mxu1 %v6284_v37  ;;  %4886 = vmatprep.mubr.f32.mxu0 %v6284_v37  ;;  %v4552_v24 = vsel %vm1721_vm9, %v4498_v7, %v4500_v57 }
 0x601   : > { %v4502_v58 = vpop.permute.xlu0 %4501 }
 0x602   : > { %v4553_v13 = vsel %vm1721_vm9, %v4500_v57, %v4502_v58 }
 0x603   : > { %5952 = vmatmul.mubr.msk.f32.gmra.mxu1 %vm4708_vm4, %v8044_v0  ;;  %5956 = vmatmul.mubr.msk.f32.gmra.mxu0 %vm4708_vm4, %v8044_v0  ;;  %v4504_v21 = vpop.permute.xlu1 %4503 }
 0x604   : > { %4803 = vmatprep.mubr.f32.mxu1 %v6284_v37  ;;  %4892 = vmatprep.mubr.f32.mxu0 %v6284_v37  ;;  %v4554_v15 = vsel %vm1721_vm9, %v4502_v58, %v4504_v21 }
 0x605   : > { %v4506_v3 = vpop.permute.xlu0 %4505 }
 0x606   : > { %v4555_v26 = vsel %vm1721_vm9, %v4504_v21, %v4506_v3 }
 0x607   : > { %5953 = vmatmul.mubr.msk.f32.gmra.mxu1 %vm4708_vm4, %v8057_v48  ;;  %5957 = vmatmul.mubr.msk.f32.gmra.mxu0 %vm4708_vm4, %v8057_v48  ;;  %v4520_v31 = vpop.permute.xlu1 %4519 }
 0x608   : > { %4963 = vmatprep.mubr.f32.mxu1 %v6284_v37  ;;  %5052 = vmatprep.mubr.f32.mxu0 %v6284_v37  ;;  %v4561_v45 = vsel %vm1721_vm9, %v8000_v50, %v4520_v31 }
 0x609   : > { %v4522_v2 = vpop.permute.xlu0 %4521 }
 0x60a   : > { %v4562_v39 = vsel %vm1721_vm9, %v4520_v31, %v4522_v2 }
 0x60b   : > { %4923 = vmatprep.subr.mxu1 %v4562_v39  ;;  %v4524_v23 = vpop.permute.xlu1 %4523 }
 0x60c   : > { %4924 = vmatpush1.msra.mxu1 %v4561_v45  ;;  %v4563_v18 = vsel %vm1721_vm9, %v4522_v2, %v4524_v23 }
 0x60d   : > { %v4526_v1 = vpop.permute.xlu0 %4525  ;;  %4925 = vmatprep.subr.mxu1 %v4553_v13 }
 0x60e   : > { %v4564_v28 = vsel %vm1721_vm9, %v4524_v23, %v4526_v1  ;;  %4926 = vmatpush1.msra.mxu1 %v4552_v24 }
 0x60f   : > { %4927 = vmatprep.subr.mxu1 %v4544_v53  ;;  %5012 = vmatprep.subr.mxu0 %v4564_v28  ;;  %v4464_v16 = vpop.permute.xlu1 %4463 }
 0x610   : > { %4928 = vmatpush1.msra.mxu1 %v4543_v35  ;;  %5013 = vmatpush1.msra.mxu0 %v4563_v18  ;;  %v4536_v49 = vsel %vm1721_vm9, %v8007_v19, %v4464_v16 }
 0x611   : > { %v4466_v46 = vpop.permute.xlu0 %4465  ;;  %4929 = vmatprep.subr.mxu1 %v8011_v38  ;;  %5014 = vmatprep.subr.mxu0 %v4555_v26 }
 0x612   : > { %v4537_v6 = vsel %vm1721_vm9, %v4464_v16, %v4466_v46  ;;  %4930 = vmatpush1.msra.mxu1 %v8005_v22  ;;  %5015 = vmatpush1.msra.mxu0 %v4554_v15 }
 0x613   : > { %5016 = vmatprep.subr.mxu0 %v4546_v27  ;;  %5958 = vmatmul.mubr.msk.f32.vlgmr.msra.gmra.mxu1 %vm4708_vm4, %v8016_v32  ;;  %v4508_v40 = vpop.permute.xlu1 %4507 }
 0x614   : > { %5017 = vmatpush1.msra.mxu0 %v4545_v8  ;;  %4969 = vmatprep.mubr.f32.mxu1 %v6284_v37  ;;  %v4556_v59 = vsel %vm1721_vm9, %v4506_v3, %v4508_v40 }
 0x615   : > { %v4510_v11 = vpop.permute.xlu0 %4509  ;;  %5018 = vmatprep.subr.mxu0 %v4537_v6 }
 0x616   : > { %v4557_v34 = vsel %vm1721_vm9, %v4508_v40, %v4510_v11  ;;  %4644 = vst.msk [vmem:[#allocation4 + $0x110] sm:$0xff] %vm1721_vm9, %v4510_v11  ;;  %5019 = vmatpush1.msra.mxu0 %v4536_v49 }
 0x617   : > { %5962 = vmatmul.mubr.msk.f32.vlgmr.msra.gmra.mxu0 %vm4708_vm4, %v8016_v32  ;;  %5959 = vmatmul.mubr.msk.f32.gmra.mxu1 %vm4708_vm4, %v8028_v56  ;;  %v4528_v36 = vpop.permute.xlu1 %4527 }
 0x618   : > { %5190 = vmatprep.subr.mxu0 %v4707_v54  ;;  %5058 = vmatprep.mubr.f32.mxu0 %v6284_v37  ;;  %v4565_v30 = vsel %vm1721_vm9, %v4526_v1, %v4528_v36 }
 0x619   : > { %v4530_v20 = vpop.permute.xlu0 %4529  ;;  %4975 = vmatprep.mubr.f32.mxu1 %v6284_v37 }
 0x61a   : > { %v4566_v55 = vsel %vm1721_vm9, %v4528_v36, %v4530_v20  ;;  %4655 = vst.msk [vmem:[#allocation4 + $0x170] sm:$0xff] %vm1721_vm9, %v4530_v20 }
 0x61b   : > { %5963 = vmatmul.mubr.msk.f32.gmra.mxu0 %vm4708_vm4, %v8028_v56  ;;  %5101 = vmatprep.subr.mxu1 %v4566_v55  ;;  %v4488_v25 = vpop.permute.xlu1 %4487 }
 0x61c   : > { %5102 = vmatpush1.msra.mxu1 %v4565_v30  ;;  %5064 = vmatprep.mubr.f32.mxu0 %v6284_v37  ;;  %v4547_v52 = vsel %vm1721_vm9, %v8032_v60, %v4488_v25 }
 0x61d   : > { %v4490_v10 = vpop.permute.xlu0 %4489  ;;  %5960 = vmatmul.mubr.msk.f32.gmra.mxu1 %vm4708_vm4, %v8044_v0  ;;  %5103 = vmatprep.subr.mxu1 %v4557_v34  ;;  %v4694_v50 = vld [vmem:[#allocation4 + $0x110] sm:$0xff] }
 0x61e   : > { %v4548_v51 = vsel %vm1721_vm9, %v4488_v25, %v4490_v10  ;;  %4633 = vst.msk [vmem:[#allocation4 + $0xb0] sm:$0xff] %vm1721_vm9, %v4490_v10  ;;  %5104 = vmatpush1.msra.mxu1 %v4556_v59  ;;  %4981 = vmatprep.mubr.f32.mxu1 %v6284_v37 }
 0x61f   : > { %5964 = vmatmul.mubr.msk.f32.gmra.mxu0 %vm4708_vm4, %v8044_v0  ;;  %5105 = vmatprep.subr.mxu1 %v4548_v51  ;;  %v4468_v7 = vpop.permute.xlu1 %4467 }
 0x620   : > { %5106 = vmatpush1.msra.mxu1 %v4547_v52  ;;  %5070 = vmatprep.mubr.f32.mxu0 %v6284_v37  ;;  %v4538_v61 = vsel %vm1721_vm9, %v4466_v46, %v4468_v7 }
 0x621   : > { %v4470_v4 = vpop.permute.xlu0 %4469  ;;  %v4706_v29 = vld [vmem:[#allocation4 + $0x170] sm:$0xff]  ;;  %5961 = vmatmul.mubr.msk.f32.gmra.mxu1 %vm4708_vm4, %v8057_v48 }
 0x622   : > { %v4539_v44 = vsel %vm1721_vm9, %v4468_v7, %v4470_v4  ;;  %4622 = vst.msk [vmem:[#allocation4 + $0x50] sm:$0xff] %vm1721_vm9, %v4470_v4  ;;  %5191 = vmatpush1.msra.mxu0 %v4706_v29  ;;  %5141 = vmatprep.mubr.f32.mxu1 %v6284_v37  ;;  %vm5302_vm9 = vcmask 581632  }
 0x623   : > { %5192 = vmatprep.subr.mxu0 %v4695_v43  ;;  %5965 = vmatmul.mubr.msk.f32.gmra.mxu0 %vm4708_vm4, %v8057_v48 }
 0x624   : > { %5193 = vmatpush1.msra.mxu0 %v4694_v50  ;;  %5107 = vmatprep.subr.mxu1 %v4539_v44 }
 0x625   : > { %5194 = vmatprep.subr.mxu0 %v4683_v42  ;;  %v4682_v5 = vld [vmem:[#allocation4 + $0xb0] sm:$0xff]  ;;  %5108 = vmatpush1.msra.mxu1 %v4538_v61 }
 0x626   : > { %5195 = vmatpush1.msra.mxu0 %v4682_v5  ;;  %5966 = vmatmul.mubr.msk.f32.vlgmr.msra.gmra.mxu1 %vm4708_vm4, %v8016_v32 }
 0x627   : > { %5196 = vmatprep.subr.mxu0 %v4671_v14  ;;  %5230 = vmatprep.mubr.f32.mxu0 %v6284_v37 }
 0x628   : > { %5147 = vmatprep.mubr.f32.mxu1 %v6284_v37 }
 0x629   : > { %v4670_v41 = vld [vmem:[#allocation4 + $0x50] sm:$0xff] }
 0x62a   : > { %5197 = vmatpush1.msra.mxu0 %v4670_v41  ;;  %5967 = vmatmul.mubr.msk.f32.gmra.mxu1 %vm4708_vm4, %v8028_v56 }
 0x62b   : > { %5970 = vmatmul.mubr.msk.f32.vlgmr.msra.gmra.mxu0 %vm4708_vm4, %v8016_v32  ;;  %5153 = vmatprep.mubr.f32.mxu1 %v6284_v37 }
 0x62c   : > { %5236 = vmatprep.mubr.f32.mxu0 %v6284_v37 }
 0x62e   : > { %5968 = vmatmul.mubr.msk.f32.gmra.mxu1 %vm4708_vm4, %v8044_v0 }
 0x62f   : > { %5159 = vmatprep.mubr.f32.mxu1 %v6284_v37  ;;  %5971 = vmatmul.mubr.msk.f32.gmra.mxu0 %vm4708_vm4, %v8028_v56 }
 0x630   : > { %5242 = vmatprep.mubr.f32.mxu0 %v6284_v37 }
 0x632   : > { %5969 = vmatmul.mubr.msk.f32.gmra.mxu1 %vm4708_vm4, %v8057_v48 }
 0x633   : > { %5972 = vmatmul.mubr.msk.f32.gmra.mxu0 %vm4708_vm4, %v8044_v0 }
 0x634   : > { %5248 = vmatprep.mubr.f32.mxu0 %v6284_v37 }
 0x637   : > { %5973 = vmatmul.mubr.msk.f32.gmra.mxu0 %vm4708_vm4, %v8057_v48 }
 0x6bb   : > { %v4787_v22 = vpop.f32.mrf.mxu1  ;;  %v4876_v19 = vpop.f32.mrf.mxu0 }
 0x6bc   : > { %5255 = vst [vmem:[#allocation5] sm:$0xff] %v4787_v22  ;;  %5257 = vst [vmem:[#allocation5 + $0x10] sm:$0xff] %v4876_v19 }
 0x6bd   : > { %v4789_v33 = vpop.f32.mrf.mxu1  ;;  %v4878_v38 = vpop.f32.mrf.mxu0 }
 0x6be   : > { %5256 = vst [vmem:[#allocation5 + $0x8] sm:$0xff] %v4789_v33  ;;  %5258 = vst [vmem:[#allocation5 + $0x18] sm:$0xff] %v4878_v38 }
 0x6bf   : > { %v4793_v62 = vpop.f32.mrf.mxu1  ;;  %v4882_v47 = vpop.f32.mrf.mxu0 }
 0x6c0   : > { %5267 = vst [vmem:[#allocation5 + $0x60] sm:$0xff] %v4793_v62  ;;  %5269 = vst [vmem:[#allocation5 + $0x70] sm:$0xff] %v4882_v47 }
 0x6c1   : > { %v4795_v32 = vpop.f32.mrf.mxu1  ;;  %v4884_v35 = vpop.f32.mrf.mxu0 }
 0x6c2   : > { %5268 = vst [vmem:[#allocation5 + $0x68] sm:$0xff] %v4795_v32  ;;  %5270 = vst [vmem:[#allocation5 + $0x78] sm:$0xff] %v4884_v35 }
 0x6c3   : > { %v4799_v37 = vpop.f32.mrf.mxu1  ;;  %v4888_v12 = vpop.f32.mrf.mxu0 }
 0x6c4   : > { %5279 = vst [vmem:[#allocation5 + $0xc0] sm:$0xff] %v4799_v37  ;;  %5281 = vst [vmem:[#allocation5 + $0xd0] sm:$0xff] %v4888_v12 }
 0x6c5   : > { %v4801_v17 = vpop.f32.mrf.mxu1  ;;  %v4890_v53 = vpop.f32.mrf.mxu0  ;;  %v5312_v2 = vld [vmem:[#allocation5 + $0x1] ss:$8 sm:$0xf]  ;;  %v5333_v49 = vld [vmem:[#allocation5 + $0x2] ss:$8 sm:$0xf] }
 0x6c6   : > { %5280 = vst [vmem:[#allocation5 + $0xc8] sm:$0xff] %v4801_v17  ;;  %5282 = vst [vmem:[#allocation5 + $0xd8] sm:$0xff] %v4890_v53  ;;  %v5354_v11 = vld [vmem:[#allocation5 + $0x3] ss:$8 sm:$0xf] }
 0x6c7   : > { %v4805_v9 = vpop.f32.mrf.mxu1  ;;  %v4894_v56 = vpop.f32.mrf.mxu0  ;;  %v5375_v55 = vld [vmem:[#allocation5 + $0x4] ss:$8 sm:$0xf]  ;;  %v5396_v61 = vld [vmem:[#allocation5 + $0x5] ss:$8 sm:$0xf] }
 0x6c8   : > { %5293 = vst [vmem:[#allocation5 + $0x130] sm:$0x1] %v4894_v56  ;;  %v5417_v41 = vld [vmem:[#allocation5 + $0x6] ss:$8 sm:$0xf] }
 0x6c9   : > { %v4807_v8 = vpop.f32.mrf.mxu1  ;;  %v4896_v60 = vpop.f32.mrf.mxu0  ;;  %v5438_v47 = vld [vmem:[#allocation5 + $0x7] ss:$8 sm:$0xf]  ;;  %v5459_v17 = vld [vmem:[#allocation5 + $0x60] ss:$8 sm:$0xf] }
 0x6ca   : > { %5292 = vst [vmem:[#allocation5 + $0x128] sm:$0x1] %v4807_v8  ;;  %5294 = vst [vmem:[#allocation5 + $0x138] sm:$0x1] %v4896_v60 }
 0x6cb   : > { %v5480_v8 = vld [vmem:[#allocation5 + $0x61] ss:$8 sm:$0xf] }
 0x6d3   : > { %v4965_v27 = vpop.f32.mrf.mxu1 }
 0x6d4   : > { %5259 = vst [vmem:[#allocation5 + $0x20] sm:$0xff] %v4965_v27 }
 0x6d5   : > { %v4967_v57 = vpop.f32.mrf.mxu1 }
 0x6d6   : > { %5260 = vst [vmem:[#allocation5 + $0x28] sm:$0xff] %v4967_v57 }
 0x6d7   : > { %v5054_v0 = vpop.f32.mrf.mxu0  ;;  %v4971_v24 = vpop.f32.mrf.mxu1 }
 0x6d8   : > { %5261 = vst [vmem:[#allocation5 + $0x30] sm:$0xff] %v5054_v0  ;;  %5271 = vst [vmem:[#allocation5 + $0x80] sm:$0xff] %v4971_v24  ;;  %v5501_v0 = vld [vmem:[#allocation5 + $0x62] ss:$8 sm:$0xf] }
 0x6d9   : > { %v5056_v58 = vpop.f32.mrf.mxu0  ;;  %v4973_v13 = vpop.f32.mrf.mxu1 }
 0x6da   : > { %5262 = vst [vmem:[#allocation5 + $0x38] sm:$0xff] %v5056_v58  ;;  %5272 = vst [vmem:[#allocation5 + $0x88] sm:$0xff] %v4973_v13 }
 0x6db   : > { %v5060_v21 = vpop.f32.mrf.mxu0 }
 0x6dc   : > { %5273 = vst [vmem:[#allocation5 + $0x90] sm:$0xff] %v5060_v21  ;;  %v5522_v21 = vld [vmem:[#allocation5 + $0x63] ss:$8 sm:$0xf] }
 0x6dd   : > { %v4977_v48 = vpop.f32.mrf.mxu1  ;;  %v5062_v15 = vpop.f32.mrf.mxu0 }
 0x6de   : > { %5283 = vst [vmem:[#allocation5 + $0xe0] sm:$0xff] %v4977_v48  ;;  %5274 = vst [vmem:[#allocation5 + $0x98] sm:$0xff] %v5062_v15 }
 0x6df   : > { %v4979_v3 = vpop.f32.mrf.mxu1  ;;  %v5066_v26 = vpop.f32.mrf.mxu0 }
 0x6e0   : > { %5284 = vst [vmem:[#allocation5 + $0xe8] sm:$0xff] %v4979_v3  ;;  %5285 = vst [vmem:[#allocation5 + $0xf0] sm:$0xff] %v5066_v26  ;;  %v5543_v26 = vld [vmem:[#allocation5 + $0x64] ss:$8 sm:$0xf] }
 0x6e1   : > { %v4983_v31 = vpop.f32.mrf.mxu1  ;;  %v5068_v45 = vpop.f32.mrf.mxu0  ;;  %v5313_v39 = vld [vmem:[#allocation5 + $0x1] ss:$8 sm:$0xf0]  ;;  %v5334_v28 = vld [vmem:[#allocation5 + $0x2] ss:$8 sm:$0xf0] }
 0x6e2   : > { %5295 = vst [vmem:[#allocation5 + $0x140] sm:$0x1] %v4983_v31  ;;  %5286 = vst [vmem:[#allocation5 + $0xf8] sm:$0xff] %v5068_v45  ;;  %v5314_v23 = vor.u32 %v5313_v39, %v5312_v2  ;;  %v5335_v6 = vor.u32 %v5334_v28, %v5333_v49  ;;  %v5355_v40 = vld [vmem:[#allocation5 + $0x3] ss:$8 sm:$0xf0] }
 0x6e3   : > { %v4985_v18 = vpop.f32.mrf.mxu1  ;;  %v5072_v1 = vpop.f32.mrf.mxu0  ;;  %v5356_v34 = vor.u32 %v5355_v40, %v5354_v11  ;;  %v5376_v30 = vld [vmem:[#allocation5 + $0x4] ss:$8 sm:$0xf0]  ;;  %v5397_v51 = vld [vmem:[#allocation5 + $0x5] ss:$8 sm:$0xf0] }
 0x6e4   : > { %5296 = vst [vmem:[#allocation5 + $0x148] sm:$0x1] %v4985_v18  ;;  %5297 = vst [vmem:[#allocation5 + $0x150] sm:$0x1] %v5072_v1  ;;  %5319 = vrot.lane.b32.xlu1 %v5314_v23, %s8490_s25  ;;  %v5377_v10 = vor.u32 %v5376_v30, %v5375_v55  ;;  %v5398_v44 = vor.u32 %v5397_v51, %v5396_v61 }
 0x6e5   : > { %v5074_v16 = vpop.f32.mrf.mxu0  ;;  %v5418_v50 = vld [vmem:[#allocation5 + $0x6] ss:$8 sm:$0xf0]  ;;  %v5439_v38 = vld [vmem:[#allocation5 + $0x7] ss:$8 sm:$0xf0] }
 0x6e6   : > { %5298 = vst [vmem:[#allocation5 + $0x158] sm:$0x1] %v5074_v16  ;;  %v5143_v46 = vpop.f32.mrf.mxu1  ;;  %v5419_v19 = vor.u32 %v5418_v50, %v5417_v41  ;;  %v5440_v35 = vor.u32 %v5439_v38, %v5438_v47  ;;  %v5460_v12 = vld [vmem:[#allocation5 + $0x60] ss:$8 sm:$0xf0] }
 0x6e7   : > { %5263 = vst [vmem:[#allocation5 + $0x40] sm:$0xff] %v5143_v46  ;;  %v5461_v53 = vor.u32 %v5460_v12, %v5459_v17  ;;  %v5481_v56 = vld [vmem:[#allocation5 + $0x61] ss:$8 sm:$0xf0] }
 0x6e8   : > { %v5145_v59 = vpop.f32.mrf.mxu1  ;;  %5340 = vrot.lane.b32.xlu1 %v5335_v6, %s8491_s17  ;;  %v5482_v60 = vor.u32 %v5481_v56, %v5480_v8  ;;  %v5502_v57 = vld [vmem:[#allocation5 + $0x62] ss:$8 sm:$0xf0]  ;;  %v5523_v13 = vld [vmem:[#allocation5 + $0x63] ss:$8 sm:$0xf0] }
 0x6e9   : > { %5264 = vst [vmem:[#allocation5 + $0x48] sm:$0xff] %v5145_v59  ;;  %v5503_v24 = vor.u32 %v5502_v57, %v5501_v0  ;;  %v5524_v48 = vor.u32 %v5523_v13, %v5522_v21  ;;  %v5544_v3 = vld [vmem:[#allocation5 + $0x64] ss:$8 sm:$0xf0]  ;;  %v8186_v0 = vpop.permute.xlu1 %5818 }
 0x6ea   : > { %v5149_v54 = vpop.f32.mrf.mxu1  ;;  %v5545_v31 = vor.u32 %v5544_v3, %v5543_v26  ;;  %v5565_v2 = vld [vmem:[#allocation5 + $0x65] ss:$8 sm:$0xf0]  ;;  %v5586_v1 = vld [vmem:[#allocation5 + $0x66] ss:$8 sm:$0xf0] }
 0x6eb   : > { %v5232_v36 = vpop.f32.mrf.mxu0  ;;  %5275 = vst [vmem:[#allocation5 + $0xa0] sm:$0xff] %v5149_v54  ;;  %v5564_v39 = vld [vmem:[#allocation5 + $0x65] ss:$8 sm:$0xf] }
 0x6ec   : > { %5265 = vst [vmem:[#allocation5 + $0x50] sm:$0xff] %v5232_v36  ;;  %v5151_v20 = vpop.f32.mrf.mxu1  ;;  %5361 = vrot.lane.b32.xlu1 %v5356_v34, %s8492_s28  ;;  %v5566_v23 = vor.u32 %v5565_v2, %v5564_v39  ;;  %v5585_v28 = vld [vmem:[#allocation5 + $0x66] ss:$8 sm:$0xf] }
 0x6ed   : > { %5276 = vst [vmem:[#allocation5 + $0xa8] sm:$0xff] %v5151_v20  ;;  %v5234_v25 = vpop.f32.mrf.mxu0  ;;  %v5587_v16 = vor.u32 %v5586_v1, %v5585_v28  ;;  %v5607_v46 = vld [vmem:[#allocation5 + $0x67] ss:$8 sm:$0xf0] }
 0x6ee   : > { %v5155_v52 = vpop.f32.mrf.mxu1  ;;  %v5606_v6 = vld [vmem:[#allocation5 + $0x67] ss:$8 sm:$0xf]  ;;  %v5628_v11 = vld [vmem:[#allocation5 + $0xc0] ss:$8 sm:$0xf0] }
 0x6ef   : > { %5287 = vst [vmem:[#allocation5 + $0x100] sm:$0xff] %v5155_v52  ;;  %v5238_v7 = vpop.f32.mrf.mxu0  ;;  %v5608_v40 = vor.u32 %v5607_v46, %v5606_v6  ;;  %v5627_v54 = vld [vmem:[#allocation5 + $0xc0] ss:$8 sm:$0xf] }
 0x6f0   : > { %v5157_v43 = vpop.f32.mrf.mxu1  ;;  %5382 = vrot.lane.b32.xlu1 %v5377_v10, %s8493_s7  ;;  %5277 = vst [vmem:[#allocation5 + $0xb0] sm:$0xff] %v5238_v7  ;;  %v5629_v34 = vor.u32 %v5628_v11, %v5627_v54  ;;  %v5649_v30 = vld [vmem:[#allocation5 + $0xc1] ss:$8 sm:$0xf0] }
 0x6f1   : > { %5288 = vst [vmem:[#allocation5 + $0x108] sm:$0xff] %v5157_v43  ;;  %v5240_v4 = vpop.f32.mrf.mxu0  ;;  %v5648_v20 = vld [vmem:[#allocation5 + $0xc1] ss:$8 sm:$0xf] }
 0x6f2   : > { %v5161_v29 = vpop.f32.mrf.mxu1  ;;  %v5650_v55 = vor.u32 %v5649_v30, %v5648_v20  ;;  %v5670_v52 = vld [vmem:[#allocation5 + $0xc2] ss:$8 sm:$0xf0]  ;;  %v5691_v43 = vld [vmem:[#allocation5 + $0xc3] ss:$8 sm:$0xf0] }
 0x6f3   : > { %v5316_v42 = vld [vmem:[#allocation5 + $0x41] ss:$8 sm:$0x7]  ;;  %5299 = vst [vmem:[#allocation5 + $0x160] sm:$0x1] %v5161_v29  ;;  %v5244_v14 = vpop.f32.mrf.mxu0 }
 0x6f4   : > { %5321 = vrot.lane.b32.xlu0 %v5316_v42, %s8490_s25  ;;  %5403 = vrot.lane.b32.xlu1 %v5398_v44, %s8503_s15  ;;  %5289 = vst [vmem:[#allocation5 + $0x110] sm:$0xff] %v5244_v14  ;;  %v5163_v5 = vpop.f32.mrf.mxu1  ;;  %v5337_v33 = vld [vmem:[#allocation5 + $0x42] ss:$8 sm:$0x7] }
 0x6f5   : > { %v5246_v22 = vpop.f32.mrf.mxu0  ;;  %5300 = vst [vmem:[#allocation5 + $0x168] sm:$0x1] %v5163_v5  ;;  %v5358_v37 = vld [vmem:[#allocation5 + $0x43] ss:$8 sm:$0x7] }
 0x6f6   : > { %5290 = vst.msk [vmem:[#allocation5 + $0x118] sm:$0xff] %vm4373_vm13, %v5246_v22  ;;  %v5379_v9 = vld [vmem:[#allocation5 + $0x44] ss:$8 sm:$0x7] }
 0x6f7   : > { %v5250_v62 = vpop.f32.mrf.mxu0  ;;  %v5400_v27 = vld [vmem:[#allocation5 + $0x45] ss:$8 sm:$0x7]  ;;  %v5421_v58 = vld [vmem:[#allocation5 + $0x46] ss:$8 sm:$0x7] }
 0x6f8   : > { %5342 = vrot.lane.b32.xlu0 %v5337_v33, %s8491_s17  ;;  %5424 = vrot.lane.b32.xlu1 %v5419_v19, %s8498_s10  ;;  %5301 = vst [vmem:[#allocation5 + $0x170] sm:$0x1] %v5250_v62  ;;  %v5442_v15 = vld [vmem:[#allocation5 + $0x47] ss:$8 sm:$0x7] }
 0x6f9   : > { %v5252_v32 = vpop.f32.mrf.mxu0  ;;  %v5463_v45 = vld [vmem:[#allocation5 + $0xa0] ss:$8 sm:$0x7]  ;;  %v5484_v18 = vld [vmem:[#allocation5 + $0xa1] ss:$8 sm:$0x7] }
 0x6fa   : > { %5303 = vst.msk [vmem:[#allocation5 + $0x178] sm:$0x1] %vm5302_vm9, %v5252_v32  ;;  %v5505_v49 = vld [vmem:[#allocation5 + $0xa2] ss:$8 sm:$0x7]  ;;  %vm8525_vm9 = vcmask 39936  }
 0x6fb   : > { %v5526_v59 = vld [vmem:[#allocation5 + $0xa3] ss:$8 sm:$0x7]  ;;  %v5547_v36 = vld [vmem:[#allocation5 + $0xa4] ss:$8 sm:$0x7] }
 0x6fc   : > { %5363 = vrot.lane.b32.xlu0 %v5358_v37, %s8492_s28  ;;  %5445 = vrot.lane.b32.xlu1 %v5440_v35, %s8499_s30  ;;  %s8504_s28 = smov 48   ;;  %v5568_v25 = vld [vmem:[#allocation5 + $0xa5] ss:$8 sm:$0x7] }
 0x6fd   : > { %v5669_v10 = vld [vmem:[#allocation5 + $0xc2] ss:$8 sm:$0xf]  ;;  %v5589_v7 = vld [vmem:[#allocation5 + $0xa6] ss:$8 sm:$0x7] }
 0x6fe   : > { %v5671_v51 = vor.u32 %v5670_v52, %v5669_v10  ;;  %v5690_v61 = vld [vmem:[#allocation5 + $0xc3] ss:$8 sm:$0xf]  ;;  %v5610_v29 = vld [vmem:[#allocation5 + $0xa7] ss:$8 sm:$0x7] }
 0x6ff   : > { %v5692_v4 = vor.u32 %v5691_v43, %v5690_v61  ;;  %v5712_v44 = vld [vmem:[#allocation5 + $0xcc] ss:$8 sm:$0xf0]  ;;  %v5631_v14 = vld [vmem:[#allocation5 + $0x100] ss:$8 sm:$0x7] }
 0x700   : > { %5384 = vrot.lane.b32.xlu0 %v5379_v9, %s8493_s7  ;;  %5466 = vrot.lane.b32.xlu1 %v5461_v53, %s8500_s20  ;;  %s8505_s7 = smov 47   ;;  %v5711_v42 = vld [vmem:[#allocation5 + $0xcc] ss:$8 sm:$0xf] }
 0x701   : > { %v5713_v50 = vor.u32 %v5712_v44, %v5711_v42  ;;  %v5733_v5 = vld [vmem:[#allocation5 + $0xcd] ss:$8 sm:$0xf0]  ;;  %v5652_v19 = vld [vmem:[#allocation5 + $0x101] ss:$8 sm:$0x7] }
 0x702   : > { %v5732_v41 = vld [vmem:[#allocation5 + $0xcd] ss:$8 sm:$0xf]  ;;  %v5754_v33 = vld [vmem:[#allocation5 + $0xce] ss:$8 sm:$0xf0] }
 0x703   : > { %v5734_v22 = vor.u32 %v5733_v5, %v5732_v41  ;;  %v5753_v38 = vld [vmem:[#allocation5 + $0xce] ss:$8 sm:$0xf]  ;;  %v5673_v47 = vld [vmem:[#allocation5 + $0x102] ss:$8 sm:$0x7] }
 0x704   : > { %5405 = vrot.lane.b32.xlu0 %v5400_v27, %s8503_s15  ;;  %5487 = vrot.lane.b32.xlu1 %v5482_v60, %s8501_s24  ;;  %v5755_v62 = vor.u32 %v5754_v33, %v5753_v38  ;;  %v5775_v32 = vld [vmem:[#allocation5 + $0xcf] ss:$8 sm:$0xf0]  ;;  %v5694_v12 = vld [vmem:[#allocation5 + $0x103] ss:$8 sm:$0x7] }
 0x705   : > { %v5774_v35 = vld [vmem:[#allocation5 + $0xcf] ss:$8 sm:$0xf]  ;;  %v5799_v17 = vld [vmem:[#allocation5 + $0x168] ss:$8 sm:$0x7] }
 0x706   : > { %v5776_v37 = vor.u32 %v5775_v32, %v5774_v35  ;;  %v5715_v53 = vld [vmem:[#allocation5 + $0x10c] ss:$8 sm:$0x7]  ;;  %v5736_v9 = vld [vmem:[#allocation5 + $0x10d] ss:$8 sm:$0x7] }
 0x707   : > { %v5757_v56 = vld [vmem:[#allocation5 + $0x10e] ss:$8 sm:$0x7]  ;;  %v5778_v8 = vld [vmem:[#allocation5 + $0x10f] ss:$8 sm:$0x7] }
 0x708   : > { %5426 = vrot.lane.b32.xlu0 %v5421_v58, %s8498_s10  ;;  %5508 = vrot.lane.b32.xlu1 %v5503_v24, %s8504_s28  ;;  %v5796_v60 = vld [vmem:[#allocation5 + $0x128] ss:$8 sm:$0xf0] }
 0x709   : > { %v5795_v27 = vld [vmem:[#allocation5 + $0x128] ss:$8 sm:$0xf] }
 0x70a   : > { %v5797_v57 = vor.u32 %v5796_v60, %v5795_v27  ;;  %v5308_v44 = vld [vmem:[#allocation5 + $0x40] ss:$8 sm:$0x3] }
 0x70c   : > { %5447 = vrot.lane.b32.xlu0 %v5442_v15, %s8499_s30  ;;  %5529 = vrot.lane.b32.xlu1 %v5524_v48, %s8505_s7  ;;  %s8508_s30 = smov 95  }
 0x710   : > { %5468 = vrot.lane.b32.xlu0 %v5463_v45, %s8500_s20  ;;  %5550 = vrot.lane.b32.xlu1 %v5545_v31, %s8475_s14  ;;  %s8506_s20 = smov 8  }
 0x714   : > { %5489 = vrot.lane.b32.xlu0 %v5484_v18, %s8501_s24  ;;  %5571 = vrot.lane.b32.xlu1 %v5566_v23, %s8476_s18  ;;  %s8507_s24 = smov 96  }
 0x718   : > { %5510 = vrot.lane.b32.xlu0 %v5505_v49, %s8504_s28  ;;  %5592 = vrot.lane.b32.xlu1 %v5587_v16, %s8477_s23 }
 0x71c   : > { %5531 = vrot.lane.b32.xlu0 %v5526_v59, %s8505_s7  ;;  %5613 = vrot.lane.b32.xlu1 %v5608_v40, %s8506_s20 }
 0x720   : > { %5552 = vrot.lane.b32.xlu0 %v5547_v36, %s8475_s14  ;;  %5634 = vrot.lane.b32.xlu1 %v5629_v34, %s8486_s22  ;;  %s8509_s14 = smov 94  }
 0x724   : > { %5573 = vrot.lane.b32.xlu0 %v5568_v25, %s8476_s18  ;;  %5655 = vrot.lane.b32.xlu1 %v5650_v55, %s8487_s19  ;;  %s8510_s18 = smov 93  }
 0x728   : > { %5594 = vrot.lane.b32.xlu0 %v5589_v7, %s8477_s23  ;;  %5676 = vrot.lane.b32.xlu1 %v5671_v51, %s8488_s26  ;;  %s8511_s23 = smov 92   ;;  %v5305_v51 = vld [vmem:[#allocation5] ss:$8 sm:$0xf0] }
 0x72c   : > { %5615 = vrot.lane.b32.xlu0 %v5610_v29, %s8506_s20  ;;  %5697 = vrot.lane.b32.xlu1 %v5692_v4, %s8489_s29  ;;  %v5304_v4 = vld [vmem:[#allocation5] ss:$8 sm:$0xf] }
 0x72d   : > { %v5306_v5 = vor.u32 %v5305_v51, %v5304_v4 }
 0x730   : > { %5636 = vrot.lane.b32.xlu0 %v5631_v14, %s8486_s22  ;;  %5718 = vrot.lane.b32.xlu1 %v5713_v50, %s8507_s24  ;;  %s6019_s22 = smul.u32 10, %s8542_s12 }
 0x734   : > { %5657 = vrot.lane.b32.xlu0 %v5652_v19, %s8487_s19  ;;  %5739 = vrot.lane.b32.xlu1 %v5734_v22, %s8508_s30 }
 0x738   : > { %5678 = vrot.lane.b32.xlu0 %v5673_v47, %s8488_s26  ;;  %5760 = vrot.lane.b32.xlu1 %v5755_v62, %s8509_s14 }
 0x73c   : > { %5699 = vrot.lane.b32.xlu0 %v5694_v12, %s8489_s29  ;;  %5781 = vrot.lane.b32.xlu1 %v5776_v37, %s8510_s18  ;;  %s357_s29 = scalar_lea.vmem %s8388_s9, %s6019_s22 }
 0x740   : > { %5720 = vrot.lane.b32.xlu0 %v5715_v53, %s8507_s24  ;;  %5804 = vrot.lane.b32.xlu1 %v5799_v17, %s8511_s23 }
 0x744   : > { %5741 = vrot.lane.b32.xlu0 %v5736_v9, %s8508_s30 }
 0x748   : > { %5762 = vrot.lane.b32.xlu0 %v5757_v56, %s8509_s14 }
 0x74c   : > { %5783 = vrot.lane.b32.xlu0 %v5778_v8, %s8510_s18 }
 0x750   : > { %5802 = vrot.lane.b32.xlu0 %v5797_v57, %s8511_s23 }
 0x756   : > { %v5320_v24 = vpop.permute.xlu1 %5319 }
 0x757   : > { %v5323_v20 = vrot.slane %v5320_v24, 1 }
 0x75a   : > { %v5341_v58 = vpop.permute.xlu1 %5340 }
 0x75b   : > { %v5344_v10 = vrot.slane %v5341_v58, 1 }
 0x75e   : > { %v5362_v13 = vpop.permute.xlu1 %5361 }
 0x75f   : > { %v5365_v29 = vrot.slane %v5362_v13, 1 }
 0x762   : > { %v8188_v21 = vpop.permute.xlu1 %5382 }
 0x763   : > { %v5386_v38 = vrot.slane %v8188_v21, 1 }
 0x766   : > { %v5322_v48 = vpop.permute.xlu0 %5321  ;;  %v8190_v15 = vpop.permute.xlu1 %5403 }
 0x767   : > { %v5324_v30 = vrot.slane %v5322_v48, 1  ;;  %v5407_v12 = vrot.slane %v8190_v15, 1 }
 0x769   : > { %v5325_v7 = vsel %vm1411_vm2, %v5323_v20, %v5324_v30  ;;  %v5327_v43 = vsel %vm1413_vm11, %v5322_v48, %v5324_v30 }
 0x76a   : > { %v5343_v3 = vpop.permute.xlu0 %5342  ;;  %v8192_v26 = vpop.permute.xlu1 %5424  ;;  %v5326_v41 = vsel %vm1413_vm11, %v5320_v24, %v5325_v7  ;;  %v5331_v22 = vadd.f32 %v5327_v43, %v5308_v44  ;;  %vm8512_vm11 = vcmask 384000  }
 0x76b   : > { %v5345_v55 = vrot.slane %v5343_v3, 1  ;;  %v5330_v17 = vadd.f32 %v5326_v41, %v5306_v5  ;;  %v5428_v27 = vrot.slane %v8192_v26, 1 }
 0x76d   : > { %v5346_v42 = vsel %vm1411_vm2, %v5344_v10, %v5345_v55  ;;  %v5348_v50 = vsel %vm1435_vm5, %v5343_v3, %v5345_v55 }
 0x76e   : > { %v5364_v31 = vpop.permute.xlu0 %5363  ;;  %v8194_v45 = vpop.permute.xlu1 %5445  ;;  %v5347_v35 = vsel %vm1435_vm5, %v5341_v58, %v5346_v42  ;;  %v5352_v37 = vadd.f32 %v5348_v50, %v5331_v22  ;;  %vm8513_vm5 = vcmask 375808  }
 0x76f   : > { %v5366_v61 = vrot.slane %v5364_v31, 1  ;;  %v5351_v48 = vadd.f32 %v5347_v35, %v5330_v17 }
 0x771   : > { %v5367_v62 = vsel %vm1411_vm2, %v5365_v29, %v5366_v61  ;;  %v5369_v47 = vsel %vm1457_vm8, %v5364_v31, %v5366_v61 }
 0x772   : > { %v5385_v2 = vpop.permute.xlu0 %5384  ;;  %v8196_v39 = vpop.permute.xlu1 %5466  ;;  %v5368_v8 = vsel %vm1457_vm8, %v5362_v13, %v5367_v62  ;;  %v5373_v60 = vadd.f32 %v5369_v47, %v5352_v37  ;;  %v5449_v13 = vrot.slane %v8194_v45, 1 }
 0x773   : > { %v5387_v14 = vrot.slane %v5385_v2, 1  ;;  %v5372_v20 = vadd.f32 %v5368_v8, %v5351_v48 }
 0x775   : > { %v5388_v53 = vsel %vm1411_vm2, %v5386_v38, %v5387_v14  ;;  %v5390_v9 = vsel %vm1479_vm7, %v5385_v2, %v5387_v14 }
 0x776   : > { %v5406_v23 = vpop.permute.xlu0 %5405  ;;  %v8198_v18 = vpop.permute.xlu1 %5487  ;;  %v5389_v2 = vsel %vm1479_vm7, %v8188_v21, %v5388_v53  ;;  %v5394_v30 = vadd.f32 %v5390_v9, %v5373_v60  ;;  %vm8517_vm7 = vcmask 359424  }
 0x777   : > { %v5408_v32 = vrot.slane %v5406_v23, 1  ;;  %v5393_v4 = vadd.f32 %v5389_v2, %v5372_v20  ;;  %v5491_v50 = vrot.slane %v8198_v18, 1 }
 0x779   : > { %v5409_v58 = vsel %vm1411_vm2, %v5407_v12, %v5408_v32  ;;  %v5411_v3 = vsel %vm1589_vm3, %v5406_v23, %v5408_v32  ;;  %v5470_v23 = vrot.slane %v8196_v39, 1 }
 0x77a   : > { %v5427_v1 = vpop.permute.xlu0 %5426  ;;  %v8200_v28 = vpop.permute.xlu1 %5508  ;;  %v5410_v7 = vsel %vm1589_vm3, %v8190_v15, %v5409_v58  ;;  %v5415_v43 = vadd.f32 %v5411_v3, %v5394_v30  ;;  %vm8514_vm3 = vmmov %vm8512_vm11 }
 0x77b   : > { %v5429_v56 = vrot.slane %v5427_v1, 1  ;;  %v5414_v14 = vadd.f32 %v5410_v7, %v5393_v4  ;;  %v5512_v62 = vrot.slane %v8200_v28, 1 }
 0x77d   : > { %v5430_v55 = vsel %vm1411_vm2, %v5428_v27, %v5429_v56  ;;  %v5432_v10 = vsel %vm1611_vm12, %v5427_v1, %v5429_v56 }
 0x77e   : > { %v8202_v16 = vpop.permute.xlu0 %5447  ;;  %v8204_v49 = vpop.permute.xlu1 %5529  ;;  %v5431_v1 = vsel %vm1611_vm12, %v8192_v26, %v5430_v55  ;;  %v5436_v42 = vadd.f32 %v5432_v10, %v5415_v43  ;;  %vm8519_vm12 = vcmask 64512  }
 0x77f   : > { %v5450_v31 = vrot.slane %v8202_v16, 1  ;;  %v5435_v47 = vadd.f32 %v5431_v1, %v5414_v14  ;;  %v5533_v17 = vrot.slane %v8204_v49, 1  ;;  %vm8522_vm13 = vmmov %vm8519_vm12 }
 0x781   : > { %v5451_v21 = vsel %vm1411_vm2, %v5449_v13, %v5450_v31  ;;  %v5453_v29 = vsel %vm1633_vm0, %v8202_v16, %v5450_v31 }
 0x782   : > { %v8206_v46 = vpop.permute.xlu0 %5468  ;;  %v8208_v6 = vpop.permute.xlu1 %5550  ;;  %v5452_v16 = vsel %vm1633_vm0, %v8194_v45, %v5451_v21  ;;  %v5457_v38 = vadd.f32 %v5453_v29, %v5436_v42  ;;  %vm8520_vm0 = vmmov %vm8517_vm7 }
 0x783   : > { %v5471_v51 = vrot.slane %v8206_v46, 1  ;;  %v5456_v53 = vadd.f32 %v5452_v16, %v5435_v47  ;;  %v5554_v60 = vrot.slane %v8208_v6, 1 }
 0x785   : > { %v5472_v5 = vsel %vm1411_vm2, %v5470_v23, %v5471_v51  ;;  %v5474_v41 = vsel %vm1655_vm6, %v8206_v46, %v5471_v51 }
 0x786   : > { %v8210_v40 = vpop.permute.xlu0 %5489  ;;  %v8212_v59 = vpop.permute.xlu1 %5571  ;;  %v5473_v46 = vsel %vm1655_vm6, %v8196_v39, %v5472_v5  ;;  %v5478_v12 = vadd.f32 %v5474_v41, %v5457_v38  ;;  %vm8521_vm6 = vcmask 56320  }
 0x787   : > { %v5492_v44 = vrot.slane %v8210_v40, 1  ;;  %v5477_v39 = vadd.f32 %v5473_v46, %v5456_v53  ;;  %vm8524_vm4 = vmmov %vm8521_vm6 }
 0x789   : > { %v5493_v32 = vsel %vm1411_vm2, %v5491_v50, %v5492_v44  ;;  %v5495_v35 = vsel %vm1677_vm10, %v8210_v40, %v5492_v44 }
 0x78a   : > { %v8214_v11 = vpop.permute.xlu0 %5510  ;;  %v8216_v54 = vpop.permute.xlu1 %5592  ;;  %v5494_v8 = vsel %vm1677_vm10, %v8198_v18, %v5493_v32  ;;  %v5499_v40 = vadd.f32 %v5495_v35, %v5478_v12  ;;  %v5575_v18 = vrot.slane %v8212_v59, 1  ;;  %vm8516_vm10 = vmmov %vm8513_vm5 }
 0x78b   : > { %v5513_v22 = vrot.slane %v8214_v11, 1  ;;  %v5498_v30 = vadd.f32 %v5494_v8, %v5477_v39  ;;  %v5596_v51 = vrot.slane %v8216_v54, 1 }
 0x78d   : > { %v5514_v45 = vsel %vm1411_vm2, %v5512_v62, %v5513_v22  ;;  %v5516_v9 = vsel %vm1787_vm15, %v8214_v11, %v5513_v22 }
 0x78e   : > { %v8218_v34 = vpop.permute.xlu0 %5531  ;;  %v8220_v36 = vpop.permute.xlu1 %5613  ;;  %v5515_v11 = vsel %vm1787_vm15, %v8200_v28, %v5514_v45  ;;  %v5520_v2 = vadd.f32 %v5516_v9, %v5499_v40  ;;  %vm8515_vm15 = vcmask 367616  }
 0x78f   : > { %v5534_v37 = vrot.slane %v8218_v34, 1  ;;  %v5519_v43 = vadd.f32 %v5515_v11, %v5498_v30  ;;  %v5617_v29 = vrot.slane %v8220_v36, 1  ;;  %vm8518_vm8 = vmmov %vm8515_vm15 }
 0x791   : > { %v5535_v58 = vsel %vm1411_vm2, %v5533_v17, %v5534_v37  ;;  %v5537_v3 = vsel %vm8512_vm11, %v8218_v34, %v5534_v37  ;;  %vm8526_vm11 = vmmov %vm8523_vm14 }
 0x792   : > { %v8222_v25 = vpop.permute.xlu0 %5552  ;;  %v8224_v52 = vpop.permute.xlu1 %5634  ;;  %v5536_v10 = vsel %vm8514_vm3, %v8204_v49, %v5535_v58  ;;  %v5541_v34 = vadd.f32 %v5537_v3, %v5520_v2  ;;  %vm8528_vm3 = vmmov %vm8525_vm9 }
 0x793   : > { %v5555_v56 = vrot.slane %v8222_v25, 1  ;;  %v5540_v49 = vadd.f32 %v5536_v10, %v5519_v43  ;;  %v5638_v5 = vrot.slane %v8224_v52, 1 }
 0x795   : > { %v5556_v13 = vsel %vm1411_vm2, %v5554_v60, %v5555_v56  ;;  %v5558_v20 = vsel %vm8513_vm5, %v8222_v25, %v5555_v56  ;;  %vm8527_vm5 = vcmask 31744  }
 0x796   : > { %v8231_v19 = vpop.permute.xlu0 %5573  ;;  %v8233_v33 = vpop.permute.xlu1 %5655  ;;  %v5557_v25 = vsel %vm8516_vm10, %v8208_v6, %v5556_v13  ;;  %v5562_v21 = vadd.f32 %v5558_v20, %v5541_v34  ;;  %vm8530_vm10 = vmmov %vm8527_vm5 }
 0x797   : > { %v5576_v31 = vrot.slane %v8231_v19, 1  ;;  %v5561_v6 = vadd.f32 %v5557_v25, %v5540_v49 }
 0x799   : > { %v5577_v28 = vsel %vm1411_vm2, %v5575_v18, %v5576_v31  ;;  %v5579_v23 = vsel %vm8515_vm15, %v8231_v19, %v5576_v31  ;;  %vm8529_vm15 = vcmask 785408  }
 0x79a   : > { %v8244_v57 = vpop.permute.xlu0 %5594  ;;  %v8246_v24 = vpop.permute.xlu1 %5676  ;;  %v5578_v19 = vsel %vm8518_vm8, %v8212_v59, %v5577_v28  ;;  %v5583_v14 = vadd.f32 %v5579_v23, %v5562_v21  ;;  %vm8532_vm8 = vmmov %vm8529_vm15 }
 0x79b   : > { %v5597_v55 = vrot.slane %v8244_v57, 1  ;;  %v5582_v32 = vadd.f32 %v5578_v19, %v5561_v6  ;;  %v5680_v17 = vrot.slane %v8246_v24, 1 }
 0x79d   : > { %v5598_v1 = vsel %vm1411_vm2, %v5596_v51, %v5597_v55  ;;  %v5600_v42 = vsel %vm8517_vm7, %v8244_v57, %v5597_v55  ;;  %v5659_v57 = vrot.slane %v8233_v33, 1  ;;  %vm8531_vm7 = vcmask 777216  }
 0x79e   : > { %v8260_v61 = vpop.permute.xlu0 %5615  ;;  %v8269_v15 = vpop.permute.xlu1 %5697  ;;  %v5599_v62 = vsel %vm8520_vm0, %v8216_v54, %v5598_v1  ;;  %v5604_v47 = vadd.f32 %v5600_v42, %v5583_v14  ;;  %vm8534_vm0 = vmmov %vm8531_vm7 }
 0x79f   : > { %v5618_v4 = vrot.slane %v8260_v61, 1  ;;  %v5603_v45 = vadd.f32 %v5599_v62, %v5582_v32 }
 0x7a1   : > { %v5619_v22 = vsel %vm1411_vm2, %v5617_v29, %v5618_v4  ;;  %v5621_v16 = vsel %vm8519_vm12, %v8260_v61, %v5618_v4  ;;  %vm8533_vm12 = vcmask 769024  }
 0x7a2   : > { %v5637_v26 = vpop.permute.xlu0 %5636  ;;  %v8292_v48 = vpop.permute.xlu1 %5718  ;;  %v5620_v46 = vsel %vm8522_vm13, %v8220_v36, %v5619_v22  ;;  %v5625_v12 = vadd.f32 %v5621_v16, %v5604_v47  ;;  %vm8536_vm13 = vcmask 760832  }
 0x7a3   : > { %v5639_v50 = vrot.slane %v5637_v26, 1  ;;  %v5624_v60 = vadd.f32 %v5620_v46, %v5603_v45  ;;  %v5722_v11 = vrot.slane %v8292_v48, 1 }
 0x7a5   : > { %v5640_v59 = vsel %vm1411_vm2, %v5638_v5, %v5639_v50  ;;  %v5642_v35 = vsel %vm8521_vm6, %v5637_v26, %v5639_v50  ;;  %v5701_v26 = vrot.slane %v8269_v15, 1  ;;  %vm8535_vm6 = vmmov %vm8533_vm12 }
 0x7a6   : > { %v5658_v27 = vpop.permute.xlu0 %5657  ;;  %v8315_v44 = vpop.permute.xlu1 %5739  ;;  %v5641_v8 = vsel %vm8524_vm4, %v8224_v52, %v5640_v59  ;;  %v5646_v40 = vadd.f32 %v5642_v35, %v5625_v12  ;;  %vm8538_vm4 = vcmask 752640   ;;  %v5824_v12 = vrot.slane %v8186_v0, %v6406_v63 }
 0x7a7   : > { %v5660_v38 = vrot.slane %v5658_v27, 1  ;;  %v5645_v2 = vadd.f32 %v5641_v8, %v5624_v60  ;;  %v5743_v34 = vrot.slane %v8315_v44, 1 }
 0x7a9   : > { %v5661_v54 = vsel %vm1411_vm2, %v5659_v57, %v5660_v38  ;;  %v5663_v9 = vsel %vm8523_vm14, %v5658_v27, %v5660_v38  ;;  %vm8537_vm14 = vmmov %vm8536_vm13 }
 0x7aa   : > { %v5679_v7 = vpop.permute.xlu0 %5678  ;;  %v5761_v61 = vpop.permute.xlu1 %5760  ;;  %v5662_v3 = vsel %vm8526_vm11, %v8233_v33, %v5661_v54  ;;  %v5667_v31 = vadd.f32 %v5663_v9, %v5646_v40 }
 0x7ab   : > { %v5681_v37 = vrot.slane %v5679_v7, 1  ;;  %v5666_v10 = vadd.f32 %v5662_v3, %v5645_v2  ;;  %v5764_v28 = vrot.slane %v5761_v61, 1 }
 0x7ad   : > { %v5682_v36 = vsel %vm1411_vm2, %v5680_v17, %v5681_v37  ;;  %v5684_v39 = vsel %vm8525_vm9, %v5679_v7, %v5681_v37  ;;  %vm8539_vm9 = vmmov %vm8538_vm4 }
 0x7ae   : > { %v5700_v41 = vpop.permute.xlu0 %5699  ;;  %v5683_v13 = vsel %vm8528_vm3, %v8246_v24, %v5682_v36  ;;  %v5688_v20 = vadd.f32 %v5684_v39, %v5667_v31  ;;  %v5782_v55 = vpop.permute.xlu1 %5781 }
 0x7af   : > { %v5702_v56 = vrot.slane %v5700_v41, 1  ;;  %v5687_v4 = vadd.f32 %v5683_v13, %v5666_v10  ;;  %v5785_v6 = vrot.slane %v5782_v55, 1 }
 0x7b1   : > { %v5703_v18 = vsel %vm1411_vm2, %v5701_v26, %v5702_v56  ;;  %v5705_v52 = vsel %vm8527_vm5, %v5700_v41, %v5702_v56 }
 0x7b2   : > { %v5721_v53 = vpop.permute.xlu0 %5720  ;;  %v5704_v7 = vsel %vm8530_vm10, %v8269_v15, %v5703_v18  ;;  %v5709_v43 = vadd.f32 %v5705_v52, %v5688_v20  ;;  %v5805_v1 = vpop.permute.xlu1 %5804 }
 0x7b3   : > { %v5723_v58 = vrot.slane %v5721_v53, 1  ;;  %v5708_v42 = vadd.f32 %v5704_v7, %v5687_v4  ;;  %v5807_v16 = vrot.slane %v5805_v1, 1 }
 0x7b5   : > { %v5724_v33 = vsel %vm1411_vm2, %v5722_v11, %v5723_v58  ;;  %v5726_v51 = vsel %vm8529_vm15, %v5721_v53, %v5723_v58 }
 0x7b6   : > { %v5742_v27 = vpop.permute.xlu0 %5741  ;;  %v5725_v29 = vsel %vm8532_vm8, %v8292_v48, %v5724_v33  ;;  %v5730_v49 = vadd.f32 %v5726_v51, %v5709_v43 }
 0x7b7   : > { %v5744_v30 = vrot.slane %v5742_v27, 1  ;;  %v5729_v41 = vadd.f32 %v5725_v29, %v5708_v42 }
 0x7b9   : > { %v5745_v25 = vsel %vm1411_vm2, %v5743_v34, %v5744_v30  ;;  %v5747_v24 = vsel %vm8531_vm7, %v5742_v27, %v5744_v30 }
 0x7ba   : > { %v5763_v23 = vpop.permute.xlu0 %5762  ;;  %v5746_v19 = vsel %vm8534_vm0, %v8315_v44, %v5745_v25  ;;  %v5751_v14 = vadd.f32 %v5747_v24, %v5730_v49  ;;  %v5810_v44 = vsel %vm8538_vm4, %v5805_v1, %v5807_v16 }
 0x7bb   : > { %v5765_v21 = vrot.slane %v5763_v23, 1  ;;  %v5750_v57 = vadd.f32 %v5746_v19, %v5729_v41 }
 0x7bd   : > { %v5766_v50 = vsel %vm1411_vm2, %v5764_v28, %v5765_v21  ;;  %v5768_v15 = vsel %vm8533_vm12, %v5763_v23, %v5765_v21 }
 0x7be   : > { %v5784_v5 = vpop.permute.xlu0 %5783  ;;  %v5772_v38 = vadd.f32 %v5768_v15, %v5751_v14  ;;  %v5767_v48 = vsel %vm8535_vm6, %v5761_v61, %v5766_v50 }
 0x7bf   : > { %v5786_v22 = vrot.slane %v5784_v5, 1  ;;  %v5771_v37 = vadd.f32 %v5767_v48, %v5750_v57 }
 0x7c1   : > { %v5787_v62 = vsel %vm1411_vm2, %v5785_v6, %v5786_v22  ;;  %v5789_v47 = vsel %vm8536_vm13, %v5784_v5, %v5786_v22 }
 0x7c2   : > { %v5793_v32 = vadd.f32 %v5789_v47, %v5772_v38  ;;  %v5803_v59 = vpop.permute.xlu0 %5802  ;;  %v5788_v35 = vsel %vm8537_vm14, %v5782_v55, %v5787_v62 }
 0x7c3   : > { %v5806_v46 = vrot.slane %v5803_v59, 1  ;;  %v5792_v61 = vadd.f32 %v5788_v35, %v5771_v37 }
 0x7c4   : > { %v5814_v17 = vadd.f32 %v5810_v44, %v5793_v32 }
 0x7c5   : > { %v5808_v53 = vsel %vm1411_vm2, %v5806_v46, %v5807_v16 }
 0x7c6   : > { %v5826_v45 = vadd.f32 %v5824_v12, %v5814_v17  ;;  %v5809_v54 = vsel %vm8539_vm9, %v5803_v59, %v5808_v53 }
 0x7c7   : > { %v5813_v9 = vadd.f32 %v5809_v54, %v5792_v61 }
 0x7c8   : > { %5828 = vst.msk [vmem:[%s357_s29 + $0x8] sm:$0x3] %vm6531_vm1, %v5826_v45 }
 0x7c9   : > { %v5825_v8 = vadd.f32 %v5824_v12, %v5813_v9 }
 0x7cb   : > { %5827 = vst [vmem:[%s357_s29] sm:$0xff] %v5825_v8 }
 0x7cc PF: > { %s23_s11 = sadd.s32 1, %s6202_s11  }
 0x7cd   : > { %p20_p3 = scmp.ge.s32.totalorder %s23_s11, 4  }
 0x7cf   :  { %22 = sbr.rel (!%p20_p3) target bundleno = 5 (0x5), region = 305 }
 0x7d4   :  { %5848 = vsyncpa [#allocation8], 1 }
 0x7d5   :  { %5850 = vsyncpa [#allocation8 + $0x1], 1 }
 0x7d6   :  { %5851 = vsyncpa [#allocation10], 1 }

</bundles_post_ra>
